<compile_context>
chip_gen: v5e
topology: v5e:2x2
jax: 0.10.0
libtpu: 0.0.40
codegen_flags: <defaults>
</compile_context>

<pallas_src>
import functools
import math

import jax
import jax.numpy as jnp
from jax.experimental import pallas as pl
from jax.experimental.pallas import tpu as pltpu


# ------------------------------ in-kernel helpers ---------------------------

def _layernorm(x, g, b, eps):
    mu = jnp.mean(x, axis=-1, keepdims=True)
    var = jnp.mean(jnp.square(x - mu), axis=-1, keepdims=True)
    return (x - mu) * jax.lax.rsqrt(var + eps) * g + b


def _compiler_params():
    return pltpu.CompilerParams(dimension_semantics=("parallel",))


def _pick_batch_tile(batch, seq, target_rows=128):
    # largest divisor of `batch` whose tile has <= target_rows token rows
    tb = max(1, min(batch, target_rows // max(seq, 1)))
    while batch % tb:
        tb -= 1
    return tb


# ------------------------------ Pallas kernels ------------------------------

def embed_pe_kernel(x_ref, w_ref, b_ref, pe_ref, o_ref):
    # y = x @ W_emb + b_emb + pe[s]      (bf16 MXU, f32 accumulate/epilogue)
    tb, s, f = x_ref.shape
    e = w_ref.shape[1]
    x2 = x_ref[...].reshape(tb * s, f)
    y = jnp.dot(x2.astype(jnp.bfloat16), w_ref[...],
                preferred_element_type=jnp.float32) + b_ref[...]
    o_ref[...] = y.reshape(tb, s, e) + pe_ref[...][None, :, :]


def encoder_layer_kernel(x_ref, wqkv_ref, bqkv_ref, wo_ref, bo_ref,
                         g1_ref, be1_ref, w1_ref, bf1_ref,
                         w2_ref, bf2_ref, g2_ref, be2_ref, *rest,
                         n_head, eps, fuse_encoder_norm):
    # One full post-norm TransformerEncoderLayer on a (tb, S, E) batch tile.
    if fuse_encoder_norm:
        g3_ref, be3_ref, o_ref = rest
    else:
        (o_ref,) = rest

    tb, s, e = x_ref.shape
    tm = tb * s
    dh = e // n_head
    scale = 1.0 / math.sqrt(dh)
    bf16 = jnp.bfloat16

    x2 = x_ref[...].reshape(tm, e)                                  # f32

    # ---- fused QKV projection (single wide MXU matmul) ----
    qkv = jnp.dot(x2.astype(bf16), wqkv_ref[...],
                  preferred_element_type=jnp.float32) + bqkv_ref[...]
    q = qkv[:, :e].reshape(tb, s, e)
    k = qkv[:, e:2 * e].reshape(tb, s, e)
    v = qkv[:, 2 * e:].reshape(tb, s, e)

    # ---- multi-head self-attention, all batch rows of this tile at once ----
    attn = jnp.zeros((tm, e), jnp.float32)
    for h in range(n_head):
        sl = slice(h * dh, (h + 1) * dh)
        qh = q[..., sl].astype(bf16)                                # (tb,S,dh)
        kh = k[..., sl].astype(bf16)
        vh = v[..., sl].astype(bf16)
        sc = jnp.einsum('bqd,bkd->bqk', qh, kh,
                        preferred_element_type=jnp.float32) * scale
        m = jnp.max(sc, axis=-1, keepdims=True)
        p = jnp.exp(sc - m)
        l = jnp.sum(p, axis=-1, keepdims=True)
        p = p * pl.reciprocal(l, approx=True)
        oh = jnp.einsum('bqk,bkd->bqd', p.astype(bf16), vh,
                        preferred_element_type=jnp.float32)         # (tb,S,dh)
        # out-projection folded per head: concat_h(o_h) @ Wo == sum_h o_h @ Wo[h]
        attn = attn + jnp.dot(oh.reshape(tm, dh).astype(bf16), wo_ref[h],
                              preferred_element_type=jnp.float32)
    attn = attn + bo_ref[...]

    # ---- residual + LayerNorm 1 (f32) ----
    h1 = _layernorm(x2 + attn, g1_ref[...], be1_ref[...], eps)

    # ---- feed-forward (bf16 MXU, f32 epilogue) ----
    ff = jnp.dot(h1.astype(bf16), w1_ref[...],
                 preferred_element_type=jnp.float32) + bf1_ref[...]
    ff = jnp.maximum(ff, 0.0)
    ff = jnp.dot(ff.astype(bf16), w2_ref[...],
                 preferred_element_type=jnp.float32) + bf2_ref[...]

    # ---- residual + LayerNorm 2 (f32) ----
    h2 = _layernorm(h1 + ff, g2_ref[...], be2_ref[...], eps)

    # ---- optional per-encoder final LayerNorm, fused (no zeros residual) ----
    if fuse_encoder_norm:
        h2 = _layernorm(h2, g3_ref[...], be3_ref[...], eps)

    o_ref[...] = h2.reshape(tb, s, e)


def out_proj_kernel(x_ref, w_ref, b_ref, o_ref):
    # Lane-dense output projection: W is zero-padded to (E, 128).
    tb, s, e = x_ref.shape
    npad = w_ref.shape[1]
    x2 = x_ref[...].reshape(tb * s, e)
    y = jnp.dot(x2.astype(jnp.bfloat16), w_ref[...],
                preferred_element_type=jnp.float32) + b_ref[...]
    o_ref[...] = y.reshape(tb, s, npad)


# ------------------------------ kernel wrappers ------------------------------

def embed_pe(x, w, b, pe, tb):
    B, S, F = x.shape
    E = w.shape[1]
    return pl.pallas_call(
        embed_pe_kernel,
        out_shape=jax.ShapeDtypeStruct((B, S, E), jnp.float32),
        grid=(B // tb,),
        in_specs=[pl.BlockSpec((tb, S, F), lambda i: (i, 0, 0)),
                  pl.BlockSpec((F, E), lambda i: (0, 0)),
                  pl.BlockSpec((1, E), lambda i: (0, 0)),
                  pl.BlockSpec((S, E), lambda i: (0, 0))],
        out_specs=pl.BlockSpec((tb, S, E), lambda i: (i, 0, 0)),
        compiler_params=_compiler_params(),
    )(x, w, b.reshape(1, E), pe)


def encoder_layer(h, p, n_head, tb, enc_norm=None, eps=1e-5):
    B, S, E = h.shape
    NH = p['lin1_w'].shape[1]
    dh = E // n_head
    fuse = enc_norm is not None

    args = [h,
            p['in_proj_w'], p['in_proj_b'].reshape(1, 3 * E),
            p['out_proj_w_heads'], p['out_proj_b'].reshape(1, E),
            p['ln1_g'].reshape(1, E), p['ln1_b'].reshape(1, E),
            p['lin1_w'], p['lin1_b'].reshape(1, NH),
            p['lin2_w'], p['lin2_b'].reshape(1, E),
            p['ln2_g'].reshape(1, E), p['ln2_b'].reshape(1, E)]
    in_specs = [pl.BlockSpec((tb, S, E), lambda i: (i, 0, 0)),
                pl.BlockSpec((E, 3 * E), lambda i: (0, 0)),
                pl.BlockSpec((1, 3 * E), lambda i: (0, 0)),
                pl.BlockSpec((n_head, dh, E), lambda i: (0, 0, 0)),
                pl.BlockSpec((1, E), lambda i: (0, 0)),
                pl.BlockSpec((1, E), lambda i: (0, 0)),
                pl.BlockSpec((1, E), lambda i: (0, 0)),
                pl.BlockSpec((E, NH), lambda i: (0, 0)),
                pl.BlockSpec((1, NH), lambda i: (0, 0)),
                pl.BlockSpec((NH, E), lambda i: (0, 0)),
                pl.BlockSpec((1, E), lambda i: (0, 0)),
                pl.BlockSpec((1, E), lambda i: (0, 0)),
                pl.BlockSpec((1, E), lambda i: (0, 0))]
    if fuse:
        g3, b3 = enc_norm
        args += [g3.reshape(1, E), b3.reshape(1, E)]
        in_specs += [pl.BlockSpec((1, E), lambda i: (0, 0)),
                     pl.BlockSpec((1, E), lambda i: (0, 0))]

    return pl.pallas_call(
        functools.partial(encoder_layer_kernel, n_head=n_head, eps=eps,
                          fuse_encoder_norm=fuse),
        out_shape=jax.ShapeDtypeStruct((B, S, E), jnp.float32),
        grid=(B // tb,),
        in_specs=in_specs,
        out_specs=pl.BlockSpec((tb, S, E), lambda i: (i, 0, 0)),
        compiler_params=_compiler_params(),
    )(*args)


def out_proj(h, w_pad, b_pad, tb):
    B, S, E = h.shape
    Np = w_pad.shape[1]
    y = pl.pallas_call(
        out_proj_kernel,
        out_shape=jax.ShapeDtypeStruct((B, S, Np), jnp.float32),
        grid=(B // tb,),
        in_specs=[pl.BlockSpec((tb, S, E), lambda i: (i, 0, 0)),
                  pl.BlockSpec((E, Np), lambda i: (0, 0)),
                  pl.BlockSpec((1, Np), lambda i: (0, 0))],
        out_specs=pl.BlockSpec((tb, S, Np), lambda i: (i, 0, 0)),
        compiler_params=_compiler_params(),
    )(h, w_pad, b_pad.reshape(1, Np))
    return y[..., :1]                               # real output column


# ------------------------------ model forward --------------------------------

def transformer_forward(x, params, n_head):
    # x: (B, S, F)  ->  (B, S, 1)
    B, S, _ = x.shape
    tb = _pick_batch_tile(B, S)

    h = embed_pe(x, params['emb_w'], params['emb_b'], params['pe'][:S], tb)

    for enc in params['encoders']:
        n_layers = len(enc['layers'])
        for li, layer in enumerate(enc['layers']):
            norm = (enc['norm_g'], enc['norm_b']) if li == n_layers - 1 else None
            h = encoder_layer(h, layer, n_head, tb, enc_norm=norm)

    return out_proj(h, params['out_w_pad'], params['out_b_pad'], tb)


# ------------------------------ parameter init --------------------------------

def init_params(key, n_features, n_encoders, n_head, emb_dim, n_hidden,
                n_layers, max_len=64):
    keys = iter(jax.random.split(key, 256))
    bf16 = jnp.bfloat16
    dh = emb_dim // n_head

    def xavier(k, fan_in, fan_out):
        bound = math.sqrt(6.0 / (fan_in + fan_out))
        return jax.random.uniform(k, (fan_in, fan_out), jnp.float32,
                                  -bound, bound)

    params = {
        'emb_w': xavier(next(keys), n_features, emb_dim).astype(bf16),
        'emb_b': jnp.zeros((emb_dim,), jnp.float32),
    }

    # standard sinusoidal positional encoding table
    pos = jnp.arange(max_len, dtype=jnp.float32)[:, None]
    div = jnp.exp(jnp.arange(0, emb_dim, 2, dtype=jnp.float32)
                  * (-math.log(10000.0) / emb_dim))
    pe = jnp.zeros((max_len, emb_dim), jnp.float32)
    pe = pe.at[:, 0::2].set(jnp.sin(pos * div))
    pe = pe.at[:, 1::2].set(jnp.cos(pos * div))
    params['pe'] = pe

    encoders = []
    for _ in range(n_encoders):
        layers = []
        for _ in range(n_layers):
            out_proj_w = xavier(next(keys), emb_dim, emb_dim)       # (E_in, E_out)
            layers.append({
                'in_proj_w': xavier(next(keys), emb_dim, 3 * emb_dim).astype(bf16),
                'in_proj_b': jnp.zeros((3 * emb_dim,), jnp.float32),
                # (H, dh, E): head-sliced rows of the out-projection weight
                'out_proj_w_heads': out_proj_w.reshape(n_head, dh, emb_dim).astype(bf16),
                'out_proj_b': jnp.zeros((emb_dim,), jnp.float32),
                'lin1_w': xavier(next(keys), emb_dim, n_hidden).astype(bf16),
                'lin1_b': jnp.zeros((n_hidden,), jnp.float32),
                'lin2_w': xavier(next(keys), n_hidden, emb_dim).astype(bf16),
                'lin2_b': jnp.zeros((emb_dim,), jnp.float32),
                'ln1_g': jnp.ones((emb_dim,), jnp.float32),
                'ln1_b': jnp.zeros((emb_dim,), jnp.float32),
                'ln2_g': jnp.ones((emb_dim,), jnp.float32),
                'ln2_b': jnp.zeros((emb_dim,), jnp.float32),
            })
        encoders.append({'layers': layers,
                         'norm_g': jnp.ones((emb_dim,), jnp.float32),
                         'norm_b': jnp.zeros((emb_dim,), jnp.float32)})
    params['encoders'] = encoders

    # output Linear(E, 1) padded to 128 lanes for a lane-dense store
    out_w = xavier(next(keys), emb_dim, 1)
    params['out_w_pad'] = (jnp.zeros((emb_dim, 128), jnp.float32)
                           .at[:, :1].set(out_w)).astype(bf16)
    params['out_b_pad'] = jnp.zeros((128,), jnp.float32)
    # NOTE: biases are synthetically zero-initialized (torch keeps its default
    # uniform bias init, which _reset_parameters does not touch).
    return params


# ----------------------------------- main ------------------------------------

if __name__ == "__main__":
    # config: n_features=4, n_encoders=1, n_head=2, emb_dim=32, n_hidden=64,
    #         n_layers=2, dropout=0.0 (eval), fc_layer_units=None
    B, S = 32, 8
    n_features, n_encoders, n_head = 4, 1, 2
    emb_dim, n_hidden, n_layers = 32, 64, 2

    key = jax.random.PRNGKey(0)
    kx, kp = jax.random.split(key)
    x = jax.random.normal(kx, (B, S, n_features), dtype=jnp.float32)
    params = init_params(kp, n_features, n_encoders, n_head, emb_dim,
                         n_hidden, n_layers)

    fwd = jax.jit(transformer_forward, static_argnums=(2,))
    y = fwd(x, params, n_head)
    y = jax.block_until_ready(y)
    assert y.shape == (B, S, 1), y.shape
    assert bool(jnp.all(jnp.isfinite(y)))
    print("KERNEL_OK")
</pallas_src>

<mosaic_0001>
module attributes {stable_mosaic.version = 11 : i64} {
  func.func @embed_pe_kernel(%arg0: i32, %arg1: memref<16x8x4xf32, #tpu.memory_space<vmem>>, %arg2: memref<4x32xbf16, #tpu.memory_space<vmem>>, %arg3: memref<1x32xf32, #tpu.memory_space<vmem>>, %arg4: memref<8x32xf32, #tpu.memory_space<vmem>>, %arg5: memref<16x8x32xf32, #tpu.memory_space<vmem>>) attributes {dimension_semantics = [#tpu.dimension_semantics<parallel>], iteration_bounds = array<i64: 2>, scalar_prefetch = 0 : i64, scratch_operands = 0 : i64, tpu.core_type = #tpu.core_type<tc>, window_params = [{transform_indices = @transform_0, window_bounds = array<i64: 16, 8, 4>}, {pipeline_mode = #tpu.pipeline_mode<synchronous>, transform_indices = @transform_1, window_bounds = array<i64: 4, 32>}, {pipeline_mode = #tpu.pipeline_mode<synchronous>, transform_indices = @transform_2, window_bounds = array<i64: 1, 32>}, {pipeline_mode = #tpu.pipeline_mode<synchronous>, transform_indices = @transform_3, window_bounds = array<i64: 8, 32>}, {transform_indices = @transform_4, window_bounds = array<i64: 16, 8, 32>}]} {
    %c0 = arith.constant 0 : index
    %c0_0 = arith.constant 0 : index
    %c0_1 = arith.constant 0 : index
    %0 = vector.load %arg1[%c0, %c0_0, %c0_1] : memref<16x8x4xf32, #tpu.memory_space<vmem>>, vector<16x8x4xf32>
    %1 = vector.shape_cast %0 : vector<16x8x4xf32> to vector<128x4xf32>
    %2 = arith.truncf %1 : vector<128x4xf32> to vector<128x4xbf16>
    %c0_2 = arith.constant 0 : index
    %c0_3 = arith.constant 0 : index
    %3 = vector.load %arg2[%c0_2, %c0_3] : memref<4x32xbf16, #tpu.memory_space<vmem>>, vector<4x32xbf16>
    %cst = arith.constant dense<0.000000e+00> : vector<128x32xf32>
    %4 = tpu.matmul %2, %3, %cst {dimension_numbers = #tpu.dot_dimension_numbers<[1], [0], [0], [1], [0, 0, 1, 1], [], []>} : vector<128x4xbf16>, vector<4x32xbf16>, vector<128x32xf32> -> vector<128x32xf32>
    %c0_4 = arith.constant 0 : index
    %c0_5 = arith.constant 0 : index
    %5 = vector.load %arg3[%c0_4, %c0_5] : memref<1x32xf32, #tpu.memory_space<vmem>>, vector<1x32xf32>
    %6 = vector.broadcast %5 : vector<1x32xf32> to vector<128x32xf32>
    %7 = arith.addf %4, %6 : vector<128x32xf32>
    %8 = vector.shape_cast %7 : vector<128x32xf32> to vector<16x8x32xf32>
    %c0_6 = arith.constant 0 : index
    %c0_7 = arith.constant 0 : index
    %9 = vector.load %arg4[%c0_6, %c0_7] : memref<8x32xf32, #tpu.memory_space<vmem>>, vector<8x32xf32>
    %10 = vector.shape_cast %9 : vector<8x32xf32> to vector<1x8x32xf32>
    %11 = vector.broadcast %10 : vector<1x8x32xf32> to vector<16x8x32xf32>
    %12 = arith.addf %8, %11 : vector<16x8x32xf32>
    %c0_8 = arith.constant 0 : index
    %c0_9 = arith.constant 0 : index
    %c0_10 = arith.constant 0 : index
    %13 = vector.load %arg5[%c0_8, %c0_9, %c0_10] : memref<16x8x32xf32, #tpu.memory_space<vmem>>, vector<16x8x32xf32>
    tpu.vector_store %arg5[%c0_8, %c0_9, %c0_10], %12 {strides = array<i32>} : memref<16x8x32xf32, #tpu.memory_space<vmem>>, vector<16x8x32xf32>,
    return
  }
  func.func @transform_0(%arg0: i32) -> (i32, i32, i32) {
    %c0_i32 = arith.constant 0 : i32
    %c0_i32_0 = arith.constant 0 : i32
    %c0_i32_1 = arith.constant 0 : i32
    return %arg0, %c0_i32, %c0_i32_0 : i32, i32, i32
  }
  func.func @transform_1(%arg0: i32) -> (i32, i32) {
    %c0_i32 = arith.constant 0 : i32
    %c0_i32_0 = arith.constant 0 : i32
    %c0_i32_1 = arith.constant 0 : i32
    return %c0_i32, %c0_i32_0 : i32, i32
  }
  func.func @transform_2(%arg0: i32) -> (i32, i32) {
    %c0_i32 = arith.constant 0 : i32
    %c0_i32_0 = arith.constant 0 : i32
    %c0_i32_1 = arith.constant 0 : i32
    return %c0_i32, %c0_i32_0 : i32, i32
  }
  func.func @transform_3(%arg0: i32) -> (i32, i32) {
    %c0_i32 = arith.constant 0 : i32
    %c0_i32_0 = arith.constant 0 : i32
    %c0_i32_1 = arith.constant 0 : i32
    return %c0_i32, %c0_i32_0 : i32, i32
  }
  func.func @transform_4(%arg0: i32) -> (i32, i32, i32) {
    %c0_i32 = arith.constant 0 : i32
    %c0_i32_0 = arith.constant 0 : i32
    %c0_i32_1 = arith.constant 0 : i32
    return %arg0, %c0_i32, %c0_i32_0 : i32, i32, i32
  }
}

module attributes {stable_mosaic.version = 11 : i64} {
  func.func @encoder_layer_kernel(%arg0: i32, %arg1: memref<16x8x32xf32, #tpu.memory_space<vmem>>, %arg2: memref<32x96xbf16, #tpu.memory_space<vmem>>, %arg3: memref<1x96xf32, #tpu.memory_space<vmem>>, %arg4: memref<2x16x32xbf16, #tpu.memory_space<vmem>>, %arg5: memref<1x32xf32, #tpu.memory_space<vmem>>, %arg6: memref<1x32xf32, #tpu.memory_space<vmem>>, %arg7: memref<1x32xf32, #tpu.memory_space<vmem>>, %arg8: memref<32x64xbf16, #tpu.memory_space<vmem>>, %arg9: memref<1x64xf32, #tpu.memory_space<vmem>>, %arg10: memref<64x32xbf16, #tpu.memory_space<vmem>>, %arg11: memref<1x32xf32, #tpu.memory_space<vmem>>, %arg12: memref<1x32xf32, #tpu.memory_space<vmem>>, %arg13: memref<1x32xf32, #tpu.memory_space<vmem>>, %arg14: memref<16x8x32xf32, #tpu.memory_space<vmem>>) attributes {dimension_semantics = [#tpu.dimension_semantics<parallel>], iteration_bounds = array<i64: 2>, scalar_prefetch = 0 : i64, scratch_operands = 0 : i64, tpu.core_type = #tpu.core_type<tc>, window_params = [{transform_indices = @transform_0, window_bounds = array<i64: 16, 8, 32>}, {pipeline_mode = #tpu.pipeline_mode<synchronous>, transform_indices = @transform_1, window_bounds = array<i64: 32, 96>}, {pipeline_mode = #tpu.pipeline_mode<synchronous>, transform_indices = @transform_2, window_bounds = array<i64: 1, 96>}, {pipeline_mode = #tpu.pipeline_mode<synchronous>, transform_indices = @transform_3, window_bounds = array<i64: 2, 16, 32>}, {pipeline_mode = #tpu.pipeline_mode<synchronous>, transform_indices = @transform_4, window_bounds = array<i64: 1, 32>}, {pipeline_mode = #tpu.pipeline_mode<synchronous>, transform_indices = @transform_5, window_bounds = array<i64: 1, 32>}, {pipeline_mode = #tpu.pipeline_mode<synchronous>, transform_indices = @transform_6, window_bounds = array<i64: 1, 32>}, {pipeline_mode = #tpu.pipeline_mode<synchronous>, transform_indices = @transform_7, window_bounds = array<i64: 32, 64>}, {pipeline_mode = #tpu.pipeline_mode<synchronous>, transform_indices = @transform_8, window_bounds = array<i64: 1, 64>}, {pipeline_mode = #tpu.pipeline_mode<synchronous>, transform_indices = @transform_9, window_bounds = array<i64: 64, 32>}, {pipeline_mode = #tpu.pipeline_mode<synchronous>, transform_indices = @transform_10, window_bounds = array<i64: 1, 32>}, {pipeline_mode = #tpu.pipeline_mode<synchronous>, transform_indices = @transform_11, window_bounds = array<i64: 1, 32>}, {pipeline_mode = #tpu.pipeline_mode<synchronous>, transform_indices = @transform_12, window_bounds = array<i64: 1, 32>}, {transform_indices = @transform_13, window_bounds = array<i64: 16, 8, 32>}]} {
    %c0 = arith.constant 0 : index
    %c0_0 = arith.constant 0 : index
    %c0_1 = arith.constant 0 : index
    %0 = vector.load %arg1[%c0, %c0_0, %c0_1] : memref<16x8x32xf32, #tpu.memory_space<vmem>>, vector<16x8x32xf32>
    %1 = vector.shape_cast %0 : vector<16x8x32xf32> to vector<128x32xf32>
    %2 = arith.truncf %1 : vector<128x32xf32> to vector<128x32xbf16>
    %c0_2 = arith.constant 0 : index
    %c0_3 = arith.constant 0 : index
    %3 = vector.load %arg2[%c0_2, %c0_3] : memref<32x96xbf16, #tpu.memory_space<vmem>>, vector<32x96xbf16>
    %cst = arith.constant dense<0.000000e+00> : vector<128x96xf32>
    %4 = tpu.matmul %2, %3, %cst {dimension_numbers = #tpu.dot_dimension_numbers<[1], [0], [0], [1], [0, 0, 1, 1], [], []>} : vector<128x32xbf16>, vector<32x96xbf16>, vector<128x96xf32> -> vector<128x96xf32>
    %c0_4 = arith.constant 0 : index
    %c0_5 = arith.constant 0 : index
    %5 = vector.load %arg3[%c0_4, %c0_5] : memref<1x96xf32, #tpu.memory_space<vmem>>, vector<1x96xf32>
    %6 = vector.broadcast %5 : vector<1x96xf32> to vector<128x96xf32>
    %7 = arith.addf %4, %6 : vector<128x96xf32>
    %8 = vector.extract_strided_slice %7 {offsets = [0, 0], sizes = [128, 32], strides = [1, 1]} : vector<128x96xf32> to vector<128x32xf32>
    %9 = vector.shape_cast %8 : vector<128x32xf32> to vector<16x8x32xf32>
    %10 = vector.extract_strided_slice %7 {offsets = [0, 32], sizes = [128, 32], strides = [1, 1]} : vector<128x96xf32> to vector<128x32xf32>
    %11 = vector.shape_cast %10 : vector<128x32xf32> to vector<16x8x32xf32>
    %12 = vector.extract_strided_slice %7 {offsets = [0, 64], sizes = [128, 32], strides = [1, 1]} : vector<128x96xf32> to vector<128x32xf32>
    %13 = vector.shape_cast %12 : vector<128x32xf32> to vector<16x8x32xf32>
    %cst_6 = arith.constant 0.000000e+00 : f32
    %14 = vector.broadcast %cst_6 : f32 to vector<128x32xf32>
    %15 = vector.extract_strided_slice %9 {offsets = [0, 0, 0], sizes = [16, 8, 16], strides = [1, 1, 1]} : vector<16x8x32xf32> to vector<16x8x16xf32>
    %16 = arith.truncf %15 : vector<16x8x16xf32> to vector<16x8x16xbf16>
    %17 = vector.extract_strided_slice %11 {offsets = [0, 0, 0], sizes = [16, 8, 16], strides = [1, 1, 1]} : vector<16x8x32xf32> to vector<16x8x16xf32>
    %18 = arith.truncf %17 : vector<16x8x16xf32> to vector<16x8x16xbf16>
    %19 = vector.extract_strided_slice %13 {offsets = [0, 0, 0], sizes = [16, 8, 16], strides = [1, 1, 1]} : vector<16x8x32xf32> to vector<16x8x16xf32>
    %20 = arith.truncf %19 : vector<16x8x16xf32> to vector<16x8x16xbf16>
    "tpu.trace_start"() <{level = 10 : i32, message = "bqd,bkd->bqk"}> : () -> ()
    %cst_7 = arith.constant dense<0.000000e+00> : vector<16x8x8xf32>
    %21 = tpu.matmul %16, %18, %cst_7 {dimension_numbers = #tpu.dot_dimension_numbers<[2], [2], [1], [1], [0, 0, 0, 1, 1, 1], [0], [0]>} : vector<16x8x16xbf16>, vector<16x8x16xbf16>, vector<16x8x8xf32> -> vector<16x8x8xf32>
    "tpu.trace_stop"() : () -> ()
    %cst_8 = arith.constant 2.500000e-01 : f32
    %22 = vector.broadcast %cst_8 : f32 to vector<16x8x8xf32>
    %23 = arith.mulf %21, %22 : vector<16x8x8xf32>
    %cst_9 = arith.constant dense<0xFF800000> : vector<16x8xf32>
    %24 = vector.multi_reduction <maximumf>, %23, %cst_9 [2] : vector<16x8x8xf32> to vector<16x8xf32>
    %25 = vector.shape_cast %24 : vector<16x8xf32> to vector<16x8x1xf32>
    %26 = vector.broadcast %25 : vector<16x8x1xf32> to vector<16x8x8xf32>
    %27 = arith.subf %23, %26 : vector<16x8x8xf32>
    %28 = math.exp %27 : vector<16x8x8xf32>
    %cst_10 = arith.constant dense<0.000000e+00> : vector<16x8xf32>
    %29 = vector.multi_reduction <add>, %28, %cst_10 [2] : vector<16x8x8xf32> to vector<16x8xf32>
    %30 = vector.shape_cast %29 : vector<16x8xf32> to vector<16x8x1xf32>
    %31 = tpu.reciprocal %30 {approx = true} : vector<16x8x1xf32> -> vector<16x8x1xf32>
    %32 = vector.broadcast %31 : vector<16x8x1xf32> to vector<16x8x8xf32>
    %33 = arith.mulf %28, %32 : vector<16x8x8xf32>
    %34 = arith.truncf %33 : vector<16x8x8xf32> to vector<16x8x8xbf16>
    "tpu.trace_start"() <{level = 10 : i32, message = "bqk,bkd->bqd"}> : () -> ()
    %cst_11 = arith.constant dense<0.000000e+00> : vector<16x8x16xf32>
    %35 = tpu.matmul %34, %20, %cst_11 {dimension_numbers = #tpu.dot_dimension_numbers<[2], [1], [1], [2], [0, 0, 0, 1, 1, 2], [0], [0]>} : vector<16x8x8xbf16>, vector<16x8x16xbf16>, vector<16x8x16xf32> -> vector<16x8x16xf32>
    "tpu.trace_stop"() : () -> ()
    %36 = vector.shape_cast %35 : vector<16x8x16xf32> to vector<128x16xf32>
    %37 = arith.truncf %36 : vector<128x16xf32> to vector<128x16xbf16>
    %c0_12 = arith.constant 0 : index
    %c0_13 = arith.constant 0 : index
    %c0_14 = arith.constant 0 : index
    %38 = vector.load %arg4[%c0_12, %c0_13, %c0_14] : memref<2x16x32xbf16, #tpu.memory_space<vmem>>, vector<1x16x32xbf16>
    %39 = vector.shape_cast %38 : vector<1x16x32xbf16> to vector<16x32xbf16>
    %cst_15 = arith.constant dense<0.000000e+00> : vector<128x32xf32>
    %40 = tpu.matmul %37, %39, %cst_15 {dimension_numbers = #tpu.dot_dimension_numbers<[1], [0], [0], [1], [0, 0, 1, 1], [], []>} : vector<128x16xbf16>, vector<16x32xbf16>, vector<128x32xf32> -> vector<128x32xf32>
    %41 = arith.addf %14, %40 : vector<128x32xf32>
    %42 = vector.extract_strided_slice %9 {offsets = [0, 0, 16], sizes = [16, 8, 16], strides = [1, 1, 1]} : vector<16x8x32xf32> to vector<16x8x16xf32>
    %43 = arith.truncf %42 : vector<16x8x16xf32> to vector<16x8x16xbf16>
    %44 = vector.extract_strided_slice %11 {offsets = [0, 0, 16], sizes = [16, 8, 16], strides = [1, 1, 1]} : vector<16x8x32xf32> to vector<16x8x16xf32>
    %45 = arith.truncf %44 : vector<16x8x16xf32> to vector<16x8x16xbf16>
    %46 = vector.extract_strided_slice %13 {offsets = [0, 0, 16], sizes = [16, 8, 16], strides = [1, 1, 1]} : vector<16x8x32xf32> to vector<16x8x16xf32>
    %47 = arith.truncf %46 : vector<16x8x16xf32> to vector<16x8x16xbf16>
    "tpu.trace_start"() <{level = 10 : i32, message = "bqd,bkd->bqk"}> : () -> ()
    %cst_16 = arith.constant dense<0.000000e+00> : vector<16x8x8xf32>
    %48 = tpu.matmul %43, %45, %cst_16 {dimension_numbers = #tpu.dot_dimension_numbers<[2], [2], [1], [1], [0, 0, 0, 1, 1, 1], [0], [0]>} : vector<16x8x16xbf16>, vector<16x8x16xbf16>, vector<16x8x8xf32> -> vector<16x8x8xf32>
    "tpu.trace_stop"() : () -> ()
    %cst_17 = arith.constant 2.500000e-01 : f32
    %49 = vector.broadcast %cst_17 : f32 to vector<16x8x8xf32>
    %50 = arith.mulf %48, %49 : vector<16x8x8xf32>
    %cst_18 = arith.constant dense<0xFF800000> : vector<16x8xf32>
    %51 = vector.multi_reduction <maximumf>, %50, %cst_18 [2] : vector<16x8x8xf32> to vector<16x8xf32>
    %52 = vector.shape_cast %51 : vector<16x8xf32> to vector<16x8x1xf32>
    %53 = vector.broadcast %52 : vector<16x8x1xf32> to vector<16x8x8xf32>
    %54 = arith.subf %50, %53 : vector<16x8x8xf32>
    %55 = math.exp %54 : vector<16x8x8xf32>
    %cst_19 = arith.constant dense<0.000000e+00> : vector<16x8xf32>
    %56 = vector.multi_reduction <add>, %55, %cst_19 [2] : vector<16x8x8xf32> to vector<16x8xf32>
    %57 = vector.shape_cast %56 : vector<16x8xf32> to vector<16x8x1xf32>
    %58 = tpu.reciprocal %57 {approx = true} : vector<16x8x1xf32> -> vector<16x8x1xf32>
    %59 = vector.broadcast %58 : vector<16x8x1xf32> to vector<16x8x8xf32>
    %60 = arith.mulf %55, %59 : vector<16x8x8xf32>
    %61 = arith.truncf %60 : vector<16x8x8xf32> to vector<16x8x8xbf16>
    "tpu.trace_start"() <{level = 10 : i32, message = "bqk,bkd->bqd"}> : () -> ()
    %cst_20 = arith.constant dense<0.000000e+00> : vector<16x8x16xf32>
    %62 = tpu.matmul %61, %47, %cst_20 {dimension_numbers = #tpu.dot_dimension_numbers<[2], [1], [1], [2], [0, 0, 0, 1, 1, 2], [0], [0]>} : vector<16x8x8xbf16>, vector<16x8x16xbf16>, vector<16x8x16xf32> -> vector<16x8x16xf32>
    "tpu.trace_stop"() : () -> ()
    %63 = vector.shape_cast %62 : vector<16x8x16xf32> to vector<128x16xf32>
    %64 = arith.truncf %63 : vector<128x16xf32> to vector<128x16xbf16>
    %c1 = arith.constant 1 : index
    %c0_21 = arith.constant 0 : index
    %c0_22 = arith.constant 0 : index
    %65 = vector.load %arg4[%c1, %c0_21, %c0_22] : memref<2x16x32xbf16, #tpu.memory_space<vmem>>, vector<1x16x32xbf16>
    %66 = vector.shape_cast %65 : vector<1x16x32xbf16> to vector<16x32xbf16>
    %cst_23 = arith.constant dense<0.000000e+00> : vector<128x32xf32>
    %67 = tpu.matmul %64, %66, %cst_23 {dimension_numbers = #tpu.dot_dimension_numbers<[1], [0], [0], [1], [0, 0, 1, 1], [], []>} : vector<128x16xbf16>, vector<16x32xbf16>, vector<128x32xf32> -> vector<128x32xf32>
    %68 = arith.addf %41, %67 : vector<128x32xf32>
    %c0_24 = arith.constant 0 : index
    %c0_25 = arith.constant 0 : index
    %69 = vector.load %arg5[%c0_24, %c0_25] : memref<1x32xf32, #tpu.memory_space<vmem>>, vector<1x32xf32>
    %70 = vector.broadcast %69 : vector<1x32xf32> to vector<128x32xf32>
    %71 = arith.addf %68, %70 : vector<128x32xf32>
    %72 = arith.addf %1, %71 : vector<128x32xf32>
    %c0_26 = arith.constant 0 : index
    %c0_27 = arith.constant 0 : index
    %73 = vector.load %arg6[%c0_26, %c0_27] : memref<1x32xf32, #tpu.memory_space<vmem>>, vector<1x32xf32>
    %c0_28 = arith.constant 0 : index
    %c0_29 = arith.constant 0 : index
    %74 = vector.load %arg7[%c0_28, %c0_29] : memref<1x32xf32, #tpu.memory_space<vmem>>, vector<1x32xf32>
    %cst_30 = arith.constant dense<0.000000e+00> : vector<128xf32>
    %75 = vector.multi_reduction <add>, %72, %cst_30 [1] : vector<128x32xf32> to vector<128xf32>
    %76 = vector.shape_cast %75 : vector<128xf32> to vector<128x1xf32>
    %cst_31 = arith.constant 3.200000e+01 : f32
    %77 = vector.broadcast %cst_31 : f32 to vector<128x1xf32>
    %78 = arith.divf %76, %77 : vector<128x1xf32>
    %79 = vector.broadcast %78 : vector<128x1xf32> to vector<128x32xf32>
    %80 = arith.subf %72, %79 : vector<128x32xf32>
    %81 = arith.mulf %80, %80 : vector<128x32xf32>
    %cst_32 = arith.constant dense<0.000000e+00> : vector<128xf32>
    %82 = vector.multi_reduction <add>, %81, %cst_32 [1] : vector<128x32xf32> to vector<128xf32>
    %83 = vector.shape_cast %82 : vector<128xf32> to vector<128x1xf32>
    %cst_33 = arith.constant 3.200000e+01 : f32
    %84 = vector.broadcast %cst_33 : f32 to vector<128x1xf32>
    %85 = arith.divf %83, %84 : vector<128x1xf32>
    %86 = vector.broadcast %78 : vector<128x1xf32> to vector<128x32xf32>
    %87 = arith.subf %72, %86 : vector<128x32xf32>
    %cst_34 = arith.constant 9.99999974E-6 : f32
    %88 = vector.broadcast %cst_34 : f32 to vector<128x1xf32>
    %89 = arith.addf %85, %88 : vector<128x1xf32>
    %90 = math.rsqrt %89 : vector<128x1xf32>
    %91 = vector.broadcast %90 : vector<128x1xf32> to vector<128x32xf32>
    %92 = arith.mulf %87, %91 : vector<128x32xf32>
    %93 = vector.broadcast %73 : vector<1x32xf32> to vector<128x32xf32>
    %94 = arith.mulf %92, %93 : vector<128x32xf32>
    %95 = vector.broadcast %74 : vector<1x32xf32> to vector<128x32xf32>
    %96 = arith.addf %94, %95 : vector<128x32xf32>
    %97 = arith.truncf %96 : vector<128x32xf32> to vector<128x32xbf16>
    %c0_35 = arith.constant 0 : index
    %c0_36 = arith.constant 0 : index
    %98 = vector.load %arg8[%c0_35, %c0_36] : memref<32x64xbf16, #tpu.memory_space<vmem>>, vector<32x64xbf16>
    %cst_37 = arith.constant dense<0.000000e+00> : vector<128x64xf32>
    %99 = tpu.matmul %97, %98, %cst_37 {dimension_numbers = #tpu.dot_dimension_numbers<[1], [0], [0], [1], [0, 0, 1, 1], [], []>} : vector<128x32xbf16>, vector<32x64xbf16>, vector<128x64xf32> -> vector<128x64xf32>
    %c0_38 = arith.constant 0 : index
    %c0_39 = arith.constant 0 : index
    %100 = vector.load %arg9[%c0_38, %c0_39] : memref<1x64xf32, #tpu.memory_space<vmem>>, vector<1x64xf32>
    %101 = vector.broadcast %100 : vector<1x64xf32> to vector<128x64xf32>
    %102 = arith.addf %99, %101 : vector<128x64xf32>
    %cst_40 = arith.constant 0.000000e+00 : f32
    %103 = vector.broadcast %cst_40 : f32 to vector<128x64xf32>
    %104 = arith.maximumf %102, %103 : vector<128x64xf32>
    %105 = arith.truncf %104 : vector<128x64xf32> to vector<128x64xbf16>
    %c0_41 = arith.constant 0 : index
    %c0_42 = arith.constant 0 : index
    %106 = vector.load %arg10[%c0_41, %c0_42] : memref<64x32xbf16, #tpu.memory_space<vmem>>, vector<64x32xbf16>
    %cst_43 = arith.constant dense<0.000000e+00> : vector<128x32xf32>
    %107 = tpu.matmul %105, %106, %cst_43 {dimension_numbers = #tpu.dot_dimension_numbers<[1], [0], [0], [1], [0, 0, 1, 1], [], []>} : vector<128x64xbf16>, vector<64x32xbf16>, vector<128x32xf32> -> vector<128x32xf32>
    %c0_44 = arith.constant 0 : index
    %c0_45 = arith.constant 0 : index
    %108 = vector.load %arg11[%c0_44, %c0_45] : memref<1x32xf32, #tpu.memory_space<vmem>>, vector<1x32xf32>
    %109 = vector.broadcast %108 : vector<1x32xf32> to vector<128x32xf32>
    %110 = arith.addf %107, %109 : vector<128x32xf32>
    %111 = arith.addf %96, %110 : vector<128x32xf32>
    %c0_46 = arith.constant 0 : index
    %c0_47 = arith.constant 0 : index
    %112 = vector.load %arg12[%c0_46, %c0_47] : memref<1x32xf32, #tpu.memory_space<vmem>>, vector<1x32xf32>
    %c0_48 = arith.constant 0 : index
    %c0_49 = arith.constant 0 : index
    %113 = vector.load %arg13[%c0_48, %c0_49] : memref<1x32xf32, #tpu.memory_space<vmem>>, vector<1x32xf32>
    %cst_50 = arith.constant dense<0.000000e+00> : vector<128xf32>
    %114 = vector.multi_reduction <add>, %111, %cst_50 [1] : vector<128x32xf32> to vector<128xf32>
    %115 = vector.shape_cast %114 : vector<128xf32> to vector<128x1xf32>
    %cst_51 = arith.constant 3.200000e+01 : f32
    %116 = vector.broadcast %cst_51 : f32 to vector<128x1xf32>
    %117 = arith.divf %115, %116 : vector<128x1xf32>
    %118 = vector.broadcast %117 : vector<128x1xf32> to vector<128x32xf32>
    %119 = arith.subf %111, %118 : vector<128x32xf32>
    %120 = arith.mulf %119, %119 : vector<128x32xf32>
    %cst_52 = arith.constant dense<0.000000e+00> : vector<128xf32>
    %121 = vector.multi_reduction <add>, %120, %cst_52 [1] : vector<128x32xf32> to vector<128xf32>
    %122 = vector.shape_cast %121 : vector<128xf32> to vector<128x1xf32>
    %cst_53 = arith.constant 3.200000e+01 : f32
    %123 = vector.broadcast %cst_53 : f32 to vector<128x1xf32>
    %124 = arith.divf %122, %123 : vector<128x1xf32>
    %125 = vector.broadcast %117 : vector<128x1xf32> to vector<128x32xf32>
    %126 = arith.subf %111, %125 : vector<128x32xf32>
    %cst_54 = arith.constant 9.99999974E-6 : f32
    %127 = vector.broadcast %cst_54 : f32 to vector<128x1xf32>
    %128 = arith.addf %124, %127 : vector<128x1xf32>
    %129 = math.rsqrt %128 : vector<128x1xf32>
    %130 = vector.broadcast %129 : vector<128x1xf32> to vector<128x32xf32>
    %131 = arith.mulf %126, %130 : vector<128x32xf32>
    %132 = vector.broadcast %112 : vector<1x32xf32> to vector<128x32xf32>
    %133 = arith.mulf %131, %132 : vector<128x32xf32>
    %134 = vector.broadcast %113 : vector<1x32xf32> to vector<128x32xf32>
    %135 = arith.addf %133, %134 : vector<128x32xf32>
    %136 = vector.shape_cast %135 : vector<128x32xf32> to vector<16x8x32xf32>
    %c0_55 = arith.constant 0 : index
    %c0_56 = arith.constant 0 : index
    %c0_57 = arith.constant 0 : index
    %137 = vector.load %arg14[%c0_55, %c0_56, %c0_57] : memref<16x8x32xf32, #tpu.memory_space<vmem>>, vector<16x8x32xf32>
    tpu.vector_store %arg14[%c0_55, %c0_56, %c0_57], %136 {strides = array<i32>} : memref<16x8x32xf32, #tpu.memory_space<vmem>>, vector<16x8x32xf32>,
    return
  }
  func.func @transform_0(%arg0: i32) -> (i32, i32, i32) {
    %c0_i32 = arith.constant 0 : i32
    %c0_i32_0 = arith.constant 0 : i32
    %c0_i32_1 = arith.constant 0 : i32
    return %arg0, %c0_i32, %c0_i32_0 : i32, i32, i32
  }
  func.func @transform_1(%arg0: i32) -> (i32, i32) {
    %c0_i32 = arith.constant 0 : i32
    %c0_i32_0 = arith.constant 0 : i32
    %c0_i32_1 = arith.constant 0 : i32
    return %c0_i32, %c0_i32_0 : i32, i32
  }
  func.func @transform_2(%arg0: i32) -> (i32, i32) {
    %c0_i32 = arith.constant 0 : i32
    %c0_i32_0 = arith.constant 0 : i32
    %c0_i32_1 = arith.constant 0 : i32
    return %c0_i32, %c0_i32_0 : i32, i32
  }
  func.func @transform_3(%arg0: i32) -> (i32, i32, i32) {
    %c0_i32 = arith.constant 0 : i32
    %c0_i32_0 = arith.constant 0 : i32
    %c0_i32_1 = arith.constant 0 : i32
    %c0_i32_2 = arith.constant 0 : i32
    return %c0_i32, %c0_i32_0, %c0_i32_1 : i32, i32, i32
  }
  func.func @transform_4(%arg0: i32) -> (i32, i32) {
    %c0_i32 = arith.constant 0 : i32
    %c0_i32_0 = arith.constant 0 : i32
    %c0_i32_1 = arith.constant 0 : i32
    return %c0_i32, %c0_i32_0 : i32, i32
  }
  func.func @transform_5(%arg0: i32) -> (i32, i32) {
    %c0_i32 = arith.constant 0 : i32
    %c0_i32_0 = arith.constant 0 : i32
    %c0_i32_1 = arith.constant 0 : i32
    return %c0_i32, %c0_i32_0 : i32, i32
  }
  func.func @transform_6(%arg0: i32) -> (i32, i32) {
    %c0_i32 = arith.constant 0 : i32
    %c0_i32_0 = arith.constant 0 : i32
    %c0_i32_1 = arith.constant 0 : i32
    return %c0_i32, %c0_i32_0 : i32, i32
  }
  func.func @transform_7(%arg0: i32) -> (i32, i32) {
    %c0_i32 = arith.constant 0 : i32
    %c0_i32_0 = arith.constant 0 : i32
    %c0_i32_1 = arith.constant 0 : i32
    return %c0_i32, %c0_i32_0 : i32, i32
  }
  func.func @transform_8(%arg0: i32) -> (i32, i32) {
    %c0_i32 = arith.constant 0 : i32
    %c0_i32_0 = arith.constant 0 : i32
    %c0_i32_1 = arith.constant 0 : i32
    return %c0_i32, %c0_i32_0 : i32, i32
  }
  func.func @transform_9(%arg0: i32) -> (i32, i32) {
    %c0_i32 = arith.constant 0 : i32
    %c0_i32_0 = arith.constant 0 : i32
    %c0_i32_1 = arith.constant 0 : i32
    return %c0_i32, %c0_i32_0 : i32, i32
  }
  func.func @transform_10(%arg0: i32) -> (i32, i32) {
    %c0_i32 = arith.constant 0 : i32
    %c0_i32_0 = arith.constant 0 : i32
    %c0_i32_1 = arith.constant 0 : i32
    return %c0_i32, %c0_i32_0 : i32, i32
  }
  func.func @transform_11(%arg0: i32) -> (i32, i32) {
    %c0_i32 = arith.constant 0 : i32
    %c0_i32_0 = arith.constant 0 : i32
    %c0_i32_1 = arith.constant 0 : i32
    return %c0_i32, %c0_i32_0 : i32, i32
  }
  func.func @transform_12(%arg0: i32) -> (i32, i32) {
    %c0_i32 = arith.constant 0 : i32
    %c0_i32_0 = arith.constant 0 : i32
    %c0_i32_1 = arith.constant 0 : i32
    return %c0_i32, %c0_i32_0 : i32, i32
  }
  func.func @transform_13(%arg0: i32) -> (i32, i32, i32) {
    %c0_i32 = arith.constant 0 : i32
    %c0_i32_0 = arith.constant 0 : i32
    %c0_i32_1 = arith.constant 0 : i32
    return %arg0, %c0_i32, %c0_i32_0 : i32, i32, i32
  }
}

module attributes {stable_mosaic.version = 11 : i64} {
  func.func @encoder_layer_kernel(%arg0: i32, %arg1: memref<16x8x32xf32, #tpu.memory_space<vmem>>, %arg2: memref<32x96xbf16, #tpu.memory_space<vmem>>, %arg3: memref<1x96xf32, #tpu.memory_space<vmem>>, %arg4: memref<2x16x32xbf16, #tpu.memory_space<vmem>>, %arg5: memref<1x32xf32, #tpu.memory_space<vmem>>, %arg6: memref<1x32xf32, #tpu.memory_space<vmem>>, %arg7: memref<1x32xf32, #tpu.memory_space<vmem>>, %arg8: memref<32x64xbf16, #tpu.memory_space<vmem>>, %arg9: memref<1x64xf32, #tpu.memory_space<vmem>>, %arg10: memref<64x32xbf16, #tpu.memory_space<vmem>>, %arg11: memref<1x32xf32, #tpu.memory_space<vmem>>, %arg12: memref<1x32xf32, #tpu.memory_space<vmem>>, %arg13: memref<1x32xf32, #tpu.memory_space<vmem>>, %arg14: memref<1x32xf32, #tpu.memory_space<vmem>>, %arg15: memref<1x32xf32, #tpu.memory_space<vmem>>, %arg16: memref<16x8x32xf32, #tpu.memory_space<vmem>>) attributes {dimension_semantics = [#tpu.dimension_semantics<parallel>], iteration_bounds = array<i64: 2>, scalar_prefetch = 0 : i64, scratch_operands = 0 : i64, tpu.core_type = #tpu.core_type<tc>, window_params = [{transform_indices = @transform_0, window_bounds = array<i64: 16, 8, 32>}, {pipeline_mode = #tpu.pipeline_mode<synchronous>, transform_indices = @transform_1, window_bounds = array<i64: 32, 96>}, {pipeline_mode = #tpu.pipeline_mode<synchronous>, transform_indices = @transform_2, window_bounds = array<i64: 1, 96>}, {pipeline_mode = #tpu.pipeline_mode<synchronous>, transform_indices = @transform_3, window_bounds = array<i64: 2, 16, 32>}, {pipeline_mode = #tpu.pipeline_mode<synchronous>, transform_indices = @transform_4, window_bounds = array<i64: 1, 32>}, {pipeline_mode = #tpu.pipeline_mode<synchronous>, transform_indices = @transform_5, window_bounds = array<i64: 1, 32>}, {pipeline_mode = #tpu.pipeline_mode<synchronous>, transform_indices = @transform_6, window_bounds = array<i64: 1, 32>}, {pipeline_mode = #tpu.pipeline_mode<synchronous>, transform_indices = @transform_7, window_bounds = array<i64: 32, 64>}, {pipeline_mode = #tpu.pipeline_mode<synchronous>, transform_indices = @transform_8, window_bounds = array<i64: 1, 64>}, {pipeline_mode = #tpu.pipeline_mode<synchronous>, transform_indices = @transform_9, window_bounds = array<i64: 64, 32>}, {pipeline_mode = #tpu.pipeline_mode<synchronous>, transform_indices = @transform_10, window_bounds = array<i64: 1, 32>}, {pipeline_mode = #tpu.pipeline_mode<synchronous>, transform_indices = @transform_11, window_bounds = array<i64: 1, 32>}, {pipeline_mode = #tpu.pipeline_mode<synchronous>, transform_indices = @transform_12, window_bounds = array<i64: 1, 32>}, {pipeline_mode = #tpu.pipeline_mode<synchronous>, transform_indices = @transform_13, window_bounds = array<i64: 1, 32>}, {pipeline_mode = #tpu.pipeline_mode<synchronous>, transform_indices = @transform_14, window_bounds = array<i64: 1, 32>}, {transform_indices = @transform_15, window_bounds = array<i64: 16, 8, 32>}]} {
    %c0 = arith.constant 0 : index
    %c0_0 = arith.constant 0 : index
    %c0_1 = arith.constant 0 : index
    %0 = vector.load %arg1[%c0, %c0_0, %c0_1] : memref<16x8x32xf32, #tpu.memory_space<vmem>>, vector<16x8x32xf32>
    %1 = vector.shape_cast %0 : vector<16x8x32xf32> to vector<128x32xf32>
    %2 = arith.truncf %1 : vector<128x32xf32> to vector<128x32xbf16>
    %c0_2 = arith.constant 0 : index
    %c0_3 = arith.constant 0 : index
    %3 = vector.load %arg2[%c0_2, %c0_3] : memref<32x96xbf16, #tpu.memory_space<vmem>>, vector<32x96xbf16>
    %cst = arith.constant dense<0.000000e+00> : vector<128x96xf32>
    %4 = tpu.matmul %2, %3, %cst {dimension_numbers = #tpu.dot_dimension_numbers<[1], [0], [0], [1], [0, 0, 1, 1], [], []>} : vector<128x32xbf16>, vector<32x96xbf16>, vector<128x96xf32> -> vector<128x96xf32>
    %c0_4 = arith.constant 0 : index
    %c0_5 = arith.constant 0 : index
    %5 = vector.load %arg3[%c0_4, %c0_5] : memref<1x96xf32, #tpu.memory_space<vmem>>, vector<1x96xf32>
    %6 = vector.broadcast %5 : vector<1x96xf32> to vector<128x96xf32>
    %7 = arith.addf %4, %6 : vector<128x96xf32>
    %8 = vector.extract_strided_slice %7 {offsets = [0, 0], sizes = [128, 32], strides = [1, 1]} : vector<128x96xf32> to vector<128x32xf32>
    %9 = vector.shape_cast %8 : vector<128x32xf32> to vector<16x8x32xf32>
    %10 = vector.extract_strided_slice %7 {offsets = [0, 32], sizes = [128, 32], strides = [1, 1]} : vector<128x96xf32> to vector<128x32xf32>
    %11 = vector.shape_cast %10 : vector<128x32xf32> to vector<16x8x32xf32>
    %12 = vector.extract_strided_slice %7 {offsets = [0, 64], sizes = [128, 32], strides = [1, 1]} : vector<128x96xf32> to vector<128x32xf32>
    %13 = vector.shape_cast %12 : vector<128x32xf32> to vector<16x8x32xf32>
    %cst_6 = arith.constant 0.000000e+00 : f32
    %14 = vector.broadcast %cst_6 : f32 to vector<128x32xf32>
    %15 = vector.extract_strided_slice %9 {offsets = [0, 0, 0], sizes = [16, 8, 16], strides = [1, 1, 1]} : vector<16x8x32xf32> to vector<16x8x16xf32>
    %16 = arith.truncf %15 : vector<16x8x16xf32> to vector<16x8x16xbf16>
    %17 = vector.extract_strided_slice %11 {offsets = [0, 0, 0], sizes = [16, 8, 16], strides = [1, 1, 1]} : vector<16x8x32xf32> to vector<16x8x16xf32>
    %18 = arith.truncf %17 : vector<16x8x16xf32> to vector<16x8x16xbf16>
    %19 = vector.extract_strided_slice %13 {offsets = [0, 0, 0], sizes = [16, 8, 16], strides = [1, 1, 1]} : vector<16x8x32xf32> to vector<16x8x16xf32>
    %20 = arith.truncf %19 : vector<16x8x16xf32> to vector<16x8x16xbf16>
    "tpu.trace_start"() <{level = 10 : i32, message = "bqd,bkd->bqk"}> : () -> ()
    %cst_7 = arith.constant dense<0.000000e+00> : vector<16x8x8xf32>
    %21 = tpu.matmul %16, %18, %cst_7 {dimension_numbers = #tpu.dot_dimension_numbers<[2], [2], [1], [1], [0, 0, 0, 1, 1, 1], [0], [0]>} : vector<16x8x16xbf16>, vector<16x8x16xbf16>, vector<16x8x8xf32> -> vector<16x8x8xf32>
    "tpu.trace_stop"() : () -> ()
    %cst_8 = arith.constant 2.500000e-01 : f32
    %22 = vector.broadcast %cst_8 : f32 to vector<16x8x8xf32>
    %23 = arith.mulf %21, %22 : vector<16x8x8xf32>
    %cst_9 = arith.constant dense<0xFF800000> : vector<16x8xf32>
    %24 = vector.multi_reduction <maximumf>, %23, %cst_9 [2] : vector<16x8x8xf32> to vector<16x8xf32>
    %25 = vector.shape_cast %24 : vector<16x8xf32> to vector<16x8x1xf32>
    %26 = vector.broadcast %25 : vector<16x8x1xf32> to vector<16x8x8xf32>
    %27 = arith.subf %23, %26 : vector<16x8x8xf32>
    %28 = math.exp %27 : vector<16x8x8xf32>
    %cst_10 = arith.constant dense<0.000000e+00> : vector<16x8xf32>
    %29 = vector.multi_reduction <add>, %28, %cst_10 [2] : vector<16x8x8xf32> to vector<16x8xf32>
    %30 = vector.shape_cast %29 : vector<16x8xf32> to vector<16x8x1xf32>
    %31 = tpu.reciprocal %30 {approx = true} : vector<16x8x1xf32> -> vector<16x8x1xf32>
    %32 = vector.broadcast %31 : vector<16x8x1xf32> to vector<16x8x8xf32>
    %33 = arith.mulf %28, %32 : vector<16x8x8xf32>
    %34 = arith.truncf %33 : vector<16x8x8xf32> to vector<16x8x8xbf16>
    "tpu.trace_start"() <{level = 10 : i32, message = "bqk,bkd->bqd"}> : () -> ()
    %cst_11 = arith.constant dense<0.000000e+00> : vector<16x8x16xf32>
    %35 = tpu.matmul %34, %20, %cst_11 {dimension_numbers = #tpu.dot_dimension_numbers<[2], [1], [1], [2], [0, 0, 0, 1, 1, 2], [0], [0]>} : vector<16x8x8xbf16>, vector<16x8x16xbf16>, vector<16x8x16xf32> -> vector<16x8x16xf32>
    "tpu.trace_stop"() : () -> ()
    %36 = vector.shape_cast %35 : vector<16x8x16xf32> to vector<128x16xf32>
    %37 = arith.truncf %36 : vector<128x16xf32> to vector<128x16xbf16>
    %c0_12 = arith.constant 0 : index
    %c0_13 = arith.constant 0 : index
    %c0_14 = arith.constant 0 : index
    %38 = vector.load %arg4[%c0_12, %c0_13, %c0_14] : memref<2x16x32xbf16, #tpu.memory_space<vmem>>, vector<1x16x32xbf16>
    %39 = vector.shape_cast %38 : vector<1x16x32xbf16> to vector<16x32xbf16>
    %cst_15 = arith.constant dense<0.000000e+00> : vector<128x32xf32>
    %40 = tpu.matmul %37, %39, %cst_15 {dimension_numbers = #tpu.dot_dimension_numbers<[1], [0], [0], [1], [0, 0, 1, 1], [], []>} : vector<128x16xbf16>, vector<16x32xbf16>, vector<128x32xf32> -> vector<128x32xf32>
    %41 = arith.addf %14, %40 : vector<128x32xf32>
    %42 = vector.extract_strided_slice %9 {offsets = [0, 0, 16], sizes = [16, 8, 16], strides = [1, 1, 1]} : vector<16x8x32xf32> to vector<16x8x16xf32>
    %43 = arith.truncf %42 : vector<16x8x16xf32> to vector<16x8x16xbf16>
    %44 = vector.extract_strided_slice %11 {offsets = [0, 0, 16], sizes = [16, 8, 16], strides = [1, 1, 1]} : vector<16x8x32xf32> to vector<16x8x16xf32>
    %45 = arith.truncf %44 : vector<16x8x16xf32> to vector<16x8x16xbf16>
    %46 = vector.extract_strided_slice %13 {offsets = [0, 0, 16], sizes = [16, 8, 16], strides = [1, 1, 1]} : vector<16x8x32xf32> to vector<16x8x16xf32>
    %47 = arith.truncf %46 : vector<16x8x16xf32> to vector<16x8x16xbf16>
    "tpu.trace_start"() <{level = 10 : i32, message = "bqd,bkd->bqk"}> : () -> ()
    %cst_16 = arith.constant dense<0.000000e+00> : vector<16x8x8xf32>
    %48 = tpu.matmul %43, %45, %cst_16 {dimension_numbers = #tpu.dot_dimension_numbers<[2], [2], [1], [1], [0, 0, 0, 1, 1, 1], [0], [0]>} : vector<16x8x16xbf16>, vector<16x8x16xbf16>, vector<16x8x8xf32> -> vector<16x8x8xf32>
    "tpu.trace_stop"() : () -> ()
    %cst_17 = arith.constant 2.500000e-01 : f32
    %49 = vector.broadcast %cst_17 : f32 to vector<16x8x8xf32>
    %50 = arith.mulf %48, %49 : vector<16x8x8xf32>
    %cst_18 = arith.constant dense<0xFF800000> : vector<16x8xf32>
    %51 = vector.multi_reduction <maximumf>, %50, %cst_18 [2] : vector<16x8x8xf32> to vector<16x8xf32>
    %52 = vector.shape_cast %51 : vector<16x8xf32> to vector<16x8x1xf32>
    %53 = vector.broadcast %52 : vector<16x8x1xf32> to vector<16x8x8xf32>
    %54 = arith.subf %50, %53 : vector<16x8x8xf32>
    %55 = math.exp %54 : vector<16x8x8xf32>
    %cst_19 = arith.constant dense<0.000000e+00> : vector<16x8xf32>
    %56 = vector.multi_reduction <add>, %55, %cst_19 [2] : vector<16x8x8xf32> to vector<16x8xf32>
    %57 = vector.shape_cast %56 : vector<16x8xf32> to vector<16x8x1xf32>
    %58 = tpu.reciprocal %57 {approx = true} : vector<16x8x1xf32> -> vector<16x8x1xf32>
    %59 = vector.broadcast %58 : vector<16x8x1xf32> to vector<16x8x8xf32>
    %60 = arith.mulf %55, %59 : vector<16x8x8xf32>
    %61 = arith.truncf %60 : vector<16x8x8xf32> to vector<16x8x8xbf16>
    "tpu.trace_start"() <{level = 10 : i32, message = "bqk,bkd->bqd"}> : () -> ()
    %cst_20 = arith.constant dense<0.000000e+00> : vector<16x8x16xf32>
    %62 = tpu.matmul %61, %47, %cst_20 {dimension_numbers = #tpu.dot_dimension_numbers<[2], [1], [1], [2], [0, 0, 0, 1, 1, 2], [0], [0]>} : vector<16x8x8xbf16>, vector<16x8x16xbf16>, vector<16x8x16xf32> -> vector<16x8x16xf32>
    "tpu.trace_stop"() : () -> ()
    %63 = vector.shape_cast %62 : vector<16x8x16xf32> to vector<128x16xf32>
    %64 = arith.truncf %63 : vector<128x16xf32> to vector<128x16xbf16>
    %c1 = arith.constant 1 : index
    %c0_21 = arith.constant 0 : index
    %c0_22 = arith.constant 0 : index
    %65 = vector.load %arg4[%c1, %c0_21, %c0_22] : memref<2x16x32xbf16, #tpu.memory_space<vmem>>, vector<1x16x32xbf16>
    %66 = vector.shape_cast %65 : vector<1x16x32xbf16> to vector<16x32xbf16>
    %cst_23 = arith.constant dense<0.000000e+00> : vector<128x32xf32>
    %67 = tpu.matmul %64, %66, %cst_23 {dimension_numbers = #tpu.dot_dimension_numbers<[1], [0], [0], [1], [0, 0, 1, 1], [], []>} : vector<128x16xbf16>, vector<16x32xbf16>, vector<128x32xf32> -> vector<128x32xf32>
    %68 = arith.addf %41, %67 : vector<128x32xf32>
    %c0_24 = arith.constant 0 : index
    %c0_25 = arith.constant 0 : index
    %69 = vector.load %arg5[%c0_24, %c0_25] : memref<1x32xf32, #tpu.memory_space<vmem>>, vector<1x32xf32>
    %70 = vector.broadcast %69 : vector<1x32xf32> to vector<128x32xf32>
    %71 = arith.addf %68, %70 : vector<128x32xf32>
    %72 = arith.addf %1, %71 : vector<128x32xf32>
    %c0_26 = arith.constant 0 : index
    %c0_27 = arith.constant 0 : index
    %73 = vector.load %arg6[%c0_26, %c0_27] : memref<1x32xf32, #tpu.memory_space<vmem>>, vector<1x32xf32>
    %c0_28 = arith.constant 0 : index
    %c0_29 = arith.constant 0 : index
    %74 = vector.load %arg7[%c0_28, %c0_29] : memref<1x32xf32, #tpu.memory_space<vmem>>, vector<1x32xf32>
    %cst_30 = arith.constant dense<0.000000e+00> : vector<128xf32>
    %75 = vector.multi_reduction <add>, %72, %cst_30 [1] : vector<128x32xf32> to vector<128xf32>
    %76 = vector.shape_cast %75 : vector<128xf32> to vector<128x1xf32>
    %cst_31 = arith.constant 3.200000e+01 : f32
    %77 = vector.broadcast %cst_31 : f32 to vector<128x1xf32>
    %78 = arith.divf %76, %77 : vector<128x1xf32>
    %79 = vector.broadcast %78 : vector<128x1xf32> to vector<128x32xf32>
    %80 = arith.subf %72, %79 : vector<128x32xf32>
    %81 = arith.mulf %80, %80 : vector<128x32xf32>
    %cst_32 = arith.constant dense<0.000000e+00> : vector<128xf32>
    %82 = vector.multi_reduction <add>, %81, %cst_32 [1] : vector<128x32xf32> to vector<128xf32>
    %83 = vector.shape_cast %82 : vector<128xf32> to vector<128x1xf32>
    %cst_33 = arith.constant 3.200000e+01 : f32
    %84 = vector.broadcast %cst_33 : f32 to vector<128x1xf32>
    %85 = arith.divf %83, %84 : vector<128x1xf32>
    %86 = vector.broadcast %78 : vector<128x1xf32> to vector<128x32xf32>
    %87 = arith.subf %72, %86 : vector<128x32xf32>
    %cst_34 = arith.constant 9.99999974E-6 : f32
    %88 = vector.broadcast %cst_34 : f32 to vector<128x1xf32>
    %89 = arith.addf %85, %88 : vector<128x1xf32>
    %90 = math.rsqrt %89 : vector<128x1xf32>
    %91 = vector.broadcast %90 : vector<128x1xf32> to vector<128x32xf32>
    %92 = arith.mulf %87, %91 : vector<128x32xf32>
    %93 = vector.broadcast %73 : vector<1x32xf32> to vector<128x32xf32>
    %94 = arith.mulf %92, %93 : vector<128x32xf32>
    %95 = vector.broadcast %74 : vector<1x32xf32> to vector<128x32xf32>
    %96 = arith.addf %94, %95 : vector<128x32xf32>
    %97 = arith.truncf %96 : vector<128x32xf32> to vector<128x32xbf16>
    %c0_35 = arith.constant 0 : index
    %c0_36 = arith.constant 0 : index
    %98 = vector.load %arg8[%c0_35, %c0_36] : memref<32x64xbf16, #tpu.memory_space<vmem>>, vector<32x64xbf16>
    %cst_37 = arith.constant dense<0.000000e+00> : vector<128x64xf32>
    %99 = tpu.matmul %97, %98, %cst_37 {dimension_numbers = #tpu.dot_dimension_numbers<[1], [0], [0], [1], [0, 0, 1, 1], [], []>} : vector<128x32xbf16>, vector<32x64xbf16>, vector<128x64xf32> -> vector<128x64xf32>
    %c0_38 = arith.constant 0 : index
    %c0_39 = arith.constant 0 : index
    %100 = vector.load %arg9[%c0_38, %c0_39] : memref<1x64xf32, #tpu.memory_space<vmem>>, vector<1x64xf32>
    %101 = vector.broadcast %100 : vector<1x64xf32> to vector<128x64xf32>
    %102 = arith.addf %99, %101 : vector<128x64xf32>
    %cst_40 = arith.constant 0.000000e+00 : f32
    %103 = vector.broadcast %cst_40 : f32 to vector<128x64xf32>
    %104 = arith.maximumf %102, %103 : vector<128x64xf32>
    %105 = arith.truncf %104 : vector<128x64xf32> to vector<128x64xbf16>
    %c0_41 = arith.constant 0 : index
    %c0_42 = arith.constant 0 : index
    %106 = vector.load %arg10[%c0_41, %c0_42] : memref<64x32xbf16, #tpu.memory_space<vmem>>, vector<64x32xbf16>
    %cst_43 = arith.constant dense<0.000000e+00> : vector<128x32xf32>
    %107 = tpu.matmul %105, %106, %cst_43 {dimension_numbers = #tpu.dot_dimension_numbers<[1], [0], [0], [1], [0, 0, 1, 1], [], []>} : vector<128x64xbf16>, vector<64x32xbf16>, vector<128x32xf32> -> vector<128x32xf32>
    %c0_44 = arith.constant 0 : index
    %c0_45 = arith.constant 0 : index
    %108 = vector.load %arg11[%c0_44, %c0_45] : memref<1x32xf32, #tpu.memory_space<vmem>>, vector<1x32xf32>
    %109 = vector.broadcast %108 : vector<1x32xf32> to vector<128x32xf32>
    %110 = arith.addf %107, %109 : vector<128x32xf32>
    %111 = arith.addf %96, %110 : vector<128x32xf32>
    %c0_46 = arith.constant 0 : index
    %c0_47 = arith.constant 0 : index
    %112 = vector.load %arg12[%c0_46, %c0_47] : memref<1x32xf32, #tpu.memory_space<vmem>>, vector<1x32xf32>
    %c0_48 = arith.constant 0 : index
    %c0_49 = arith.constant 0 : index
    %113 = vector.load %arg13[%c0_48, %c0_49] : memref<1x32xf32, #tpu.memory_space<vmem>>, vector<1x32xf32>
    %cst_50 = arith.constant dense<0.000000e+00> : vector<128xf32>
    %114 = vector.multi_reduction <add>, %111, %cst_50 [1] : vector<128x32xf32> to vector<128xf32>
    %115 = vector.shape_cast %114 : vector<128xf32> to vector<128x1xf32>
    %cst_51 = arith.constant 3.200000e+01 : f32
    %116 = vector.broadcast %cst_51 : f32 to vector<128x1xf32>
    %117 = arith.divf %115, %116 : vector<128x1xf32>
    %118 = vector.broadcast %117 : vector<128x1xf32> to vector<128x32xf32>
    %119 = arith.subf %111, %118 : vector<128x32xf32>
    %120 = arith.mulf %119, %119 : vector<128x32xf32>
    %cst_52 = arith.constant dense<0.000000e+00> : vector<128xf32>
    %121 = vector.multi_reduction <add>, %120, %cst_52 [1] : vector<128x32xf32> to vector<128xf32>
    %122 = vector.shape_cast %121 : vector<128xf32> to vector<128x1xf32>
    %cst_53 = arith.constant 3.200000e+01 : f32
    %123 = vector.broadcast %cst_53 : f32 to vector<128x1xf32>
    %124 = arith.divf %122, %123 : vector<128x1xf32>
    %125 = vector.broadcast %117 : vector<128x1xf32> to vector<128x32xf32>
    %126 = arith.subf %111, %125 : vector<128x32xf32>
    %cst_54 = arith.constant 9.99999974E-6 : f32
    %127 = vector.broadcast %cst_54 : f32 to vector<128x1xf32>
    %128 = arith.addf %124, %127 : vector<128x1xf32>
    %129 = math.rsqrt %128 : vector<128x1xf32>
    %130 = vector.broadcast %129 : vector<128x1xf32> to vector<128x32xf32>
    %131 = arith.mulf %126, %130 : vector<128x32xf32>
    %132 = vector.broadcast %112 : vector<1x32xf32> to vector<128x32xf32>
    %133 = arith.mulf %131, %132 : vector<128x32xf32>
    %134 = vector.broadcast %113 : vector<1x32xf32> to vector<128x32xf32>
    %135 = arith.addf %133, %134 : vector<128x32xf32>
    %c0_55 = arith.constant 0 : index
    %c0_56 = arith.constant 0 : index
    %136 = vector.load %arg14[%c0_55, %c0_56] : memref<1x32xf32, #tpu.memory_space<vmem>>, vector<1x32xf32>
    %c0_57 = arith.constant 0 : index
    %c0_58 = arith.constant 0 : index
    %137 = vector.load %arg15[%c0_57, %c0_58] : memref<1x32xf32, #tpu.memory_space<vmem>>, vector<1x32xf32>
    %cst_59 = arith.constant dense<0.000000e+00> : vector<128xf32>
    %138 = vector.multi_reduction <add>, %135, %cst_59 [1] : vector<128x32xf32> to vector<128xf32>
    %139 = vector.shape_cast %138 : vector<128xf32> to vector<128x1xf32>
    %cst_60 = arith.constant 3.200000e+01 : f32
    %140 = vector.broadcast %cst_60 : f32 to vector<128x1xf32>
    %141 = arith.divf %139, %140 : vector<128x1xf32>
    %142 = vector.broadcast %141 : vector<128x1xf32> to vector<128x32xf32>
    %143 = arith.subf %135, %142 : vector<128x32xf32>
    %144 = arith.mulf %143, %143 : vector<128x32xf32>
    %cst_61 = arith.constant dense<0.000000e+00> : vector<128xf32>
    %145 = vector.multi_reduction <add>, %144, %cst_61 [1] : vector<128x32xf32> to vector<128xf32>
    %146 = vector.shape_cast %145 : vector<128xf32> to vector<128x1xf32>
    %cst_62 = arith.constant 3.200000e+01 : f32
    %147 = vector.broadcast %cst_62 : f32 to vector<128x1xf32>
    %148 = arith.divf %146, %147 : vector<128x1xf32>
    %149 = vector.broadcast %141 : vector<128x1xf32> to vector<128x32xf32>
    %150 = arith.subf %135, %149 : vector<128x32xf32>
    %cst_63 = arith.constant 9.99999974E-6 : f32
    %151 = vector.broadcast %cst_63 : f32 to vector<128x1xf32>
    %152 = arith.addf %148, %151 : vector<128x1xf32>
    %153 = math.rsqrt %152 : vector<128x1xf32>
    %154 = vector.broadcast %153 : vector<128x1xf32> to vector<128x32xf32>
    %155 = arith.mulf %150, %154 : vector<128x32xf32>
    %156 = vector.broadcast %136 : vector<1x32xf32> to vector<128x32xf32>
    %157 = arith.mulf %155, %156 : vector<128x32xf32>
    %158 = vector.broadcast %137 : vector<1x32xf32> to vector<128x32xf32>
    %159 = arith.addf %157, %158 : vector<128x32xf32>
    %160 = vector.shape_cast %159 : vector<128x32xf32> to vector<16x8x32xf32>
    %c0_64 = arith.constant 0 : index
    %c0_65 = arith.constant 0 : index
    %c0_66 = arith.constant 0 : index
    %161 = vector.load %arg16[%c0_64, %c0_65, %c0_66] : memref<16x8x32xf32, #tpu.memory_space<vmem>>, vector<16x8x32xf32>
    tpu.vector_store %arg16[%c0_64, %c0_65, %c0_66], %160 {strides = array<i32>} : memref<16x8x32xf32, #tpu.memory_space<vmem>>, vector<16x8x32xf32>,
    return
  }
  func.func @transform_0(%arg0: i32) -> (i32, i32, i32) {
    %c0_i32 = arith.constant 0 : i32
    %c0_i32_0 = arith.constant 0 : i32
    %c0_i32_1 = arith.constant 0 : i32
    return %arg0, %c0_i32, %c0_i32_0 : i32, i32, i32
  }
  func.func @transform_1(%arg0: i32) -> (i32, i32) {
    %c0_i32 = arith.constant 0 : i32
    %c0_i32_0 = arith.constant 0 : i32
    %c0_i32_1 = arith.constant 0 : i32
    return %c0_i32, %c0_i32_0 : i32, i32
  }
  func.func @transform_2(%arg0: i32) -> (i32, i32) {
    %c0_i32 = arith.constant 0 : i32
    %c0_i32_0 = arith.constant 0 : i32
    %c0_i32_1 = arith.constant 0 : i32
    return %c0_i32, %c0_i32_0 : i32, i32
  }
  func.func @transform_3(%arg0: i32) -> (i32, i32, i32) {
    %c0_i32 = arith.constant 0 : i32
    %c0_i32_0 = arith.constant 0 : i32
    %c0_i32_1 = arith.constant 0 : i32
    %c0_i32_2 = arith.constant 0 : i32
    return %c0_i32, %c0_i32_0, %c0_i32_1 : i32, i32, i32
  }
  func.func @transform_4(%arg0: i32) -> (i32, i32) {
    %c0_i32 = arith.constant 0 : i32
    %c0_i32_0 = arith.constant 0 : i32
    %c0_i32_1 = arith.constant 0 : i32
    return %c0_i32, %c0_i32_0 : i32, i32
  }
  func.func @transform_5(%arg0: i32) -> (i32, i32) {
    %c0_i32 = arith.constant 0 : i32
    %c0_i32_0 = arith.constant 0 : i32
    %c0_i32_1 = arith.constant 0 : i32
    return %c0_i32, %c0_i32_0 : i32, i32
  }
  func.func @transform_6(%arg0: i32) -> (i32, i32) {
    %c0_i32 = arith.constant 0 : i32
    %c0_i32_0 = arith.constant 0 : i32
    %c0_i32_1 = arith.constant 0 : i32
    return %c0_i32, %c0_i32_0 : i32, i32
  }
  func.func @transform_7(%arg0: i32) -> (i32, i32) {
    %c0_i32 = arith.constant 0 : i32
    %c0_i32_0 = arith.constant 0 : i32
    %c0_i32_1 = arith.constant 0 : i32
    return %c0_i32, %c0_i32_0 : i32, i32
  }
  func.func @transform_8(%arg0: i32) -> (i32, i32) {
    %c0_i32 = arith.constant 0 : i32
    %c0_i32_0 = arith.constant 0 : i32
    %c0_i32_1 = arith.constant 0 : i32
    return %c0_i32, %c0_i32_0 : i32, i32
  }
  func.func @transform_9(%arg0: i32) -> (i32, i32) {
    %c0_i32 = arith.constant 0 : i32
    %c0_i32_0 = arith.constant 0 : i32
    %c0_i32_1 = arith.constant 0 : i32
    return %c0_i32, %c0_i32_0 : i32, i32
  }
  func.func @transform_10(%arg0: i32) -> (i32, i32) {
    %c0_i32 = arith.constant 0 : i32
    %c0_i32_0 = arith.constant 0 : i32
    %c0_i32_1 = arith.constant 0 : i32
    return %c0_i32, %c0_i32_0 : i32, i32
  }
  func.func @transform_11(%arg0: i32) -> (i32, i32) {
    %c0_i32 = arith.constant 0 : i32
    %c0_i32_0 = arith.constant 0 : i32
    %c0_i32_1 = arith.constant 0 : i32
    return %c0_i32, %c0_i32_0 : i32, i32
  }
  func.func @transform_12(%arg0: i32) -> (i32, i32) {
    %c0_i32 = arith.constant 0 : i32
    %c0_i32_0 = arith.constant 0 : i32
    %c0_i32_1 = arith.constant 0 : i32
    return %c0_i32, %c0_i32_0 : i32, i32
  }
  func.func @transform_13(%arg0: i32) -> (i32, i32) {
    %c0_i32 = arith.constant 0 : i32
    %c0_i32_0 = arith.constant 0 : i32
    %c0_i32_1 = arith.constant 0 : i32
    return %c0_i32, %c0_i32_0 : i32, i32
  }
  func.func @transform_14(%arg0: i32) -> (i32, i32) {
    %c0_i32 = arith.constant 0 : i32
    %c0_i32_0 = arith.constant 0 : i32
    %c0_i32_1 = arith.constant 0 : i32
    return %c0_i32, %c0_i32_0 : i32, i32
  }
  func.func @transform_15(%arg0: i32) -> (i32, i32, i32) {
    %c0_i32 = arith.constant 0 : i32
    %c0_i32_0 = arith.constant 0 : i32
    %c0_i32_1 = arith.constant 0 : i32
    return %arg0, %c0_i32, %c0_i32_0 : i32, i32, i32
  }
}

module attributes {stable_mosaic.version = 11 : i64} {
  func.func @out_proj_kernel(%arg0: i32, %arg1: memref<16x8x32xf32, #tpu.memory_space<vmem>>, %arg2: memref<32x128xbf16, #tpu.memory_space<vmem>>, %arg3: memref<1x128xf32, #tpu.memory_space<vmem>>, %arg4: memref<16x8x128xf32, #tpu.memory_space<vmem>>) attributes {dimension_semantics = [#tpu.dimension_semantics<parallel>], iteration_bounds = array<i64: 2>, scalar_prefetch = 0 : i64, scratch_operands = 0 : i64, tpu.core_type = #tpu.core_type<tc>, window_params = [{transform_indices = @transform_0, window_bounds = array<i64: 16, 8, 32>}, {pipeline_mode = #tpu.pipeline_mode<synchronous>, transform_indices = @transform_1, window_bounds = array<i64: 32, 128>}, {pipeline_mode = #tpu.pipeline_mode<synchronous>, transform_indices = @transform_2, window_bounds = array<i64: 1, 128>}, {transform_indices = @transform_3, window_bounds = array<i64: 16, 8, 128>}]} {
    %c0 = arith.constant 0 : index
    %c0_0 = arith.constant 0 : index
    %c0_1 = arith.constant 0 : index
    %0 = vector.load %arg1[%c0, %c0_0, %c0_1] : memref<16x8x32xf32, #tpu.memory_space<vmem>>, vector<16x8x32xf32>
    %1 = vector.shape_cast %0 : vector<16x8x32xf32> to vector<128x32xf32>
    %2 = arith.truncf %1 : vector<128x32xf32> to vector<128x32xbf16>
    %c0_2 = arith.constant 0 : index
    %c0_3 = arith.constant 0 : index
    %3 = vector.load %arg2[%c0_2, %c0_3] : memref<32x128xbf16, #tpu.memory_space<vmem>>, vector<32x128xbf16>
    %cst = arith.constant dense<0.000000e+00> : vector<128x128xf32>
    %4 = tpu.matmul %2, %3, %cst {dimension_numbers = #tpu.dot_dimension_numbers<[1], [0], [0], [1], [0, 0, 1, 1], [], []>} : vector<128x32xbf16>, vector<32x128xbf16>, vector<128x128xf32> -> vector<128x128xf32>
    %c0_4 = arith.constant 0 : index
    %c0_5 = arith.constant 0 : index
    %5 = vector.load %arg3[%c0_4, %c0_5] : memref<1x128xf32, #tpu.memory_space<vmem>>, vector<1x128xf32>
    %6 = vector.broadcast %5 : vector<1x128xf32> to vector<128x128xf32>
    %7 = arith.addf %4, %6 : vector<128x128xf32>
    %8 = vector.shape_cast %7 : vector<128x128xf32> to vector<16x8x128xf32>
    %c0_6 = arith.constant 0 : index
    %c0_7 = arith.constant 0 : index
    %c0_8 = arith.constant 0 : index
    %9 = vector.load %arg4[%c0_6, %c0_7, %c0_8] : memref<16x8x128xf32, #tpu.memory_space<vmem>>, vector<16x8x128xf32>
    tpu.vector_store %arg4[%c0_6, %c0_7, %c0_8], %8 {strides = array<i32>} : memref<16x8x128xf32, #tpu.memory_space<vmem>>, vector<16x8x128xf32>,
    return
  }
  func.func @transform_0(%arg0: i32) -> (i32, i32, i32) {
    %c0_i32 = arith.constant 0 : i32
    %c0_i32_0 = arith.constant 0 : i32
    %c0_i32_1 = arith.constant 0 : i32
    return %arg0, %c0_i32, %c0_i32_0 : i32, i32, i32
  }
  func.func @transform_1(%arg0: i32) -> (i32, i32) {
    %c0_i32 = arith.constant 0 : i32
    %c0_i32_0 = arith.constant 0 : i32
    %c0_i32_1 = arith.constant 0 : i32
    return %c0_i32, %c0_i32_0 : i32, i32
  }
  func.func @transform_2(%arg0: i32) -> (i32, i32) {
    %c0_i32 = arith.constant 0 : i32
    %c0_i32_0 = arith.constant 0 : i32
    %c0_i32_1 = arith.constant 0 : i32
    return %c0_i32, %c0_i32_0 : i32, i32
  }
  func.func @transform_3(%arg0: i32) -> (i32, i32, i32) {
    %c0_i32 = arith.constant 0 : i32
    %c0_i32_0 = arith.constant 0 : i32
    %c0_i32_1 = arith.constant 0 : i32
    return %arg0, %c0_i32, %c0_i32_0 : i32, i32, i32
  }
}

</mosaic_0001>

<bundles_post_ra>
// kernel: transformer_forward.4
= control target key start
LH: loop header
LB: loop body
LE: loop exit
PB: predicated region body
PF: predicated region fallthrough
CT: control target
= control target key end

     0   :  { %s463_s15 = smov 0   ;;  %s574_s0 = inlined_call_operand.vmem [shape: f32[32,8,4], index: 0, kind: input, shape index: {}]   ;;  %s575_s1 = inlined_call_operand.vmem [shape: bf16[4,32], index: 1, kind: input, shape index: {}]   ;;  %s576_s2 = inlined_call_operand.vmem [shape: f32[1,32], index: 2, kind: input, shape index: {}]   ;;  %s577_s3 = inlined_call_operand.vmem [shape: f32[8,32], index: 3, kind: input, shape index: {}]   ;;  %s578_s4 = inlined_call_operand.vmem [shape: f32[32,8,32], index: 4, kind: output, shape index: {}]  }
   0x1 LB: > { %s399_s16 = sadd.s32 4294967295, %s436_s15   ;;  %p403_p0 = scmp.ge.s32.totalorder %s436_s15, 1  ;;  %s436_s15 = sphi %s463_s15, %s14_s15  }
   0x2   : > { %p163_p1 = scmp.lt.s32.totalorder %s436_s15, 3 }
   0x4   : > { %p164_p2 = pnand %p403_p0, %p163_p1 }
   0x5   : > { %s404_s19 = sshll.u32 (!%p164_p2), %s399_s16, 4 }
   0x6   : > { %167 = sbr.rel (%p164_p2) target bundleno = 181 (0xb5), region = 36  ;;  %p190_p3 = scmp.lt.s32.totalorder (!%p164_p2), %s404_s19, 31 }
   0xb   : > { %v226_v0 = vld [vmem:[%s575_s1] sm:$0x3]  ;;  %vm256_vm0 = vcmask 1041408   ;;  %s580_s19 = smov (!%p190_p3, %s404_s19), 31  ;;  %vm231_vm1 = vcmask 31744   ;;  %vm326_vm2 = vcmask 261120  }
   0xc   : > { %v258_v1 = vsel %vm256_vm0, %v226_v0, 0  ;;  %s405_s20 = sshll.u32 %s580_s19, 3  ;;  %v493_v26 = vld [vmem:[%s576_s2] ss:$0 sm:$0xff] }
   0xd   : > { %267 = vmatpush.bf16.msra.mxu0 %v258_v1  ;;  %418 = vmatpush.bf16.msra.mxu1 %v258_v1  ;;  %s193_s23 = scalar_lea.vmem %s574_s0, %s405_s20  ;;  %v498_v28 = vld [vmem:[%s577_s3] sm:$0xff]  ;;  %s506_s30 = scalar_lea.vmem %s578_s4, %s405_s20 }
   0xe   : > { %419 = vmatpush.bf16.msra.mxu2 %v258_v1  ;;  %420 = vmatpush.bf16.msra.mxu3 %v258_v1  ;;  %v202_v2 = vld [vmem:[%s193_s23] sm:$0xff]  ;;  %v203_v3 = vld [vmem:[%s193_s23 + $0x8] sm:$0xff]  ;;  %v204_v14 = vld [vmem:[%s193_s23 + $0x10] sm:$0xff] }
   0xf   : > { %v206_v4 = vld [vmem:[%s193_s23 + $0x20] sm:$0xff]  ;;  %v218_v5 = vpack.c.bf16 %v203_v3, %v202_v2  ;;  %v207_v6 = vld [vmem:[%s193_s23 + $0x28] sm:$0xff]  ;;  %v205_v15 = vld [vmem:[%s193_s23 + $0x18] sm:$0xff] }
  0x10   : > { %v210_v7 = vld [vmem:[%s193_s23 + $0x40] sm:$0xff]  ;;  %v211_v8 = vld [vmem:[%s193_s23 + $0x48] sm:$0xff]  ;;  %v220_v9 = vpack.c.bf16 %v207_v6, %v206_v4  ;;  %v208_v16 = vld [vmem:[%s193_s23 + $0x30] sm:$0xff]  ;;  %v219_v22 = vpack.c.bf16 %v205_v15, %v204_v14 }
  0x11   : > { %v222_v10 = vpack.c.bf16 %v211_v8, %v210_v7  ;;  %v214_v11 = vld [vmem:[%s193_s23 + $0x60] sm:$0xff]  ;;  %v215_v12 = vld [vmem:[%s193_s23 + $0x68] sm:$0xff]  ;;  %408 = vmatmul.msk.bf16.vlgmr.msra.gmra.mxu0 %vm231_vm1, %v218_v5  ;;  %v209_v17 = vld [vmem:[%s193_s23 + $0x38] sm:$0xff] }
  0x12   : > { %v224_v13 = vpack.c.bf16 %v215_v12, %v214_v11  ;;  %410 = vmatmul.msk.bf16.vlgmr.msra.gmra.mxu1 %vm231_vm1, %v220_v9  ;;  %v212_v18 = vld [vmem:[%s193_s23 + $0x50] sm:$0xff]  ;;  %v213_v19 = vld [vmem:[%s193_s23 + $0x58] sm:$0xff]  ;;  %v221_v23 = vpack.c.bf16 %v209_v17, %v208_v16 }
  0x13   : > { %412 = vmatmul.msk.bf16.vlgmr.msra.gmra.mxu2 %vm231_vm1, %v222_v10  ;;  %v216_v20 = vld [vmem:[%s193_s23 + $0x70] sm:$0xff]  ;;  %v217_v21 = vld [vmem:[%s193_s23 + $0x78] sm:$0xff]  ;;  %v223_v24 = vpack.c.bf16 %v213_v19, %v212_v18 }
  0x14   : > { %414 = vmatmul.msk.bf16.vlgmr.msra.gmra.mxu3 %vm231_vm1, %v224_v13  ;;  %v225_v25 = vpack.c.bf16 %v217_v21, %v216_v20 }
  0x21   : > { %409 = vmatmul.msk.bf16.gmra.mxu0 %vm231_vm1, %v219_v22 }
  0x22   : > { %411 = vmatmul.msk.bf16.gmra.mxu1 %vm231_vm1, %v221_v23 }
  0x23   : > { %413 = vmatmul.msk.bf16.gmra.mxu2 %vm231_vm1, %v223_v24 }
  0x24   : > { %415 = vmatmul.msk.bf16.gmra.mxu3 %vm231_vm1, %v225_v25 }
  0x8e   : > { %v269_v27 = vpop.f32.mrf.mxu0 }
  0x8f   : > { %v270_v29 = vadd.f32 %v493_v26, %v269_v27  ;;  %v279_v30 = vpop.f32.mrf.mxu1 }
  0x90   : > { %v280_v31 = vadd.f32 %v493_v26, %v279_v30 }
  0x91   : > { %v310_v32 = vadd.f32 %v498_v28, %v270_v29 }
  0x92   : > { %v314_v33 = vadd.f32 %v498_v28, %v280_v31 }
  0x93   : > { %327 = vst.msk [vmem:[%s506_s30] sm:$0xff] %vm326_vm2, %v310_v32 }
  0x94   : > { %331 = vst.msk [vmem:[%s506_s30 + $0x20] sm:$0xff] %vm326_vm2, %v314_v33 }
  0x96   : > { %v289_v34 = vpop.f32.mrf.mxu2  ;;  %v271_v37 = vpop.f32.mrf.mxu0 }
  0x97   : > { %v290_v35 = vadd.f32 %v493_v26, %v289_v34  ;;  %v299_v36 = vpop.f32.mrf.mxu3  ;;  %v272_v39 = vadd.f32 %v493_v26, %v271_v37  ;;  %v281_v40 = vpop.f32.mrf.mxu1 }
  0x98   : > { %v300_v38 = vadd.f32 %v493_v26, %v299_v36  ;;  %v282_v42 = vadd.f32 %v493_v26, %v281_v40 }
  0x99   : > { %v318_v41 = vadd.f32 %v498_v28, %v290_v35  ;;  %v311_v44 = vadd.f32 %v498_v28, %v272_v39 }
  0x9a   : > { %v322_v43 = vadd.f32 %v498_v28, %v300_v38  ;;  %v315_v45 = vadd.f32 %v498_v28, %v282_v42 }
  0x9b   : > { %335 = vst.msk [vmem:[%s506_s30 + $0x40] sm:$0xff] %vm326_vm2, %v318_v41 }
  0x9c   : > { %339 = vst.msk [vmem:[%s506_s30 + $0x60] sm:$0xff] %vm326_vm2, %v322_v43 }
  0x9d   : > { %328 = vst.msk [vmem:[%s506_s30 + $0x8] sm:$0xff] %vm326_vm2, %v311_v44 }
  0x9e   : > { %332 = vst.msk [vmem:[%s506_s30 + $0x28] sm:$0xff] %vm326_vm2, %v315_v45  ;;  %v291_v46 = vpop.f32.mrf.mxu2  ;;  %v274_v49 = vpop.f32.mrf.mxu0 }
  0x9f   : > { %v292_v47 = vadd.f32 %v493_v26, %v291_v46  ;;  %v301_v48 = vpop.f32.mrf.mxu3  ;;  %v275_v51 = vadd.f32 %v493_v26, %v274_v49  ;;  %v284_v52 = vpop.f32.mrf.mxu1 }
  0xa0   : > { %v302_v50 = vadd.f32 %v493_v26, %v301_v48  ;;  %v285_v54 = vadd.f32 %v493_v26, %v284_v52 }
  0xa1   : > { %v319_v53 = vadd.f32 %v498_v28, %v292_v47  ;;  %v312_v56 = vadd.f32 %v498_v28, %v275_v51 }
  0xa2   : > { %v323_v55 = vadd.f32 %v498_v28, %v302_v50  ;;  %v316_v57 = vadd.f32 %v498_v28, %v285_v54 }
  0xa3   : > { %336 = vst.msk [vmem:[%s506_s30 + $0x48] sm:$0xff] %vm326_vm2, %v319_v53 }
  0xa4   : > { %340 = vst.msk [vmem:[%s506_s30 + $0x68] sm:$0xff] %vm326_vm2, %v323_v55 }
  0xa5   : > { %329 = vst.msk [vmem:[%s506_s30 + $0x10] sm:$0xff] %vm326_vm2, %v312_v56 }
  0xa6   : > { %333 = vst.msk [vmem:[%s506_s30 + $0x30] sm:$0xff] %vm326_vm2, %v316_v57  ;;  %v294_v58 = vpop.f32.mrf.mxu2  ;;  %v276_v61 = vpop.f32.mrf.mxu0 }
  0xa7   : > { %v295_v59 = vadd.f32 %v493_v26, %v294_v58  ;;  %v304_v60 = vpop.f32.mrf.mxu3  ;;  %v277_v63 = vadd.f32 %v493_v26, %v276_v61  ;;  %v286_v0 = vpop.f32.mrf.mxu1 }
  0xa8   : > { %v305_v62 = vadd.f32 %v493_v26, %v304_v60  ;;  %v287_v2 = vadd.f32 %v493_v26, %v286_v0 }
  0xa9   : > { %v320_v1 = vadd.f32 %v498_v28, %v295_v59  ;;  %v313_v4 = vadd.f32 %v498_v28, %v277_v63 }
  0xaa   : > { %v324_v3 = vadd.f32 %v498_v28, %v305_v62  ;;  %v317_v5 = vadd.f32 %v498_v28, %v287_v2 }
  0xab   : > { %337 = vst.msk [vmem:[%s506_s30 + $0x50] sm:$0xff] %vm326_vm2, %v320_v1 }
  0xac   : > { %341 = vst.msk [vmem:[%s506_s30 + $0x70] sm:$0xff] %vm326_vm2, %v324_v3 }
  0xad   : > { %330 = vst.msk [vmem:[%s506_s30 + $0x18] sm:$0xff] %vm326_vm2, %v313_v4 }
  0xae   : > { %334 = vst.msk [vmem:[%s506_s30 + $0x38] sm:$0xff] %vm326_vm2, %v317_v5  ;;  %v296_v6 = vpop.f32.mrf.mxu2 }
  0xaf   : > { %v297_v7 = vadd.f32 %v493_v26, %v296_v6  ;;  %v306_v8 = vpop.f32.mrf.mxu3 }
  0xb0   : > { %v307_v9 = vadd.f32 %v493_v26, %v306_v8 }
  0xb1   : > { %v321_v10 = vadd.f32 %v498_v28, %v297_v7 }
  0xb2   : > { %v325_v11 = vadd.f32 %v498_v28, %v307_v9 }
  0xb3   : > { %338 = vst.msk [vmem:[%s506_s30 + $0x58] sm:$0xff] %vm326_vm2, %v321_v10 }
  0xb4   : > { %342 = vst.msk [vmem:[%s506_s30 + $0x78] sm:$0xff] %vm326_vm2, %v325_v11 }
  0xb5 PF: > { %s14_s15 = sadd.s32 1, %s436_s15  }
  0xb6   : > { %p11_p4 = scmp.ge.s32.totalorder %s14_s15, 4  }
  0xb8   :  { %13 = sbr.rel (!%p11_p4) target bundleno = 1 (0x1), region = 66 }

// kernel: transformer_forward.7
= control target key start
LH: loop header
LB: loop body
LE: loop exit
PB: predicated region body
PF: predicated region fallthrough
CT: control target
= control target key end

     0   :  { %s437_s12 = smov 0   ;;  %s496_s0 = inlined_call_operand.vmem [shape: f32[32,8,32], index: 0, kind: input, shape index: {}]   ;;  %s497_s1 = inlined_call_operand.vmem [shape: bf16[32,128], index: 1, kind: input, shape index: {}]   ;;  %s498_s2 = inlined_call_operand.vmem [shape: f32[1,128], index: 2, kind: input, shape index: {}]   ;;  %s499_s3 = inlined_call_operand.vmem [shape: f32[32,8,128], index: 3, kind: output, shape index: {}]  }
   0x1 LB: > { %s365_s13 = sadd.s32 4294967295, %s415_s12   ;;  %p369_p0 = scmp.ge.s32.totalorder %s415_s12, 1  ;;  %s415_s12 = sphi %s437_s12, %s13_s12  }
   0x2   : > { %p138_p1 = scmp.lt.s32.totalorder %s415_s12, 3 }
   0x4   : > { %p139_p2 = pnand %p369_p0, %p138_p1 }
   0x5   : > { %s370_s16 = sshll.u32 (!%p139_p2), %s365_s13, 4 }
   0x6   : > { %142 = sbr.rel (%p139_p2) target bundleno = 180 (0xb4), region = 32  ;;  %p163_p3 = scmp.lt.s32.totalorder (!%p139_p2), %s370_s16, 31 }
   0xb   : > { %v393_v0 = vld [vmem:[%s497_s1 + $0x8] sm:$0xff]  ;;  %v392_v1 = vld [vmem:[%s497_s1] sm:$0xff]  ;;  %s501_s16 = smov (!%p163_p3, %s370_s16), 31  ;;  %vm219_vm0 = vcmask 261120  }
   0xc   : > { %250 = vmatpush.bf16.msra.mxu0 %v393_v0  ;;  %394 = vmatpush.bf16.msra.mxu1 %v393_v0  ;;  %s371_s19 = sshll.u32 %s501_s16, 3  ;;  %v408_v26 = vld [vmem:[%s498_s2] ss:$0 sm:$0xff] }
   0xd   : > { %395 = vmatpush.bf16.msra.mxu2 %v393_v0  ;;  %396 = vmatpush.bf16.msra.mxu3 %v393_v0  ;;  %s166_s22 = scalar_lea.vmem %s496_s0, %s371_s19  ;;  %s475_s27 = scalar_lea.vmem %s499_s3, %s371_s19 }
   0xe   : > { %v175_v2 = vld [vmem:[%s166_s22] sm:$0xff]  ;;  %v176_v3 = vld [vmem:[%s166_s22 + $0x8] sm:$0xff]  ;;  %v177_v14 = vld [vmem:[%s166_s22 + $0x10] sm:$0xff] }
   0xf   : > { %v179_v4 = vld [vmem:[%s166_s22 + $0x20] sm:$0xff]  ;;  %v191_v5 = vpack.c.bf16 %v176_v3, %v175_v2  ;;  %v180_v6 = vld [vmem:[%s166_s22 + $0x28] sm:$0xff]  ;;  %v178_v15 = vld [vmem:[%s166_s22 + $0x18] sm:$0xff] }
  0x10   : > { %251 = vmatpush.bf16.msra.mxu0 %v392_v1  ;;  %397 = vmatpush.bf16.msra.mxu1 %v392_v1  ;;  %v183_v7 = vld [vmem:[%s166_s22 + $0x40] sm:$0xff]  ;;  %v184_v8 = vld [vmem:[%s166_s22 + $0x48] sm:$0xff]  ;;  %v193_v9 = vpack.c.bf16 %v180_v6, %v179_v4  ;;  %v181_v16 = vld [vmem:[%s166_s22 + $0x30] sm:$0xff]  ;;  %v192_v22 = vpack.c.bf16 %v178_v15, %v177_v14 }
  0x11   : > { %398 = vmatpush.bf16.msra.mxu2 %v392_v1  ;;  %399 = vmatpush.bf16.msra.mxu3 %v392_v1  ;;  %v195_v10 = vpack.c.bf16 %v184_v8, %v183_v7  ;;  %v187_v11 = vld [vmem:[%s166_s22 + $0x60] sm:$0xff]  ;;  %v188_v12 = vld [vmem:[%s166_s22 + $0x68] sm:$0xff]  ;;  %v182_v17 = vld [vmem:[%s166_s22 + $0x38] sm:$0xff] }
  0x12   : > { %v197_v13 = vpack.c.bf16 %v188_v12, %v187_v11  ;;  %v185_v18 = vld [vmem:[%s166_s22 + $0x50] sm:$0xff]  ;;  %v186_v19 = vld [vmem:[%s166_s22 + $0x58] sm:$0xff]  ;;  %v194_v23 = vpack.c.bf16 %v182_v17, %v181_v16 }
  0x13   : > { %382 = vmatmul.msk.bf16.vlgmr.msra.gmra.mxu0 %vm219_vm0, %v191_v5  ;;  %384 = vmatmul.msk.bf16.vlgmr.msra.gmra.mxu1 %vm219_vm0, %v193_v9  ;;  %v189_v20 = vld [vmem:[%s166_s22 + $0x70] sm:$0xff]  ;;  %v190_v21 = vld [vmem:[%s166_s22 + $0x78] sm:$0xff]  ;;  %v196_v24 = vpack.c.bf16 %v186_v19, %v185_v18 }
  0x14   : > { %386 = vmatmul.msk.bf16.vlgmr.msra.gmra.mxu2 %vm219_vm0, %v195_v10  ;;  %388 = vmatmul.msk.bf16.vlgmr.msra.gmra.mxu3 %vm219_vm0, %v197_v13  ;;  %v198_v25 = vpack.c.bf16 %v190_v21, %v189_v20 }
  0x23   : > { %383 = vmatmul.msk.bf16.gmra.mxu0 %vm219_vm0, %v192_v22  ;;  %385 = vmatmul.msk.bf16.gmra.mxu1 %vm219_vm0, %v194_v23 }
  0x24   : > { %387 = vmatmul.msk.bf16.gmra.mxu2 %vm219_vm0, %v196_v24  ;;  %389 = vmatmul.msk.bf16.gmra.mxu3 %vm219_vm0, %v198_v25 }
  0x90   : > { %v253_v27 = vpop.f32.mrf.mxu0  ;;  %v263_v29 = vpop.f32.mrf.mxu1 }
  0x91   : > { %v254_v28 = vadd.f32 %v408_v26, %v253_v27  ;;  %v264_v30 = vadd.f32 %v408_v26, %v263_v29 }
  0x93   : > { %293 = vst [vmem:[%s475_s27] sm:$0xff] %v254_v28 }
  0x94   : > { %297 = vst [vmem:[%s475_s27 + $0x20] sm:$0xff] %v264_v30 }
  0x97   : > { %v273_v31 = vpop.f32.mrf.mxu2  ;;  %v283_v33 = vpop.f32.mrf.mxu3 }
  0x98   : > { %v274_v32 = vadd.f32 %v408_v26, %v273_v31  ;;  %v255_v34 = vpop.f32.mrf.mxu0  ;;  %v284_v35 = vadd.f32 %v408_v26, %v283_v33  ;;  %v265_v37 = vpop.f32.mrf.mxu1 }
  0x99   : > { %v256_v36 = vadd.f32 %v408_v26, %v255_v34  ;;  %v266_v38 = vadd.f32 %v408_v26, %v265_v37 }
  0x9a   : > { %301 = vst [vmem:[%s475_s27 + $0x40] sm:$0xff] %v274_v32 }
  0x9b   : > { %305 = vst [vmem:[%s475_s27 + $0x60] sm:$0xff] %v284_v35 }
  0x9c   : > { %294 = vst [vmem:[%s475_s27 + $0x8] sm:$0xff] %v256_v36 }
  0x9d   : > { %298 = vst [vmem:[%s475_s27 + $0x28] sm:$0xff] %v266_v38 }
  0x9f   : > { %v275_v39 = vpop.f32.mrf.mxu2  ;;  %v285_v41 = vpop.f32.mrf.mxu3 }
  0xa0   : > { %v276_v40 = vadd.f32 %v408_v26, %v275_v39  ;;  %v258_v42 = vpop.f32.mrf.mxu0  ;;  %v286_v43 = vadd.f32 %v408_v26, %v285_v41  ;;  %v268_v45 = vpop.f32.mrf.mxu1 }
  0xa1   : > { %v259_v44 = vadd.f32 %v408_v26, %v258_v42  ;;  %v269_v46 = vadd.f32 %v408_v26, %v268_v45 }
  0xa2   : > { %302 = vst [vmem:[%s475_s27 + $0x48] sm:$0xff] %v276_v40 }
  0xa3   : > { %306 = vst [vmem:[%s475_s27 + $0x68] sm:$0xff] %v286_v43 }
  0xa4   : > { %295 = vst [vmem:[%s475_s27 + $0x10] sm:$0xff] %v259_v44 }
  0xa5   : > { %299 = vst [vmem:[%s475_s27 + $0x30] sm:$0xff] %v269_v46 }
  0xa7   : > { %v278_v47 = vpop.f32.mrf.mxu2  ;;  %v288_v49 = vpop.f32.mrf.mxu3 }
  0xa8   : > { %v279_v48 = vadd.f32 %v408_v26, %v278_v47  ;;  %v260_v50 = vpop.f32.mrf.mxu0  ;;  %v289_v51 = vadd.f32 %v408_v26, %v288_v49  ;;  %v270_v53 = vpop.f32.mrf.mxu1 }
  0xa9   : > { %v261_v52 = vadd.f32 %v408_v26, %v260_v50  ;;  %v271_v54 = vadd.f32 %v408_v26, %v270_v53 }
  0xaa   : > { %303 = vst [vmem:[%s475_s27 + $0x50] sm:$0xff] %v279_v48 }
  0xab   : > { %307 = vst [vmem:[%s475_s27 + $0x70] sm:$0xff] %v289_v51 }
  0xac   : > { %296 = vst [vmem:[%s475_s27 + $0x18] sm:$0xff] %v261_v52 }
  0xad   : > { %300 = vst [vmem:[%s475_s27 + $0x38] sm:$0xff] %v271_v54 }
  0xaf   : > { %v280_v55 = vpop.f32.mrf.mxu2  ;;  %v290_v57 = vpop.f32.mrf.mxu3 }
  0xb0   : > { %v281_v56 = vadd.f32 %v408_v26, %v280_v55  ;;  %v291_v58 = vadd.f32 %v408_v26, %v290_v57 }
  0xb2   : > { %304 = vst [vmem:[%s475_s27 + $0x58] sm:$0xff] %v281_v56 }
  0xb3   : > { %308 = vst [vmem:[%s475_s27 + $0x78] sm:$0xff] %v291_v58 }
  0xb4 PF: > { %s13_s12 = sadd.s32 1, %s415_s12  }
  0xb5   : > { %p10_p4 = scmp.ge.s32.totalorder %s13_s12, 4  }
  0xb7   :  { %12 = sbr.rel (!%p10_p4) target bundleno = 1 (0x1), region = 62 }

// kernel: transformer_forward.5
= control target key start
LH: loop header
LB: loop body
LE: loop exit
PB: predicated region body
PF: predicated region fallthrough
CT: control target
= control target key end

     0   :  { %s4234_s25 = smov 0   ;;  %s5941_s0 = inlined_call_operand.vmem [shape: f32[32,8,32], index: 0, kind: input, shape index: {}]   ;;  %s5942_s1 = inlined_call_operand.vmem [shape: bf16[32,96], index: 1, kind: input, shape index: {}]   ;;  %s5943_s2 = inlined_call_operand.vmem [shape: f32[1,96], index: 2, kind: input, shape index: {}]   ;;  %s5944_s3 = inlined_call_operand.vmem [shape: bf16[2,16,32], index: 3, kind: input, shape index: {}]   ;;  %s5945_s4 = inlined_call_operand.vmem [shape: f32[1,32], index: 4, kind: input, shape index: {}]   ;;  %s5946_s5 = inlined_call_operand.vmem [shape: f32[1,32], index: 5, kind: input, shape index: {}]   ;;  %s5947_s6 = inlined_call_operand.vmem [shape: f32[1,32], index: 6, kind: input, shape index: {}]   ;;  %s5948_s7 = inlined_call_operand.vmem [shape: bf16[32,64], index: 7, kind: input, shape index: {}]   ;;  %s5949_s8 = inlined_call_operand.vmem [shape: f32[1,64], index: 8, kind: input, shape index: {}]   ;;  %s5950_s9 = inlined_call_operand.vmem [shape: bf16[64,32], index: 9, kind: input, shape index: {}]   ;;  %s5951_s10 = inlined_call_operand.vmem [shape: f32[1,32], index: 10, kind: input, shape index: {}]   ;;  %s5952_s11 = inlined_call_operand.vmem [shape: f32[1,32], index: 11, kind: input, shape index: {}]   ;;  %s5953_s12 = inlined_call_operand.vmem [shape: f32[1,32], index: 12, kind: input, shape index: {}]   ;;  %s5954_s13 = inlined_call_operand.vmem [shape: f32[32,8,32], index: 13, kind: output, shape index: {}]  }
   0x1 LB: > { %s3751_s26 = sadd.s32 4294967295, %s4156_s25   ;;  %p3755_p0 = scmp.ge.s32.totalorder %s4156_s25, 1  ;;  %s4156_s25 = sphi %s4234_s25, %s23_s25  }
   0x2   : > { %p388_p1 = scmp.lt.s32.totalorder %s4156_s25, 3 }
   0x4   : > { %p389_p2 = pnand %p3755_p0, %p388_p1 }
   0x5   : > { %s3756_s29 = sshll.u32 (!%p389_p2), %s3751_s26, 4  ;;  %s4158_s21 = smov (!%p389_p2), 96  }
   0x6   : > { %392 = sbr.rel (%p389_p2) target bundleno = 2580 (0xa14), region = 72  ;;  %p433_p3 = scmp.lt.s32.totalorder (!%p389_p2), %s3756_s29, 31 }
   0x7   : > { %s4159_s22 = smov (!%p389_p2), 64   ;;  %s4160_s23 = smov (!%p389_p2), 80  }
   0x8   : > { %s4161_s24 = smov (!%p389_p2), 112   ;;  %s4162_s26 = smov (!%p389_p2), 48  }
   0xb   : > { %v3909_v0 = vld [vmem:[%s5942_s1 + $0x8] sm:$0xff]  ;;  %v3908_v1 = vld [vmem:[%s5942_s1] sm:$0xff]  ;;  %s5956_s29 = smov (!%p433_p3, %s3756_s29), 31  ;;  %vm489_vm0 = vcmask 261120   ;;  %vm584_vm1 = vcmask 130048   ;;  %vm1178_vm2 = vcmask 1043456  }
   0xc   : > { %520 = vmatpush.bf16.msra.mxu0 %v3909_v0  ;;  %s3757_s15 = sshll.u32 %s5956_s29, 3  ;;  %v4285_v26 = vld [vmem:[%s5943_s2] ss:$0 sm:$0xff]  ;;  %vm980_vm3 = vcmask 64512  }
   0xd   : > { %s4256_s18 = scalar_lea.vmem %s5941_s0, %s3757_s15  ;;  %s5784_s16 = scalar_lea.vmem %s5954_s13, %s3757_s15 }
   0xe   : > { %v445_v2 = vld [vmem:[%s4256_s18] sm:$0xff]  ;;  %v446_v3 = vld [vmem:[%s4256_s18 + $0x8] sm:$0xff]  ;;  %v447_v5 = vld [vmem:[%s4256_s18 + $0x10] sm:$0xff] }
   0xf   : > { %v461_v4 = vpack.c.bf16 %v446_v3, %v445_v2  ;;  %v448_v6 = vld [vmem:[%s4256_s18 + $0x18] sm:$0xff]  ;;  %v449_v8 = vld [vmem:[%s4256_s18 + $0x20] sm:$0xff]  ;;  %v450_v9 = vld [vmem:[%s4256_s18 + $0x28] sm:$0xff] }
  0x10   : > { %521 = vmatpush.bf16.msra.mxu0 %v3908_v1  ;;  %v462_v7 = vpack.c.bf16 %v448_v6, %v447_v5  ;;  %v463_v10 = vpack.c.bf16 %v450_v9, %v449_v8  ;;  %v451_v11 = vld [vmem:[%s4256_s18 + $0x30] sm:$0xff]  ;;  %v452_v12 = vld [vmem:[%s4256_s18 + $0x38] sm:$0xff]  ;;  %v453_v14 = vld [vmem:[%s4256_s18 + $0x40] sm:$0xff] }
  0x11   : > { %v464_v13 = vpack.c.bf16 %v452_v12, %v451_v11  ;;  %v454_v15 = vld [vmem:[%s4256_s18 + $0x48] sm:$0xff]  ;;  %v455_v17 = vld [vmem:[%s4256_s18 + $0x50] sm:$0xff]  ;;  %v456_v18 = vld [vmem:[%s4256_s18 + $0x58] sm:$0xff] }
  0x12   : > { %v465_v16 = vpack.c.bf16 %v454_v15, %v453_v14  ;;  %v466_v19 = vpack.c.bf16 %v456_v18, %v455_v17  ;;  %v457_v20 = vld [vmem:[%s4256_s18 + $0x60] sm:$0xff]  ;;  %v458_v21 = vld [vmem:[%s4256_s18 + $0x68] sm:$0xff]  ;;  %v459_v23 = vld [vmem:[%s4256_s18 + $0x70] sm:$0xff] }
  0x13   : > { %3768 = vmatmul.msk.bf16.vlgmr.msra.gmra.mxu0 %vm489_vm0, %v461_v4  ;;  %v467_v22 = vpack.c.bf16 %v458_v21, %v457_v20  ;;  %v460_v24 = vld [vmem:[%s4256_s18 + $0x78] sm:$0xff] }
  0x14   : > { %v468_v25 = vpack.c.bf16 %v460_v24, %v459_v23 }
  0x23   : > { %3769 = vmatmul.msk.bf16.gmra.mxu0 %vm489_vm0, %v462_v7 }
  0x33   : > { %3770 = vmatmul.msk.bf16.gmra.mxu0 %vm489_vm0, %v463_v10 }
  0x43   : > { %3771 = vmatmul.msk.bf16.gmra.mxu0 %vm489_vm0, %v464_v13 }
  0x53   : > { %3772 = vmatmul.msk.bf16.gmra.mxu0 %vm489_vm0, %v465_v16 }
  0x63   : > { %3773 = vmatmul.msk.bf16.gmra.mxu0 %vm489_vm0, %v466_v19 }
  0x73   : > { %3774 = vmatmul.msk.bf16.gmra.mxu0 %vm489_vm0, %v467_v22 }
  0x83   : > { %3775 = vmatmul.msk.bf16.gmra.mxu0 %vm489_vm0, %v468_v25 }
  0x90   : > { %v523_v27 = vpop.f32.mrf.mxu0 }
  0x91   : > { %v524_v28 = vadd.f32 %v4285_v26, %v523_v27 }
  0x93   : > { %v4288_v29 = vpack.c.bf16 %v524_v28, %v524_v28 }
  0x95   : > { %v580_v30 = vunpack.c.l.b16 %v4288_v29 }
  0x97   : > { %v4291_v31 = vpack.c.b16 %v580_v30, %v580_v30 }
  0x98   : > { %v525_v32 = vpop.f32.mrf.mxu0 }
  0x99   : > { %v526_v33 = vadd.f32 %v4285_v26, %v525_v32  ;;  %582 = vrot.lane.b32.xlu0 %v4291_v31, %s4158_s21 }
  0x9b   : > { %v4296_v34 = vpack.c.bf16 %v526_v33, %v526_v33 }
  0x9d   : > { %v605_v35 = vunpack.c.l.b16 %v4296_v34 }
  0x9f   : > { %v4299_v36 = vpack.c.b16 %v605_v35, %v605_v35 }
  0xa0   : > { %v528_v37 = vpop.f32.mrf.mxu0 }
  0xa1   : > { %v529_v38 = vadd.f32 %v4285_v26, %v528_v37  ;;  %607 = vrot.lane.b32.xlu0 %v4299_v36, %s4158_s21 }
  0xa3   : > { %v4304_v39 = vpack.c.bf16 %v529_v38, %v529_v38 }
  0xa5   : > { %v629_v40 = vunpack.c.l.b16 %v4304_v39 }
  0xa7   : > { %v4307_v41 = vpack.c.b16 %v629_v40, %v629_v40 }
  0xa8   : > { %v530_v42 = vpop.f32.mrf.mxu0 }
  0xa9   : > { %v531_v43 = vadd.f32 %v4285_v26, %v530_v42  ;;  %631 = vrot.lane.b32.xlu1 %v4307_v41, %s4158_s21 }
  0xab   : > { %v4312_v44 = vpack.c.bf16 %v531_v43, %v531_v43 }
  0xad   : > { %v653_v45 = vunpack.c.l.b16 %v4312_v44 }
  0xaf   : > { %v4315_v46 = vpack.c.b16 %v653_v45, %v653_v45 }
  0xb0   : > { %v533_v47 = vpop.f32.mrf.mxu0 }
  0xb1   : > { %v534_v48 = vadd.f32 %v4285_v26, %v533_v47  ;;  %655 = vrot.lane.b32.xlu1 %v4315_v46, %s4158_s21 }
  0xb3   : > { %v4320_v49 = vpack.c.bf16 %v534_v48, %v534_v48 }
  0xb5   : > { %v677_v50 = vunpack.c.l.b16 %v4320_v49 }
  0xb7   : > { %v4323_v51 = vpack.c.b16 %v677_v50, %v677_v50 }
  0xb8   : > { %v535_v52 = vpop.f32.mrf.mxu0 }
  0xb9   : > { %v536_v53 = vadd.f32 %v4285_v26, %v535_v52  ;;  %679 = vrot.lane.b32.xlu2 %v4323_v51, %s4158_s21 }
  0xbb   : > { %v4328_v54 = vpack.c.bf16 %v536_v53, %v536_v53 }
  0xbd   : > { %v701_v55 = vunpack.c.l.b16 %v4328_v54 }
  0xbf   : > { %v4331_v56 = vpack.c.b16 %v701_v55, %v701_v55 }
  0xc0   : > { %v538_v57 = vpop.f32.mrf.mxu0 }
  0xc1   : > { %v539_v58 = vadd.f32 %v4285_v26, %v538_v57  ;;  %703 = vrot.lane.b32.xlu2 %v4331_v56, %s4158_s21 }
  0xc3   : > { %v4336_v59 = vpack.c.bf16 %v539_v58, %v539_v58 }
  0xc5   : > { %v725_v60 = vunpack.c.l.b16 %v4336_v59 }
  0xc7   : > { %v4339_v61 = vpack.c.b16 %v725_v60, %v725_v60 }
  0xc8   : > { %v540_v62 = vpop.f32.mrf.mxu0 }
  0xc9   : > { %v541_v63 = vadd.f32 %v4285_v26, %v540_v62  ;;  %727 = vrot.lane.b32.xlu0 %v4339_v61, %s4158_s21 }
  0xcb   : > { %v4344_v0 = vpack.c.bf16 %v541_v63, %v541_v63 }
  0xcd   : > { %v749_v1 = vunpack.c.l.b16 %v4344_v0 }
  0xcf   : > { %v4347_v2 = vpack.c.b16 %v749_v1, %v749_v1 }
  0xd0   : > { %v543_v3 = vpop.f32.mrf.mxu0 }
  0xd1   : > { %v544_v4 = vadd.f32 %v4285_v26, %v543_v3  ;;  %751 = vrot.lane.b32.xlu1 %v4347_v2, %s4158_s21 }
  0xd3   : > { %v4352_v5 = vpack.c.bf16 %v544_v4, %v544_v4 }
  0xd5   : > { %v773_v6 = vunpack.c.l.b16 %v4352_v5 }
  0xd7   : > { %v4355_v7 = vpack.c.b16 %v773_v6, %v773_v6 }
  0xd8   : > { %v545_v8 = vpop.f32.mrf.mxu0 }
  0xd9   : > { %v546_v9 = vadd.f32 %v4285_v26, %v545_v8  ;;  %775 = vrot.lane.b32.xlu2 %v4355_v7, %s4158_s21 }
  0xdb   : > { %v4360_v10 = vpack.c.bf16 %v546_v9, %v546_v9 }
  0xdd   : > { %v797_v11 = vunpack.c.l.b16 %v4360_v10 }
  0xdf   : > { %v4363_v12 = vpack.c.b16 %v797_v11, %v797_v11 }
  0xe0   : > { %v548_v13 = vpop.f32.mrf.mxu0 }
  0xe1   : > { %v549_v14 = vadd.f32 %v4285_v26, %v548_v13  ;;  %799 = vrot.lane.b32.xlu0 %v4363_v12, %s4158_s21 }
  0xe3   : > { %v4368_v15 = vpack.c.bf16 %v549_v14, %v549_v14 }
  0xe5   : > { %v821_v16 = vunpack.c.l.b16 %v4368_v15 }
  0xe7   : > { %v4371_v17 = vpack.c.b16 %v821_v16, %v821_v16 }
  0xe8   : > { %v550_v18 = vpop.f32.mrf.mxu0 }
  0xe9   : > { %v551_v19 = vadd.f32 %v4285_v26, %v550_v18  ;;  %823 = vrot.lane.b32.xlu1 %v4371_v17, %s4158_s21 }
  0xeb   : > { %v4376_v20 = vpack.c.bf16 %v551_v19, %v551_v19 }
  0xed   : > { %v845_v21 = vunpack.c.l.b16 %v4376_v20 }
  0xef   : > { %v4379_v22 = vpack.c.b16 %v845_v21, %v845_v21 }
  0xf0   : > { %v553_v23 = vpop.f32.mrf.mxu0 }
  0xf1   : > { %v554_v24 = vadd.f32 %v4285_v26, %v553_v23  ;;  %847 = vrot.lane.b32.xlu2 %v4379_v22, %s4158_s21 }
  0xf3   : > { %v4384_v25 = vpack.c.bf16 %v554_v24, %v554_v24 }
  0xf5   : > { %v869_v27 = vunpack.c.l.b16 %v4384_v25 }
  0xf7   : > { %v4387_v28 = vpack.c.b16 %v869_v27, %v869_v27 }
  0xf8   : > { %v555_v30 = vpop.f32.mrf.mxu0 }
  0xf9   : > { %v556_v32 = vadd.f32 %v4285_v26, %v555_v30  ;;  %871 = vrot.lane.b32.xlu0 %v4387_v28, %s4158_s21 }
  0xfb   : > { %v4392_v33 = vpack.c.bf16 %v556_v32, %v556_v32 }
  0xfd   : > { %v893_v35 = vunpack.c.l.b16 %v4392_v33 }
  0xff   : > { %v4395_v37 = vpack.c.b16 %v893_v35, %v893_v35 }
 0x100   : > { %v558_v38 = vpop.f32.mrf.mxu0 }
 0x101   : > { %v559_v40 = vadd.f32 %v4285_v26, %v558_v38  ;;  %895 = vrot.lane.b32.xlu1 %v4395_v37, %s4158_s21 }
 0x103   : > { %v4400_v42 = vpack.c.bf16 %v559_v40, %v559_v40 }
 0x105   : > { %v917_v43 = vunpack.c.l.b16 %v4400_v42 }
 0x107   : > { %v4403_v45 = vpack.c.b16 %v917_v43, %v917_v43 }
 0x108   : > { %v560_v47 = vpop.f32.mrf.mxu0 }
 0x109   : > { %v561_v48 = vadd.f32 %v4285_v26, %v560_v47  ;;  %919 = vrot.lane.b32.xlu2 %v4403_v45, %s4158_s21  ;;  %1173 = vrot.lane.b32.xlu1 %v4291_v31, %s4159_s22 }
 0x10b   : > { %v4410_v50 = vpack.c.bf16 %v561_v48, %v561_v48  ;;  %v583_v52 = vpop.permute.xlu0 %582 }
 0x10c   : > { %v589_v53 = vsel %vm584_vm1, %v583_v52, 0 }
 0x10d   : > { %v941_v55 = vunpack.c.l.b16 %v4410_v50  ;;  %598 = vmatpush.bf16.xpose.msra.mxu1 %v589_v53 }
 0x10f   : > { %v4414_v57 = vpack.c.b16 %v941_v55, %v941_v55 }
 0x111   : > { %1195 = vrot.lane.b32.xlu2 %v4299_v36, %s4159_s22  ;;  %1279 = vrot.lane.b32.xlu1 %v4331_v56, %s4159_s22 }
 0x112   : > { %943 = vrot.lane.b32.xlu0 %v4414_v57, %s4158_s21 }
 0x113   : > { %v680_v26 = vpop.permute.xlu2 %679  ;;  %v608_v58 = vpop.permute.xlu0 %607 }
 0x114   : > { %3776 = vmatmul.msk.bf16.vlgmr.msra.gmra.mxu1 %vm584_vm1, %v4288_v29  ;;  %v613_v60 = vsel %vm584_vm1, %v608_v58, 0  ;;  %v685_v62 = vsel %vm584_vm1, %v680_v26, 0 }
 0x115   : > { %622 = vmatpush.bf16.xpose.msra.mxu2 %v613_v60 }
 0x119   : > { %1300 = vrot.lane.b32.xlu2 %v4339_v61, %s4159_s22  ;;  %1321 = vrot.lane.b32.xlu1 %v4347_v2, %s4159_s22 }
 0x11a   : > { %1216 = vrot.lane.b32.xlu0 %v4307_v41, %s4159_s22 }
 0x11b   : > { %v704_v63 = vpop.permute.xlu2 %703  ;;  %v632_v1 = vpop.permute.xlu1 %631 }
 0x11c   : > { %3777 = vmatmul.msk.bf16.vlgmr.msra.gmra.mxu2 %vm584_vm1, %v4296_v34  ;;  %v637_v29 = vsel %vm584_vm1, %v632_v1, 0  ;;  %v709_v3 = vsel %vm584_vm1, %v704_v63, 0 }
 0x11d   : > { %694 = vmatpush.bf16.xpose.msrb.mxu2 %v685_v62  ;;  %646 = vmatpush.bf16.xpose.msra.mxu3 %v637_v29 }
 0x121   : > { %1363 = vrot.lane.b32.xlu2 %v4363_v12, %s4159_s22  ;;  %1405 = vrot.lane.b32.xlu1 %v4379_v22, %s4159_s22 }
 0x122   : > { %1237 = vrot.lane.b32.xlu0 %v4315_v46, %s4159_s22 }
 0x123   : > { %v656_v4 = vpop.permute.xlu1 %655 }
 0x124   : > { %3778 = vmatmul.msk.bf16.vlgmr.msra.gmra.mxu3 %vm584_vm1, %v4304_v39  ;;  %v661_v34 = vsel %vm584_vm1, %v656_v4, 0 }
 0x125   : > { %718 = vmatpush.bf16.xpose.msrb.mxu3 %v709_v3  ;;  %670 = vmatpush.bf16.xpose.msrb.mxu1 %v661_v34 }
 0x129   : > { %1447 = vrot.lane.b32.xlu2 %v4395_v37, %s4159_s22  ;;  %1468 = vrot.lane.b32.xlu1 %v4403_v45, %s4159_s22 }
 0x12a   : > { %1258 = vrot.lane.b32.xlu0 %v4323_v51, %s4159_s22 }
 0x12c   : > { %3779 = vmatmul.msk.bf16.vlgmr.msrb.gmra.mxu1 %vm584_vm1, %v4312_v44  ;;  %3780 = vmatmul.msk.bf16.vlgmr.msrb.gmra.mxu2 %vm584_vm1, %v4320_v49 }
 0x131   : > { %1545 = vrot.lane.b32.xlu2 %v4299_v36, %s4160_s23 }
 0x132   : > { %1342 = vrot.lane.b32.xlu0 %v4355_v7, %s4159_s22 }
 0x133   : > { %v776_v39 = vpop.permute.xlu2 %775 }
 0x134   : > { %3781 = vmatmul.msk.bf16.vlgmr.msrb.gmra.mxu3 %vm584_vm1, %v4328_v54  ;;  %v781_v6 = vsel %vm584_vm1, %v776_v39, 0 }
 0x135   : > { %790 = vmatpush.bf16.xpose.msra.mxu3 %v781_v6 }
 0x13a   : > { %1384 = vrot.lane.b32.xlu0 %v4371_v17, %s4159_s22 }
 0x13b   : > { %v728_v44 = vpop.permute.xlu0 %727 }
 0x13c   : > { %v733_v49 = vsel %vm584_vm1, %v728_v44, 0 }
 0x13d   : > { %742 = vmatpush.bf16.xpose.msra.mxu1 %v733_v49 }
 0x142   : > { %1426 = vrot.lane.b32.xlu0 %v4387_v28, %s4159_s22 }
 0x143   : > { %v752_v8 = vpop.permute.xlu1 %751 }
 0x144   : > { %v757_v9 = vsel %vm584_vm1, %v752_v8, 0  ;;  %3782 = vmatmul.msk.bf16.vlgmr.msra.gmra.mxu1 %vm584_vm1, %v4336_v59  ;;  %3784 = vmatmul.msk.bf16.vlgmr.msra.gmra.mxu3 %vm584_vm1, %v4352_v5 }
 0x145   : > { %766 = vmatpush.bf16.xpose.msra.mxu2 %v757_v9 }
 0x14a   : > { %1522 = vrot.lane.b32.xlu0 %v4291_v31, %s4160_s23 }
 0x14b   : > { %v848_v54 = vpop.permute.xlu2 %847 }
 0x14c   : > { %v853_v11 = vsel %vm584_vm1, %v848_v54, 0  ;;  %3783 = vmatmul.msk.bf16.vlgmr.msra.gmra.mxu2 %vm584_vm1, %v4344_v0 }
 0x14d   : > { %862 = vmatpush.bf16.xpose.msrb.mxu3 %v853_v11 }
 0x152   : > { %1568 = vrot.lane.b32.xlu0 %v4307_v41, %s4160_s23 }
 0x153   : > { %v800_v13 = vpop.permute.xlu0 %799 }
 0x154   : > { %v805_v59 = vsel %vm584_vm1, %v800_v13, 0  ;;  %3787 = vmatmul.msk.bf16.vlgmr.msrb.gmra.mxu3 %vm584_vm1, %v4376_v20 }
 0x155   : > { %814 = vmatpush.bf16.xpose.msrb.mxu1 %v805_v59 }
 0x15a   : > { %1489 = vrot.lane.b32.xlu0 %v4414_v57, %s4159_s22 }
 0x15b   : > { %v824_v5 = vpop.permute.xlu1 %823 }
 0x15c   : > { %v829_v14 = vsel %vm584_vm1, %v824_v5, 0  ;;  %3785 = vmatmul.msk.bf16.vlgmr.msrb.gmra.mxu1 %vm584_vm1, %v4360_v10 }
 0x15d   : > { %838 = vmatpush.bf16.xpose.msrb.mxu2 %v829_v14 }
 0x163   : > { %v920_v0 = vpop.permute.xlu2 %919 }
 0x164   : > { %v925_v16 = vsel %vm584_vm1, %v920_v0, 0  ;;  %3786 = vmatmul.msk.bf16.vlgmr.msrb.gmra.mxu2 %vm584_vm1, %v4368_v15 }
 0x165   : > { %934 = vmatpush.bf16.xpose.msra.mxu3 %v925_v16 }
 0x16b   : > { %v1196_v18 = vpop.permute.xlu2 %1195  ;;  %v872_v19 = vpop.permute.xlu0 %871 }
 0x16c   : > { %v1201_v20 = vsel %vm1178_vm2, %v1196_v18, 0  ;;  %v877_v21 = vsel %vm584_vm1, %v872_v19, 0  ;;  %3790 = vmatmul.msk.bf16.vlgmr.msra.gmra.mxu3 %vm584_vm1, %v4400_v42 }
 0x16d   : > { %886 = vmatpush.bf16.xpose.msra.mxu1 %v877_v21  ;;  %1210 = vmatpush.bf16.msrb.mxu3 %v1201_v20 }
 0x173   : > { %v896_v10 = vpop.permute.xlu1 %895 }
 0x174   : > { %v901_v23 = vsel %vm584_vm1, %v896_v10, 0  ;;  %3788 = vmatmul.msk.bf16.vlgmr.msra.gmra.mxu1 %vm584_vm1, %v4384_v25 }
 0x175   : > { %910 = vmatpush.bf16.xpose.msra.mxu2 %v901_v23 }
 0x17b   : > { %v1174_v15 = vpop.permute.xlu1 %1173 }
 0x17c   : > { %v1180_v24 = vsel %vm1178_vm2, %v1174_v15, 0  ;;  %3789 = vmatmul.msk.bf16.vlgmr.msra.gmra.mxu2 %vm584_vm1, %v4392_v33 }
 0x17d   : > { %1189 = vmatpush.bf16.msrb.mxu2 %v1180_v24 }
 0x183   : > { %v1280_v32 = vpop.permute.xlu1 %1279 }
 0x184   : > { %v944_v27 = vpop.permute.xlu0 %943  ;;  %v1285_v25 = vsel %vm1178_vm2, %v1280_v32, 0 }
 0x185   : > { %v949_v30 = vsel %vm584_vm1, %v944_v27, 0 }
 0x186   : > { %958 = vmatpush.bf16.xpose.msrb.mxu1 %v949_v30 }
 0x18c   : > { %v1217_v35 = vpop.permute.xlu0 %1216 }
 0x18d   : > { %v1222_v38 = vsel %vm1178_vm2, %v1217_v35, 0  ;;  %3791 = vmatmul.msk.bf16.vlgmr.msrb.gmra.mxu1 %vm584_vm1, %v4410_v50 }
 0x18e   : > { %1231 = vmatpush.bf16.msra.mxu1 %v1222_v38 }
 0x191   : > { %v600_v40 = vpop.f32.mrf.mxu1 }
 0x192   : > { %1294 = vmatpush.bf16.msrb.mxu1 %v1285_v25  ;;  %v4505_v42 = vmul.f32 0.25, %v600_v40 }
 0x194   : > { %v1238_v33 = vpop.permute.xlu0 %1237  ;;  %v981_v43 = vsel %vm980_vm3, %v4505_v42, -inf }
 0x195   : > { %v1243_v47 = vsel %vm1178_vm2, %v1238_v33, 0  ;;  %982 = vmax.xlane.f32.xlu1 %v981_v43 }
 0x196   : > { %1252 = vmatpush.bf16.msra.mxu2 %v1243_v47 }
 0x199   : > { %v602_v48 = vpop.f32.mrf.mxu1 }
 0x19c   : > { %v1259_v52 = vpop.permute.xlu0 %1258 }
 0x19d   : > { %v1264_v50 = vsel %vm1178_vm2, %v1259_v52, 0 }
 0x19e   : > { %1273 = vmatpush.bf16.msra.mxu3 %v1264_v50 }
 0x19f   : > { %v624_v53 = vpop.f32.mrf.mxu2 }
 0x1a0   : > { %v4511_v55 = vmul.f32 0.25, %v624_v53 }
 0x1a2   : > { %v984_v26 = vsel %vm980_vm3, %v4511_v55, -inf }
 0x1a3   : > { %985 = vmax.xlane.f32.xlu2 %v984_v26  ;;  %v4559_v26 = vpop.permute.xlu1 %1321 }
 0x1a4   : > { %v1343_v58 = vpop.permute.xlu0 %1342 }
 0x1a5   : > { %v1348_v60 = vsel %vm1178_vm2, %v1343_v58, 0 }
 0x1a6   : > { %1357 = vmatpush.bf16.msrb.mxu0 %v1348_v60 }
 0x1a7   : > { %v626_v62 = vpop.f32.mrf.mxu2  ;;  %v648_v63 = vpop.f32.mrf.mxu3 }
 0x1a8   : > { %v4516_v1 = vmul.f32 0.25, %v648_v63  ;;  %v4561_v62 = vpop.permute.xlu2 %1300 }
 0x1a9   : > { %v672_v29 = vpop.f32.mrf.mxu1 }
 0x1aa   : > { %v4518_v3 = vmul.f32 0.25, %v672_v29  ;;  %v987_v4 = vsel %vm980_vm3, %v4516_v1, -inf }
 0x1ab   : > { %988 = vmax.xlane.f32.xlu0 %v987_v4 }
 0x1ac   : > { %v4522_v34 = vpop.permute.xlu0 %1384  ;;  %v990_v39 = vsel %vm980_vm3, %v4518_v3, -inf }
 0x1ad   : > { %991 = vmax.xlane.f32.xlu2 %v990_v39  ;;  %v4567_v39 = vpop.permute.xlu1 %1405 }
 0x1af   : > { %v650_v6 = vpop.f32.mrf.mxu3  ;;  %v696_v44 = vpop.f32.mrf.mxu2 }
 0x1b0   : > { %v4526_v49 = vmul.f32 0.25, %v696_v44 }
 0x1b1   : > { %v674_v8 = vpop.f32.mrf.mxu1 }
 0x1b2   : > { %v993_v9 = vsel %vm980_vm3, %v4526_v49, -inf  ;;  %v4569_v8 = vpop.permute.xlu2 %1363 }
 0x1b3   : > { %994 = vmax.xlane.f32.xlu1 %v993_v9 }
 0x1b4   : > { %v1427_v54 = vpop.permute.xlu0 %1426 }
 0x1b5   : > { %v1432_v11 = vsel %vm1178_vm2, %v1427_v54, 0  ;;  %v4571_v54 = vpop.permute.xlu1 %1468 }
 0x1b6   : > { %1441 = vmatpush.bf16.msra.mxu0 %v1432_v11 }
 0x1b7   : > { %v698_v13 = vpop.f32.mrf.mxu2  ;;  %v720_v59 = vpop.f32.mrf.mxu3 }
 0x1b8   : > { %v4531_v5 = vmul.f32 0.25, %v720_v59 }
 0x1ba   : > { %v996_v14 = vsel %vm980_vm3, %v4531_v5, -inf }
 0x1bb   : > { %997 = vmax.xlane.f32.xlu2 %v996_v14  ;;  %v4579_v14 = vpop.permute.xlu2 %1447 }
 0x1bc   : > { %v4575_v13 = vpop.permute.xlu0 %1522 }
 0x1bf   : > { %v722_v0 = vpop.f32.mrf.mxu3 }
 0x1c1   : > { %v744_v16 = vpop.f32.mrf.mxu1 }
 0x1c2   : > { %v4535_v18 = vmul.f32 0.25, %v744_v16 }
 0x1c4   : > { %v999_v19 = vsel %vm980_vm3, %v4535_v18, -inf }
 0x1c5   : > { %1000 = vmax.xlane.f32.xlu0 %v999_v19 }
 0x1c7   : > { %v792_v20 = vpop.f32.mrf.mxu3 }
 0x1c8   : > { %v4539_v21 = vmul.f32 0.25, %v792_v20 }
 0x1c9   : > { %v746_v10 = vpop.f32.mrf.mxu1 }
 0x1ca   : > { %v1005_v23 = vsel %vm980_vm3, %v4539_v21, -inf }
 0x1cb   : > { %1006 = vmax.xlane.f32.xlu2 %v1005_v23 }
 0x1cf   : > { %v768_v15 = vpop.f32.mrf.mxu2  ;;  %v794_v24 = vpop.f32.mrf.mxu3 }
 0x1d0   : > { %v4543_v27 = vmul.f32 0.25, %v768_v15  ;;  %v4586_v15 = vpop.permute.xlu0 %1568 }
 0x1d2   : > { %v1002_v30 = vsel %vm980_vm3, %v4543_v27, -inf }
 0x1d3   : > { %1003 = vmax.xlane.f32.xlu1 %v1002_v30  ;;  %v4588_v30 = vpop.permute.xlu2 %1545 }
 0x1d7   : > { %v770_v32 = vpop.f32.mrf.mxu2  ;;  %v864_v35 = vpop.f32.mrf.mxu3 }
 0x1d8   : > { %v4547_v38 = vmul.f32 0.25, %v864_v35 }
 0x1d9   : > { %v816_v25 = vpop.f32.mrf.mxu1 }
 0x1da   : > { %v4549_v40 = vmul.f32 0.25, %v816_v25  ;;  %v1014_v33 = vsel %vm980_vm3, %v4547_v38, -inf }
 0x1db   : > { %1015 = vmax.xlane.f32.xlu2 %v1014_v33  ;;  %v4594_v33 = vpop.permute.xlu0 %1489 }
 0x1dc   : > { %v1008_v43 = vsel %vm980_vm3, %v4549_v40, -inf }
 0x1dd   : > { %1009 = vmax.xlane.f32.xlu0 %v1008_v43 }
 0x1df   : > { %v866_v47 = vpop.f32.mrf.mxu3 }
 0x1e1   : > { %v818_v48 = vpop.f32.mrf.mxu1 }
 0x1e7   : > { %v840_v52 = vpop.f32.mrf.mxu2 }
 0x1e8   : > { %v4555_v50 = vmul.f32 0.25, %v840_v52 }
 0x1ea   : > { %v1011_v53 = vsel %vm980_vm3, %v4555_v50, -inf }
 0x1eb   : > { %1012 = vmax.xlane.f32.xlu1 %v1011_v53 }
 0x1ef   : > { %v842_v58 = vpop.f32.mrf.mxu2  ;;  %v936_v60 = vpop.f32.mrf.mxu3 }
 0x1f0   : > { %v4581_v0 = vmul.f32 0.25, %v936_v60 }
 0x1f1   : > { %v888_v63 = vpop.f32.mrf.mxu1 }
 0x1f2   : > { %v4563_v29 = vmul.f32 0.25, %v888_v63  ;;  %v1023_v23 = vsel %vm980_vm3, %v4581_v0, -inf }
 0x1f4   : > { %v1017_v4 = vsel %vm980_vm3, %v4563_v29, -inf }
 0x1f5   : > { %1018 = vmax.xlane.f32.xlu2 %v1017_v4 }
 0x1f7   : > { %v938_v6 = vpop.f32.mrf.mxu3 }
 0x1f9   : > { %v890_v44 = vpop.f32.mrf.mxu1 }
 0x1ff   : > { %v912_v9 = vpop.f32.mrf.mxu2 }
 0x200   : > { %v4573_v11 = vmul.f32 0.25, %v912_v9 }
 0x202   : > { %v1020_v59 = vsel %vm980_vm3, %v4573_v11, -inf }
 0x203   : > { %1021 = vmax.xlane.f32.xlu0 %v1020_v59 }
 0x207   : > { %v914_v16 = vpop.f32.mrf.mxu2 }
 0x208   : > { %v983_v19 = vpop.xlane.xlu1 %982 }
 0x209   : > { %v1029_v20 = vsub.f32 %v4505_v42, %v983_v19 }
 0x20a   : > { %v960_v10 = vpop.f32.mrf.mxu1 }
 0x20b   : > { %1024 = vmax.xlane.f32.xlu0 %v1023_v23  ;;  %v1045_v24 = vmul.f32 1.442695, %v1029_v20  ;;  %v4590_v32 = vmul.f32 0.25, %v960_v10 }
 0x20d   : > { %3940 = vpow2.f32 %v1045_v24  ;;  %v1026_v25 = vsel %vm980_vm3, %v4590_v32, -inf }
 0x212   : > { %v962_v35 = vpop.f32.mrf.mxu1 }
 0x213   : > { %1027 = vmax.xlane.f32.xlu0 %v1026_v25  ;;  %v4596_v43 = vpop.eup %3940 }
 0x214   : > { %v1077_v52 = vsel %vm980_vm3, %v4596_v43, 0.0 }
 0x216   : > { %v986_v42 = vpop.xlane.xlu2 %985 }
 0x217   : > { %v1030_v47 = vsub.f32 %v4511_v55, %v986_v42 }
 0x219   : > { %v1047_v48 = vmul.f32 1.442695, %v1030_v47 }
 0x21b   : > { %3942 = vpow2.f32 %v1047_v48  ;;  %1078 = vadd.xlane.f32.xlu0 %v1077_v52 }
 0x21e   : > { %v989_v53 = vpop.xlane.xlu0 %988 }
 0x21f   : > { %v1031_v58 = vsub.f32 %v4516_v1, %v989_v53 }
 0x220   : > { %v992_v60 = vpop.xlane.xlu2 %991 }
 0x221   : > { %v4602_v63 = vpop.eup %3942  ;;  %v1049_v4 = vmul.f32 1.442695, %v1031_v58  ;;  %v1032_v6 = vsub.f32 %v4518_v3, %v992_v60 }
 0x222   : > { %v1080_v44 = vsel %vm980_vm3, %v4602_v63, 0.0 }
 0x223   : > { %3944 = vpow2.f32 %v1049_v4  ;;  %v1051_v55 = vmul.f32 1.442695, %v1032_v6  ;;  %1081 = vadd.xlane.f32.xlu1 %v1080_v44 }
 0x225   : > { %3946 = vpow2.f32 %v1051_v55 }
 0x226   : > { %v995_v9 = vpop.xlane.xlu1 %994 }
 0x227   : > { %v1033_v59 = vsub.f32 %v4526_v49, %v995_v9 }
 0x229   : > { %v4608_v16 = vpop.eup %3944  ;;  %v1053_v19 = vmul.f32 1.442695, %v1033_v59 }
 0x22a   : > { %v1083_v1 = vsel %vm980_vm3, %v4608_v16, 0.0 }
 0x22b   : > { %v4612_v20 = vpop.eup %3946  ;;  %3948 = vpow2.f32 %v1053_v19  ;;  %1084 = vadd.xlane.f32.xlu0 %v1083_v1 }
 0x22c   : > { %v1086_v3 = vsel %vm980_vm3, %v4612_v20, 0.0 }
 0x22d   : > { %1087 = vadd.xlane.f32.xlu1 %v1086_v3 }
 0x22e   : > { %v998_v53 = vpop.xlane.xlu2 %997 }
 0x22f   : > { %v1034_v4 = vsub.f32 %v4531_v5, %v998_v53 }
 0x231   : > { %v4616_v10 = vpop.eup %3948 }
 0x232   : > { %v1089_v23 = vsel %vm980_vm3, %v4616_v10, 0.0 }
 0x233   : > { %1090 = vadd.xlane.f32.xlu2 %v1089_v23 }
 0x238   : > { %v1001_v49 = vpop.xlane.xlu0 %1000 }
 0x239   : > { %v1035_v24 = vsub.f32 %v4535_v18, %v1001_v49 }
 0x23b   : > { %v1057_v35 = vmul.f32 1.442695, %v1035_v24 }
 0x23d   : > { %3950 = vpow2.f32 %v1057_v35 }
 0x23e   : > { %v1007_v60 = vpop.xlane.xlu2 %1006 }
 0x243   : > { %v4621_v25 = vpop.eup %3950 }
 0x244   : > { %v1095_v42 = vsel %vm980_vm3, %v4621_v25, 0.0 }
 0x245   : > { %1096 = vadd.xlane.f32.xlu0 %v1095_v42 }
 0x246   : > { %v1004_v47 = vpop.xlane.xlu1 %1003  ;;  %1591 = vrot.lane.b32.xlu1 %v4315_v46, %s4160_s23 }
 0x247   : > { %v1036_v48 = vsub.f32 %v4543_v27, %v1004_v47  ;;  %v1055_v27 = vmul.f32 1.442695, %v1034_v4 }
 0x249   : > { %v1059_v52 = vmul.f32 1.442695, %v1036_v48 }
 0x24b   : > { %3952 = vpow2.f32 %v1059_v52 }
 0x24e   : > { %v1016_v6 = vpop.xlane.xlu2 %1015 }
 0x24f   : > { %v1040_v9 = vsub.f32 %v4547_v38, %v1016_v6 }
 0x250   : > { %v1010_v19 = vpop.xlane.xlu0 %1009 }
 0x251   : > { %v4628_v58 = vpop.eup %3952  ;;  %v1067_v1 = vmul.f32 1.442695, %v1040_v9  ;;  %v1038_v3 = vsub.f32 %v4549_v40, %v1010_v19 }
 0x252   : > { %v1098_v18 = vsel %vm980_vm3, %v4628_v58, 0.0 }
 0x253   : > { %1099 = vadd.xlane.f32.xlu2 %v1098_v18  ;;  %v1063_v24 = vmul.f32 1.442695, %v1038_v3 }
 0x25e   : > { %v1013_v44 = vpop.xlane.xlu1 %1012 }
 0x25f   : > { %v1039_v55 = vsub.f32 %v4555_v50, %v1013_v44 }
 0x261   : > { %v1065_v59 = vmul.f32 1.442695, %v1039_v55  ;;  %v1037_v55 = vsub.f32 %v4539_v21, %v1007_v60 }
 0x263   : > { %3954 = vpow2.f32 %v1065_v59  ;;  %v1061_v9 = vmul.f32 1.442695, %v1037_v55  ;;  %v1327_v55 = vsel %vm1178_vm2, %v4559_v26, 0  ;;  %v1369_v26 = vsel %vm1178_vm2, %v4569_v8, 0 }
 0x264   : > { %3956 = vpow2.f32 %v1055_v27 }
 0x265   : > { %3958 = vpow2.f32 %v1067_v1 }
 0x266   : > { %3960 = vpow2.f32 %v1063_v24 }
 0x268   : > { %v1019_v23 = vpop.xlane.xlu2 %1018 }
 0x269   : > { %v4636_v49 = vpop.eup %3954  ;;  %v1041_v5 = vsub.f32 %v4563_v29, %v1019_v23 }
 0x26a   : > { %v1107_v50 = vsel %vm980_vm3, %v4636_v49, 0.0  ;;  %v4643_v38 = vpop.eup %3956 }
 0x26b   : > { %1520 = vrot.lane.b32.xlu2 %v4291_v31, %s4161_s24  ;;  %1108 = vadd.xlane.f32.xlu0 %v1107_v50  ;;  %v1069_v35 = vmul.f32 1.442695, %v1041_v5  ;;  %v4645_v40 = vpop.eup %3958  ;;  %v1092_v42 = vsel %vm980_vm3, %v4643_v38, 0.0 }
 0x26c   : > { %v1110_v29 = vsel %vm980_vm3, %v4645_v40, 0.0  ;;  %v4651_v47 = vpop.eup %3960 }
 0x26d   : > { %3962 = vpow2.f32 %v1069_v35  ;;  %v1104_v53 = vsel %vm980_vm3, %v4651_v47, 0.0 }
 0x270   : > { %1093 = vadd.xlane.f32.xlu1 %v1092_v42 }
 0x273   : > { %1111 = vadd.xlane.f32.xlu0 %v1110_v29  ;;  %v4653_v52 = vpop.eup %3962 }
 0x274   : > { %v1113_v18 = vsel %vm980_vm3, %v4653_v52, 0.0 }
 0x276   : > { %v1022_v48 = vpop.xlane.xlu0 %1021 }
 0x277   : > { %v1042_v3 = vsub.f32 %v4573_v11, %v1022_v48  ;;  %v1306_v48 = vsel %vm1178_vm2, %v4561_v62, 0 }
 0x278   : > { %1105 = vadd.xlane.f32.xlu1 %v1104_v53 }
 0x27b   : > { %1114 = vadd.xlane.f32.xlu0 %v1113_v18 }
 0x27e   : > { %v1025_v4 = vpop.xlane.xlu0 %1024 }
 0x27f   : > { %v1043_v6 = vsub.f32 %v4581_v0, %v1025_v4  ;;  %v1071_v0 = vmul.f32 1.442695, %v1042_v3 }
 0x281   : > { %v1073_v44 = vmul.f32 1.442695, %v1043_v6 }
 0x283   : > { %3964 = vpow2.f32 %v1073_v44 }
 0x284   : > { %3966 = vpow2.f32 %v1061_v9 }
 0x286   : > { %v1028_v59 = vpop.xlane.xlu0 %1027 }
 0x287   : > { %v1044_v27 = vsub.f32 %v4590_v32, %v1028_v59 }
 0x289   : > { %v4662_v19 = vpop.eup %3964  ;;  %v1075_v1 = vmul.f32 1.442695, %v1044_v27 }
 0x28a   : > { %v1119_v23 = vsel %vm980_vm3, %v4662_v19, 0.0  ;;  %v4667_v21 = vpop.eup %3966 }
 0x28b   : > { %3968 = vpow2.f32 %v1075_v1  ;;  %1120 = vadd.xlane.f32.xlu1 %v1119_v23  ;;  %v1101_v11 = vsel %vm980_vm3, %v4667_v21, 0.0  ;;  %v1390_v23 = vsel %vm1178_vm2, %v4522_v34, 0 }
 0x28e   : > { %v1079_v5 = vpop.xlane.xlu0 %1078 }
 0x28f   : > { %3970 = vrcp.f32 %v1079_v5 }
 0x290   : > { %3972 = vpow2.f32 %v1071_v0 }
 0x291   : > { %v4669_v60 = vpop.eup %3968 }
 0x292   : > { %v1122_v32 = vsel %vm980_vm3, %v4669_v60, 0.0 }
 0x293   : > { %1123 = vadd.xlane.f32.xlu0 %v1122_v32  ;;  %v1474_v32 = vsel %vm1178_vm2, %v4571_v54, 0 }
 0x294   : > { %1102 = vadd.xlane.f32.xlu2 %v1101_v11 }
 0x295   : > { %v3971_v24 = vpop.eup %3970 }
 0x296   : > { %v1141_v50 = vmul.f32 %v3971_v24, %v4596_v43  ;;  %v1082_v35 = vpop.xlane.xlu1 %1081  ;;  %v4676_v42 = vpop.eup %3972 }
 0x297   : > { %3974 = vrcp.f32 %v1082_v35  ;;  %v1116_v53 = vsel %vm980_vm3, %v4676_v42, 0.0 }
 0x298   : > { %v1157_v29 = vpack.c.bf16 %v1141_v50, %v1141_v50  ;;  %v1495_v50 = vsel %vm1178_vm2, %v4594_v33, 0 }
 0x29a   : > { %3792 = vmatmul.msk.bf16.vlgmr.msrb.gmra.mxu2 %vm980_vm3, %v1157_v29 }
 0x29b   : > { %1315 = vmatpush.bf16.msrb.mxu2 %v1306_v48 }
 0x29c   : > { %1117 = vadd.xlane.f32.xlu2 %v1116_v53 }
 0x29d   : > { %v3975_v18 = vpop.eup %3974 }
 0x29e   : > { %v1142_v4 = vmul.f32 %v3975_v18, %v4602_v63  ;;  %v1085_v6 = vpop.xlane.xlu0 %1084 }
 0x29f   : > { %3976 = vrcp.f32 %v1085_v6  ;;  %v1574_v6 = vsel %vm584_vm1, %v4586_v15, 0  ;;  %v1453_v15 = vsel %vm1178_vm2, %v4579_v14, 0 }
 0x2a0   : > { %v1158_v43 = vpack.c.bf16 %v1142_v4, %v1142_v4  ;;  %v1088_v44 = vpop.xlane.xlu1 %1087 }
 0x2a1   : > { %3978 = vrcp.f32 %v1088_v44 }
 0x2a2   : > { %3793 = vmatmul.msk.bf16.vlgmr.msrb.gmra.mxu3 %vm980_vm3, %v1158_v43 }
 0x2a3   : > { %1336 = vmatpush.bf16.msrb.mxu3 %v1327_v55 }
 0x2a4   : > { %1566 = vrot.lane.b32.xlu1 %v4307_v41, %s4161_s24 }
 0x2a5   : > { %v3977_v62 = vpop.eup %3976 }
 0x2a6   : > { %v1143_v9 = vmul.f32 %v3977_v62, %v4608_v16  ;;  %v1091_v59 = vpop.xlane.xlu2 %1090 }
 0x2a7   : > { %v3979_v27 = vpop.eup %3978  ;;  %3980 = vrcp.f32 %v1091_v59  ;;  %1543 = vrot.lane.b32.xlu0 %v4299_v36, %s4161_s24 }
 0x2a8   : > { %v1159_v63 = vpack.c.bf16 %v1143_v9, %v1143_v9  ;;  %v1144_v1 = vmul.f32 %v3979_v27, %v4612_v20  ;;  %v1411_v20 = vsel %vm1178_vm2, %v4567_v39, 0  ;;  %v1551_v27 = vsel %vm584_vm1, %v4588_v30, 0 }
 0x2aa   : > { %v1160_v3 = vpack.c.bf16 %v1144_v1, %v1144_v1  ;;  %3794 = vmatmul.msk.bf16.vlgmr.msra.gmra.mxu1 %vm980_vm3, %v1159_v63 }
 0x2ab   : > { %1378 = vmatpush.bf16.msra.mxu1 %v1369_v26 }
 0x2ac   : > { %1637 = vrot.lane.b32.xlu1 %v4331_v56, %s4160_s23  ;;  %3795 = vmatmul.msk.bf16.vlgmr.msra.gmra.mxu2 %vm980_vm3, %v1160_v3 }
 0x2ad   : > { %v3981_v16 = vpop.eup %3980  ;;  %1399 = vmatpush.bf16.msra.mxu2 %v1390_v23 }
 0x2ae   : > { %v1145_v0 = vmul.f32 %v3981_v16, %v4616_v10 }
 0x2af   : > { %1614 = vrot.lane.b32.xlu0 %v4323_v51, %s4160_s23 }
 0x2b0   : > { %v1161_v8 = vpack.c.bf16 %v1145_v0, %v1145_v0 }
 0x2b2   : > { %3796 = vmatmul.msk.bf16.vlgmr.msra.gmra.mxu3 %vm980_vm3, %v1161_v8 }
 0x2b3   : > { %1420 = vmatpush.bf16.msra.mxu3 %v1411_v20 }
 0x2b4   : > { %1589 = vrot.lane.b32.xlu2 %v4315_v46, %s4161_s24  ;;  %1612 = vrot.lane.b32.xlu1 %v4323_v51, %s4161_s24 }
 0x2b7   : > { %1683 = vrot.lane.b32.xlu0 %v4347_v2, %s4160_s23 }
 0x2b8   : > { %v1097_v34 = vpop.xlane.xlu0 %1096 }
 0x2b9   : > { %3982 = vrcp.f32 %v1097_v34 }
 0x2bc   : > { %1660 = vrot.lane.b32.xlu2 %v4339_v61, %s4160_s23  ;;  %1681 = vrot.lane.b32.xlu1 %v4347_v2, %s4161_s24 }
 0x2bf   : > { %v3983_v39 = vpop.eup %3982  ;;  %1658 = vrot.lane.b32.xlu0 %v4339_v61, %s4161_s24 }
 0x2c0   : > { %v1147_v10 = vmul.f32 %v3983_v39, %v4621_v25 }
 0x2c2   : > { %v1163_v5 = vpack.c.bf16 %v1147_v10, %v1147_v10 }
 0x2c4   : > { %1635 = vrot.lane.b32.xlu2 %v4331_v56, %s4161_s24  ;;  %1752 = vrot.lane.b32.xlu1 %v4371_v17, %s4160_s23 }
 0x2c5   : > { %3798 = vmatmul.msk.bf16.vlgmr.msrb.gmra.mxu2 %vm980_vm3, %v1163_v5 }
 0x2c6   : > { %1483 = vmatpush.bf16.msrb.mxu2 %v1474_v32  ;;  %v1100_v11 = vpop.xlane.xlu2 %1099 }
 0x2c7   : > { %3984 = vrcp.f32 %v1100_v11  ;;  %1729 = vrot.lane.b32.xlu0 %v4363_v12, %s4160_s23 }
 0x2cc   : > { %1706 = vrot.lane.b32.xlu2 %v4355_v7, %s4160_s23  ;;  %1727 = vrot.lane.b32.xlu1 %v4363_v12, %s4161_s24 }
 0x2cd   : > { %v3985_v25 = vpop.eup %3984 }
 0x2ce   : > { %v1148_v24 = vmul.f32 %v3985_v25, %v4628_v58  ;;  %v1592_v58 = vpop.permute.xlu1 %1591  ;;  %v4787_v63 = vpop.permute.xlu2 %1520 }
 0x2cf   : > { %1704 = vrot.lane.b32.xlu0 %v4355_v7, %s4161_s24  ;;  %v1597_v9 = vsel %vm584_vm1, %v1592_v58, 0 }
 0x2d0   : > { %v1164_v54 = vpack.c.bf16 %v1148_v24, %v1148_v24 }
 0x2d2   : > { %3799 = vmatmul.msk.bf16.vlgmr.msrb.gmra.mxu3 %vm980_vm3, %v1164_v54 }
 0x2d3   : > { %1504 = vmatpush.bf16.msrb.mxu3 %v1495_v50 }
 0x2d4   : > { %1775 = vrot.lane.b32.xlu2 %v4379_v22, %s4160_s23  ;;  %1798 = vrot.lane.b32.xlu1 %v4387_v28, %s4160_s23 }
 0x2d7   : > { %1773 = vrot.lane.b32.xlu0 %v4379_v22, %s4161_s24 }
 0x2dc   : > { %1750 = vrot.lane.b32.xlu2 %v4371_v17, %s4161_s24  ;;  %1867 = vrot.lane.b32.xlu1 %v4414_v57, %s4160_s23 }
 0x2de   : > { %v1109_v33 = vpop.xlane.xlu0 %1108 }
 0x2df   : > { %3986 = vrcp.f32 %v1109_v33  ;;  %1844 = vrot.lane.b32.xlu0 %v4403_v45, %s4160_s23 }
 0x2e3   : > { %v1094_v35 = vpop.xlane.xlu1 %1093 }
 0x2e4   : > { %3988 = vrcp.f32 %v1094_v35  ;;  %1821 = vrot.lane.b32.xlu2 %v4395_v37, %s4160_s23  ;;  %1842 = vrot.lane.b32.xlu1 %v4403_v45, %s4161_s24 }
 0x2e5   : > { %v3987_v29 = vpop.eup %3986 }
 0x2e6   : > { %v1151_v48 = vmul.f32 %v3987_v29, %v4636_v49  ;;  %v1112_v53 = vpop.xlane.xlu0 %1111 }
 0x2e7   : > { %3990 = vrcp.f32 %v1112_v53  ;;  %1819 = vrot.lane.b32.xlu0 %v4395_v37, %s4161_s24 }
 0x2e8   : > { %v1167_v18 = vpack.c.bf16 %v1151_v48, %v1151_v48 }
 0x2ea   : > { %v3989_v4 = vpop.eup %3988  ;;  %3802 = vmatmul.msk.bf16.vlgmr.msra.gmra.mxu2 %vm980_vm3, %v1167_v18 }
 0x2eb   : > { %v1146_v43 = vmul.f32 %v3989_v4, %v4643_v38  ;;  %1583 = vmatpush.bf16.xpose.msra.mxu2 %v1574_v6  ;;  %v1106_v55 = vpop.xlane.xlu1 %1105 }
 0x2ec   : > { %1796 = vrot.lane.b32.xlu2 %v4387_v28, %s4161_s24  ;;  %2117 = vrot.lane.b32.xlu1 %v4299_v36, %s4162_s26  ;;  %3992 = vrcp.f32 %v1106_v55 }
 0x2ed   : > { %v3991_v49 = vpop.eup %3990  ;;  %v1162_v44 = vpack.c.bf16 %v1146_v43, %v1146_v43 }
 0x2ee   : > { %v1152_v62 = vmul.f32 %v3991_v49, %v4645_v40  ;;  %v1115_v40 = vpop.xlane.xlu0 %1114 }
 0x2ef   : > { %2159 = vrot.lane.b32.xlu0 %v4315_v46, %s4162_s26  ;;  %3797 = vmatmul.msk.bf16.vlgmr.msrb.gmra.mxu1 %vm980_vm3, %v1162_v44 }
 0x2f0   : > { %v1168_v38 = vpack.c.bf16 %v1152_v62, %v1152_v62  ;;  %1462 = vmatpush.bf16.msrb.mxu1 %v1453_v15 }
 0x2f2   : > { %3803 = vmatmul.msk.bf16.vlgmr.msra.gmra.mxu3 %vm980_vm3, %v1168_v38  ;;  %v3993_v36 = vpop.eup %3992 }
 0x2f3   : > { %1606 = vmatpush.bf16.xpose.msra.mxu3 %v1597_v9  ;;  %v1150_v46 = vmul.f32 %v3993_v36, %v4651_v47 }
 0x2f4   : > { %1865 = vrot.lane.b32.xlu2 %v4414_v57, %s4161_s24  ;;  %2138 = vrot.lane.b32.xlu1 %v4307_v41, %s4162_s26 }
 0x2f5   : > { %v1166_v14 = vpack.c.bf16 %v1150_v46, %v1150_v46 }
 0x2f7   : > { %2222 = vrot.lane.b32.xlu0 %v4339_v61, %s4162_s26 }
 0x2fc   : > { %2096 = vrot.lane.b32.xlu2 %v4291_v31, %s4162_s26  ;;  %2180 = vrot.lane.b32.xlu1 %v4323_v51, %s4162_s26 }
 0x2fe   : > { %v1121_v59 = vpop.xlane.xlu1 %1120 }
 0x2ff   : > { %3994 = vrcp.f32 %v1121_v59  ;;  %2243 = vrot.lane.b32.xlu0 %v4347_v2, %s4162_s26  ;;  %3801 = vmatmul.msk.bf16.vlgmr.msra.gmra.mxu1 %vm980_vm3, %v1166_v14 }
 0x300   : > { %1560 = vmatpush.bf16.xpose.msra.mxu1 %v1551_v27 }
 0x304   : > { %2201 = vrot.lane.b32.xlu2 %v4331_v56, %s4162_s26 }
 0x305   : > { %v3995_v31 = vpop.eup %3994 }
 0x306   : > { %v1155_v41 = vmul.f32 %v3995_v31, %v4662_v19  ;;  %v1124_v51 = vpop.xlane.xlu0 %1123  ;;  %v1528_v19 = vsel %vm584_vm1, %v4575_v13, 0 }
 0x307   : > { %3996 = vrcp.f32 %v1124_v51  ;;  %v1103_v61 = vpop.xlane.xlu2 %1102 }
 0x308   : > { %v1171_v47 = vpack.c.bf16 %v1155_v41, %v1155_v41  ;;  %3998 = vrcp.f32 %v1103_v61 }
 0x30a   : > { %3806 = vmatmul.msk.bf16.vlgmr.msrb.gmra.mxu2 %vm980_vm3, %v1171_v47 }
 0x30d   : > { %v3997_v30 = vpop.eup %3996 }
 0x30e   : > { %v3999_v1 = vpop.eup %3998  ;;  %v1156_v2 = vmul.f32 %v3997_v30, %v4669_v60 }
 0x30f   : > { %v1149_v26 = vmul.f32 %v3999_v1, %v4667_v21  ;;  %v1118_v3 = vpop.xlane.xlu2 %1117 }
 0x310   : > { %v1172_v23 = vpack.c.bf16 %v1156_v2, %v1156_v2  ;;  %4000 = vrcp.f32 %v1118_v3 }
 0x311   : > { %v1165_v56 = vpack.c.bf16 %v1149_v26, %v1149_v26  ;;  %4002 = vrcp.f32 %v1115_v40 }
 0x312   : > { %3807 = vmatmul.msk.bf16.vlgmr.msrb.gmra.mxu3 %vm980_vm3, %v1172_v23 }
 0x313   : > { %3800 = vmatmul.msk.bf16.vlgmr.msrb.gmra.mxu0 %vm980_vm3, %v1165_v56 }
 0x314   : > { %1537 = vmatpush.bf16.xpose.msrb.mxu0 %v1528_v19 }
 0x316   : > { %v4001_v16 = vpop.eup %4000  ;;  %v1567_v0 = vpop.permute.xlu1 %1566 }
 0x317   : > { %v1154_v8 = vmul.f32 %v4001_v16, %v4676_v42  ;;  %v1590_v60 = vpop.permute.xlu2 %1589  ;;  %v4003_v34 = vpop.eup %4002 }
 0x318   : > { %v1153_v39 = vmul.f32 %v4003_v34, %v4653_v52 }
 0x319   : > { %v1170_v20 = vpack.c.bf16 %v1154_v8, %v1154_v8  ;;  %v1544_v21 = vpop.permute.xlu0 %1543 }
 0x31a   : > { %3810 = vmatmul.msk.bf16.vlgmr.msra.gmra.mxu2 %vm584_vm1, %v1567_v0  ;;  %v1169_v42 = vpack.c.bf16 %v1153_v39, %v1153_v39 }
 0x31b   : > { %3805 = vmatmul.msk.bf16.vlgmr.msrb.gmra.mxu1 %vm980_vm3, %v1170_v20 }
 0x31d   : > { %v4806_v10 = vpop.f32.mrf.mxu2 }
 0x31e   : > { %v1638_v13 = vpop.permute.xlu1 %1637 }
 0x31f   : > { %v1643_v5 = vsel %vm584_vm1, %v1638_v13, 0  ;;  %v1661_v32 = vpop.permute.xlu2 %1660 }
 0x320   : > { %v1666_v11 = vsel %vm584_vm1, %v1661_v32, 0  ;;  %1652 = vmatpush.bf16.xpose.msrb.mxu1 %v1643_v5 }
 0x321   : > { %1675 = vmatpush.bf16.xpose.msrb.mxu2 %v1666_v11  ;;  %v1615_v25 = vpop.permute.xlu0 %1614 }
 0x322   : > { %v1620_v24 = vsel %vm584_vm1, %v1615_v25, 0  ;;  %3811 = vmatmul.msk.bf16.vlgmr.msra.gmra.mxu3 %vm584_vm1, %v1590_v60 }
 0x323   : > { %3804 = vmatmul.msk.bf16.vlgmr.msra.gmra.mxu0 %vm980_vm3, %v1169_v42 }
 0x324   : > { %1629 = vmatpush.bf16.xpose.msra.mxu0 %v1620_v24 }
 0x325   : > { %v1193_v52 = vpop.f32.mrf.mxu2  ;;  %v4813_v54 = vpop.f32.mrf.mxu3 }
 0x326   : > { %v1510_v50 = vpack.c.bf16 %v4813_v54, %v4806_v10  ;;  %v1613_v58 = vpop.permute.xlu1 %1612 }
 0x327   : > { %v1636_v33 = vpop.permute.xlu2 %1635  ;;  %v4817_v35 = vpop.f32.mrf.mxu1 }
 0x329   : > { %v1684_v29 = vpop.permute.xlu0 %1683 }
 0x32a   : > { %v1689_v48 = vsel %vm584_vm1, %v1684_v29, 0 }
 0x32b   : > { %3809 = vmatmul.msk.bf16.vlgmr.msra.gmra.mxu1 %vm584_vm1, %v1544_v21  ;;  %1698 = vmatpush.bf16.xpose.msrb.mxu3 %v1689_v48 }
 0x32d   : > { %v1214_v53 = vpop.f32.mrf.mxu3 }
 0x32e   : > { %v1682_v18 = vpop.permute.xlu1 %1681 }
 0x32f   : > { %v1707_v4 = vpop.permute.xlu2 %1706  ;;  %v1235_v6 = vpop.f32.mrf.mxu1 }
 0x330   : > { %v4821_v43 = vpop.f32.mrf.mxu2  ;;  %v1712_v55 = vsel %vm584_vm1, %v1707_v4, 0 }
 0x331   : > { %v1511_v49 = vpack.c.bf16 %v4821_v43, %v4817_v35  ;;  %v1659_v44 = vpop.permute.xlu0 %1658 }
 0x332   : > { %3814 = vmatmul.msk.bf16.vlgmr.msrb.gmra.mxu2 %vm584_vm1, %v1659_v44  ;;  %3815 = vmatmul.msk.bf16.vlgmr.msrb.gmra.mxu3 %vm584_vm1, %v1682_v18 }
 0x333   : > { %3808 = vmatmul.msk.bf16.vlgmr.msrb.gmra.mxu0 %vm584_vm1, %v4787_v63 }
 0x334   : > { %1721 = vmatpush.bf16.xpose.msrb.mxu0 %v1712_v55 }
 0x335   : > { %v4830_v62 = vpop.f32.mrf.mxu3 }
 0x336   : > { %v1753_v15 = vpop.permute.xlu1 %1752 }
 0x337   : > { %v1758_v38 = vsel %vm584_vm1, %v1753_v15, 0  ;;  %v1776_v9 = vpop.permute.xlu2 %1775 }
 0x338   : > { %v1781_v36 = vsel %vm584_vm1, %v1776_v9, 0  ;;  %v1256_v46 = vpop.f32.mrf.mxu2  ;;  %1767 = vmatpush.bf16.xpose.msra.mxu2 %v1758_v38 }
 0x339   : > { %1790 = vmatpush.bf16.xpose.msra.mxu3 %v1781_v36  ;;  %v1730_v14 = vpop.permute.xlu0 %1729 }
 0x33a   : > { %v1735_v40 = vsel %vm584_vm1, %v1730_v14, 0 }
 0x33b   : > { %3813 = vmatmul.msk.bf16.vlgmr.msrb.gmra.mxu1 %vm584_vm1, %v1636_v33 }
 0x33c   : > { %1744 = vmatpush.bf16.xpose.msra.mxu1 %v1735_v40 }
 0x33d   : > { %v1277_v59 = vpop.f32.mrf.mxu3 }
 0x33e   : > { %v1728_v27 = vpop.permute.xlu1 %1727 }
 0x33f   : > { %v1751_v63 = vpop.permute.xlu2 %1750 }
 0x341   : > { %v1705_v31 = vpop.permute.xlu0 %1704 }
 0x342   : > { %3818 = vmatmul.msk.bf16.vlgmr.msra.gmra.mxu2 %vm584_vm1, %v1751_v63 }
 0x343   : > { %3812 = vmatmul.msk.bf16.vlgmr.msra.gmra.mxu0 %vm584_vm1, %v1613_v58 }
 0x346   : > { %v1799_v41 = vpop.permute.xlu1 %1798 }
 0x347   : > { %v1804_v51 = vsel %vm584_vm1, %v1799_v41, 0  ;;  %v1822_v61 = vpop.permute.xlu2 %1821 }
 0x348   : > { %v1827_v47 = vsel %vm584_vm1, %v1822_v61, 0  ;;  %v4840_v30 = vpop.f32.mrf.mxu2  ;;  %1813 = vmatpush.bf16.xpose.msra.mxu0 %v1804_v51 }
 0x349   : > { %1836 = vmatpush.bf16.xpose.msrb.mxu1 %v1827_v47  ;;  %v1774_v1 = vpop.permute.xlu0 %1773 }
 0x34a   : > { %3819 = vmatmul.msk.bf16.vlgmr.msra.gmra.mxu3 %vm584_vm1, %v1774_v1 }
 0x34b   : > { %3817 = vmatmul.msk.bf16.vlgmr.msra.gmra.mxu1 %vm584_vm1, %v1728_v27 }
 0x34e   : > { %v1868_v2 = vpop.permute.xlu1 %1867 }
 0x34f   : > { %v1873_v26 = vsel %vm584_vm1, %v1868_v2, 0  ;;  %v1797_v3 = vpop.permute.xlu2 %1796 }
 0x350   : > { %v1319_v23 = vpop.f32.mrf.mxu2  ;;  %1882 = vmatpush.bf16.xpose.msrb.mxu3 %v1873_v26 }
 0x351   : > { %v1845_v56 = vpop.permute.xlu0 %1844 }
 0x352   : > { %v1850_v19 = vsel %vm584_vm1, %v1845_v56, 0 }
 0x353   : > { %3816 = vmatmul.msk.bf16.vlgmr.msrb.gmra.mxu0 %vm584_vm1, %v1705_v31  ;;  %1859 = vmatpush.bf16.xpose.msrb.mxu2 %v1850_v19 }
 0x355   : > { %v4847_v16 = vpop.f32.mrf.mxu3 }
 0x356   : > { %v1513_v0 = vpack.c.bf16 %v4847_v16, %v4840_v30  ;;  %v1843_v8 = vpop.permute.xlu1 %1842 }
 0x357   : > { %v1866_v60 = vpop.permute.xlu2 %1865 }
 0x359   : > { %v1820_v20 = vpop.permute.xlu0 %1819 }
 0x35a   : > { %3822 = vmatmul.msk.bf16.vlgmr.msrb.gmra.mxu2 %vm584_vm1, %v1843_v8  ;;  %3823 = vmatmul.msk.bf16.vlgmr.msrb.gmra.mxu3 %vm584_vm1, %v1866_v60 }
 0x35b   : > { %3821 = vmatmul.msk.bf16.vlgmr.msrb.gmra.mxu1 %vm584_vm1, %v1820_v20 }
 0x35d   : > { %v1340_v21 = vpop.f32.mrf.mxu3 }
 0x35e   : > { %v2118_v34 = vpop.permute.xlu1 %2117 }
 0x35f   : > { %v2123_v39 = vsel %vm1178_vm2, %v2118_v34, 0  ;;  %v2097_v13 = vpop.permute.xlu2 %2096 }
 0x360   : > { %v2102_v5 = vsel %vm1178_vm2, %v2097_v13, 0  ;;  %2132 = vmatpush.bf16.msra.mxu1 %v2123_v39 }
 0x361   : > { %2111 = vmatpush.bf16.msrb.mxu0 %v2102_v5  ;;  %v2160_v32 = vpop.permute.xlu0 %2159 }
 0x362   : > { %v2165_v11 = vsel %vm1178_vm2, %v2160_v32, 0 }
 0x363   : > { %3820 = vmatmul.msk.bf16.vlgmr.msra.gmra.mxu0 %vm584_vm1, %v1797_v3  ;;  %2174 = vmatpush.bf16.msra.mxu3 %v2165_v11 }
 0x366   : > { %v2139_v42 = vpop.permute.xlu1 %2138 }
 0x367   : > { %v2144_v25 = vsel %vm1178_vm2, %v2139_v42, 0  ;;  %v2202_v24 = vpop.permute.xlu2 %2201 }
 0x368   : > { %v2207_v52 = vsel %vm1178_vm2, %v2202_v24, 0  ;;  %2153 = vmatpush.bf16.msra.mxu2 %v2144_v25 }
 0x369   : > { %2216 = vmatpush.bf16.msrb.mxu1 %v2207_v52  ;;  %v2223_v58 = vpop.permute.xlu0 %2222 }
 0x36a   : > { %v2228_v33 = vsel %vm1178_vm2, %v2223_v58, 0 }
 0x36c   : > { %2237 = vmatpush.bf16.msrb.mxu2 %v2228_v33  ;;  %v4861_v29 = vpop.f32.mrf.mxu1 }
 0x36d   : > { %v1512_v48 = vpack.c.bf16 %v4861_v29, %v4830_v62  ;;  %v4865_v53 = vpop.f32.mrf.mxu2 }
 0x36e   : > { %v2181_v18 = vpop.permute.xlu1 %2180 }
 0x36f   : > { %v2186_v4 = vsel %vm1178_vm2, %v2181_v18, 0 }
 0x370   : > { %2195 = vmatpush.bf16.msra.mxu0 %v2186_v4 }
 0x371   : > { %v2244_v6 = vpop.permute.xlu0 %2243 }
 0x372   : > { %v2249_v44 = vsel %vm1178_vm2, %v2244_v6, 0 }
 0x373   : > { %2258 = vmatpush.bf16.msrb.mxu3 %v2249_v44 }
 0x374   : > { %v1298_v55 = vpop.f32.mrf.mxu1 }
 0x375   : > { %v1403_v15 = vpop.f32.mrf.mxu2  ;;  %v4869_v38 = vpop.f32.mrf.mxu3 }
 0x376   : > { %v1515_v9 = vpack.c.bf16 %v4869_v38, %v4865_v53 }
 0x37c   : > { %v4873_v36 = vpop.f32.mrf.mxu1 }
 0x37d   : > { %v1424_v46 = vpop.f32.mrf.mxu3 }
 0x384   : > { %v1382_v14 = vpop.f32.mrf.mxu1 }
 0x38d   : > { %v4875_v40 = vpop.f32.mrf.mxu2 }
 0x390   : > { %v4877_v59 = vpop.f32.mrf.mxu0 }
 0x391   : > { %v1514_v27 = vpack.c.bf16 %v4873_v36, %v4877_v59 }
 0x395   : > { %v1487_v63 = vpop.f32.mrf.mxu2  ;;  %v4881_v31 = vpop.f32.mrf.mxu3 }
 0x396   : > { %v1517_v41 = vpack.c.bf16 %v4881_v31, %v4875_v40 }
 0x398   : > { %v1361_v51 = vpop.f32.mrf.mxu0  ;;  %v4885_v61 = vpop.f32.mrf.mxu1 }
 0x39d   : > { %v1508_v47 = vpop.f32.mrf.mxu3  ;;  %v1585_v1 = vpop.f32.mrf.mxu2 }
 0x39e   : > { %v4911_v14 = vmul.f32 0.25, %v1585_v1 }
 0x3a0   : > { %v4887_v2 = vpop.f32.mrf.mxu0  ;;  %v1466_v26 = vpop.f32.mrf.mxu1  ;;  %v1910_v47 = vsel %vm980_vm3, %v4911_v14, -inf }
 0x3a1   : > { %v1516_v3 = vpack.c.bf16 %v4885_v61, %v4887_v2  ;;  %v5139_v2 = vld [vmem:[%s5945_s4] ss:$0 sm:$0xff] }
 0x3a5   : > { %v1587_v23 = vpop.f32.mrf.mxu2  ;;  %v1608_v56 = vpop.f32.mrf.mxu3 }
 0x3a6   : > { %v4899_v42 = vmul.f32 0.25, %v1608_v56 }
 0x3a8   : > { %v1445_v19 = vpop.f32.mrf.mxu0  ;;  %v1562_v8 = vpop.f32.mrf.mxu1  ;;  %v1913_v58 = vsel %vm980_vm3, %v4899_v42, -inf }
 0x3a9   : > { %v4891_v60 = vmul.f32 0.25, %v1562_v8 }
 0x3ab   : > { %v1907_v20 = vsel %vm980_vm3, %v4891_v60, -inf }
 0x3ac   : > { %1908 = vmax.xlane.f32.xlu1 %v1907_v20 }
 0x3ad   : > { %v1610_v21 = vpop.f32.mrf.mxu3 }
 0x3b0   : > { %v1539_v34 = vpop.f32.mrf.mxu0  ;;  %v1564_v39 = vpop.f32.mrf.mxu1 }
 0x3b1   : > { %v4895_v13 = vmul.f32 0.25, %v1539_v34 }
 0x3b3   : > { %v1904_v5 = vsel %vm980_vm3, %v4895_v13, -inf }
 0x3b4   : > { %1905 = vmax.xlane.f32.xlu0 %v1904_v5 }
 0x3b5   : > { %v1677_v32 = vpop.f32.mrf.mxu2  ;;  %v1700_v11 = vpop.f32.mrf.mxu3 }
 0x3b6   : > { %v4915_v56 = vmul.f32 0.25, %v1700_v11  ;;  %v4925_v39 = vmul.f32 0.25, %v1677_v32 }
 0x3b8   : > { %v1541_v25 = vpop.f32.mrf.mxu0  ;;  %v1654_v24 = vpop.f32.mrf.mxu1  ;;  %v1925_v21 = vsel %vm980_vm3, %v4915_v56, -inf }
 0x3b9   : > { %v4901_v52 = vmul.f32 0.25, %v1654_v24  ;;  %v1922_v25 = vsel %vm980_vm3, %v4925_v39, -inf }
 0x3bb   : > { %v1919_v33 = vsel %vm980_vm3, %v4901_v52, -inf }
 0x3bc   : > { %1914 = vmax.xlane.f32.xlu0 %v1913_v58  ;;  %1920 = vmax.xlane.f32.xlu1 %v1919_v33 }
 0x3bd   : > { %v1679_v18 = vpop.f32.mrf.mxu2  ;;  %v1702_v4 = vpop.f32.mrf.mxu3 }
 0x3c0   : > { %v1631_v6 = vpop.f32.mrf.mxu0  ;;  %v1656_v44 = vpop.f32.mrf.mxu1 }
 0x3c1   : > { %v4907_v55 = vmul.f32 0.25, %v1631_v6 }
 0x3c3   : > { %v1916_v15 = vsel %vm980_vm3, %v4907_v55, -inf }
 0x3c4   : > { %1917 = vmax.xlane.f32.xlu2 %v1916_v15 }
 0x3c5   : > { %v1769_v46 = vpop.f32.mrf.mxu2 }
 0x3c8   : > { %v1633_v63 = vpop.f32.mrf.mxu0  ;;  %v1746_v51 = vpop.f32.mrf.mxu1 }
 0x3cc   : > { %1911 = vmax.xlane.f32.xlu2 %v1910_v47 }
 0x3cd   : > { %v1771_v26 = vpop.f32.mrf.mxu2  ;;  %v1792_v23 = vpop.f32.mrf.mxu3 }
 0x3ce   : > { %v4929_v33 = vmul.f32 0.25, %v1792_v23  ;;  %v4943_v23 = vmul.f32 0.25, %v1769_v46 }
 0x3d0   : > { %v1723_v19 = vpop.f32.mrf.mxu0  ;;  %v1748_v8 = vpop.f32.mrf.mxu1  ;;  %v1937_v6 = vsel %vm980_vm3, %v4929_v33, -inf }
 0x3d1   : > { %v4917_v20 = vmul.f32 0.25, %v1723_v19  ;;  %v1934_v19 = vsel %vm980_vm3, %v4943_v23, -inf }
 0x3d3   : > { %v1928_v1 = vsel %vm980_vm3, %v4917_v20, -inf }
 0x3d4   : > { %1926 = vmax.xlane.f32.xlu2 %v1925_v21  ;;  %1929 = vmax.xlane.f32.xlu0 %v1928_v1 }
 0x3d5   : > { %2285 = vrot.lane.b32.xlu1 %v4363_v12, %s4162_s26  ;;  %v1794_v34 = vpop.f32.mrf.mxu3 }
 0x3d8   : > { %v1725_v5 = vpop.f32.mrf.mxu0  ;;  %v1838_v11 = vpop.f32.mrf.mxu1 }
 0x3d9   : > { %v4955_v34 = vmul.f32 0.25, %v1838_v11 }
 0x3db   : > { %v1943_v46 = vsel %vm980_vm3, %v4955_v34, -inf }
 0x3dc   : > { %1923 = vmax.xlane.f32.xlu0 %v1922_v25 }
 0x3dd   : > { %v1861_v24 = vpop.f32.mrf.mxu2  ;;  %v1884_v58 = vpop.f32.mrf.mxu3 }
 0x3de   : > { %v4933_v32 = vmul.f32 0.25, %v1861_v24  ;;  %v4947_v8 = vmul.f32 0.25, %v1884_v58 }
 0x3e0   : > { %v1815_v18 = vpop.f32.mrf.mxu0  ;;  %v1840_v4 = vpop.f32.mrf.mxu1  ;;  %v1946_v63 = vsel %vm980_vm3, %v4933_v32, -inf  ;;  %v1949_v21 = vsel %vm980_vm3, %v4947_v8, -inf }
 0x3e1   : > { %v4939_v47 = vmul.f32 0.25, %v1815_v18 }
 0x3e3   : > { %v1940_v26 = vsel %vm980_vm3, %v4939_v47, -inf }
 0x3e4   : > { %1938 = vmax.xlane.f32.xlu0 %v1937_v6 }
 0x3e5   : > { %v1863_v12 = vpop.f32.mrf.mxu2  ;;  %v1886_v44 = vpop.f32.mrf.mxu3 }
 0x3e8   : > { %v1817_v15 = vpop.f32.mrf.mxu0 }
 0x3ec   : > { %2264 = vrot.lane.b32.xlu2 %v4355_v7, %s4162_s26  ;;  %1947 = vmax.xlane.f32.xlu0 %v1946_v63  ;;  %v4951_v7 = vmul.f32 0.25, %v1746_v51 }
 0x3ee   : > { %v1931_v1 = vsel %vm980_vm3, %v4951_v7, -inf }
 0x3ff   : > { %1941 = vmax.xlane.f32.xlu1 %v1940_v26 }
 0x407   : > { %1935 = vmax.xlane.f32.xlu1 %v1934_v19 }
 0x40f   : > { %1950 = vmax.xlane.f32.xlu1 %v1949_v21 }
 0x415   : > { %1932 = vmax.xlane.f32.xlu2 %v1931_v1 }
 0x41d   : > { %1944 = vmax.xlane.f32.xlu2 %v1943_v46 }
 0x41f   : > { %v1909_v5 = vpop.xlane.xlu1 %1908 }
 0x420   : > { %v1953_v25 = vsub.f32 %v4891_v60, %v1909_v5 }
 0x422   : > { %v1970_v24 = vmul.f32 1.442695, %v1953_v25 }
 0x424   : > { %4004 = vpow2.f32 %v1970_v24 }
 0x427   : > { %v1906_v58 = vpop.xlane.xlu0 %1905 }
 0x428   : > { %v1952_v18 = vsub.f32 %v4895_v13, %v1906_v58 }
 0x42a   : > { %v4961_v51 = vpop.eup %4004  ;;  %v1968_v4 = vmul.f32 1.442695, %v1952_v18 }
 0x42b   : > { %v2003_v6 = vsel %vm980_vm3, %v4961_v51, 0.0 }
 0x42c   : > { %4006 = vpow2.f32 %v1968_v4  ;;  %2004 = vadd.xlane.f32.xlu0 %v2003_v6 }
 0x42f   : > { %v1921_v60 = vpop.xlane.xlu1 %1920  ;;  %v1915_v19 = vpop.xlane.xlu0 %1914 }
 0x430   : > { %v1957_v13 = vsub.f32 %v4901_v52, %v1921_v60  ;;  %v1955_v5 = vsub.f32 %v4899_v42, %v1915_v19 }
 0x432   : > { %v4965_v11 = vpop.eup %4006  ;;  %v1978_v26 = vmul.f32 1.442695, %v1957_v13 }
 0x433   : > { %v2000_v12 = vsel %vm980_vm3, %v4965_v11, 0.0 }
 0x434   : > { %2001 = vadd.xlane.f32.xlu1 %v2000_v12 }
 0x437   : > { %v1918_v44 = vpop.xlane.xlu2 %1917 }
 0x438   : > { %v1956_v15 = vsub.f32 %v4907_v55, %v1918_v44  ;;  %v1974_v55 = vmul.f32 1.442695, %v1955_v5 }
 0x43a   : > { %v1976_v63 = vmul.f32 1.442695, %v1956_v15 }
 0x43c   : > { %4008 = vpow2.f32 %v1976_v63 }
 0x43d   : > { %4010 = vpow2.f32 %v1978_v26 }
 0x43f   : > { %v1912_v21 = vpop.xlane.xlu2 %1911 }
 0x440   : > { %v1954_v1 = vsub.f32 %v4911_v14, %v1912_v21 }
 0x442   : > { %v4972_v46 = vpop.eup %4008  ;;  %v1972_v25 = vmul.f32 1.442695, %v1954_v1 }
 0x443   : > { %v2012_v24 = vsel %vm980_vm3, %v4972_v46, 0.0  ;;  %v4977_v52 = vpop.eup %4010 }
 0x444   : > { %4012 = vpow2.f32 %v1972_v25  ;;  %2013 = vadd.xlane.f32.xlu2 %v2012_v24  ;;  %v2015_v42 = vsel %vm980_vm3, %v4977_v52, 0.0 }
 0x445   : > { %4014 = vpow2.f32 %v1974_v55 }
 0x447   : > { %v1930_v58 = vpop.xlane.xlu0 %1929  ;;  %v1927_v60 = vpop.xlane.xlu2 %1926 }
 0x448   : > { %v1960_v18 = vsub.f32 %v4917_v20, %v1930_v58  ;;  %v1959_v13 = vsub.f32 %v4915_v56, %v1927_v60  ;;  %v2286_v5 = vpop.permute.xlu1 %2285 }
 0x44a   : > { %v4980_v4 = vpop.eup %4012  ;;  %v1984_v14 = vmul.f32 1.442695, %v1960_v18 }
 0x44b   : > { %v2006_v6 = vsel %vm980_vm3, %v4980_v4, 0.0  ;;  %v4988_v12 = vpop.eup %4014 }
 0x44c   : > { %2007 = vadd.xlane.f32.xlu0 %v2006_v6  ;;  %2016 = vadd.xlane.f32.xlu2 %v2015_v42  ;;  %4016 = vpow2.f32 %v1984_v14  ;;  %v2009_v26 = vsel %vm980_vm3, %v4988_v12, 0.0 }
 0x44d   : > { %2306 = vrot.lane.b32.xlu1 %v4371_v17, %s4162_s26  ;;  %v1982_v17 = vmul.f32 1.442695, %v1959_v13 }
 0x44f   : > { %v1924_v20 = vpop.xlane.xlu0 %1923  ;;  %v2265_v18 = vpop.permute.xlu2 %2264 }
 0x450   : > { %v1958_v44 = vsub.f32 %v4925_v39, %v1924_v20 }
 0x452   : > { %v4991_v15 = vpop.eup %4016  ;;  %v1980_v63 = vmul.f32 1.442695, %v1958_v44 }
 0x453   : > { %v2024_v19 = vsel %vm980_vm3, %v4991_v15, 0.0 }
 0x454   : > { %2010 = vadd.xlane.f32.xlu0 %v2009_v26  ;;  %4018 = vpow2.f32 %v1980_v63  ;;  %2025 = vadd.xlane.f32.xlu2 %v2024_v19 }
 0x455   : > { %4020 = vpow2.f32 %v1982_v17 }
 0x457   : > { %v1939_v13 = vpop.xlane.xlu0 %1938 }
 0x45a   : > { %v4998_v21 = vpop.eup %4018 }
 0x45b   : > { %v2018_v39 = vsel %vm980_vm3, %v4998_v21, 0.0  ;;  %v5002_v1 = vpop.eup %4020 }
 0x45c   : > { %2019 = vadd.xlane.f32.xlu0 %v2018_v39  ;;  %v2021_v56 = vsel %vm980_vm3, %v5002_v1, 0.0 }
 0x45f   : > { %v1948_v39 = vpop.xlane.xlu0 %1947 }
 0x464   : > { %2022 = vadd.xlane.f32.xlu0 %v2021_v56 }
 0x472   : > { %v1942_v25 = vpop.xlane.xlu1 %1941 }
 0x473   : > { %v1964_v20 = vsub.f32 %v4939_v47, %v1942_v25 }
 0x478   : > { %2327 = vrot.lane.b32.xlu0 %v4379_v22, %s4162_s26  ;;  %v1992_v22 = vmul.f32 1.442695, %v1964_v20 }
 0x47a   : > { %v1936_v24 = vpop.xlane.xlu1 %1935 }
 0x47b   : > { %v1962_v55 = vsub.f32 %v4943_v23, %v1936_v24  ;;  %v1963_v23 = vsub.f32 %v4929_v33, %v1939_v13 }
 0x47d   : > { %v1988_v58 = vmul.f32 1.442695, %v1962_v55  ;;  %v1990_v19 = vmul.f32 1.442695, %v1963_v23 }
 0x47f   : > { %4022 = vpow2.f32 %v1988_v58 }
 0x482   : > { %v1951_v33 = vpop.xlane.xlu1 %1950 }
 0x483   : > { %v1967_v58 = vsub.f32 %v4947_v8, %v1951_v33  ;;  %v2291_v8 = vsel %vm1178_vm2, %v2286_v5, 0  ;;  %v1966_v5 = vsub.f32 %v4933_v32, %v1948_v39 }
 0x485   : > { %v5009_v14 = vpop.eup %4022 }
 0x486   : > { %v2030_v6 = vsel %vm980_vm3, %v5009_v14, 0.0 }
 0x487   : > { %2031 = vadd.xlane.f32.xlu2 %v2030_v6 }
 0x488   : > { %v1933_v42 = vpop.xlane.xlu2 %1932 }
 0x489   : > { %v1961_v60 = vsub.f32 %v4951_v7, %v1933_v42 }
 0x48b   : > { %v1986_v44 = vmul.f32 1.442695, %v1961_v60 }
 0x48d   : > { %4024 = vpow2.f32 %v1986_v44 }
 0x48e   : > { %4026 = vpow2.f32 %v1992_v22 }
 0x48f   : > { %4028 = vpow2.f32 %v1990_v19 }
 0x490   : > { %v1945_v17 = vpop.xlane.xlu2 %1944 }
 0x491   : > { %v1965_v47 = vsub.f32 %v4955_v34, %v1945_v17  ;;  %v1998_v34 = vmul.f32 1.442695, %v1967_v58  ;;  %v2270_v17 = vsel %vm1178_vm2, %v2265_v18, 0 }
 0x493   : > { %v5016_v63 = vpop.eup %4024  ;;  %v1994_v25 = vmul.f32 1.442695, %v1965_v47 }
 0x494   : > { %v2027_v26 = vsel %vm980_vm3, %v5016_v63, 0.0  ;;  %v5020_v56 = vpop.eup %4026 }
 0x495   : > { %2028 = vadd.xlane.f32.xlu1 %v2027_v26  ;;  %v2036_v7 = vsel %vm980_vm3, %v5020_v56, 0.0  ;;  %v5025_v24 = vpop.eup %4028 }
 0x496   : > { %v2033_v6 = vsel %vm980_vm3, %v5025_v24, 0.0 }
 0x49d   : > { %2037 = vadd.xlane.f32.xlu1 %v2036_v7  ;;  %v1996_v7 = vmul.f32 1.442695, %v1966_v5 }
 0x49f   : > { %2348 = vrot.lane.b32.xlu2 %v4387_v28, %s4162_s26  ;;  %v2005_v55 = vpop.xlane.xlu0 %2004 }
 0x4a0   : > { %4030 = vrcp.f32 %v2005_v55 }
 0x4a1   : > { %4032 = vpow2.f32 %v1994_v25 }
 0x4a2   : > { %2034 = vadd.xlane.f32.xlu0 %v2033_v6 }
 0x4a6   : > { %v4031_v42 = vpop.eup %4030 }
 0x4a7   : > { %v5032_v60 = vpop.eup %4032  ;;  %v2065_v20 = vmul.f32 %v4031_v42, %v4961_v51  ;;  %v2002_v44 = vpop.xlane.xlu1 %2001 }
 0x4a8   : > { %4034 = vrcp.f32 %v2002_v44  ;;  %v2039_v28 = vsel %vm980_vm3, %v5032_v60, 0.0 }
 0x4a9   : > { %4036 = vpow2.f32 %v1998_v34  ;;  %v2081_v13 = vpack.c.bf16 %v2065_v20, %v2065_v20 }
 0x4aa   : > { %2040 = vadd.xlane.f32.xlu0 %v2039_v28 }
 0x4ab   : > { %3825 = vmatmul.msk.bf16.vlgmr.msra.gmra.mxu1 %vm980_vm3, %v2081_v13 }
 0x4ac   : > { %2300 = vmatpush.bf16.msra.mxu1 %v2291_v8 }
 0x4ae   : > { %v4035_v22 = vpop.eup %4034 }
 0x4af   : > { %v5039_v23 = vpop.eup %4036  ;;  %v2064_v26 = vmul.f32 %v4035_v22, %v4965_v11 }
 0x4b0   : > { %v2045_v51 = vsel %vm980_vm3, %v5039_v23, 0.0 }
 0x4b1   : > { %v2080_v19 = vpack.c.bf16 %v2064_v26, %v2064_v26 }
 0x4b2   : > { %2046 = vadd.xlane.f32.xlu0 %v2045_v51 }
 0x4b3   : > { %3824 = vmatmul.msk.bf16.vlgmr.msrb.gmra.mxu0 %vm980_vm3, %v2080_v19 }
 0x4b4   : > { %2279 = vmatpush.bf16.msrb.mxu0 %v2270_v17 }
 0x4b6   : > { %2369 = vrot.lane.b32.xlu1 %v4395_v37, %s4162_s26 }
 0x4b7   : > { %v2014_v47 = vpop.xlane.xlu2 %2013 }
 0x4b8   : > { %4038 = vrcp.f32 %v2014_v47 }
 0x4b9   : > { %4040 = vpow2.f32 %v1996_v7 }
 0x4be   : > { %v4039_v25 = vpop.eup %4038  ;;  %2411 = vrot.lane.b32.xlu1 %v4414_v57, %s4162_s26 }
 0x4bf   : > { %v2068_v11 = vmul.f32 %v4039_v25, %v4972_v46  ;;  %v2017_v18 = vpop.xlane.xlu2 %2016  ;;  %v2008_v33 = vpop.xlane.xlu0 %2007 }
 0x4c0   : > { %4042 = vrcp.f32 %v2017_v18  ;;  %v5053_v32 = vpop.eup %4040  ;;  %v2307_v20 = vpop.permute.xlu1 %2306 }
 0x4c1   : > { %v2084_v55 = vpack.c.bf16 %v2068_v11, %v2068_v11  ;;  %4044 = vrcp.f32 %v2008_v33  ;;  %v2042_v57 = vsel %vm980_vm3, %v5053_v32, 0.0 }
 0x4c3   : > { %3828 = vmatmul.msk.bf16.vlgmr.msra.gmra.mxu0 %vm980_vm3, %v2084_v55 }
 0x4c6   : > { %v4043_v37 = vpop.eup %4042  ;;  %2390 = vrot.lane.b32.xlu0 %v4403_v45, %s4162_s26 }
 0x4c7   : > { %v4045_v39 = vpop.eup %4044  ;;  %v2069_v58 = vmul.f32 %v4043_v37, %v4977_v52  ;;  %v2026_v6 = vpop.xlane.xlu2 %2025  ;;  %v2312_v52 = vsel %vm1178_vm2, %v2307_v20, 0 }
 0x4c8   : > { %v2066_v46 = vmul.f32 %v4045_v39, %v4980_v4  ;;  %v2011_v34 = vpop.xlane.xlu0 %2010  ;;  %2043 = vadd.xlane.f32.xlu2 %v2042_v57  ;;  %4046 = vrcp.f32 %v2026_v6 }
 0x4c9   : > { %v2085_v42 = vpack.c.bf16 %v2069_v58, %v2069_v58  ;;  %4048 = vrcp.f32 %v2011_v34 }
 0x4ca   : > { %v2082_v44 = vpack.c.bf16 %v2066_v46, %v2066_v46  ;;  %v3911_v46 = vld [vmem:[%s5944_s3 + $0x8] sm:$0xff] }
 0x4cb   : > { %3829 = vmatmul.msk.bf16.vlgmr.msrb.gmra.mxu1 %vm980_vm3, %v2085_v42 }
 0x4cc   : > { %3826 = vmatmul.msk.bf16.vlgmr.msra.gmra.mxu2 %vm980_vm3, %v2082_v44 }
 0x4cd   : > { %2321 = vmatpush.bf16.msra.mxu2 %v2312_v52 }
 0x4ce   : > { %v4047_v45 = vpop.eup %4046 }
 0x4cf   : > { %v4049_v13 = vpop.eup %4048  ;;  %v2072_v28 = vmul.f32 %v4047_v45, %v4991_v15 }
 0x4d0   : > { %v2020_v4 = vpop.xlane.xlu0 %2019  ;;  %v2067_v8 = vmul.f32 %v4049_v13, %v4988_v12 }
 0x4d1   : > { %4050 = vrcp.f32 %v2020_v4  ;;  %v2088_v22 = vpack.c.bf16 %v2072_v28, %v2072_v28 }
 0x4d2   : > { %v2083_v26 = vpack.c.bf16 %v2067_v8, %v2067_v8 }
 0x4d3   : > { %3832 = vmatmul.msk.bf16.vlgmr.msrb.gmra.mxu0 %vm980_vm3, %v2088_v22 }
 0x4d4   : > { %3827 = vmatmul.msk.bf16.vlgmr.msra.gmra.mxu3 %vm980_vm3, %v2083_v26 }
 0x4d7   : > { %v4051_v19 = vpop.eup %4050 }
 0x4d8   : > { %v2070_v51 = vmul.f32 %v4051_v19, %v4998_v21  ;;  %v2023_v17 = vpop.xlane.xlu0 %2022 }
 0x4d9   : > { %4052 = vrcp.f32 %v2023_v17 }
 0x4da   : > { %v2086_v5 = vpack.c.bf16 %v2070_v51, %v2070_v51 }
 0x4dc   : > { %3830 = vmatmul.msk.bf16.vlgmr.msrb.gmra.mxu2 %vm980_vm3, %v2086_v5 }
 0x4df   : > { %v4053_v47 = vpop.eup %4052 }
 0x4e0   : > { %v2071_v15 = vmul.f32 %v4053_v47, %v5002_v1 }
 0x4e2   : > { %v2087_v7 = vpack.c.bf16 %v2071_v15, %v2071_v15 }
 0x4e4   : > { %3831 = vmatmul.msk.bf16.vlgmr.msrb.gmra.mxu3 %vm980_vm3, %v2087_v7 }
 0x4ea   : > { %v2328_v12 = vpop.permute.xlu0 %2327 }
 0x4eb   : > { %v2333_v25 = vsel %vm1178_vm2, %v2328_v12, 0 }
 0x4ec   : > { %2342 = vmatpush.bf16.msra.mxu3 %v2333_v25 }
 0x4fa   : > { %v2032_v11 = vpop.xlane.xlu2 %2031 }
 0x4fb   : > { %4054 = vrcp.f32 %v2032_v11 }
 0x501   : > { %v4055_v18 = vpop.eup %4054 }
 0x502   : > { %v2074_v21 = vmul.f32 %v4055_v18, %v5009_v14  ;;  %v2349_v33 = vpop.permute.xlu2 %2348 }
 0x503   : > { %v2354_v55 = vsel %vm1178_vm2, %v2349_v33, 0 }
 0x504   : > { %v2090_v37 = vpack.c.bf16 %v2074_v21, %v2074_v21  ;;  %2363 = vmatpush.bf16.msra.mxu0 %v2354_v55 }
 0x506   : > { %3834 = vmatmul.msk.bf16.vlgmr.msra.gmra.mxu2 %vm980_vm3, %v2090_v37 }
 0x508   : > { %v2029_v1 = vpop.xlane.xlu1 %2028  ;;  %2480 = vmatpush.bf16.msrb.mxu0 %v3911_v46 }
 0x509   : > { %4056 = vrcp.f32 %v2029_v1 }
 0x50f   : > { %v4057_v39 = vpop.eup %4056 }
 0x510   : > { %v2073_v58 = vmul.f32 %v4057_v39, %v5016_v63  ;;  %v2038_v57 = vpop.xlane.xlu1 %2037 }
 0x511   : > { %4058 = vrcp.f32 %v2038_v57 }
 0x512   : > { %v2089_v6 = vpack.c.bf16 %v2073_v58, %v2073_v58 }
 0x514   : > { %3833 = vmatmul.msk.bf16.vlgmr.msra.gmra.mxu1 %vm980_vm3, %v2089_v6 }
 0x515   : > { %v2035_v14 = vpop.xlane.xlu0 %2034 }
 0x516   : > { %4060 = vrcp.f32 %v2035_v14 }
 0x517   : > { %v4059_v34 = vpop.eup %4058 }
 0x518   : > { %v2076_v42 = vmul.f32 %v4059_v34, %v5020_v56  ;;  %v3910_v56 = vld [vmem:[%s5944_s3] sm:$0xff] }
 0x51a   : > { %v2092_v20 = vpack.c.bf16 %v2076_v42, %v2076_v42 }
 0x51c   : > { %3836 = vmatmul.msk.bf16.vlgmr.msra.gmra.mxu0 %vm980_vm3, %v2092_v20  ;;  %v4061_v44 = vpop.eup %4060 }
 0x51d   : > { %v2075_v63 = vmul.f32 %v4061_v44, %v5025_v24  ;;  %v2041_v52 = vpop.xlane.xlu0 %2040 }
 0x51e   : > { %4062 = vrcp.f32 %v2041_v52  ;;  %v4134_v52 = vld [vmem:[%s4256_s18] sm:$0xff] }
 0x51f   : > { %v2091_v45 = vpack.c.bf16 %v2075_v63, %v2075_v63 }
 0x521   : > { %3835 = vmatmul.msk.bf16.vlgmr.msra.gmra.mxu3 %vm980_vm3, %v2091_v45 }
 0x524   : > { %v4063_v13 = vpop.eup %4062 }
 0x525   : > { %v2047_v28 = vpop.xlane.xlu0 %2046  ;;  %v2077_v4 = vmul.f32 %v4063_v13, %v5032_v60 }
 0x526   : > { %4064 = vrcp.f32 %v2047_v28 }
 0x527   : > { %v2093_v24 = vpack.c.bf16 %v2077_v4, %v2077_v4 }
 0x528   : > { %v2370_v8 = vpop.permute.xlu1 %2369  ;;  %v2134_v22 = vpop.f32.mrf.mxu1 }
 0x529   : > { %v2375_v26 = vsel %vm1178_vm2, %v2370_v8, 0 }
 0x52a   : > { %2384 = vmatpush.bf16.msrb.mxu1 %v2375_v26 }
 0x52c   : > { %v4065_v19 = vpop.eup %4064 }
 0x52d   : > { %3837 = vmatmul.msk.bf16.vlgmr.msrb.gmra.mxu1 %vm980_vm3, %v2093_v24  ;;  %v2079_v51 = vmul.f32 %v4065_v19, %v5039_v23 }
 0x52e   : > { %2559 = vmatpush.bf16.msra.mxu1 %v3910_v56  ;;  %v4135_v56 = vld [vmem:[%s4256_s18 + $0x8] sm:$0xff] }
 0x52f   : > { %v2095_v7 = vpack.c.bf16 %v2079_v51, %v2079_v51 }
 0x530   : > { %v2113_v17 = vpop.f32.mrf.mxu0  ;;  %v2412_v5 = vpop.permute.xlu1 %2411 }
 0x531   : > { %v2432_v60 = vpack.c.bf16 %v2134_v22, %v2113_v17  ;;  %v2417_v47 = vsel %vm1178_vm2, %v2412_v5, 0  ;;  %v2136_v15 = vpop.f32.mrf.mxu1 }
 0x532   : > { %2426 = vmatpush.bf16.msrb.mxu3 %v2417_v47  ;;  %v4136_v15 = vld [vmem:[%s4256_s18 + $0x10] sm:$0xff] }
 0x533   : > { %3846 = vmatmul.msk.bf16.vlgmr.msrb.gmra.mxu0 %vm584_vm1, %v2432_v60 }
 0x535   : > { %3839 = vmatmul.msk.bf16.vlgmr.msrb.gmra.mxu3 %vm980_vm3, %v2095_v7 }
 0x538   : > { %v2115_v12 = vpop.f32.mrf.mxu0  ;;  %v2391_v25 = vpop.permute.xlu0 %2390 }
 0x539   : > { %v2396_v11 = vsel %vm1178_vm2, %v2391_v25, 0 }
 0x53a   : > { %2405 = vmatpush.bf16.msrb.mxu2 %v2396_v11 }
 0x53b   : > { %v2044_v18 = vpop.xlane.xlu2 %2043 }
 0x53c   : > { %4066 = vrcp.f32 %v2044_v18 }
 0x53d   : > { %3858 = vmatmul.msk.bf16.vlgmr.msra.gmra.mxu1 %vm584_vm1, %v1510_v50 }
 0x540   : > { %v2197_v23 = vpop.f32.mrf.mxu0 }
 0x542   : > { %v4067_v21 = vpop.eup %4066 }
 0x543   : > { %v2078_v33 = vmul.f32 %v4067_v21, %v5053_v32  ;;  %v4137_v21 = vld [vmem:[%s4256_s18 + $0x18] sm:$0xff] }
 0x545   : > { %v2094_v55 = vpack.c.bf16 %v2078_v33, %v2078_v33 }
 0x547   : > { %3838 = vmatmul.msk.bf16.vlgmr.msrb.gmra.mxu2 %vm980_vm3, %v2094_v55 }
 0x548   : > { %v2199_v37 = vpop.f32.mrf.mxu0  ;;  %v2218_v1 = vpop.f32.mrf.mxu1 }
 0x549   : > { %v2434_v43 = vpack.c.bf16 %v2218_v1, %v2197_v23 }
 0x54d   : > { %3859 = vmatmul.msk.bf16.gmra.mxu1 %vm584_vm1, %v1511_v49 }
 0x54f   : > { %v2155_v39 = vpop.f32.mrf.mxu2 }
 0x550   : > { %v2220_v58 = vpop.f32.mrf.mxu1  ;;  %v2281_v57 = vpop.f32.mrf.mxu0 }
 0x557   : > { %v2157_v10 = vpop.f32.mrf.mxu2  ;;  %v2176_v54 = vpop.f32.mrf.mxu3 }
 0x558   : > { %v2433_v50 = vpack.c.bf16 %v2176_v54, %v2155_v39  ;;  %v2283_v46 = vpop.f32.mrf.mxu0 }
 0x55a   : > { %3847 = vmatmul.msk.bf16.gmra.mxu0 %vm584_vm1, %v2433_v50 }
 0x55d   : > { %3860 = vmatmul.msk.bf16.gmra.mxu1 %vm584_vm1, %v1512_v48 }
 0x55f   : > { %v2239_v32 = vpop.f32.mrf.mxu2  ;;  %v2178_v6 = vpop.f32.mrf.mxu3 }
 0x560   : > { %v4139_v6 = vld [vmem:[%s4256_s18 + $0x28] sm:$0xff] }
 0x567   : > { %v2241_v14 = vpop.f32.mrf.mxu2  ;;  %v2260_v35 = vpop.f32.mrf.mxu3 }
 0x568   : > { %v2435_v34 = vpack.c.bf16 %v2260_v35, %v2239_v32 }
 0x56a   : > { %3848 = vmatmul.msk.bf16.gmra.mxu0 %vm584_vm1, %v2434_v43 }
 0x56d   : > { %3861 = vmatmul.msk.bf16.gmra.mxu1 %vm584_vm1, %v1513_v0 }
 0x56f   : > { %v2262_v49 = vpop.f32.mrf.mxu3 }
 0x57a   : > { %3849 = vmatmul.msk.bf16.gmra.mxu0 %vm584_vm1, %v2435_v34 }
 0x57d   : > { %3862 = vmatmul.msk.bf16.gmra.mxu1 %vm584_vm1, %v1514_v27 }
 0x589   : > { %v2323_v62 = vpop.f32.mrf.mxu2 }
 0x58d   : > { %3863 = vmatmul.msk.bf16.gmra.mxu1 %vm584_vm1, %v1515_v9 }
 0x591   : > { %v2302_v29 = vpop.f32.mrf.mxu1  ;;  %v2325_v48 = vpop.f32.mrf.mxu2 }
 0x592   : > { %v2436_v30 = vpack.c.bf16 %v2302_v29, %v2281_v57  ;;  %v4138_v57 = vld [vmem:[%s4256_s18 + $0x20] sm:$0xff] }
 0x594   : > { %3850 = vmatmul.msk.bf16.gmra.mxu0 %vm584_vm1, %v2436_v30 }
 0x599   : > { %v2304_v16 = vpop.f32.mrf.mxu1  ;;  %v2365_v0 = vpop.f32.mrf.mxu0 }
 0x59a   : > { %v4140_v16 = vld [vmem:[%s4256_s18 + $0x38] sm:$0xff] }
 0x59d   : > { %3864 = vmatmul.msk.bf16.gmra.mxu1 %vm584_vm1, %v1516_v3 }
 0x5a1   : > { %v2367_v36 = vpop.f32.mrf.mxu0 }
 0x5a4   : > { %v2344_v59 = vpop.f32.mrf.mxu3 }
 0x5a5   : > { %v2437_v27 = vpack.c.bf16 %v2344_v59, %v2323_v62 }
 0x5a7   : > { %3851 = vmatmul.msk.bf16.gmra.mxu0 %vm584_vm1, %v2437_v27 }
 0x5aa   : > { %v2386_v53 = vpop.f32.mrf.mxu1 }
 0x5ab   : > { %v2438_v42 = vpack.c.bf16 %v2386_v53, %v2365_v0 }
 0x5ac   : > { %v2346_v38 = vpop.f32.mrf.mxu3 }
 0x5ad   : > { %3865 = vmatmul.msk.bf16.gmra.mxu1 %vm584_vm1, %v1517_v41 }
 0x5b0   : > { %v2482_v20 = vpop.f32.mrf.mxu0 }
 0x5b2   : > { %v2388_v9 = vpop.f32.mrf.mxu1 }
 0x5b3   : > { %v4141_v9 = vld [vmem:[%s4256_s18 + $0x40] sm:$0xff] }
 0x5b7   : > { %3852 = vmatmul.msk.bf16.gmra.mxu0 %vm584_vm1, %v2438_v42 }
 0x5b8   : > { %v2428_v61 = vpop.f32.mrf.mxu3  ;;  %v2484_v45 = vpop.f32.mrf.mxu0 }
 0x5ba   : > { %v2561_v3 = vpop.f32.mrf.mxu1 }
 0x5bb   : > { %v2562_v44 = vadd.f32 %v2561_v3, %v2482_v20 }
 0x5bd   : > { %v2605_v63 = vadd.f32 %v5139_v2, %v2562_v44 }
 0x5bf   : > { %v5143_v40 = vadd.f32 %v4134_v52, %v2605_v63 }
 0x5c0   : > { %v2430_v31 = vpop.f32.mrf.mxu3 }
 0x5c1   : > { %v2639_v41 = vsel %vm489_vm0, %v5143_v40, 0.0 }
 0x5c2   : > { %v2563_v13 = vpop.f32.mrf.mxu1  ;;  %2640 = vadd.xlane.f32.xlu1 %v2639_v41 }
 0x5c3   : > { %v2564_v28 = vadd.f32 %v2563_v13, %v2484_v45 }
 0x5c5   : > { %v2606_v4 = vadd.f32 %v5139_v2, %v2564_v28 }
 0x5c7   : > { %v5149_v8 = vadd.f32 %v4135_v56, %v2606_v4 }
 0x5c9   : > { %v2642_v22 = vsel %vm489_vm0, %v5149_v8, 0.0 }
 0x5ca   : > { %2643 = vadd.xlane.f32.xlu0 %v2642_v22  ;;  %v2407_v26 = vpop.f32.mrf.mxu2  ;;  %v2566_v19 = vpop.f32.mrf.mxu1 }
 0x5cb   : > { %v2439_v24 = vpack.c.bf16 %v2428_v61, %v2407_v26  ;;  %v4163_v61 = vmov 32.0  }
 0x5cc   : > { %4068 = vrcp.f32 %v4163_v61  ;;  %v4145_v61 = vld [vmem:[%s4256_s18 + $0x58] sm:$0xff] }
 0x5cd   : > { %3853 = vmatmul.msk.bf16.gmra.mxu0 %vm584_vm1, %v2439_v24 }
 0x5d2   : > { %v2409_v51 = vpop.f32.mrf.mxu2  ;;  %v2568_v17 = vpop.f32.mrf.mxu1 }
 0x5d3   : > { %v4069_v3 = vpop.eup %4068  ;;  %v4142_v51 = vld [vmem:[%s4256_s18 + $0x30] sm:$0xff] }
 0x5d4   : > { %v2688_v44 = vmul.f32 32.0, %v4069_v3  ;;  %vm2692_vm4 = vweird.f32 %v4069_v3 }
 0x5d6   : > { %v2689_v63 = vsub.f32 1.0, %v2688_v44 }
 0x5d7   : > { %v2487_v5 = vpop.f32.mrf.mxu0 }
 0x5d8   : > { %v2567_v60 = vadd.f32 %v2566_v19, %v2487_v5  ;;  %v2690_v52 = vmul.f32 %v4069_v3, %v2689_v63 }
 0x5da   : > { %v2607_v47 = vadd.f32 %v5139_v2, %v2567_v60  ;;  %v2571_v18 = vpop.f32.mrf.mxu1  ;;  %v2691_v31 = vadd.f32 %v4069_v3, %v2690_v52 }
 0x5dc   : > { %v5156_v7 = vadd.f32 %v4136_v15, %v2607_v47  ;;  %v5190_v41 = vsel %vm2692_vm4, %v4069_v3, %v2691_v31 }
 0x5de   : > { %v2645_v12 = vsel %vm489_vm0, %v5156_v7, 0.0 }
 0x5df   : > { %v2489_v25 = vpop.f32.mrf.mxu0  ;;  %2646 = vadd.xlane.f32.xlu2 %v2645_v12 }
 0x5e0   : > { %v2569_v11 = vadd.f32 %v2568_v17, %v2489_v25 }
 0x5e2   : > { %v2608_v23 = vadd.f32 %v5139_v2, %v2569_v11  ;;  %v2573_v58 = vpop.f32.mrf.mxu1 }
 0x5e4   : > { %v5162_v33 = vadd.f32 %v4137_v21, %v2608_v23 }
 0x5e6   : > { %v2648_v55 = vsel %vm489_vm0, %v5162_v33, 0.0 }
 0x5e7   : > { %v2492_v37 = vpop.f32.mrf.mxu0  ;;  %2649 = vadd.xlane.f32.xlu2 %v2648_v55 }
 0x5e8   : > { %v2572_v1 = vadd.f32 %v2571_v18, %v2492_v37 }
 0x5ea   : > { %v2609_v39 = vadd.f32 %v5139_v2, %v2572_v1  ;;  %v2576_v35 = vpop.f32.mrf.mxu1 }
 0x5ec   : > { %v5168_v10 = vadd.f32 %v4138_v57, %v2609_v39 }
 0x5ee   : > { %v2651_v54 = vsel %vm489_vm0, %v5168_v10, 0.0 }
 0x5ef   : > { %v2494_v50 = vpop.f32.mrf.mxu0  ;;  %2652 = vadd.xlane.f32.xlu2 %v2651_v54 }
 0x5f0   : > { %v2574_v46 = vadd.f32 %v2573_v58, %v2494_v50 }
 0x5f2   : > { %v2610_v32 = vadd.f32 %v5139_v2, %v2574_v46  ;;  %v2578_v62 = vpop.f32.mrf.mxu1 }
 0x5f4   : > { %v5174_v14 = vadd.f32 %v4139_v6, %v2610_v32 }
 0x5f6   : > { %v2654_v43 = vsel %vm489_vm0, %v5174_v14, 0.0 }
 0x5f7   : > { %v2497_v49 = vpop.f32.mrf.mxu0  ;;  %2655 = vadd.xlane.f32.xlu2 %v2654_v43 }
 0x5f8   : > { %v2577_v34 = vadd.f32 %v2576_v35, %v2497_v49 }
 0x5fa   : > { %v2581_v59 = vpop.f32.mrf.mxu1  ;;  %v2611_v56 = vadd.f32 %v5139_v2, %v2577_v34 }
 0x5fc   : > { %v5205_v17 = vadd.f32 %v4142_v51, %v2611_v56 }
 0x5fe   : > { %v2657_v5 = vsel %vm489_vm0, %v5205_v17, 0.0 }
 0x5ff   : > { %v2499_v29 = vpop.f32.mrf.mxu0 }
 0x600   : > { %v2579_v48 = vadd.f32 %v2578_v62, %v2499_v29  ;;  %v4144_v29 = vld [vmem:[%s4256_s18 + $0x50] sm:$0xff] }
 0x602   : > { %v2612_v30 = vadd.f32 %v5139_v2, %v2579_v48  ;;  %v2583_v47 = vpop.f32.mrf.mxu1 }
 0x604   : > { %v5180_v0 = vadd.f32 %v4140_v16, %v2612_v30 }
 0x606   : > { %v2660_v36 = vsel %vm489_vm0, %v5180_v0, 0.0 }
 0x607   : > { %2661 = vadd.xlane.f32.xlu0 %v2660_v36 }
 0x60a   : > { %v2586_v21 = vpop.f32.mrf.mxu1 }
 0x611   : > { %v2502_v27 = vpop.f32.mrf.mxu0 }
 0x612   : > { %v2582_v53 = vadd.f32 %v2581_v59, %v2502_v27  ;;  %v2588_v43 = vpop.f32.mrf.mxu1 }
 0x614   : > { %v2613_v38 = vadd.f32 %v5139_v2, %v2582_v53 }
 0x616   : > { %v5186_v42 = vadd.f32 %v4141_v9, %v2613_v38 }
 0x618   : > { %v2663_v20 = vsel %vm489_vm0, %v5186_v42, 0.0 }
 0x619   : > { %2664 = vadd.xlane.f32.xlu0 %v2663_v20  ;;  %v2504_v15 = vpop.f32.mrf.mxu0 }
 0x61a   : > { %v2584_v25 = vadd.f32 %v2583_v47, %v2504_v15  ;;  %v2591_v38 = vpop.f32.mrf.mxu1 }
 0x61c   : > { %v2614_v55 = vadd.f32 %v5139_v2, %v2584_v25 }
 0x624   : > { %v2507_v18 = vpop.f32.mrf.mxu0 }
 0x625   : > { %v2587_v58 = vadd.f32 %v2586_v21, %v2507_v18 }
 0x627   : > { %v2615_v32 = vadd.f32 %v5139_v2, %v2587_v58 }
 0x629   : > { %v5238_v48 = vadd.f32 %v4144_v29, %v2615_v32 }
 0x62b   : > { %v2669_v59 = vsel %vm489_vm0, %v5238_v48, 0.0 }
 0x62c   : > { %v2509_v46 = vpop.f32.mrf.mxu0 }
 0x62d   : > { %v2589_v34 = vadd.f32 %v2588_v43, %v2509_v46 }
 0x62f   : > { %v2616_v16 = vadd.f32 %v5139_v2, %v2589_v34 }
 0x631   : > { %v5251_v3 = vadd.f32 %v4145_v61, %v2616_v16 }
 0x633   : > { %v2672_v31 = vsel %vm489_vm0, %v5251_v3, 0.0 }
 0x634   : > { %v2512_v27 = vpop.f32.mrf.mxu0 }
 0x635   : > { %v2641_v45 = vpop.xlane.xlu1 %2640  ;;  %v2592_v9 = vadd.f32 %v2591_v38, %v2512_v27 }
 0x636   : > { %v2694_v13 = vmul.f32 %v5190_v41, %v2641_v45  ;;  %v4146_v45 = vld [vmem:[%s4256_s18 + $0x60] sm:$0xff] }
 0x637   : > { %v2617_v63 = vadd.f32 %v5139_v2, %v2592_v9  ;;  %v4148_v9 = vld [vmem:[%s4256_s18 + $0x68] sm:$0xff] }
 0x638   : > { %v5194_v28 = vsub.f32 %v5143_v40, %v2694_v13 }
 0x639   : > { %v5260_v13 = vadd.f32 %v4146_v45, %v2617_v63 }
 0x63a   : > { %v2726_v4 = vmul.f32 %v5194_v28, %v5194_v28 }
 0x63b   : > { %v2675_v56 = vsel %vm489_vm0, %v5260_v13, 0.0 }
 0x63c   : > { %v2742_v22 = vsel %vm489_vm0, %v2726_v4, 0.0  ;;  %v2514_v4 = vpop.f32.mrf.mxu0 }
 0x63d   : > { %2743 = vadd.xlane.f32.xlu1 %v2742_v22  ;;  %v2644_v26 = vpop.xlane.xlu0 %2643 }
 0x63e   : > { %v2695_v24 = vmul.f32 %v5190_v41, %v2644_v26 }
 0x640   : > { %v5202_v19 = vsub.f32 %v5149_v8, %v2695_v24 }
 0x642   : > { %v2727_v40 = vmul.f32 %v5202_v19, %v5202_v19 }
 0x644   : > { %v2745_v60 = vsel %vm489_vm0, %v2727_v40, 0.0 }
 0x645   : > { %2658 = vadd.xlane.f32.xlu1 %v2657_v5  ;;  %2746 = vadd.xlane.f32.xlu2 %v2745_v60 }
 0x64a   : > { %v2517_v40 = vpop.f32.mrf.mxu0 }
 0x652   : > { %v2647_v12 = vpop.xlane.xlu2 %2646  ;;  %v2519_v47 = vpop.f32.mrf.mxu0 }
 0x653   : > { %v2696_v8 = vmul.f32 %v5190_v41, %v2647_v12 }
 0x655   : > { %v5214_v11 = vsub.f32 %v5156_v7, %v2696_v8  ;;  %v4143_v7 = vld [vmem:[%s4256_s18 + $0x48] sm:$0xff] }
 0x656   : > { %v5225_v54 = vadd.f32 %v4143_v7, %v2614_v55  ;;  %v4147_v55 = vld [vmem:[%s4256_s18 + $0x78] sm:$0xff] }
 0x657   : > { %v2728_v23 = vmul.f32 %v5214_v11, %v5214_v11 }
 0x658   : > { %v2666_v35 = vsel %vm489_vm0, %v5225_v54, 0.0 }
 0x659   : > { %v2748_v37 = vsel %vm489_vm0, %v2728_v23, 0.0 }
 0x65a   : > { %v2650_v1 = vpop.xlane.xlu2 %2649  ;;  %2749 = vadd.xlane.f32.xlu2 %v2748_v37 }
 0x65b   : > { %v2697_v39 = vmul.f32 %v5190_v41, %v2650_v1 }
 0x65d   : > { %v5222_v57 = vsub.f32 %v5162_v33, %v2697_v39 }
 0x65f   : > { %v2729_v50 = vmul.f32 %v5222_v57, %v5222_v57 }
 0x661   : > { %v2751_v6 = vsel %vm489_vm0, %v2729_v50, 0.0  ;;  %v3912_v50 = vld [vmem:[%s5948_s7] sm:$0xff] }
 0x662   : > { %v2653_v49 = vpop.xlane.xlu2 %2652  ;;  %2752 = vadd.xlane.f32.xlu1 %v2751_v6  ;;  %2667 = vadd.xlane.f32.xlu2 %v2666_v35 }
 0x663   : > { %v2698_v33 = vmul.f32 %v5190_v41, %v2653_v49 }
 0x665   : > { %v5235_v62 = vsub.f32 %v5168_v10, %v2698_v33 }
 0x667   : > { %v2730_v30 = vmul.f32 %v5235_v62, %v5235_v62 }
 0x669   : > { %v2754_v36 = vsel %vm489_vm0, %v2730_v30, 0.0 }
 0x66a   : > { %v2656_v53 = vpop.xlane.xlu2 %2655  ;;  %2755 = vadd.xlane.f32.xlu1 %v2754_v36  ;;  %2670 = vadd.xlane.f32.xlu2 %v2669_v59 }
 0x66b   : > { %v2699_v10 = vmul.f32 %v5190_v41, %v2656_v53 }
 0x66d   : > { %v5248_v20 = vsub.f32 %v5174_v14, %v2699_v10  ;;  %v2593_v14 = vpop.f32.mrf.mxu1 }
 0x66e   : > { %v2594_v49 = vadd.f32 %v2593_v14, %v2514_v4 }
 0x66f   : > { %v2731_v44 = vmul.f32 %v5248_v20, %v5248_v20 }
 0x670   : > { %v2618_v36 = vadd.f32 %v5139_v2, %v2594_v49 }
 0x671   : > { %v2757_v52 = vsel %vm489_vm0, %v2731_v44, 0.0 }
 0x672   : > { %2758 = vadd.xlane.f32.xlu0 %v2757_v52  ;;  %2673 = vadd.xlane.f32.xlu1 %v2672_v31  ;;  %v5301_v61 = vadd.f32 %v4148_v9, %v2618_v36 }
 0x674   : > { %v2678_v31 = vsel %vm489_vm0, %v5301_v61, 0.0 }
 0x675   : > { %v2596_v60 = vpop.f32.mrf.mxu1 }
 0x676   : > { %v2597_v38 = vadd.f32 %v2596_v60, %v2517_v40  ;;  %v5318_v60 = vld [vmem:[%s5947_s6] ss:$0 sm:$0xff] }
 0x678   : > { %v2619_v52 = vadd.f32 %v5139_v2, %v2597_v38 }
 0x67a   : > { %2676 = vadd.xlane.f32.xlu1 %v2675_v56  ;;  %v2662_v22 = vpop.xlane.xlu0 %2661  ;;  %v5309_v56 = vld [vmem:[%s5946_s5] ss:$0 sm:$0xff] }
 0x67b   : > { %v2701_v26 = vmul.f32 %v5190_v41, %v2662_v22 }
 0x67d   : > { %v5266_v24 = vsub.f32 %v5180_v0, %v2701_v26  ;;  %v2598_v8 = vpop.f32.mrf.mxu1  ;;  %v4149_v26 = vld [vmem:[%s4256_s18 + $0x70] sm:$0xff] }
 0x67e   : > { %v2599_v25 = vadd.f32 %v2598_v8, %v2519_v47 }
 0x67f   : > { %v2733_v51 = vmul.f32 %v5266_v24, %v5266_v24 }
 0x680   : > { %v2620_v23 = vadd.f32 %v5139_v2, %v2599_v25 }
 0x681   : > { %v2763_v5 = vsel %vm489_vm0, %v2733_v51, 0.0  ;;  %v5313_v51 = vadd.f32 %v4149_v26, %v2619_v52 }
 0x682   : > { %2764 = vadd.xlane.f32.xlu2 %v2763_v5  ;;  %v5280_v37 = vadd.f32 %v4147_v55, %v2620_v23 }
 0x684   : > { %v2684_v1 = vsel %vm489_vm0, %v5280_v37, 0.0 }
 0x68c   : > { %v2665_v15 = vpop.xlane.xlu0 %2664 }
 0x68d   : > { %v2702_v12 = vmul.f32 %v5190_v41, %v2665_v15 }
 0x68f   : > { %v5273_v18 = vsub.f32 %v5186_v42, %v2702_v12  ;;  %v3913_v42 = vld [vmem:[%s5948_s7 + $0x8] sm:$0xff] }
 0x690   : > { %3094 = vmatpush.bf16.msra.mxu2 %v3913_v42 }
 0x691   : > { %v2734_v0 = vmul.f32 %v5273_v18, %v5273_v18 }
 0x693   : > { %v2766_v21 = vsel %vm489_vm0, %v2734_v0, 0.0 }
 0x694   : > { %2767 = vadd.xlane.f32.xlu2 %v2766_v21  ;;  %3095 = vmatpush.bf16.msra.mxu2 %v3912_v50 }
 0x69c   : > { %2685 = vadd.xlane.f32.xlu2 %v2684_v1 }
 0x6b0   : > { %v2744_v39 = vpop.xlane.xlu1 %2743 }
 0x6b1   : > { %v2790_v58 = vmul.f32 %v2744_v39, %v5190_v41 }
 0x6b3   : > { %v2806_v7 = vadd.f32 1e-05, %v2790_v58 }
 0x6b5   : > { %4070 = vrsqrt.f32 %v2806_v7  ;;  %vm2828_vm6 = vweird.f32 %v2806_v7 }
 0x6b8   : > { %v2659_v46 = vpop.xlane.xlu1 %2658  ;;  %v2747_v32 = vpop.xlane.xlu2 %2746 }
 0x6b9   : > { %v2700_v6 = vmul.f32 %v5190_v41, %v2659_v46  ;;  %v2791_v35 = vmul.f32 %v2747_v32, %v5190_v41 }
 0x6bb   : > { %v4071_v43 = vpop.eup %4070  ;;  %v5294_v33 = vsub.f32 %v5205_v17, %v2700_v6  ;;  %v2807_v34 = vadd.f32 1e-05, %v2791_v35 }
 0x6bc   : > { %v2823_v29 = vmul.f32 %v4071_v43, %v2806_v7  ;;  %vm2829_vm5 = vweird.f32 %v4071_v43 }
 0x6bd   : > { %4072 = vrsqrt.f32 %v2807_v34  ;;  %v2732_v30 = vmul.f32 %v5294_v33, %v5294_v33  ;;  %vm2830_vm7 = vmor %vm2828_vm6, %vm2829_vm5  ;;  %vm2838_vm9 = vweird.f32 %v2807_v34 }
 0x6be   : > { %v2824_v16 = vmul.f32 %v4071_v43, %v2823_v29 }
 0x6bf   : > { %v2760_v59 = vsel %vm489_vm0, %v2732_v30, 0.0 }
 0x6c0   : > { %v2825_v27 = vmul.f32 0.5, %v2824_v16  ;;  %2761 = vadd.xlane.f32.xlu0 %v2760_v59 }
 0x6c2   : > { %v2826_v53 = vsub.f32 1.5, %v2825_v27 }
 0x6c3   : > { %v4073_v10 = vpop.eup %4072 }
 0x6c4   : > { %v2827_v17 = vmul.f32 %v4071_v43, %v2826_v53  ;;  %v2833_v44 = vmul.f32 %v4073_v10, %v2807_v34  ;;  %vm2839_vm8 = vweird.f32 %v4073_v10 }
 0x6c5   : > { %vm2840_vm10 = vmor %vm2838_vm9, %vm2839_vm8 }
 0x6c6   : > { %v2834_v63 = vmul.f32 %v4073_v10, %v2833_v44  ;;  %v2831_v45 = vsel %vm2830_vm7, %v4071_v43, %v2827_v17 }
 0x6c7   : > { %v2982_v22 = vmul.f32 %v2831_v45, %v5194_v28  ;;  %v2681_v28 = vsel %vm489_vm0, %v5313_v51, 0.0 }
 0x6c8   : > { %v2835_v14 = vmul.f32 0.5, %v2834_v63  ;;  %2679 = vadd.xlane.f32.xlu0 %v2678_v31 }
 0x6c9   : > { %v3001_v47 = vmul.f32 %v5309_v56, %v2982_v22 }
 0x6ca   : > { %v2836_v4 = vsub.f32 1.5, %v2835_v14 }
 0x6cb   : > { %v5327_v0 = vadd.f32 %v5318_v60, %v3001_v47 }
 0x6cc   : > { %v2837_v2 = vmul.f32 %v4073_v10, %v2836_v4 }
 0x6cd   : > { %v2750_v5 = vpop.xlane.xlu2 %2749 }
 0x6ce   : > { %v2841_v40 = vsel %vm2840_vm10, %v4073_v10, %v2837_v2  ;;  %v2792_v12 = vmul.f32 %v2750_v5, %v5190_v41 }
 0x6cf   : > { %v2983_v15 = vmul.f32 %v2841_v40, %v5202_v19 }
 0x6d0   : > { %2682 = vadd.xlane.f32.xlu0 %v2681_v28  ;;  %v2808_v25 = vadd.f32 1e-05, %v2792_v12 }
 0x6d1   : > { %v3002_v8 = vmul.f32 %v5309_v56, %v2983_v15 }
 0x6d2   : > { %4074 = vrsqrt.f32 %v2808_v25  ;;  %vm2848_vm12 = vweird.f32 %v2808_v25 }
 0x6d3   : > { %v5330_v23 = vadd.f32 %v5318_v60, %v3002_v8 }
 0x6d5   : > { %v3036_v21 = vpack.c.bf16 %v5330_v23, %v5327_v0  ;;  %v2753_v19 = vpop.xlane.xlu1 %2752  ;;  %v2668_v55 = vpop.xlane.xlu2 %2667 }
 0x6d6   : > { %v2793_v1 = vmul.f32 %v2753_v19, %v5190_v41  ;;  %v2703_v39 = vmul.f32 %v5190_v41, %v2668_v55 }
 0x6d7   : > { %3874 = vmatmul.msk.bf16.vlgmr.msra.gmra.mxu2 %vm489_vm0, %v3036_v21 }
 0x6d8   : > { %v4075_v42 = vpop.eup %4074  ;;  %v2809_v58 = vadd.f32 1e-05, %v2793_v1  ;;  %v5338_v7 = vsub.f32 %v5225_v54, %v2703_v39 }
 0x6d9   : > { %v2843_v50 = vmul.f32 %v4075_v42, %v2808_v25  ;;  %vm2849_vm11 = vweird.f32 %v4075_v42 }
 0x6da   : > { %4076 = vrsqrt.f32 %v2809_v58  ;;  %v2735_v46 = vmul.f32 %v5338_v7, %v5338_v7  ;;  %vm2850_vm13 = vmor %vm2848_vm12, %vm2849_vm11  ;;  %vm2858_vm15 = vweird.f32 %v2809_v58 }
 0x6db   : > { %v2844_v32 = vmul.f32 %v4075_v42, %v2843_v50 }
 0x6dc   : > { %v2769_v6 = vsel %vm489_vm0, %v2735_v46, 0.0 }
 0x6dd   : > { %v2845_v35 = vmul.f32 0.5, %v2844_v32  ;;  %v2756_v43 = vpop.xlane.xlu1 %2755  ;;  %2770 = vadd.xlane.f32.xlu1 %v2769_v6  ;;  %v2671_v49 = vpop.xlane.xlu2 %2670 }
 0x6de   : > { %v2794_v34 = vmul.f32 %v2756_v43, %v5190_v41  ;;  %v2704_v29 = vmul.f32 %v5190_v41, %v2671_v49 }
 0x6df   : > { %v2846_v30 = vsub.f32 1.5, %v2845_v35 }
 0x6e0   : > { %v4077_v16 = vpop.eup %4076  ;;  %v2810_v54 = vadd.f32 1e-05, %v2794_v34  ;;  %v5346_v36 = vsub.f32 %v5238_v48, %v2704_v29 }
 0x6e1   : > { %v2847_v59 = vmul.f32 %v4075_v42, %v2846_v30  ;;  %v2853_v27 = vmul.f32 %v4077_v16, %v2809_v58  ;;  %vm2859_vm14 = vweird.f32 %v4077_v16 }
 0x6e2   : > { %4078 = vrsqrt.f32 %v2810_v54  ;;  %v2736_v53 = vmul.f32 %v5346_v36, %v5346_v36  ;;  %vm2860_vm1 = vmor %vm2858_vm15, %vm2859_vm14  ;;  %vm2868_vm3 = vweird.f32 %v2810_v54 }
 0x6e3   : > { %v2854_v10 = vmul.f32 %v4077_v16, %v2853_v27  ;;  %v2851_v9 = vsel %vm2850_vm13, %v4075_v42, %v2847_v59 }
 0x6e4   : > { %v2772_v38 = vsel %vm489_vm0, %v2736_v53, 0.0  ;;  %v2984_v14 = vmul.f32 %v2851_v9, %v5214_v11 }
 0x6e5   : > { %v2855_v17 = vmul.f32 0.5, %v2854_v10  ;;  %v2674_v44 = vpop.xlane.xlu1 %2673  ;;  %2773 = vadd.xlane.f32.xlu1 %v2772_v38  ;;  %v2759_v63 = vpop.xlane.xlu0 %2758 }
 0x6e6   : > { %v2705_v48 = vmul.f32 %v5190_v41, %v2674_v44  ;;  %v2795_v52 = vmul.f32 %v2759_v63, %v5190_v41  ;;  %v3003_v11 = vmul.f32 %v5309_v56, %v2984_v14 }
 0x6e7   : > { %v2856_v31 = vsub.f32 1.5, %v2855_v17 }
 0x6e8   : > { %v4079_v45 = vpop.eup %4078  ;;  %v5355_v4 = vsub.f32 %v5251_v3, %v2705_v48  ;;  %v2811_v22 = vadd.f32 1e-05, %v2795_v52  ;;  %v5368_v1 = vadd.f32 %v5318_v60, %v3003_v11  ;;  %v3916_v11 = vld [vmem:[%s5950_s9 + $0x10] sm:$0xff] }
 0x6e9   : > { %v2857_v26 = vmul.f32 %v4077_v16, %v2856_v31  ;;  %v2863_v2 = vmul.f32 %v4079_v45, %v2810_v54  ;;  %vm2869_vm2 = vweird.f32 %v4079_v45 }
 0x6ea   : > { %4080 = vrsqrt.f32 %v2811_v22  ;;  %v2737_v40 = vmul.f32 %v5355_v4, %v5355_v4  ;;  %vm2870_vm4 = vmor %vm2868_vm3, %vm2869_vm2  ;;  %vm2878_vm6 = vweird.f32 %v2811_v22 }
 0x6eb   : > { %v2861_v5 = vsel %vm2860_vm1, %v4077_v16, %v2857_v26  ;;  %v2864_v47 = vmul.f32 %v4079_v45, %v2863_v2 }
 0x6ec   : > { %v2985_v15 = vmul.f32 %v2861_v5, %v5222_v57  ;;  %v2775_v12 = vsel %vm489_vm0, %v2737_v40, 0.0 }
 0x6ed   : > { %v2865_v28 = vmul.f32 0.5, %v2864_v47  ;;  %v2677_v3 = vpop.xlane.xlu1 %2676  ;;  %2776 = vadd.xlane.f32.xlu0 %v2775_v12 }
 0x6ee   : > { %v2706_v8 = vmul.f32 %v5190_v41, %v2677_v3  ;;  %v3004_v25 = vmul.f32 %v5309_v56, %v2985_v15 }
 0x6ef   : > { %v2866_v21 = vsub.f32 1.5, %v2865_v28 }
 0x6f0   : > { %v4081_v19 = vpop.eup %4080  ;;  %v5365_v55 = vsub.f32 %v5260_v13, %v2706_v8  ;;  %v5371_v57 = vadd.f32 %v5318_v60, %v3004_v25 }
 0x6f1   : > { %v2867_v39 = vmul.f32 %v4079_v45, %v2866_v21  ;;  %v2873_v42 = vmul.f32 %v4081_v19, %v2811_v22  ;;  %vm2879_vm5 = vweird.f32 %v4081_v19 }
 0x6f2   : > { %v3037_v58 = vpack.c.bf16 %v5371_v57, %v5368_v1  ;;  %v2738_v50 = vmul.f32 %v5365_v55, %v5365_v55  ;;  %vm2880_vm7 = vmor %vm2878_vm6, %vm2879_vm5  ;;  %vm3197_vm5 = vcmask 523264  }
 0x6f3   : > { %v2874_v46 = vmul.f32 %v4081_v19, %v2873_v42  ;;  %v2871_v32 = vsel %vm2870_vm4, %v4079_v45, %v2867_v39 }
 0x6f4   : > { %3875 = vmatmul.msk.bf16.gmra.mxu2 %vm489_vm0, %v3037_v58  ;;  %v2778_v13 = vsel %vm489_vm0, %v2738_v50, 0.0  ;;  %v2986_v43 = vmul.f32 %v2871_v32, %v5235_v62 }
 0x6f5   : > { %v2875_v6 = vmul.f32 0.5, %v2874_v46  ;;  %2779 = vadd.xlane.f32.xlu2 %v2778_v13  ;;  %v2765_v16 = vpop.xlane.xlu2 %2764 }
 0x6f6   : > { %v3005_v30 = vmul.f32 %v5309_v56, %v2986_v43  ;;  %v2797_v44 = vmul.f32 %v2765_v16, %v5190_v41 }
 0x6f7   : > { %v2876_v35 = vsub.f32 1.5, %v2875_v6  ;;  %v3914_v6 = vld [vmem:[%s5950_s9] sm:$0xff] }
 0x6f8   : > { %v5384_v59 = vadd.f32 %v5318_v60, %v3005_v30  ;;  %v2813_v63 = vadd.f32 1e-05, %v2797_v44 }
 0x6f9   : > { %v2877_v49 = vmul.f32 %v4081_v19, %v2876_v35 }
 0x6fa   : > { %4082 = vrsqrt.f32 %v2813_v63  ;;  %vm2898_vm9 = vweird.f32 %v2813_v63 }
 0x6fb   : > { %v2881_v34 = vsel %vm2880_vm7, %v4081_v19, %v2877_v49 }
 0x6fc   : > { %v2987_v29 = vmul.f32 %v2881_v34, %v5248_v20 }
 0x6fe   : > { %v3006_v54 = vmul.f32 %v5309_v56, %v2987_v29 }
 0x700   : > { %v5387_v27 = vadd.f32 %v5318_v60, %v3006_v54  ;;  %v4083_v48 = vpop.eup %4082 }
 0x701   : > { %v2893_v52 = vmul.f32 %v4083_v48, %v2813_v63  ;;  %vm2899_vm8 = vweird.f32 %v4083_v48 }
 0x702   : > { %v3038_v62 = vpack.c.bf16 %v5387_v27, %v5384_v59  ;;  %vm2900_vm10 = vmor %vm2898_vm9, %vm2899_vm8 }
 0x703   : > { %v2894_v31 = vmul.f32 %v4083_v48, %v2893_v52 }
 0x704   : > { %3876 = vmatmul.msk.bf16.gmra.mxu2 %vm489_vm0, %v3038_v62 }
 0x705   : > { %v2895_v26 = vmul.f32 0.5, %v2894_v31 }
 0x707   : > { %v2768_v53 = vpop.xlane.xlu2 %2767  ;;  %v2896_v2 = vsub.f32 1.5, %v2895_v26  ;;  %v5446_v26 = vld [vmem:[%s5949_s8] ss:$0 sm:$0xff] }
 0x708   : > { %v2798_v5 = vmul.f32 %v2768_v53, %v5190_v41 }
 0x709   : > { %v2897_v28 = vmul.f32 %v4083_v48, %v2896_v2 }
 0x70a   : > { %v2814_v8 = vadd.f32 1e-05, %v2798_v5 }
 0x70b   : > { %v2901_v39 = vsel %vm2900_vm10, %v4083_v48, %v2897_v28 }
 0x70c   : > { %v2989_v13 = vmul.f32 %v2901_v39, %v5266_v24  ;;  %vm2908_vm15 = vweird.f32 %v2814_v8 }
 0x70f   : > { %v2686_v10 = vpop.xlane.xlu2 %2685 }
 0x710   : > { %v2709_v20 = vmul.f32 %v5190_v41, %v2686_v10 }
 0x712   : > { %v5394_v38 = vsub.f32 %v5280_v37, %v2709_v20  ;;  %v3917_v37 = vld [vmem:[%s5950_s9 + $0x18] sm:$0xff] }
 0x713   : > { %3226 = vmatpush.bf16.msra.mxu3 %v3917_v37 }
 0x714   : > { %v2741_v9 = vmul.f32 %v5394_v38, %v5394_v38 }
 0x716   : > { %v2787_v17 = vsel %vm489_vm0, %v2741_v9, 0.0 }
 0x717   : > { %2788 = vadd.xlane.f32.xlu2 %v2787_v17  ;;  %3227 = vmatpush.bf16.msra.mxu3 %v3916_v11 }
 0x733   : > { %v2762_v45 = vpop.xlane.xlu0 %2761 }
 0x734   : > { %v2796_v14 = vmul.f32 %v2762_v45, %v5190_v41 }
 0x736   : > { %v2812_v22 = vadd.f32 1e-05, %v2796_v14 }
 0x738   : > { %4084 = vrsqrt.f32 %v2812_v22  ;;  %vm2888_vm12 = vweird.f32 %v2812_v22 }
 0x739   : > { %4086 = vrsqrt.f32 %v2814_v8 }
 0x73b   : > { %v2680_v40 = vpop.xlane.xlu0 %2679 }
 0x73c   : > { %v2707_v47 = vmul.f32 %v5190_v41, %v2680_v40 }
 0x73e   : > { %v4085_v15 = vpop.eup %4084  ;;  %v5407_v12 = vsub.f32 %v5301_v61, %v2707_v47  ;;  %v3915_v61 = vld [vmem:[%s5950_s9 + $0x8] sm:$0xff] }
 0x73f   : > { %v2883_v3 = vmul.f32 %v4085_v15, %v2812_v22  ;;  %3228 = vmatpush.bf16.msra.mxu3 %v3915_v61  ;;  %vm2889_vm11 = vweird.f32 %v4085_v15  ;;  %v4087_v34 = vpop.eup %4086 }
 0x740   : > { %v2739_v25 = vmul.f32 %v5407_v12, %v5407_v12  ;;  %vm2890_vm13 = vmor %vm2888_vm12, %vm2889_vm11  ;;  %v2903_v16 = vmul.f32 %v4087_v34, %v2814_v8  ;;  %vm2909_vm14 = vweird.f32 %v4087_v34 }
 0x741   : > { %v2884_v21 = vmul.f32 %v4085_v15, %v2883_v3  ;;  %vm2910_vm1 = vmor %vm2908_vm15, %vm2909_vm14 }
 0x742   : > { %v2781_v19 = vsel %vm489_vm0, %v2739_v25, 0.0  ;;  %v2904_v10 = vmul.f32 %v4087_v34, %v2903_v16 }
 0x743   : > { %v2885_v42 = vmul.f32 0.5, %v2884_v21  ;;  %2782 = vadd.xlane.f32.xlu1 %v2781_v19  ;;  %v2683_v58 = vpop.xlane.xlu0 %2682  ;;  %3229 = vmatpush.bf16.msra.mxu3 %v3914_v6 }
 0x744   : > { %v2708_v50 = vmul.f32 %v5190_v41, %v2683_v58  ;;  %v2905_v17 = vmul.f32 0.5, %v2904_v10 }
 0x745   : > { %v2886_v46 = vsub.f32 1.5, %v2885_v42 }
 0x746   : > { %v5421_v32 = vsub.f32 %v5313_v51, %v2708_v50  ;;  %v3008_v51 = vmul.f32 %v5309_v56, %v2989_v13  ;;  %v2906_v44 = vsub.f32 1.5, %v2905_v17 }
 0x747   : > { %v2887_v35 = vmul.f32 %v4085_v15, %v2886_v46 }
 0x748   : > { %v2740_v43 = vmul.f32 %v5421_v32, %v5421_v32  ;;  %v5436_v62 = vadd.f32 %v5318_v60, %v3008_v51  ;;  %v2907_v14 = vmul.f32 %v4087_v34, %v2906_v44 }
 0x749   : > { %v2891_v49 = vsel %vm2890_vm13, %v4085_v15, %v2887_v35 }
 0x74a   : > { %v2988_v29 = vmul.f32 %v2891_v49, %v5294_v33  ;;  %v2784_v24 = vsel %vm489_vm0, %v2740_v43, 0.0  ;;  %v2911_v2 = vsel %vm2910_vm1, %v4087_v34, %v2907_v14 }
 0x74b   : > { %2785 = vadd.xlane.f32.xlu0 %v2784_v24  ;;  %v2990_v21 = vmul.f32 %v2911_v2, %v5273_v18 }
 0x74c   : > { %v3007_v30 = vmul.f32 %v5309_v56, %v2988_v29 }
 0x74d   : > { %v3009_v6 = vmul.f32 %v5309_v56, %v2990_v21 }
 0x74e   : > { %v5433_v54 = vadd.f32 %v5318_v60, %v3007_v30 }
 0x74f   : > { %v5457_v34 = vadd.f32 %v5318_v60, %v3009_v6 }
 0x750   : > { %v3039_v53 = vpack.c.bf16 %v5436_v62, %v5433_v54  ;;  %v2771_v20 = vpop.xlane.xlu1 %2770 }
 0x751   : > { %v2799_v33 = vmul.f32 %v2771_v20, %v5190_v41 }
 0x752   : > { %3877 = vmatmul.msk.bf16.gmra.mxu2 %vm489_vm0, %v3039_v53 }
 0x753   : > { %v2815_v9 = vadd.f32 1e-05, %v2799_v33 }
 0x755   : > { %4088 = vrsqrt.f32 %v2815_v9  ;;  %vm2918_vm3 = vweird.f32 %v2815_v9 }
 0x758   : > { %v2774_v63 = vpop.xlane.xlu1 %2773 }
 0x759   : > { %v2800_v48 = vmul.f32 %v2774_v63, %v5190_v41 }
 0x75a   : > { %v3097_v52 = vpop.f32.mrf.mxu2 }
 0x75b   : > { %v4089_v31 = vpop.eup %4088  ;;  %v2816_v45 = vadd.f32 1e-05, %v2800_v48  ;;  %v3098_v5 = vadd.f32 %v5446_v26, %v3097_v52 }
 0x75c   : > { %v2913_v22 = vmul.f32 %v4089_v31, %v2815_v9  ;;  %vm2919_vm2 = vweird.f32 %v4089_v31 }
 0x75d   : > { %4090 = vrsqrt.f32 %v2816_v45  ;;  %v3137_v39 = vmax.f32 %v3098_v5, 0.0  ;;  %vm2920_vm4 = vmor %vm2918_vm3, %vm2919_vm2  ;;  %vm2928_vm7 = vweird.f32 %v2816_v45 }
 0x75e   : > { %v2914_v37 = vmul.f32 %v4089_v31, %v2913_v22 }
 0x760   : > { %v2915_v40 = vmul.f32 0.5, %v2914_v37  ;;  %v2777_v47 = vpop.xlane.xlu0 %2776 }
 0x761   : > { %v2801_v15 = vmul.f32 %v2777_v47, %v5190_v41 }
 0x762   : > { %v3099_v11 = vpop.f32.mrf.mxu2  ;;  %v2916_v28 = vsub.f32 1.5, %v2915_v40 }
 0x763   : > { %v3100_v3 = vadd.f32 %v5446_v26, %v3099_v11  ;;  %v4091_v25 = vpop.eup %4090  ;;  %v2817_v19 = vadd.f32 1e-05, %v2801_v15 }
 0x764   : > { %v2917_v8 = vmul.f32 %v4089_v31, %v2916_v28  ;;  %v2923_v61 = vmul.f32 %v4091_v25, %v2816_v45  ;;  %vm2929_vm6 = vweird.f32 %v4091_v25 }
 0x765   : > { %v3138_v42 = vmax.f32 %v3100_v3, 0.0  ;;  %4092 = vrsqrt.f32 %v2817_v19  ;;  %vm2930_vm8 = vmor %vm2928_vm7, %vm2929_vm6  ;;  %vm2938_vm10 = vweird.f32 %v2817_v19 }
 0x766   : > { %v2921_v58 = vsel %vm2920_vm4, %v4089_v31, %v2917_v8  ;;  %v2924_v50 = vmul.f32 %v4091_v25, %v2923_v61 }
 0x767   : > { %v3153_v46 = vpack.c.bf16 %v3138_v42, %v3137_v39  ;;  %v2991_v13 = vmul.f32 %v2921_v58, %v5338_v7 }
 0x768   : > { %v2925_v35 = vmul.f32 0.5, %v2924_v50 }
 0x769   : > { %3898 = vmatmul.msk.bf16.vlgmr.msra.gmra.mxu3 %vm3197_vm5, %v3153_v46  ;;  %v3010_v18 = vmul.f32 %v5309_v56, %v2991_v13 }
 0x76a   : > { %v2926_v43 = vsub.f32 1.5, %v2925_v35 }
 0x76b   : > { %v4093_v49 = vpop.eup %4092  ;;  %v5460_v29 = vadd.f32 %v5318_v60, %v3010_v18 }
 0x76c   : > { %v2927_v24 = vmul.f32 %v4091_v25, %v2926_v43  ;;  %v2933_v51 = vmul.f32 %v4093_v49, %v2817_v19  ;;  %vm2939_vm9 = vweird.f32 %v4093_v49 }
 0x76d   : > { %v3040_v7 = vpack.c.bf16 %v5460_v29, %v5457_v34  ;;  %vm2940_vm11 = vmor %vm2938_vm10, %vm2939_vm9 }
 0x76e   : > { %v2934_v30 = vmul.f32 %v4093_v49, %v2933_v51  ;;  %v2931_v16 = vsel %vm2930_vm8, %v4091_v25, %v2927_v24  ;;  %v2780_v25 = vpop.xlane.xlu2 %2779 }
 0x76f   : > { %3878 = vmatmul.msk.bf16.gmra.mxu2 %vm489_vm0, %v3040_v7  ;;  %v2992_v20 = vmul.f32 %v2931_v16, %v5346_v36  ;;  %v2802_v21 = vmul.f32 %v2780_v25, %v5190_v41 }
 0x770   : > { %v2935_v53 = vmul.f32 0.5, %v2934_v30 }
 0x771   : > { %v3011_v63 = vmul.f32 %v5309_v56, %v2992_v20  ;;  %v2818_v19 = vadd.f32 1e-05, %v2802_v21 }
 0x772   : > { %v2936_v10 = vsub.f32 1.5, %v2935_v53 }
 0x773   : > { %v5470_v52 = vadd.f32 %v5318_v60, %v3011_v63  ;;  %4094 = vrsqrt.f32 %v2818_v19  ;;  %vm2948_vm13 = vweird.f32 %v2818_v19 }
 0x774   : > { %v2937_v33 = vmul.f32 %v4093_v49, %v2936_v10 }
 0x776   : > { %v2941_v9 = vsel %vm2940_vm11, %v4093_v49, %v2937_v33 }
 0x777   : > { %v2993_v17 = vmul.f32 %v2941_v9, %v5355_v4  ;;  %v3102_v44 = vpop.f32.mrf.mxu2 }
 0x778   : > { %v3103_v45 = vadd.f32 %v5446_v26, %v3102_v44 }
 0x779   : > { %v3012_v48 = vmul.f32 %v5309_v56, %v2993_v17  ;;  %v4095_v61 = vpop.eup %4094 }
 0x77a   : > { %v3139_v22 = vmax.f32 %v3103_v45, 0.0  ;;  %v2943_v42 = vmul.f32 %v4095_v61, %v2818_v19  ;;  %vm2949_vm12 = vweird.f32 %v4095_v61 }
 0x77b   : > { %v5473_v31 = vadd.f32 %v5318_v60, %v3012_v48  ;;  %vm2950_vm14 = vmor %vm2948_vm13, %vm2949_vm12 }
 0x77c   : > { %v2944_v50 = vmul.f32 %v4095_v61, %v2943_v42 }
 0x77d   : > { %v3041_v36 = vpack.c.bf16 %v5473_v31, %v5470_v52 }
 0x77e   : > { %v2945_v35 = vmul.f32 0.5, %v2944_v50 }
 0x77f   : > { %v3104_v14 = vpop.f32.mrf.mxu2  ;;  %3879 = vmatmul.msk.bf16.gmra.mxu2 %vm489_vm0, %v3041_v36 }
 0x780   : > { %v3105_v4 = vadd.f32 %v5446_v26, %v3104_v14  ;;  %v2946_v18 = vsub.f32 1.5, %v2945_v35 }
 0x782   : > { %v3140_v37 = vmax.f32 %v3105_v4, 0.0  ;;  %v2947_v30 = vmul.f32 %v4095_v61, %v2946_v18 }
 0x784   : > { %v3154_v2 = vpack.c.bf16 %v3140_v37, %v3139_v22  ;;  %v2951_v20 = vsel %vm2950_vm14, %v4095_v61, %v2947_v30 }
 0x785   : > { %v2994_v63 = vmul.f32 %v2951_v20, %v5365_v55 }
 0x786   : > { %3899 = vmatmul.msk.bf16.gmra.mxu3 %vm3197_vm5, %v3154_v2 }
 0x787   : > { %v3107_v40 = vpop.f32.mrf.mxu2  ;;  %v3013_v37 = vmul.f32 %v5309_v56, %v2994_v63 }
 0x788   : > { %v3108_v5 = vadd.f32 %v5446_v26, %v3107_v40 }
 0x78a   : > { %v3141_v11 = vmax.f32 %v3108_v5, 0.0  ;;  %v2789_v8 = vpop.xlane.xlu2 %2788 }
 0x78b   : > { %v2805_v39 = vmul.f32 %v2789_v8, %v5190_v41 }
 0x78d   : > { %v2821_v58 = vadd.f32 1e-05, %v2805_v39 }
 0x78f   : > { %v3109_v47 = vpop.f32.mrf.mxu2  ;;  %4096 = vrsqrt.f32 %v2821_v58  ;;  %vm2978_vm8 = vweird.f32 %v2821_v58 }
 0x790   : > { %v3110_v15 = vadd.f32 %v5446_v26, %v3109_v47 }
 0x792   : > { %v3142_v28 = vmax.f32 %v3110_v15, 0.0  ;;  %v5493_v15 = vadd.f32 %v5318_v60, %v3013_v37 }
 0x794   : > { %v3155_v3 = vpack.c.bf16 %v3142_v28, %v3141_v11 }
 0x795   : > { %v4097_v49 = vpop.eup %4096 }
 0x796   : > { %3900 = vmatmul.msk.bf16.gmra.mxu3 %vm3197_vm5, %v3155_v3  ;;  %v2973_v16 = vmul.f32 %v4097_v49, %v2821_v58  ;;  %vm2979_vm4 = vweird.f32 %v4097_v49 }
 0x797   : > { %vm2980_vm9 = vmor %vm2978_vm8, %vm2979_vm4 }
 0x798   : > { %v2974_v33 = vmul.f32 %v4097_v49, %v2973_v16 }
 0x79a   : > { %v2975_v48 = vmul.f32 0.5, %v2974_v33 }
 0x79c   : > { %v2976_v2 = vsub.f32 1.5, %v2975_v48 }
 0x79e   : > { %v2977_v11 = vmul.f32 %v4097_v49, %v2976_v2 }
 0x7a0   : > { %v2981_v21 = vsel %vm2980_vm9, %v4097_v49, %v2977_v11 }
 0x7a1   : > { %v2997_v8 = vmul.f32 %v2981_v21, %v5394_v38 }
 0x7a3   : > { %v3016_v50 = vmul.f32 %v5309_v56, %v2997_v8 }
 0x7a5   : > { %v5511_v35 = vadd.f32 %v5318_v60, %v3016_v50 }
 0x7b6   : > { %v2783_v46 = vpop.xlane.xlu1 %2782 }
 0x7b7   : > { %v2803_v13 = vmul.f32 %v2783_v46, %v5190_v41 }
 0x7b9   : > { %v2819_v6 = vadd.f32 1e-05, %v2803_v13 }
 0x7bb   : > { %4098 = vrsqrt.f32 %v2819_v6  ;;  %vm2958_vm1 = vweird.f32 %v2819_v6 }
 0x7be   : > { %v2786_v43 = vpop.xlane.xlu0 %2785 }
 0x7bf   : > { %v2804_v24 = vmul.f32 %v2786_v43, %v5190_v41 }
 0x7c1   : > { %v4099_v51 = vpop.eup %4098  ;;  %v2820_v7 = vadd.f32 1e-05, %v2804_v24 }
 0x7c2   : > { %v2953_v53 = vmul.f32 %v4099_v51, %v2819_v6  ;;  %vm2959_vm15 = vweird.f32 %v4099_v51 }
 0x7c3   : > { %4100 = vrsqrt.f32 %v2820_v7  ;;  %vm2960_vm2 = vmor %vm2958_vm1, %vm2959_vm15  ;;  %vm2968_vm6 = vweird.f32 %v2820_v7 }
 0x7c4   : > { %v2954_v10 = vmul.f32 %v4099_v51, %v2953_v53 }
 0x7c6   : > { %v2955_v9 = vmul.f32 0.5, %v2954_v10 }
 0x7c8   : > { %v2956_v17 = vsub.f32 1.5, %v2955_v9 }
 0x7c9   : > { %v4101_v44 = vpop.eup %4100 }
 0x7ca   : > { %v2957_v36 = vmul.f32 %v4099_v51, %v2956_v17  ;;  %v2963_v45 = vmul.f32 %v4101_v44, %v2820_v7  ;;  %vm2969_vm3 = vweird.f32 %v4101_v44 }
 0x7cb   : > { %vm2970_vm7 = vmor %vm2968_vm6, %vm2969_vm3 }
 0x7cc   : > { %v2961_v14 = vsel %vm2960_vm2, %v4099_v51, %v2957_v36  ;;  %v2964_v4 = vmul.f32 %v4101_v44, %v2963_v45 }
 0x7cd   : > { %v2995_v22 = vmul.f32 %v2961_v14, %v5407_v12 }
 0x7ce   : > { %v2965_v40 = vmul.f32 0.5, %v2964_v4 }
 0x7cf   : > { %v3014_v5 = vmul.f32 %v5309_v56, %v2995_v22 }
 0x7d0   : > { %v2966_v47 = vsub.f32 1.5, %v2965_v40 }
 0x7d1   : > { %v5496_v55 = vadd.f32 %v5318_v60, %v3014_v5 }
 0x7d2   : > { %v2967_v28 = vmul.f32 %v4101_v44, %v2966_v47 }
 0x7d3   : > { %v3042_v12 = vpack.c.bf16 %v5496_v55, %v5493_v15 }
 0x7d4   : > { %v2971_v3 = vsel %vm2970_vm7, %v4101_v44, %v2967_v28 }
 0x7d5   : > { %v3112_v25 = vpop.f32.mrf.mxu2  ;;  %3880 = vmatmul.msk.bf16.gmra.mxu2 %vm489_vm0, %v3042_v12  ;;  %v2996_v19 = vmul.f32 %v2971_v3, %v5421_v32 }
 0x7d6   : > { %v3113_v39 = vadd.f32 %v5446_v26, %v3112_v25 }
 0x7d7   : > { %v3015_v61 = vmul.f32 %v5309_v56, %v2996_v19  ;;  %v5520_v56 = vld [vmem:[%s5951_s10] ss:$0 sm:$0xff] }
 0x7d8   : > { %v3143_v13 = vmax.f32 %v3113_v39, 0.0 }
 0x7d9   : > { %v5508_v58 = vadd.f32 %v5318_v60, %v3015_v61 }
 0x7db   : > { %v3043_v38 = vpack.c.bf16 %v5511_v35, %v5508_v58 }
 0x7dd   : > { %v3114_v42 = vpop.f32.mrf.mxu2 }
 0x7de   : > { %v3115_v46 = vadd.f32 %v5446_v26, %v3114_v42 }
 0x7e0   : > { %v3144_v6 = vmax.f32 %v3115_v46, 0.0 }
 0x7e2   : > { %v3156_v32 = vpack.c.bf16 %v3144_v6, %v3143_v13 }
 0x7e4   : > { %3901 = vmatmul.msk.bf16.gmra.mxu3 %vm3197_vm5, %v3156_v32 }
 0x7e5   : > { %3881 = vmatmul.msk.bf16.gmra.mxu2 %vm489_vm0, %v3043_v38 }
 0x7ec   : > { %v3231_v18 = vpop.f32.mrf.mxu3 }
 0x7ed   : > { %v3232_v43 = vadd.f32 %v5520_v56, %v3231_v18 }
 0x7ef   : > { %v5524_v49 = vadd.f32 %v3232_v43, %v5327_v0 }
 0x7f1   : > { %v3289_v60 = vsel %vm489_vm0, %v5524_v49, 0.0 }
 0x7f2   : > { %3290 = vadd.xlane.f32.xlu1 %v3289_v60  ;;  %v3117_v24 = vpop.f32.mrf.mxu2 }
 0x7f3   : > { %v3118_v53 = vadd.f32 %v5446_v26, %v3117_v24 }
 0x7f4   : > { %v3233_v51 = vpop.f32.mrf.mxu3 }
 0x7f5   : > { %v3234_v7 = vadd.f32 %v5520_v56, %v3233_v51  ;;  %v3145_v20 = vmax.f32 %v3118_v53, 0.0 }
 0x7f7   : > { %v5530_v30 = vadd.f32 %v3234_v7, %v5330_v23 }
 0x7f9   : > { %v3292_v16 = vsel %vm489_vm0, %v5530_v30, 0.0 }
 0x7fa   : > { %3293 = vadd.xlane.f32.xlu0 %v3292_v16  ;;  %v3119_v10 = vpop.f32.mrf.mxu2 }
 0x7fb   : > { %v3120_v0 = vadd.f32 %v5446_v26, %v3119_v10 }
 0x7fd   : > { %v3146_v33 = vmax.f32 %v3120_v0, 0.0 }
 0x7ff   : > { %v3157_v9 = vpack.c.bf16 %v3146_v33, %v3145_v20 }
 0x801   : > { %3902 = vmatmul.msk.bf16.gmra.mxu3 %vm3197_vm5, %v3157_v9 }
 0x802   : > { %v3122_v17 = vpop.f32.mrf.mxu2 }
 0x803   : > { %v3123_v44 = vadd.f32 %v5446_v26, %v3122_v17 }
 0x805   : > { %v3147_v14 = vmax.f32 %v3123_v44, 0.0 }
 0x809   : > { %v3236_v63 = vpop.f32.mrf.mxu3 }
 0x80a   : > { %v3237_v23 = vadd.f32 %v5520_v56, %v3236_v63  ;;  %v3124_v48 = vpop.f32.mrf.mxu2 }
 0x80b   : > { %v3125_v36 = vadd.f32 %v5446_v26, %v3124_v48 }
 0x80c   : > { %v5541_v45 = vadd.f32 %v3237_v23, %v5368_v1 }
 0x80d   : > { %v3148_v4 = vmax.f32 %v3125_v36, 0.0 }
 0x80e   : > { %v3295_v22 = vsel %vm489_vm0, %v5541_v45, 0.0 }
 0x80f   : > { %v3158_v37 = vpack.c.bf16 %v3148_v4, %v3147_v14  ;;  %3296 = vadd.xlane.f32.xlu2 %v3295_v22 }
 0x811   : > { %v3238_v2 = vpop.f32.mrf.mxu3  ;;  %3903 = vmatmul.msk.bf16.gmra.mxu3 %vm3197_vm5, %v3158_v37 }
 0x812   : > { %v3239_v40 = vadd.f32 %v5520_v56, %v3238_v2 }
 0x814   : > { %v5548_v5 = vadd.f32 %v3239_v40, %v5371_v57 }
 0x816   : > { %v3298_v47 = vsel %vm489_vm0, %v5548_v5, 0.0 }
 0x817   : > { %3299 = vadd.xlane.f32.xlu1 %v3298_v47 }
 0x819   : > { %v3241_v1 = vpop.f32.mrf.mxu3 }
 0x81a   : > { %v3242_v11 = vadd.f32 %v5520_v56, %v3241_v1 }
 0x81c   : > { %v5554_v28 = vadd.f32 %v3242_v11, %v5384_v59 }
 0x81e   : > { %v3301_v12 = vsel %vm489_vm0, %v5554_v28, 0.0 }
 0x81f   : > { %3302 = vadd.xlane.f32.xlu0 %v3301_v12 }
 0x821   : > { %v3243_v3 = vpop.f32.mrf.mxu3 }
 0x822   : > { %v3244_v25 = vadd.f32 %v5520_v56, %v3243_v3 }
 0x824   : > { %v5560_v57 = vadd.f32 %v3244_v25, %v5387_v27 }
 0x826   : > { %v3304_v21 = vsel %vm489_vm0, %v5560_v57, 0.0 }
 0x827   : > { %3305 = vadd.xlane.f32.xlu2 %v3304_v21 }
 0x858   : > { %v3127_v19 = vpop.f32.mrf.mxu2 }
 0x859   : > { %v3128_v8 = vadd.f32 %v5446_v26, %v3127_v19 }
 0x85b   : > { %v3149_v39 = vmax.f32 %v3128_v8, 0.0 }
 0x860   : > { %v3129_v61 = vpop.f32.mrf.mxu2 }
 0x861   : > { %v3130_v59 = vadd.f32 %v5446_v26, %v3129_v61 }
 0x863   : > { %v3150_v42 = vmax.f32 %v3130_v59, 0.0 }
 0x865   : > { %v3159_v50 = vpack.c.bf16 %v3150_v42, %v3149_v39  ;;  %v3291_v2 = vpop.xlane.xlu1 %3290 }
 0x866   : > { %v3337_v47 = vmul.f32 %v3291_v2, %v5190_v41 }
 0x867   : > { %v3246_v46 = vpop.f32.mrf.mxu3  ;;  %3904 = vmatmul.msk.bf16.gmra.mxu3 %vm3197_vm5, %v3159_v50 }
 0x868   : > { %v3247_v13 = vadd.f32 %v5520_v56, %v3246_v46  ;;  %v3132_v27 = vpop.f32.mrf.mxu2  ;;  %v5618_v11 = vsub.f32 %v5524_v49, %v3337_v47 }
 0x869   : > { %v3133_v38 = vadd.f32 %v5446_v26, %v3132_v27 }
 0x86a   : > { %v5569_v6 = vadd.f32 %v3247_v13, %v5433_v54  ;;  %v3369_v8 = vmul.f32 %v5618_v11, %v5618_v11 }
 0x86b   : > { %v3151_v7 = vmax.f32 %v3133_v38, 0.0 }
 0x86c   : > { %v3307_v32 = vsel %vm489_vm0, %v5569_v6, 0.0  ;;  %v3385_v59 = vsel %vm489_vm0, %v3369_v8, 0.0 }
 0x86d   : > { %3308 = vadd.xlane.f32.xlu1 %v3307_v32  ;;  %v3294_v3 = vpop.xlane.xlu0 %3293 }
 0x86f   : > { %v3248_v18 = vpop.f32.mrf.mxu3 }
 0x870   : > { %v3249_v43 = vadd.f32 %v5520_v56, %v3248_v18  ;;  %v3134_v60 = vpop.f32.mrf.mxu2 }
 0x871   : > { %v3135_v24 = vadd.f32 %v5446_v26, %v3134_v60 }
 0x872   : > { %v5577_v51 = vadd.f32 %v3249_v43, %v5436_v62 }
 0x873   : > { %v3152_v16 = vmax.f32 %v3135_v24, 0.0 }
 0x874   : > { %v3310_v54 = vsel %vm489_vm0, %v5577_v51, 0.0 }
 0x875   : > { %v3160_v53 = vpack.c.bf16 %v3152_v16, %v3151_v7  ;;  %3311 = vadd.xlane.f32.xlu0 %v3310_v54 }
 0x877   : > { %3905 = vmatmul.msk.bf16.gmra.mxu3 %vm3197_vm5, %v3160_v53 }
 0x882   : > { %v3297_v50 = vpop.xlane.xlu2 %3296 }
 0x884   : > { %v3251_v10 = vpop.f32.mrf.mxu3 }
 0x885   : > { %v3252_v0 = vadd.f32 %v5520_v56, %v3251_v10 }
 0x887   : > { %v5584_v20 = vadd.f32 %v3252_v0, %v5457_v34 }
 0x889   : > { %v3313_v26 = vsel %vm489_vm0, %v5584_v20, 0.0 }
 0x88a   : > { %3314 = vadd.xlane.f32.xlu2 %v3313_v26  ;;  %v3300_v12 = vpop.xlane.xlu1 %3299 }
 0x88b   : > { %v3340_v21 = vmul.f32 %v3300_v12, %v5190_v41 }
 0x88c   : > { %v3253_v62 = vpop.f32.mrf.mxu3 }
 0x88d   : > { %v3254_v33 = vadd.f32 %v5520_v56, %v3253_v62  ;;  %v5631_v49 = vsub.f32 %v5548_v5, %v3340_v21 }
 0x88f   : > { %v5590_v9 = vadd.f32 %v3254_v33, %v5460_v29  ;;  %v3372_v38 = vmul.f32 %v5631_v49, %v5631_v49 }
 0x891   : > { %v3316_v17 = vsel %vm489_vm0, %v5590_v9, 0.0  ;;  %v3394_v7 = vsel %vm489_vm0, %v3372_v38, 0.0 }
 0x892   : > { %3317 = vadd.xlane.f32.xlu1 %v3316_v17  ;;  %v3303_v13 = vpop.xlane.xlu0 %3302 }
 0x893   : > { %v3341_v18 = vmul.f32 %v3303_v13, %v5190_v41 }
 0x894   : > { %v3256_v44 = vpop.f32.mrf.mxu3 }
 0x895   : > { %v3257_v63 = vadd.f32 %v5520_v56, %v3256_v44  ;;  %v5660_v16 = vsub.f32 %v5554_v28, %v3341_v18 }
 0x897   : > { %v5596_v34 = vadd.f32 %v3257_v63, %v5470_v52  ;;  %v3373_v62 = vmul.f32 %v5660_v16, %v5660_v16 }
 0x899   : > { %v3319_v23 = vsel %vm489_vm0, %v5596_v34, 0.0 }
 0x89a   : > { %3320 = vadd.xlane.f32.xlu0 %v3319_v23  ;;  %v3306_v54 = vpop.xlane.xlu2 %3305 }
 0x89c   : > { %v3258_v48 = vpop.f32.mrf.mxu3 }
 0x89d   : > { %v3259_v36 = vadd.f32 %v5520_v56, %v3258_v48 }
 0x89f   : > { %v5602_v29 = vadd.f32 %v3259_v36, %v5473_v31  ;;  %v3397_v36 = vsel %vm489_vm0, %v3373_v62, 0.0 }
 0x8a1   : > { %v3322_v14 = vsel %vm489_vm0, %v5602_v29, 0.0 }
 0x8a2   : > { %3323 = vadd.xlane.f32.xlu2 %v3322_v14 }
 0x8e0   : > { %v3309_v46 = vpop.xlane.xlu1 %3308 }
 0x8e1   : > { %v3343_v32 = vmul.f32 %v3309_v46, %v5190_v41 }
 0x8e3   : > { %v5654_v24 = vsub.f32 %v5569_v6, %v3343_v32 }
 0x8e5   : > { %v3375_v0 = vmul.f32 %v5654_v24, %v5654_v24 }
 0x8e7   : > { %v3403_v44 = vsel %vm489_vm0, %v3375_v0, 0.0 }
 0x8e8   : > { %v3312_v10 = vpop.xlane.xlu0 %3311 }
 0x8e9   : > { %v3344_v28 = vmul.f32 %v3312_v10, %v5190_v41 }
 0x8ea   : > { %v3261_v4 = vpop.f32.mrf.mxu3 }
 0x8eb   : > { %v3262_v22 = vadd.f32 %v5520_v56, %v3261_v4  ;;  %v5681_v23 = vsub.f32 %v5577_v51, %v3344_v28 }
 0x8ed   : > { %v5608_v52 = vadd.f32 %v3262_v22, %v5493_v15  ;;  %v3376_v51 = vmul.f32 %v5681_v23, %v5681_v23 }
 0x8ef   : > { %v3325_v37 = vsel %vm489_vm0, %v5608_v52, 0.0 }
 0x8f0   : > { %3326 = vadd.xlane.f32.xlu1 %v3325_v37 }
 0x8f2   : > { %v3263_v40 = vpop.f32.mrf.mxu3 }
 0x8f3   : > { %v3264_v31 = vadd.f32 %v5520_v56, %v3263_v40 }
 0x8f5   : > { %v5615_v1 = vadd.f32 %v3264_v31, %v5496_v55  ;;  %v3338_v55 = vmul.f32 %v3294_v3, %v5190_v41 }
 0x8f7   : > { %v3328_v15 = vsel %vm489_vm0, %v5615_v1, 0.0  ;;  %v5637_v42 = vsub.f32 %v5530_v30, %v3338_v55 }
 0x8f8   : > { %3329 = vadd.xlane.f32.xlu0 %v3328_v15  ;;  %v3406_v15 = vsel %vm489_vm0, %v3376_v51, 0.0 }
 0x8f9   : > { %v3370_v30 = vmul.f32 %v5637_v42, %v5637_v42 }
 0x8fa   : > { %v3266_v25 = vpop.f32.mrf.mxu3 }
 0x8fb   : > { %v3267_v19 = vadd.f32 %v5520_v56, %v3266_v25 }
 0x8fd   : > { %v5628_v61 = vadd.f32 %v3267_v19, %v5508_v58  ;;  %v3339_v58 = vmul.f32 %v3297_v50, %v5190_v41  ;;  %v3315_v48 = vpop.xlane.xlu2 %3314 }
 0x8ff   : > { %v3331_v39 = vsel %vm489_vm0, %v5628_v61, 0.0  ;;  %v5651_v60 = vsub.f32 %v5541_v45, %v3339_v58  ;;  %v3342_v45 = vmul.f32 %v3306_v54, %v5190_v41 }
 0x900   : > { %3386 = vadd.xlane.f32.xlu0 %v3385_v59  ;;  %3332 = vadd.xlane.f32.xlu2 %v3331_v39 }
 0x901   : > { %v3371_v26 = vmul.f32 %v5651_v60, %v5651_v60  ;;  %v5673_v33 = vsub.f32 %v5560_v57, %v3342_v45  ;;  %v3345_v57 = vmul.f32 %v3315_v48, %v5190_v41 }
 0x902   : > { %v3268_v27 = vpop.f32.mrf.mxu3 }
 0x903   : > { %v3269_v5 = vadd.f32 %v5520_v56, %v3268_v27  ;;  %v3391_v63 = vsel %vm489_vm0, %v3371_v26, 0.0  ;;  %v3374_v4 = vmul.f32 %v5673_v33, %v5673_v33  ;;  %v5693_v37 = vsub.f32 %v5584_v20, %v3345_v57 }
 0x905   : > { %v5648_v43 = vadd.f32 %v3269_v5, %v5511_v35  ;;  %v3318_v53 = vpop.xlane.xlu1 %3317  ;;  %v3388_v35 = vsel %vm489_vm0, %v3370_v30, 0.0  ;;  %v3400_v40 = vsel %vm489_vm0, %v3374_v4, 0.0  ;;  %v3377_v3 = vmul.f32 %v5693_v37, %v5693_v37 }
 0x906   : > { %v3346_v6 = vmul.f32 %v3318_v53, %v5190_v41 }
 0x907   : > { %v3334_v56 = vsel %vm489_vm0, %v5648_v43, 0.0 }
 0x908   : > { %3395 = vadd.xlane.f32.xlu0 %v3394_v7  ;;  %3335 = vadd.xlane.f32.xlu1 %v3334_v56  ;;  %v5676_v17 = vsub.f32 %v5590_v9, %v3346_v6 }
 0x909   : > { %3389 = vadd.xlane.f32.xlu2 %v3388_v35 }
 0x90a   : > { %v3378_v9 = vmul.f32 %v5676_v17, %v5676_v17 }
 0x90c   : > { %v3412_v2 = vsel %vm489_vm0, %v3378_v9, 0.0 }
 0x90d   : > { %v3321_v14 = vpop.xlane.xlu0 %3320 }
 0x90e   : > { %v3347_v22 = vmul.f32 %v3321_v14, %v5190_v41 }
 0x910   : > { %3404 = vadd.xlane.f32.xlu0 %v3403_v44  ;;  %3392 = vadd.xlane.f32.xlu1 %v3391_v63  ;;  %v5698_v47 = vsub.f32 %v5596_v34, %v3347_v22  ;;  %v3409_v34 = vsel %vm489_vm0, %v3377_v3, 0.0 }
 0x911   : > { %3398 = vadd.xlane.f32.xlu2 %v3397_v36 }
 0x912   : > { %v3379_v20 = vmul.f32 %v5698_v47, %v5698_v47 }
 0x914   : > { %v3415_v21 = vsel %vm489_vm0, %v3379_v20, 0.0 }
 0x915   : > { %v3324_v31 = vpop.xlane.xlu2 %3323 }
 0x916   : > { %v3348_v12 = vmul.f32 %v3324_v31, %v5190_v41 }
 0x918   : > { %3413 = vadd.xlane.f32.xlu0 %v3412_v2  ;;  %3401 = vadd.xlane.f32.xlu1 %v3400_v40  ;;  %v5707_v25 = vsub.f32 %v5602_v29, %v3348_v12 }
 0x919   : > { %3407 = vadd.xlane.f32.xlu2 %v3406_v15 }
 0x91a   : > { %v3380_v19 = vmul.f32 %v5707_v25, %v5707_v25 }
 0x91c   : > { %v3418_v8 = vsel %vm489_vm0, %v3380_v19, 0.0 }
 0x920   : > { %3410 = vadd.xlane.f32.xlu1 %v3409_v34  ;;  %v5764_v34 = vld [vmem:[%s5952_s11] ss:$0 sm:$0xff] }
 0x921   : > { %3416 = vadd.xlane.f32.xlu2 %v3415_v21 }
 0x928   : > { %3419 = vadd.xlane.f32.xlu1 %v3418_v8 }
 0x963   : > { %v3327_v55 = vpop.xlane.xlu1 %3326 }
 0x964   : > { %v3349_v59 = vmul.f32 %v3327_v55, %v5190_v41  ;;  %v5772_v55 = vld [vmem:[%s5953_s12] ss:$0 sm:$0xff] }
 0x966   : > { %v5716_v39 = vsub.f32 %v5608_v52, %v3349_v59 }
 0x968   : > { %v3381_v29 = vmul.f32 %v5716_v39, %v5716_v39 }
 0x96a   : > { %v3421_v50 = vsel %vm489_vm0, %v3381_v29, 0.0 }
 0x96b   : > { %3422 = vadd.xlane.f32.xlu0 %v3421_v50  ;;  %v3330_v46 = vpop.xlane.xlu0 %3329 }
 0x96c   : > { %v3350_v13 = vmul.f32 %v3330_v46, %v5190_v41 }
 0x96e   : > { %v5723_v27 = vsub.f32 %v5615_v1, %v3350_v13 }
 0x970   : > { %v3382_v58 = vmul.f32 %v5723_v27, %v5723_v27 }
 0x972   : > { %v3424_v32 = vsel %vm489_vm0, %v3382_v58, 0.0 }
 0x973   : > { %v3333_v5 = vpop.xlane.xlu2 %3332  ;;  %3425 = vadd.xlane.f32.xlu2 %v3424_v32  ;;  %v3387_v52 = vpop.xlane.xlu0 %3386 }
 0x974   : > { %v3351_v38 = vmul.f32 %v3333_v5, %v5190_v41  ;;  %v3433_v18 = vmul.f32 %v3387_v52, %v5190_v41 }
 0x976   : > { %v5731_v30 = vsub.f32 %v5628_v61, %v3351_v38  ;;  %v3449_v7 = vadd.f32 1e-05, %v3433_v18 }
 0x978   : > { %4102 = vrsqrt.f32 %v3449_v7  ;;  %v3383_v1 = vmul.f32 %v5731_v30, %v5731_v30  ;;  %vm3471_vm10 = vweird.f32 %v3449_v7 }
 0x97a   : > { %v3427_v56 = vsel %vm489_vm0, %v3383_v1, 0.0 }
 0x97b   : > { %v3336_v54 = vpop.xlane.xlu1 %3335  ;;  %3428 = vadd.xlane.f32.xlu1 %v3427_v56  ;;  %v3396_v53 = vpop.xlane.xlu0 %3395 }
 0x97c   : > { %v3352_v35 = vmul.f32 %v3336_v54, %v5190_v41  ;;  %v3390_v10 = vpop.xlane.xlu2 %3389  ;;  %v3436_v45 = vmul.f32 %v3396_v53, %v5190_v41 }
 0x97d   : > { %v3434_v6 = vmul.f32 %v3390_v10, %v5190_v41 }
 0x97e   : > { %v4103_v0 = vpop.eup %4102  ;;  %v5740_v61 = vsub.f32 %v5648_v43, %v3352_v35  ;;  %v5742_v26 = vadd.f32 1e-05, %v3436_v45 }
 0x97f   : > { %v3466_v28 = vmul.f32 %v4103_v0, %v3449_v7  ;;  %v5744_v62 = vadd.f32 1e-05, %v3434_v6  ;;  %vm3472_vm5 = vweird.f32 %v4103_v0 }
 0x980   : > { %4104 = vrsqrt.f32 %v5742_v26  ;;  %v3384_v44 = vmul.f32 %v5740_v61, %v5740_v61  ;;  %vm3473_vm11 = vmor %vm3471_vm10, %vm3472_vm5  ;;  %vm3501_vm12 = vweird.f32 %v5742_v26 }
 0x981   : > { %v3467_v63 = vmul.f32 %v4103_v0, %v3466_v28  ;;  %4106 = vrsqrt.f32 %v5744_v62  ;;  %vm3481_vm15 = vweird.f32 %v5744_v62 }
 0x982   : > { %v3430_v48 = vsel %vm489_vm0, %v3384_v44, 0.0 }
 0x983   : > { %v3468_v36 = vmul.f32 0.5, %v3467_v63  ;;  %3431 = vadd.xlane.f32.xlu0 %v3430_v48  ;;  %v3393_v14 = vpop.xlane.xlu1 %3392  ;;  %v3405_v43 = vpop.xlane.xlu0 %3404 }
 0x984   : > { %v3435_v57 = vmul.f32 %v3393_v14, %v5190_v41  ;;  %v3399_v9 = vpop.xlane.xlu2 %3398  ;;  %v3439_v4 = vmul.f32 %v3405_v43, %v5190_v41 }
 0x985   : > { %v3469_v22 = vsub.f32 1.5, %v3468_v36  ;;  %v3437_v51 = vmul.f32 %v3399_v9, %v5190_v41 }
 0x986   : > { %v4105_v2 = vpop.eup %4104  ;;  %v5754_v40 = vadd.f32 1e-05, %v3435_v57  ;;  %v5756_v31 = vadd.f32 1e-05, %v3439_v4 }
 0x987   : > { %v4107_v15 = vpop.eup %4106  ;;  %v3470_v12 = vmul.f32 %v4103_v0, %v3469_v22  ;;  %v3496_v3 = vmul.f32 %v4105_v2, %v5742_v26  ;;  %v5759_v20 = vadd.f32 1e-05, %v3437_v51  ;;  %vm3502_vm13 = vweird.f32 %v4105_v2 }
 0x988   : > { %v3476_v21 = vmul.f32 %v4107_v15, %v5744_v62  ;;  %4108 = vrsqrt.f32 %v5754_v40  ;;  %vm3482_vm14 = vweird.f32 %v4107_v15  ;;  %vm3503_vm1 = vmor %vm3501_vm12, %vm3502_vm13  ;;  %vm3491_vm3 = vweird.f32 %v5754_v40 }
 0x989   : > { %v3474_v19 = vsel %vm3473_vm11, %v4103_v0, %v3470_v12  ;;  %v3497_v8 = vmul.f32 %v4105_v2, %v3496_v3  ;;  %4110 = vrsqrt.f32 %v5759_v20  ;;  %vm3483_vm2 = vmor %vm3481_vm15, %vm3482_vm14  ;;  %vm3511_vm9 = vweird.f32 %v5759_v20 }
 0x98a   : > { %v3625_v59 = vmul.f32 %v3474_v19, %v5618_v11  ;;  %v3477_v29 = vmul.f32 %v4107_v15, %v3476_v21  ;;  %4112 = vrsqrt.f32 %v5756_v31  ;;  %vm3531_vm5 = vweird.f32 %v5756_v31 }
 0x98b   : > { %v3498_v50 = vmul.f32 0.5, %v3497_v8  ;;  %v3402_v46 = vpop.xlane.xlu1 %3401  ;;  %v3414_v13 = vpop.xlane.xlu0 %3413 }
 0x98c   : > { %v3644_v58 = vmul.f32 %v5764_v34, %v3625_v59  ;;  %v3478_v32 = vmul.f32 0.5, %v3477_v29  ;;  %v3438_v5 = vmul.f32 %v3402_v46, %v5190_v41  ;;  %v3408_v52 = vpop.xlane.xlu2 %3407  ;;  %v3442_v38 = vmul.f32 %v3414_v13, %v5190_v41 }
 0x98d   : > { %v3499_v11 = vsub.f32 1.5, %v3498_v50  ;;  %v3440_v18 = vmul.f32 %v3408_v52, %v5190_v41 }
 0x98e   : > { %v5788_v7 = vpop.eup %4108  ;;  %v3663_v1 = vadd.f32 %v5772_v55, %v3644_v58  ;;  %v3479_v56 = vsub.f32 1.5, %v3478_v32  ;;  %v5791_v54 = vadd.f32 1e-05, %v3438_v5  ;;  %v5810_v62 = vadd.f32 1e-05, %v3442_v38 }
 0x98f   : > { %v5793_v53 = vpop.eup %4110  ;;  %v3500_v35 = vmul.f32 %v4105_v2, %v3499_v11  ;;  %v3486_v10 = vmul.f32 %v5788_v7, %v5754_v40  ;;  %v5798_v45 = vadd.f32 1e-05, %v3440_v18  ;;  %vm3492_vm4 = vweird.f32 %v5788_v7 }
 0x990   : > { %v5800_v6 = vpop.eup %4112  ;;  %3679 = vst.msk [vmem:[%s5784_s16] sm:$0xff] %vm489_vm0, %v3663_v1  ;;  %v3480_v0 = vmul.f32 %v4107_v15, %v3479_v56  ;;  %v3506_v28 = vmul.f32 %v5793_v53, %v5759_v20  ;;  %4114 = vrsqrt.f32 %v5791_v54  ;;  %vm3512_vm6 = vweird.f32 %v5793_v53  ;;  %vm3493_vm8 = vmor %vm3491_vm3, %vm3492_vm4 }
 0x991   : > { %v3504_v44 = vsel %vm3503_vm1, %v4105_v2, %v3500_v35  ;;  %v3487_v63 = vmul.f32 %v5788_v7, %v3486_v10  ;;  %v3526_v48 = vmul.f32 %v5800_v6, %v5756_v31  ;;  %4116 = vrsqrt.f32 %v5798_v45  ;;  %vm3513_vm10 = vmor %vm3511_vm9, %vm3512_vm6 }
 0x992   : > { %v3484_v36 = vsel %vm3483_vm2, %v4107_v15, %v3480_v0  ;;  %v3628_v26 = vmul.f32 %v3504_v44, %v5631_v49  ;;  %v3507_v14 = vmul.f32 %v5793_v53, %v3506_v28  ;;  %4118 = vrsqrt.f32 %v5810_v62 }
 0x993   : > { %v3626_v43 = vmul.f32 %v3484_v36, %v5637_v42  ;;  %v3488_v57 = vmul.f32 0.5, %v3487_v63  ;;  %v3527_v9 = vmul.f32 %v5800_v6, %v3526_v48  ;;  %v3411_v4 = vpop.xlane.xlu1 %3410  ;;  %vm3532_vm7 = vweird.f32 %v5800_v6 }
 0x994   : > { %v3647_v22 = vmul.f32 %v5764_v34, %v3628_v26  ;;  %v3508_v51 = vmul.f32 0.5, %v3507_v14  ;;  %v3417_v49 = vpop.xlane.xlu2 %3416  ;;  %v3441_v19 = vmul.f32 %v3411_v4, %v5190_v41  ;;  %vm3533_vm11 = vmor %vm3531_vm5, %vm3532_vm7  ;;  %vm3521_vm13 = vweird.f32 %v5791_v54 }
 0x995   : > { %v3645_v2 = vmul.f32 %v5764_v34, %v3626_v43  ;;  %v3489_v15 = vsub.f32 1.5, %v3488_v57  ;;  %v3528_v12 = vmul.f32 0.5, %v3527_v9  ;;  %v3443_v8 = vmul.f32 %v3417_v49, %v5190_v41 }
 0x996   : > { %v4115_v42 = vpop.eup %4114  ;;  %v3666_v3 = vadd.f32 %v5772_v55, %v3647_v22  ;;  %v3509_v21 = vsub.f32 1.5, %v3508_v51  ;;  %v5848_v38 = vadd.f32 1e-05, %v3441_v19  ;;  %vm3541_vm2 = vweird.f32 %v5798_v45 }
 0x997   : > { %v3664_v59 = vadd.f32 %v5772_v55, %v3645_v2  ;;  %v3490_v29 = vmul.f32 %v5788_v7, %v3489_v15  ;;  %v3529_v50 = vsub.f32 1.5, %v3528_v12  ;;  %v3516_v46 = vmul.f32 %v4115_v42, %v5791_v54  ;;  %v4117_v58 = vpop.eup %4116 }
 0x998   : > { %3682 = vst.msk [vmem:[%s5784_s16 + $0x18] sm:$0xff] %vm489_vm0, %v3666_v3  ;;  %v3510_v13 = vmul.f32 %v5793_v53, %v3509_v21  ;;  %v4119_v40 = vpop.eup %4118  ;;  %v3536_v31 = vmul.f32 %v4117_v58, %v5798_v45  ;;  %v5855_v18 = vadd.f32 1e-05, %v3443_v8  ;;  %vm3522_vm12 = vweird.f32 %v4115_v42 }
 0x999   : > { %3680 = vst.msk [vmem:[%s5784_s16 + $0x8] sm:$0xff] %vm489_vm0, %v3664_v59  ;;  %v3494_v32 = vsel %vm3493_vm8, %v5788_v7, %v3490_v29  ;;  %v3530_v5 = vmul.f32 %v5800_v6, %v3529_v50  ;;  %v3517_v52 = vmul.f32 %v4115_v42, %v3516_v46  ;;  %v3556_v35 = vmul.f32 %v4119_v40, %v5810_v62  ;;  %vm3523_vm14 = vmor %vm3521_vm13, %vm3522_vm12 }
 0x99a   : > { %v3627_v11 = vmul.f32 %v3494_v32, %v5651_v60  ;;  %v3514_v20 = vsel %vm3513_vm10, %v5793_v53, %v3510_v13  ;;  %v3537_v53 = vmul.f32 %v4117_v58, %v3536_v31  ;;  %4120 = vrsqrt.f32 %v5848_v38 }
 0x99b   : > { %v3629_v7 = vmul.f32 %v3514_v20, %v5660_v16  ;;  %v3534_v1 = vsel %vm3533_vm11, %v5800_v6, %v3530_v5  ;;  %v3518_v56 = vmul.f32 0.5, %v3517_v52  ;;  %v3557_v44 = vmul.f32 %v4119_v40, %v3556_v35  ;;  %v3420_v16 = vpop.xlane.xlu1 %3419 }
 0x99c   : > { %v3646_v10 = vmul.f32 %v5764_v34, %v3627_v11  ;;  %v3631_v60 = vmul.f32 %v3534_v1, %v5654_v24  ;;  %v3538_v48 = vmul.f32 0.5, %v3537_v53  ;;  %4122 = vrsqrt.f32 %v5855_v18 }
 0x99d   : > { %v3648_v0 = vmul.f32 %v5764_v34, %v3629_v7  ;;  %v3519_v28 = vsub.f32 1.5, %v3518_v56  ;;  %v3558_v26 = vmul.f32 0.5, %v3557_v44  ;;  %vm3542_vm15 = vweird.f32 %v4117_v58 }
 0x99e   : > { %v3665_v6 = vadd.f32 %v5772_v55, %v3646_v10  ;;  %v3650_v63 = vmul.f32 %v5764_v34, %v3631_v60  ;;  %v3539_v43 = vsub.f32 1.5, %v3538_v48  ;;  %v3444_v57 = vmul.f32 %v3420_v16, %v5190_v41  ;;  %vm3543_vm3 = vmor %vm3541_vm2, %vm3542_vm15 }
 0x99f   : > { %v3667_v24 = vadd.f32 %v5772_v55, %v3648_v0  ;;  %v3520_v36 = vmul.f32 %v4115_v42, %v3519_v28  ;;  %v3559_v9 = vsub.f32 1.5, %v3558_v26  ;;  %vm3562_vm1 = vweird.f32 %v4119_v40 }
 0x9a0   : > { %3681 = vst.msk [vmem:[%s5784_s16 + $0x10] sm:$0xff] %vm489_vm0, %v3665_v6  ;;  %v3669_v14 = vadd.f32 %v5772_v55, %v3650_v63  ;;  %v3540_v22 = vmul.f32 %v4117_v58, %v3539_v43  ;;  %v3460_v51 = vadd.f32 1e-05, %v3444_v57  ;;  %v4121_v49 = vpop.eup %4120  ;;  %vm3561_vm4 = vweird.f32 %v5810_v62 }
 0x9a1   : > { %3683 = vst.msk [vmem:[%s5784_s16 + $0x20] sm:$0xff] %vm489_vm0, %v3667_v24  ;;  %v3524_v54 = vsel %vm3523_vm14, %v4115_v42, %v3520_v36  ;;  %v3560_v2 = vmul.f32 %v4119_v40, %v3559_v9  ;;  %vm3563_vm6 = vmor %vm3561_vm4, %vm3562_vm1  ;;  %v3546_v42 = vmul.f32 %v4121_v49, %v5848_v38  ;;  %vm3552_vm7 = vweird.f32 %v4121_v49 }
 0x9a2   : > { %3685 = vst.msk [vmem:[%s5784_s16 + $0x30] sm:$0xff] %vm489_vm0, %v3669_v14  ;;  %v3630_v4 = vmul.f32 %v3524_v54, %v5673_v33  ;;  %v3544_v12 = vsel %vm3543_vm3, %v4117_v58, %v3540_v22  ;;  %v4123_v3 = vpop.eup %4122  ;;  %4124 = vrsqrt.f32 %v3460_v51  ;;  %vm3551_vm8 = vweird.f32 %v5848_v38 }
 0x9a3   : > { %v3632_v21 = vmul.f32 %v3544_v12, %v5681_v23  ;;  %v3564_v33 = vsel %vm3563_vm6, %v4119_v40, %v3560_v2  ;;  %v3547_v8 = vmul.f32 %v4121_v49, %v3546_v42  ;;  %v3566_v62 = vmul.f32 %v4123_v3, %v5855_v18  ;;  %vm3553_vm5 = vmor %vm3551_vm8, %vm3552_vm7 }
 0x9a4   : > { %v3649_v15 = vmul.f32 %v5764_v34, %v3630_v4  ;;  %v3634_v19 = vmul.f32 %v3564_v33, %v5676_v17  ;;  %vm3572_vm9 = vweird.f32 %v4123_v3  ;;  %vm3571_vm10 = vweird.f32 %v5855_v18 }
 0x9a5   : > { %v3651_v59 = vmul.f32 %v5764_v34, %v3632_v21  ;;  %v3548_v50 = vmul.f32 0.5, %v3547_v8  ;;  %v3567_v46 = vmul.f32 %v4123_v3, %v3566_v62  ;;  %vm3573_vm11 = vmor %vm3571_vm10, %vm3572_vm9  ;;  %vm3581_vm13 = vweird.f32 %v3460_v51 }
 0x9a6   : > { %v3668_v45 = vadd.f32 %v5772_v55, %v3649_v15  ;;  %v3653_v29 = vmul.f32 %v5764_v34, %v3634_v19 }
 0x9a7   : > { %v3670_v23 = vadd.f32 %v5772_v55, %v3651_v59  ;;  %v3549_v58 = vsub.f32 1.5, %v3548_v50  ;;  %v3568_v32 = vmul.f32 0.5, %v3567_v46 }
 0x9a8   : > { %3684 = vst.msk [vmem:[%s5784_s16 + $0x28] sm:$0xff] %vm489_vm0, %v3668_v45  ;;  %v3672_v13 = vadd.f32 %v5772_v55, %v3653_v29  ;;  %v4125_v17 = vpop.eup %4124 }
 0x9a9   : > { %3686 = vst.msk [vmem:[%s5784_s16 + $0x38] sm:$0xff] %vm489_vm0, %v3670_v23  ;;  %v3550_v5 = vmul.f32 %v4121_v49, %v3549_v58  ;;  %v3569_v52 = vsub.f32 1.5, %v3568_v32  ;;  %v3576_v40 = vmul.f32 %v4125_v17, %v3460_v51  ;;  %vm3582_vm12 = vweird.f32 %v4125_v17 }
 0x9aa   : > { %3688 = vst.msk [vmem:[%s5784_s16 + $0x48] sm:$0xff] %vm489_vm0, %v3672_v13  ;;  %vm3583_vm14 = vmor %vm3581_vm13, %vm3582_vm12 }
 0x9ab   : > { %v3554_v11 = vsel %vm3553_vm5, %v4121_v49, %v3550_v5  ;;  %v3570_v20 = vmul.f32 %v4123_v3, %v3569_v52  ;;  %v3577_v31 = vmul.f32 %v4125_v17, %v3576_v40 }
 0x9ac   : > { %v3633_v7 = vmul.f32 %v3554_v11, %v5693_v37 }
 0x9ad   : > { %v3574_v1 = vsel %vm3573_vm11, %v4123_v3, %v3570_v20  ;;  %v3578_v56 = vmul.f32 0.5, %v3577_v31 }
 0x9ae   : > { %v3652_v38 = vmul.f32 %v5764_v34, %v3633_v7  ;;  %v3635_v35 = vmul.f32 %v3574_v1, %v5698_v47 }
 0x9af   : > { %v3579_v10 = vsub.f32 1.5, %v3578_v56 }
 0x9b0   : > { %v3671_v60 = vadd.f32 %v5772_v55, %v3652_v38  ;;  %v3654_v53 = vmul.f32 %v5764_v34, %v3635_v35 }
 0x9b1   : > { %v3580_v0 = vmul.f32 %v4125_v17, %v3579_v10 }
 0x9b2   : > { %3687 = vst.msk [vmem:[%s5784_s16 + $0x40] sm:$0xff] %vm489_vm0, %v3671_v60  ;;  %v3673_v37 = vadd.f32 %v5772_v55, %v3654_v53 }
 0x9b3   : > { %v3584_v18 = vsel %vm3583_vm14, %v4125_v17, %v3580_v0 }
 0x9b4   : > { %3689 = vst.msk [vmem:[%s5784_s16 + $0x50] sm:$0xff] %vm489_vm0, %v3673_v37  ;;  %v3636_v28 = vmul.f32 %v3584_v18, %v5707_v25 }
 0x9b6   : > { %v3655_v47 = vmul.f32 %v5764_v34, %v3636_v28 }
 0x9b8   : > { %v3674_v44 = vadd.f32 %v5772_v55, %v3655_v47 }
 0x9ba   : > { %3690 = vst.msk [vmem:[%s5784_s16 + $0x58] sm:$0xff] %vm489_vm0, %v3674_v44 }
 0x9de   : > { %v3423_v16 = vpop.xlane.xlu0 %3422 }
 0x9df   : > { %v3445_v6 = vmul.f32 %v3423_v16, %v5190_v41 }
 0x9e1   : > { %v3461_v63 = vadd.f32 1e-05, %v3445_v6 }
 0x9e3   : > { %4126 = vrsqrt.f32 %v3461_v63  ;;  %vm3591_vm1 = vweird.f32 %v3461_v63 }
 0x9e6   : > { %v3426_v48 = vpop.xlane.xlu2 %3425 }
 0x9e7   : > { %v3446_v24 = vmul.f32 %v3426_v48, %v5190_v41 }
 0x9e9   : > { %v4127_v36 = vpop.eup %4126  ;;  %v3462_v26 = vadd.f32 1e-05, %v3446_v24 }
 0x9ea   : > { %v3586_v14 = vmul.f32 %v4127_v36, %v3461_v63  ;;  %vm3592_vm15 = vweird.f32 %v4127_v36 }
 0x9eb   : > { %4128 = vrsqrt.f32 %v3462_v26  ;;  %vm3593_vm2 = vmor %vm3591_vm1, %vm3592_vm15  ;;  %vm3601_vm4 = vweird.f32 %v3462_v26 }
 0x9ec   : > { %v3587_v43 = vmul.f32 %v4127_v36, %v3586_v14 }
 0x9ee   : > { %v3588_v25 = vmul.f32 0.5, %v3587_v43  ;;  %v3429_v57 = vpop.xlane.xlu1 %3428 }
 0x9ef   : > { %v3447_v54 = vmul.f32 %v3429_v57, %v5190_v41 }
 0x9f0   : > { %v3589_v9 = vsub.f32 1.5, %v3588_v25 }
 0x9f1   : > { %v4129_v4 = vpop.eup %4128  ;;  %v3463_v22 = vadd.f32 1e-05, %v3447_v54 }
 0x9f2   : > { %v3590_v51 = vmul.f32 %v4127_v36, %v3589_v9  ;;  %v3596_v49 = vmul.f32 %v4129_v4, %v3462_v26  ;;  %vm3602_vm3 = vweird.f32 %v4129_v4 }
 0x9f3   : > { %4130 = vrsqrt.f32 %v3463_v22  ;;  %vm3603_vm6 = vmor %vm3601_vm4, %vm3602_vm3  ;;  %vm3611_vm8 = vweird.f32 %v3463_v22 }
 0x9f4   : > { %v3594_v2 = vsel %vm3593_vm2, %v4127_v36, %v3590_v51  ;;  %v3597_v15 = vmul.f32 %v4129_v4, %v3596_v49 }
 0x9f5   : > { %v3637_v12 = vmul.f32 %v3594_v2, %v5716_v39 }
 0x9f6   : > { %v3598_v42 = vmul.f32 0.5, %v3597_v15  ;;  %v3432_v3 = vpop.xlane.xlu0 %3431 }
 0x9f7   : > { %v3656_v21 = vmul.f32 %v5764_v34, %v3637_v12  ;;  %v3448_v33 = vmul.f32 %v3432_v3, %v5190_v41 }
 0x9f8   : > { %v3599_v45 = vsub.f32 1.5, %v3598_v42 }
 0x9f9   : > { %v4131_v19 = vpop.eup %4130  ;;  %v3675_v8 = vadd.f32 %v5772_v55, %v3656_v21  ;;  %v3464_v62 = vadd.f32 1e-05, %v3448_v33 }
 0x9fa   : > { %v3600_v59 = vmul.f32 %v4129_v4, %v3599_v45  ;;  %v3606_v29 = vmul.f32 %v4131_v19, %v3463_v22  ;;  %vm3612_vm7 = vweird.f32 %v4131_v19 }
 0x9fb   : > { %3691 = vst.msk [vmem:[%s5784_s16 + $0x60] sm:$0xff] %vm489_vm0, %v3675_v8  ;;  %4132 = vrsqrt.f32 %v3464_v62  ;;  %vm3613_vm9 = vmor %vm3611_vm8, %vm3612_vm7  ;;  %vm3621_vm10 = vweird.f32 %v3464_v62 }
 0x9fc   : > { %v3604_v39 = vsel %vm3603_vm6, %v4129_v4, %v3600_v59  ;;  %v3607_v50 = vmul.f32 %v4131_v19, %v3606_v29 }
 0x9fd   : > { %v3638_v46 = vmul.f32 %v3604_v39, %v5723_v27 }
 0x9fe   : > { %v3608_v23 = vmul.f32 0.5, %v3607_v50 }
 0x9ff   : > { %v3657_v41 = vmul.f32 %v5764_v34, %v3638_v46 }
 0xa00   : > { %v3609_v13 = vsub.f32 1.5, %v3608_v23 }
 0xa01   : > { %v4133_v58 = vpop.eup %4132  ;;  %v3676_v32 = vadd.f32 %v5772_v55, %v3657_v41 }
 0xa02   : > { %v3610_v17 = vmul.f32 %v4131_v19, %v3609_v13  ;;  %v3616_v5 = vmul.f32 %v4133_v58, %v3464_v62  ;;  %vm3622_vm5 = vweird.f32 %v4133_v58 }
 0xa03   : > { %3692 = vst.msk [vmem:[%s5784_s16 + $0x68] sm:$0xff] %vm489_vm0, %v3676_v32  ;;  %vm3623_vm11 = vmor %vm3621_vm10, %vm3622_vm5 }
 0xa04   : > { %v3614_v52 = vsel %vm3613_vm9, %v4131_v19, %v3610_v17  ;;  %v3617_v40 = vmul.f32 %v4133_v58, %v3616_v5 }
 0xa05   : > { %v3639_v27 = vmul.f32 %v3614_v52, %v5731_v30 }
 0xa06   : > { %v3618_v11 = vmul.f32 0.5, %v3617_v40 }
 0xa07   : > { %v3658_v20 = vmul.f32 %v5764_v34, %v3639_v27 }
 0xa08   : > { %v3619_v31 = vsub.f32 1.5, %v3618_v11 }
 0xa09   : > { %v3677_v7 = vadd.f32 %v5772_v55, %v3658_v20 }
 0xa0a   : > { %v3620_v1 = vmul.f32 %v4133_v58, %v3619_v31 }
 0xa0b   : > { %3693 = vst.msk [vmem:[%s5784_s16 + $0x70] sm:$0xff] %vm489_vm0, %v3677_v7 }
 0xa0c   : > { %v3624_v56 = vsel %vm3623_vm11, %v4133_v58, %v3620_v1 }
 0xa0d   : > { %v3640_v38 = vmul.f32 %v3624_v56, %v5740_v61 }
 0xa0f   : > { %v3659_v35 = vmul.f32 %v5764_v34, %v3640_v38 }
 0xa11   : > { %v3678_v10 = vadd.f32 %v5772_v55, %v3659_v35 }
 0xa13   : > { %3694 = vst.msk [vmem:[%s5784_s16 + $0x78] sm:$0xff] %vm489_vm0, %v3678_v10 }
 0xa14 PF: > { %s23_s25 = sadd.s32 1, %s4156_s25  }
 0xa15   : > { %p20_p4 = scmp.ge.s32.totalorder %s23_s25, 4  }
 0xa17   :  { %22 = sbr.rel (!%p20_p4) target bundleno = 1 (0x1), region = 103 }

// kernel: transformer_forward.6
= control target key start
LH: loop header
LB: loop body
LE: loop exit
PB: predicated region body
PF: predicated region fallthrough
CT: control target
= control target key end

     0   :  { %s4724_s18 = smov 0   ;;  %s6881_s0 = inlined_call_operand.vmem [shape: f32[32,8,32], index: 0, kind: input, shape index: {}]   ;;  %s6882_s1 = inlined_call_operand.vmem [shape: bf16[32,96], index: 1, kind: input, shape index: {}]   ;;  %s6883_s2 = inlined_call_operand.vmem [shape: f32[1,96], index: 2, kind: input, shape index: {}]   ;;  %s6884_s3 = inlined_call_operand.vmem [shape: bf16[2,16,32], index: 3, kind: input, shape index: {}]   ;;  %s6885_s4 = inlined_call_operand.vmem [shape: f32[1,32], index: 4, kind: input, shape index: {}]   ;;  %s6886_s5 = inlined_call_operand.vmem [shape: f32[1,32], index: 5, kind: input, shape index: {}]   ;;  %s6887_s6 = inlined_call_operand.vmem [shape: f32[1,32], index: 6, kind: input, shape index: {}]   ;;  %s6888_s7 = inlined_call_operand.vmem [shape: bf16[32,64], index: 7, kind: input, shape index: {}]   ;;  %s6889_s8 = inlined_call_operand.vmem [shape: f32[1,64], index: 8, kind: input, shape index: {}]   ;;  %s6890_s9 = inlined_call_operand.vmem [shape: bf16[64,32], index: 9, kind: input, shape index: {}]   ;;  %s6891_s10 = inlined_call_operand.vmem [shape: f32[1,32], index: 10, kind: input, shape index: {}]   ;;  %s6892_s11 = inlined_call_operand.vmem [shape: f32[1,32], index: 11, kind: input, shape index: {}]   ;;  %s6893_s12 = inlined_call_operand.vmem [shape: f32[1,32], index: 12, kind: input, shape index: {}]   ;;  %s6894_s13 = inlined_call_operand.vmem [shape: f32[1,32], index: 13, kind: input, shape index: {}]   ;;  %s6895_s14 = inlined_call_operand.vmem [shape: f32[1,32], index: 14, kind: input, shape index: {}]   ;;  %s6896_s15 = inlined_call_operand.vmem [shape: f32[32,8,32], index: 15, kind: output, shape index: {}]  }
   0x1 LB: > { %s4197_s19 = sadd.s32 4294967295, %s4636_s18   ;;  %p4201_p0 = scmp.ge.s32.totalorder %s4636_s18, 1  ;;  %s4636_s18 = sphi %s4724_s18, %s25_s18  }
   0x2   : > { %p438_p1 = scmp.lt.s32.totalorder %s4636_s18, 3 }
   0x4   : > { %p439_p2 = pnand %p4201_p0, %p438_p1 }
   0x5   : > { %s4202_s22 = sshll.u32 (!%p439_p2), %s4197_s19, 4  ;;  %s4638_s16 = smov (!%p439_p2), 96  }
   0x6   : > { %442 = sbr.rel (%p439_p2) target bundleno = 2848 (0xb20), region = 80  ;;  %p487_p3 = scmp.lt.s32.totalorder (!%p439_p2), %s4202_s22, 31 }
   0x7   : > { %s4639_s17 = smov (!%p439_p2), 64   ;;  %s4640_s19 = smov (!%p439_p2), 80  }
   0x8   : > { %s4641_s20 = smov (!%p439_p2), 112   ;;  %s4642_s21 = smov (!%p439_p2), 48  }
   0xb   : > { %v4355_v0 = vld [vmem:[%s6882_s1 + $0x8] sm:$0xff]  ;;  %v4354_v1 = vld [vmem:[%s6882_s1] sm:$0xff]  ;;  %s6914_s22 = smov (!%p487_p3, %s4202_s22), 31  ;;  %vm543_vm0 = vcmask 261120   ;;  %vm638_vm1 = vcmask 130048   ;;  %vm1232_vm2 = vcmask 1043456  }
   0xc   : > { %574 = vmatpush.bf16.msra.mxu0 %v4355_v0  ;;  %s4203_s25 = sshll.u32 %s6914_s22, 3  ;;  %v4775_v26 = vld [vmem:[%s6883_s2] ss:$0 sm:$0xff]  ;;  %vm1034_vm3 = vcmask 64512  }
   0xd   : > { %s4746_s28 = scalar_lea.vmem %s6881_s0, %s4203_s25  ;;  %s6722_s24 = scalar_lea.vmem %s6896_s15, %s4203_s25 }
   0xe   : > { %v499_v2 = vld [vmem:[%s4746_s28] sm:$0xff]  ;;  %v500_v3 = vld [vmem:[%s4746_s28 + $0x8] sm:$0xff]  ;;  %v501_v5 = vld [vmem:[%s4746_s28 + $0x10] sm:$0xff] }
   0xf   : > { %v515_v4 = vpack.c.bf16 %v500_v3, %v499_v2  ;;  %v502_v6 = vld [vmem:[%s4746_s28 + $0x18] sm:$0xff]  ;;  %v503_v8 = vld [vmem:[%s4746_s28 + $0x20] sm:$0xff]  ;;  %v504_v9 = vld [vmem:[%s4746_s28 + $0x28] sm:$0xff] }
  0x10   : > { %575 = vmatpush.bf16.msra.mxu0 %v4354_v1  ;;  %v516_v7 = vpack.c.bf16 %v502_v6, %v501_v5  ;;  %v517_v10 = vpack.c.bf16 %v504_v9, %v503_v8  ;;  %v505_v11 = vld [vmem:[%s4746_s28 + $0x30] sm:$0xff]  ;;  %v506_v12 = vld [vmem:[%s4746_s28 + $0x38] sm:$0xff]  ;;  %v507_v14 = vld [vmem:[%s4746_s28 + $0x40] sm:$0xff] }
  0x11   : > { %v518_v13 = vpack.c.bf16 %v506_v12, %v505_v11  ;;  %v508_v15 = vld [vmem:[%s4746_s28 + $0x48] sm:$0xff]  ;;  %v509_v17 = vld [vmem:[%s4746_s28 + $0x50] sm:$0xff]  ;;  %v510_v18 = vld [vmem:[%s4746_s28 + $0x58] sm:$0xff] }
  0x12   : > { %v519_v16 = vpack.c.bf16 %v508_v15, %v507_v14  ;;  %v520_v19 = vpack.c.bf16 %v510_v18, %v509_v17  ;;  %v511_v20 = vld [vmem:[%s4746_s28 + $0x60] sm:$0xff]  ;;  %v512_v21 = vld [vmem:[%s4746_s28 + $0x68] sm:$0xff]  ;;  %v513_v23 = vld [vmem:[%s4746_s28 + $0x70] sm:$0xff] }
  0x13   : > { %4214 = vmatmul.msk.bf16.vlgmr.msra.gmra.mxu0 %vm543_vm0, %v515_v4  ;;  %v521_v22 = vpack.c.bf16 %v512_v21, %v511_v20  ;;  %v514_v24 = vld [vmem:[%s4746_s28 + $0x78] sm:$0xff] }
  0x14   : > { %v522_v25 = vpack.c.bf16 %v514_v24, %v513_v23 }
  0x23   : > { %4215 = vmatmul.msk.bf16.gmra.mxu0 %vm543_vm0, %v516_v7 }
  0x33   : > { %4216 = vmatmul.msk.bf16.gmra.mxu0 %vm543_vm0, %v517_v10 }
  0x43   : > { %4217 = vmatmul.msk.bf16.gmra.mxu0 %vm543_vm0, %v518_v13 }
  0x53   : > { %4218 = vmatmul.msk.bf16.gmra.mxu0 %vm543_vm0, %v519_v16 }
  0x63   : > { %4219 = vmatmul.msk.bf16.gmra.mxu0 %vm543_vm0, %v520_v19 }
  0x73   : > { %4220 = vmatmul.msk.bf16.gmra.mxu0 %vm543_vm0, %v521_v22 }
  0x83   : > { %4221 = vmatmul.msk.bf16.gmra.mxu0 %vm543_vm0, %v522_v25 }
  0x90   : > { %v577_v27 = vpop.f32.mrf.mxu0 }
  0x91   : > { %v578_v28 = vadd.f32 %v4775_v26, %v577_v27 }
  0x93   : > { %v4778_v29 = vpack.c.bf16 %v578_v28, %v578_v28 }
  0x95   : > { %v634_v30 = vunpack.c.l.b16 %v4778_v29 }
  0x97   : > { %v4781_v31 = vpack.c.b16 %v634_v30, %v634_v30 }
  0x98   : > { %v579_v32 = vpop.f32.mrf.mxu0 }
  0x99   : > { %v580_v33 = vadd.f32 %v4775_v26, %v579_v32  ;;  %636 = vrot.lane.b32.xlu0 %v4781_v31, %s4638_s16 }
  0x9b   : > { %v4786_v34 = vpack.c.bf16 %v580_v33, %v580_v33 }
  0x9d   : > { %v659_v35 = vunpack.c.l.b16 %v4786_v34 }
  0x9f   : > { %v4789_v36 = vpack.c.b16 %v659_v35, %v659_v35 }
  0xa0   : > { %v582_v37 = vpop.f32.mrf.mxu0 }
  0xa1   : > { %v583_v38 = vadd.f32 %v4775_v26, %v582_v37  ;;  %661 = vrot.lane.b32.xlu0 %v4789_v36, %s4638_s16 }
  0xa3   : > { %v4794_v39 = vpack.c.bf16 %v583_v38, %v583_v38 }
  0xa5   : > { %v683_v40 = vunpack.c.l.b16 %v4794_v39 }
  0xa7   : > { %v4797_v41 = vpack.c.b16 %v683_v40, %v683_v40 }
  0xa8   : > { %v584_v42 = vpop.f32.mrf.mxu0 }
  0xa9   : > { %v585_v43 = vadd.f32 %v4775_v26, %v584_v42  ;;  %685 = vrot.lane.b32.xlu1 %v4797_v41, %s4638_s16 }
  0xab   : > { %v4802_v44 = vpack.c.bf16 %v585_v43, %v585_v43 }
  0xad   : > { %v707_v45 = vunpack.c.l.b16 %v4802_v44 }
  0xaf   : > { %v4805_v46 = vpack.c.b16 %v707_v45, %v707_v45 }
  0xb0   : > { %v587_v47 = vpop.f32.mrf.mxu0 }
  0xb1   : > { %v588_v48 = vadd.f32 %v4775_v26, %v587_v47  ;;  %709 = vrot.lane.b32.xlu1 %v4805_v46, %s4638_s16 }
  0xb3   : > { %v4810_v49 = vpack.c.bf16 %v588_v48, %v588_v48 }
  0xb5   : > { %v731_v50 = vunpack.c.l.b16 %v4810_v49 }
  0xb7   : > { %v4813_v51 = vpack.c.b16 %v731_v50, %v731_v50 }
  0xb8   : > { %v589_v52 = vpop.f32.mrf.mxu0 }
  0xb9   : > { %v590_v53 = vadd.f32 %v4775_v26, %v589_v52  ;;  %733 = vrot.lane.b32.xlu2 %v4813_v51, %s4638_s16 }
  0xbb   : > { %v4818_v54 = vpack.c.bf16 %v590_v53, %v590_v53 }
  0xbd   : > { %v755_v55 = vunpack.c.l.b16 %v4818_v54 }
  0xbf   : > { %v4821_v56 = vpack.c.b16 %v755_v55, %v755_v55 }
  0xc0   : > { %v592_v57 = vpop.f32.mrf.mxu0 }
  0xc1   : > { %v593_v58 = vadd.f32 %v4775_v26, %v592_v57  ;;  %757 = vrot.lane.b32.xlu2 %v4821_v56, %s4638_s16 }
  0xc3   : > { %v4826_v59 = vpack.c.bf16 %v593_v58, %v593_v58 }
  0xc5   : > { %v779_v60 = vunpack.c.l.b16 %v4826_v59 }
  0xc7   : > { %v4829_v61 = vpack.c.b16 %v779_v60, %v779_v60 }
  0xc8   : > { %v594_v62 = vpop.f32.mrf.mxu0 }
  0xc9   : > { %v595_v63 = vadd.f32 %v4775_v26, %v594_v62  ;;  %781 = vrot.lane.b32.xlu0 %v4829_v61, %s4638_s16 }
  0xcb   : > { %v4834_v0 = vpack.c.bf16 %v595_v63, %v595_v63 }
  0xcd   : > { %v803_v1 = vunpack.c.l.b16 %v4834_v0 }
  0xcf   : > { %v4837_v2 = vpack.c.b16 %v803_v1, %v803_v1 }
  0xd0   : > { %v597_v3 = vpop.f32.mrf.mxu0 }
  0xd1   : > { %v598_v4 = vadd.f32 %v4775_v26, %v597_v3  ;;  %805 = vrot.lane.b32.xlu1 %v4837_v2, %s4638_s16 }
  0xd3   : > { %v4842_v5 = vpack.c.bf16 %v598_v4, %v598_v4 }
  0xd5   : > { %v827_v6 = vunpack.c.l.b16 %v4842_v5 }
  0xd7   : > { %v4845_v7 = vpack.c.b16 %v827_v6, %v827_v6 }
  0xd8   : > { %v599_v8 = vpop.f32.mrf.mxu0 }
  0xd9   : > { %v600_v9 = vadd.f32 %v4775_v26, %v599_v8  ;;  %829 = vrot.lane.b32.xlu2 %v4845_v7, %s4638_s16 }
  0xdb   : > { %v4850_v10 = vpack.c.bf16 %v600_v9, %v600_v9 }
  0xdd   : > { %v851_v11 = vunpack.c.l.b16 %v4850_v10 }
  0xdf   : > { %v4853_v12 = vpack.c.b16 %v851_v11, %v851_v11 }
  0xe0   : > { %v602_v13 = vpop.f32.mrf.mxu0 }
  0xe1   : > { %v603_v14 = vadd.f32 %v4775_v26, %v602_v13  ;;  %853 = vrot.lane.b32.xlu0 %v4853_v12, %s4638_s16 }
  0xe3   : > { %v4858_v15 = vpack.c.bf16 %v603_v14, %v603_v14 }
  0xe5   : > { %v875_v16 = vunpack.c.l.b16 %v4858_v15 }
  0xe7   : > { %v4861_v17 = vpack.c.b16 %v875_v16, %v875_v16 }
  0xe8   : > { %v604_v18 = vpop.f32.mrf.mxu0 }
  0xe9   : > { %v605_v19 = vadd.f32 %v4775_v26, %v604_v18  ;;  %877 = vrot.lane.b32.xlu1 %v4861_v17, %s4638_s16 }
  0xeb   : > { %v4866_v20 = vpack.c.bf16 %v605_v19, %v605_v19 }
  0xed   : > { %v899_v21 = vunpack.c.l.b16 %v4866_v20 }
  0xef   : > { %v4869_v22 = vpack.c.b16 %v899_v21, %v899_v21 }
  0xf0   : > { %v607_v23 = vpop.f32.mrf.mxu0 }
  0xf1   : > { %v608_v24 = vadd.f32 %v4775_v26, %v607_v23  ;;  %901 = vrot.lane.b32.xlu2 %v4869_v22, %s4638_s16 }
  0xf3   : > { %v4874_v25 = vpack.c.bf16 %v608_v24, %v608_v24 }
  0xf5   : > { %v923_v27 = vunpack.c.l.b16 %v4874_v25 }
  0xf7   : > { %v4877_v28 = vpack.c.b16 %v923_v27, %v923_v27 }
  0xf8   : > { %v609_v30 = vpop.f32.mrf.mxu0 }
  0xf9   : > { %v610_v32 = vadd.f32 %v4775_v26, %v609_v30  ;;  %925 = vrot.lane.b32.xlu0 %v4877_v28, %s4638_s16 }
  0xfb   : > { %v4882_v33 = vpack.c.bf16 %v610_v32, %v610_v32 }
  0xfd   : > { %v947_v35 = vunpack.c.l.b16 %v4882_v33 }
  0xff   : > { %v4885_v37 = vpack.c.b16 %v947_v35, %v947_v35 }
 0x100   : > { %v612_v38 = vpop.f32.mrf.mxu0 }
 0x101   : > { %v613_v40 = vadd.f32 %v4775_v26, %v612_v38  ;;  %949 = vrot.lane.b32.xlu1 %v4885_v37, %s4638_s16 }
 0x103   : > { %v4890_v42 = vpack.c.bf16 %v613_v40, %v613_v40 }
 0x105   : > { %v971_v43 = vunpack.c.l.b16 %v4890_v42 }
 0x107   : > { %v4893_v45 = vpack.c.b16 %v971_v43, %v971_v43 }
 0x108   : > { %v614_v47 = vpop.f32.mrf.mxu0 }
 0x109   : > { %v615_v48 = vadd.f32 %v4775_v26, %v614_v47  ;;  %973 = vrot.lane.b32.xlu2 %v4893_v45, %s4638_s16  ;;  %1227 = vrot.lane.b32.xlu1 %v4781_v31, %s4639_s17 }
 0x10b   : > { %v4900_v50 = vpack.c.bf16 %v615_v48, %v615_v48  ;;  %v637_v52 = vpop.permute.xlu0 %636 }
 0x10c   : > { %v643_v53 = vsel %vm638_vm1, %v637_v52, 0 }
 0x10d   : > { %v995_v55 = vunpack.c.l.b16 %v4900_v50  ;;  %652 = vmatpush.bf16.xpose.msra.mxu1 %v643_v53 }
 0x10f   : > { %v4904_v57 = vpack.c.b16 %v995_v55, %v995_v55 }
 0x111   : > { %1249 = vrot.lane.b32.xlu2 %v4789_v36, %s4639_s17  ;;  %1333 = vrot.lane.b32.xlu1 %v4821_v56, %s4639_s17 }
 0x112   : > { %997 = vrot.lane.b32.xlu0 %v4904_v57, %s4638_s16 }
 0x113   : > { %v734_v26 = vpop.permute.xlu2 %733  ;;  %v662_v58 = vpop.permute.xlu0 %661 }
 0x114   : > { %4222 = vmatmul.msk.bf16.vlgmr.msra.gmra.mxu1 %vm638_vm1, %v4778_v29  ;;  %v667_v60 = vsel %vm638_vm1, %v662_v58, 0  ;;  %v739_v62 = vsel %vm638_vm1, %v734_v26, 0 }
 0x115   : > { %676 = vmatpush.bf16.xpose.msra.mxu2 %v667_v60 }
 0x119   : > { %1354 = vrot.lane.b32.xlu2 %v4829_v61, %s4639_s17  ;;  %1375 = vrot.lane.b32.xlu1 %v4837_v2, %s4639_s17 }
 0x11a   : > { %1270 = vrot.lane.b32.xlu0 %v4797_v41, %s4639_s17 }
 0x11b   : > { %v758_v63 = vpop.permute.xlu2 %757  ;;  %v686_v1 = vpop.permute.xlu1 %685 }
 0x11c   : > { %4223 = vmatmul.msk.bf16.vlgmr.msra.gmra.mxu2 %vm638_vm1, %v4786_v34  ;;  %v691_v29 = vsel %vm638_vm1, %v686_v1, 0  ;;  %v763_v3 = vsel %vm638_vm1, %v758_v63, 0 }
 0x11d   : > { %748 = vmatpush.bf16.xpose.msrb.mxu2 %v739_v62  ;;  %700 = vmatpush.bf16.xpose.msra.mxu3 %v691_v29 }
 0x121   : > { %1417 = vrot.lane.b32.xlu2 %v4853_v12, %s4639_s17  ;;  %1459 = vrot.lane.b32.xlu1 %v4869_v22, %s4639_s17 }
 0x122   : > { %1291 = vrot.lane.b32.xlu0 %v4805_v46, %s4639_s17 }
 0x123   : > { %v710_v4 = vpop.permute.xlu1 %709 }
 0x124   : > { %4224 = vmatmul.msk.bf16.vlgmr.msra.gmra.mxu3 %vm638_vm1, %v4794_v39  ;;  %v715_v34 = vsel %vm638_vm1, %v710_v4, 0 }
 0x125   : > { %772 = vmatpush.bf16.xpose.msrb.mxu3 %v763_v3  ;;  %724 = vmatpush.bf16.xpose.msrb.mxu1 %v715_v34 }
 0x129   : > { %1501 = vrot.lane.b32.xlu2 %v4885_v37, %s4639_s17  ;;  %1522 = vrot.lane.b32.xlu1 %v4893_v45, %s4639_s17 }
 0x12a   : > { %1312 = vrot.lane.b32.xlu0 %v4813_v51, %s4639_s17 }
 0x12c   : > { %4225 = vmatmul.msk.bf16.vlgmr.msrb.gmra.mxu1 %vm638_vm1, %v4802_v44  ;;  %4226 = vmatmul.msk.bf16.vlgmr.msrb.gmra.mxu2 %vm638_vm1, %v4810_v49 }
 0x131   : > { %1599 = vrot.lane.b32.xlu2 %v4789_v36, %s4640_s19 }
 0x132   : > { %1396 = vrot.lane.b32.xlu0 %v4845_v7, %s4639_s17 }
 0x133   : > { %v830_v39 = vpop.permute.xlu2 %829 }
 0x134   : > { %4227 = vmatmul.msk.bf16.vlgmr.msrb.gmra.mxu3 %vm638_vm1, %v4818_v54  ;;  %v835_v6 = vsel %vm638_vm1, %v830_v39, 0 }
 0x135   : > { %844 = vmatpush.bf16.xpose.msra.mxu3 %v835_v6 }
 0x13a   : > { %1438 = vrot.lane.b32.xlu0 %v4861_v17, %s4639_s17 }
 0x13b   : > { %v782_v44 = vpop.permute.xlu0 %781 }
 0x13c   : > { %v787_v49 = vsel %vm638_vm1, %v782_v44, 0 }
 0x13d   : > { %796 = vmatpush.bf16.xpose.msra.mxu1 %v787_v49 }
 0x142   : > { %1480 = vrot.lane.b32.xlu0 %v4877_v28, %s4639_s17 }
 0x143   : > { %v806_v8 = vpop.permute.xlu1 %805 }
 0x144   : > { %v811_v9 = vsel %vm638_vm1, %v806_v8, 0  ;;  %4228 = vmatmul.msk.bf16.vlgmr.msra.gmra.mxu1 %vm638_vm1, %v4826_v59  ;;  %4230 = vmatmul.msk.bf16.vlgmr.msra.gmra.mxu3 %vm638_vm1, %v4842_v5 }
 0x145   : > { %820 = vmatpush.bf16.xpose.msra.mxu2 %v811_v9 }
 0x14a   : > { %1576 = vrot.lane.b32.xlu0 %v4781_v31, %s4640_s19 }
 0x14b   : > { %v902_v54 = vpop.permute.xlu2 %901 }
 0x14c   : > { %v907_v11 = vsel %vm638_vm1, %v902_v54, 0  ;;  %4229 = vmatmul.msk.bf16.vlgmr.msra.gmra.mxu2 %vm638_vm1, %v4834_v0 }
 0x14d   : > { %916 = vmatpush.bf16.xpose.msrb.mxu3 %v907_v11 }
 0x152   : > { %1622 = vrot.lane.b32.xlu0 %v4797_v41, %s4640_s19 }
 0x153   : > { %v854_v13 = vpop.permute.xlu0 %853 }
 0x154   : > { %v859_v59 = vsel %vm638_vm1, %v854_v13, 0  ;;  %4233 = vmatmul.msk.bf16.vlgmr.msrb.gmra.mxu3 %vm638_vm1, %v4866_v20 }
 0x155   : > { %868 = vmatpush.bf16.xpose.msrb.mxu1 %v859_v59 }
 0x15a   : > { %1543 = vrot.lane.b32.xlu0 %v4904_v57, %s4639_s17 }
 0x15b   : > { %v878_v5 = vpop.permute.xlu1 %877 }
 0x15c   : > { %v883_v14 = vsel %vm638_vm1, %v878_v5, 0  ;;  %4231 = vmatmul.msk.bf16.vlgmr.msrb.gmra.mxu1 %vm638_vm1, %v4850_v10 }
 0x15d   : > { %892 = vmatpush.bf16.xpose.msrb.mxu2 %v883_v14 }
 0x163   : > { %v974_v0 = vpop.permute.xlu2 %973 }
 0x164   : > { %v979_v16 = vsel %vm638_vm1, %v974_v0, 0  ;;  %4232 = vmatmul.msk.bf16.vlgmr.msrb.gmra.mxu2 %vm638_vm1, %v4858_v15 }
 0x165   : > { %988 = vmatpush.bf16.xpose.msra.mxu3 %v979_v16 }
 0x16b   : > { %v1250_v18 = vpop.permute.xlu2 %1249  ;;  %v926_v19 = vpop.permute.xlu0 %925 }
 0x16c   : > { %v1255_v20 = vsel %vm1232_vm2, %v1250_v18, 0  ;;  %v931_v21 = vsel %vm638_vm1, %v926_v19, 0  ;;  %4236 = vmatmul.msk.bf16.vlgmr.msra.gmra.mxu3 %vm638_vm1, %v4890_v42 }
 0x16d   : > { %940 = vmatpush.bf16.xpose.msra.mxu1 %v931_v21  ;;  %1264 = vmatpush.bf16.msrb.mxu3 %v1255_v20 }
 0x173   : > { %v950_v10 = vpop.permute.xlu1 %949 }
 0x174   : > { %v955_v23 = vsel %vm638_vm1, %v950_v10, 0  ;;  %4234 = vmatmul.msk.bf16.vlgmr.msra.gmra.mxu1 %vm638_vm1, %v4874_v25 }
 0x175   : > { %964 = vmatpush.bf16.xpose.msra.mxu2 %v955_v23 }
 0x17b   : > { %v1228_v15 = vpop.permute.xlu1 %1227 }
 0x17c   : > { %v1234_v24 = vsel %vm1232_vm2, %v1228_v15, 0  ;;  %4235 = vmatmul.msk.bf16.vlgmr.msra.gmra.mxu2 %vm638_vm1, %v4882_v33 }
 0x17d   : > { %1243 = vmatpush.bf16.msrb.mxu2 %v1234_v24 }
 0x183   : > { %v1334_v32 = vpop.permute.xlu1 %1333 }
 0x184   : > { %v998_v27 = vpop.permute.xlu0 %997  ;;  %v1339_v25 = vsel %vm1232_vm2, %v1334_v32, 0 }
 0x185   : > { %v1003_v30 = vsel %vm638_vm1, %v998_v27, 0 }
 0x186   : > { %1012 = vmatpush.bf16.xpose.msrb.mxu1 %v1003_v30 }
 0x18c   : > { %v1271_v35 = vpop.permute.xlu0 %1270 }
 0x18d   : > { %v1276_v38 = vsel %vm1232_vm2, %v1271_v35, 0  ;;  %4237 = vmatmul.msk.bf16.vlgmr.msrb.gmra.mxu1 %vm638_vm1, %v4900_v50 }
 0x18e   : > { %1285 = vmatpush.bf16.msra.mxu1 %v1276_v38 }
 0x191   : > { %v654_v40 = vpop.f32.mrf.mxu1 }
 0x192   : > { %1348 = vmatpush.bf16.msrb.mxu1 %v1339_v25  ;;  %v4995_v42 = vmul.f32 0.25, %v654_v40 }
 0x194   : > { %v1292_v33 = vpop.permute.xlu0 %1291  ;;  %v1035_v43 = vsel %vm1034_vm3, %v4995_v42, -inf }
 0x195   : > { %v1297_v47 = vsel %vm1232_vm2, %v1292_v33, 0  ;;  %1036 = vmax.xlane.f32.xlu1 %v1035_v43 }
 0x196   : > { %1306 = vmatpush.bf16.msra.mxu2 %v1297_v47 }
 0x199   : > { %v656_v48 = vpop.f32.mrf.mxu1 }
 0x19c   : > { %v1313_v52 = vpop.permute.xlu0 %1312 }
 0x19d   : > { %v1318_v50 = vsel %vm1232_vm2, %v1313_v52, 0 }
 0x19e   : > { %1327 = vmatpush.bf16.msra.mxu3 %v1318_v50 }
 0x19f   : > { %v678_v53 = vpop.f32.mrf.mxu2 }
 0x1a0   : > { %v5001_v55 = vmul.f32 0.25, %v678_v53 }
 0x1a2   : > { %v1038_v26 = vsel %vm1034_vm3, %v5001_v55, -inf }
 0x1a3   : > { %1039 = vmax.xlane.f32.xlu2 %v1038_v26  ;;  %v5049_v26 = vpop.permute.xlu1 %1375 }
 0x1a4   : > { %v1397_v58 = vpop.permute.xlu0 %1396 }
 0x1a5   : > { %v1402_v60 = vsel %vm1232_vm2, %v1397_v58, 0 }
 0x1a6   : > { %1411 = vmatpush.bf16.msrb.mxu0 %v1402_v60 }
 0x1a7   : > { %v680_v62 = vpop.f32.mrf.mxu2  ;;  %v702_v63 = vpop.f32.mrf.mxu3 }
 0x1a8   : > { %v5006_v1 = vmul.f32 0.25, %v702_v63  ;;  %v5051_v62 = vpop.permute.xlu2 %1354 }
 0x1a9   : > { %v726_v29 = vpop.f32.mrf.mxu1 }
 0x1aa   : > { %v5008_v3 = vmul.f32 0.25, %v726_v29  ;;  %v1041_v4 = vsel %vm1034_vm3, %v5006_v1, -inf }
 0x1ab   : > { %1042 = vmax.xlane.f32.xlu0 %v1041_v4 }
 0x1ac   : > { %v5012_v34 = vpop.permute.xlu0 %1438  ;;  %v1044_v39 = vsel %vm1034_vm3, %v5008_v3, -inf }
 0x1ad   : > { %1045 = vmax.xlane.f32.xlu2 %v1044_v39  ;;  %v5057_v39 = vpop.permute.xlu1 %1459 }
 0x1af   : > { %v704_v6 = vpop.f32.mrf.mxu3  ;;  %v750_v44 = vpop.f32.mrf.mxu2 }
 0x1b0   : > { %v5016_v49 = vmul.f32 0.25, %v750_v44 }
 0x1b1   : > { %v728_v8 = vpop.f32.mrf.mxu1 }
 0x1b2   : > { %v1047_v9 = vsel %vm1034_vm3, %v5016_v49, -inf  ;;  %v5059_v8 = vpop.permute.xlu2 %1417 }
 0x1b3   : > { %1048 = vmax.xlane.f32.xlu1 %v1047_v9 }
 0x1b4   : > { %v1481_v54 = vpop.permute.xlu0 %1480 }
 0x1b5   : > { %v1486_v11 = vsel %vm1232_vm2, %v1481_v54, 0  ;;  %v5061_v54 = vpop.permute.xlu1 %1522 }
 0x1b6   : > { %1495 = vmatpush.bf16.msra.mxu0 %v1486_v11 }
 0x1b7   : > { %v752_v13 = vpop.f32.mrf.mxu2  ;;  %v774_v59 = vpop.f32.mrf.mxu3 }
 0x1b8   : > { %v5021_v5 = vmul.f32 0.25, %v774_v59 }
 0x1ba   : > { %v1050_v14 = vsel %vm1034_vm3, %v5021_v5, -inf }
 0x1bb   : > { %1051 = vmax.xlane.f32.xlu2 %v1050_v14  ;;  %v5069_v14 = vpop.permute.xlu2 %1501 }
 0x1bc   : > { %v5065_v13 = vpop.permute.xlu0 %1576 }
 0x1bf   : > { %v776_v0 = vpop.f32.mrf.mxu3 }
 0x1c1   : > { %v798_v16 = vpop.f32.mrf.mxu1 }
 0x1c2   : > { %v5025_v18 = vmul.f32 0.25, %v798_v16 }
 0x1c4   : > { %v1053_v19 = vsel %vm1034_vm3, %v5025_v18, -inf }
 0x1c5   : > { %1054 = vmax.xlane.f32.xlu0 %v1053_v19 }
 0x1c7   : > { %v846_v20 = vpop.f32.mrf.mxu3 }
 0x1c8   : > { %v5029_v21 = vmul.f32 0.25, %v846_v20 }
 0x1c9   : > { %v800_v10 = vpop.f32.mrf.mxu1 }
 0x1ca   : > { %v1059_v23 = vsel %vm1034_vm3, %v5029_v21, -inf }
 0x1cb   : > { %1060 = vmax.xlane.f32.xlu2 %v1059_v23 }
 0x1cf   : > { %v822_v15 = vpop.f32.mrf.mxu2  ;;  %v848_v24 = vpop.f32.mrf.mxu3 }
 0x1d0   : > { %v5033_v27 = vmul.f32 0.25, %v822_v15  ;;  %v5076_v15 = vpop.permute.xlu0 %1622 }
 0x1d2   : > { %v1056_v30 = vsel %vm1034_vm3, %v5033_v27, -inf }
 0x1d3   : > { %1057 = vmax.xlane.f32.xlu1 %v1056_v30  ;;  %v5078_v30 = vpop.permute.xlu2 %1599 }
 0x1d7   : > { %v824_v32 = vpop.f32.mrf.mxu2  ;;  %v918_v35 = vpop.f32.mrf.mxu3 }
 0x1d8   : > { %v5037_v38 = vmul.f32 0.25, %v918_v35 }
 0x1d9   : > { %v870_v25 = vpop.f32.mrf.mxu1 }
 0x1da   : > { %v5039_v40 = vmul.f32 0.25, %v870_v25  ;;  %v1068_v33 = vsel %vm1034_vm3, %v5037_v38, -inf }
 0x1db   : > { %1069 = vmax.xlane.f32.xlu2 %v1068_v33  ;;  %v5084_v33 = vpop.permute.xlu0 %1543 }
 0x1dc   : > { %v1062_v43 = vsel %vm1034_vm3, %v5039_v40, -inf }
 0x1dd   : > { %1063 = vmax.xlane.f32.xlu0 %v1062_v43 }
 0x1df   : > { %v920_v47 = vpop.f32.mrf.mxu3 }
 0x1e1   : > { %v872_v48 = vpop.f32.mrf.mxu1 }
 0x1e7   : > { %v894_v52 = vpop.f32.mrf.mxu2 }
 0x1e8   : > { %v5045_v50 = vmul.f32 0.25, %v894_v52 }
 0x1ea   : > { %v1065_v53 = vsel %vm1034_vm3, %v5045_v50, -inf }
 0x1eb   : > { %1066 = vmax.xlane.f32.xlu1 %v1065_v53 }
 0x1ef   : > { %v896_v58 = vpop.f32.mrf.mxu2  ;;  %v990_v60 = vpop.f32.mrf.mxu3 }
 0x1f0   : > { %v5071_v0 = vmul.f32 0.25, %v990_v60 }
 0x1f1   : > { %v942_v63 = vpop.f32.mrf.mxu1 }
 0x1f2   : > { %v5053_v29 = vmul.f32 0.25, %v942_v63  ;;  %v1077_v23 = vsel %vm1034_vm3, %v5071_v0, -inf }
 0x1f4   : > { %v1071_v4 = vsel %vm1034_vm3, %v5053_v29, -inf }
 0x1f5   : > { %1072 = vmax.xlane.f32.xlu2 %v1071_v4 }
 0x1f7   : > { %v992_v6 = vpop.f32.mrf.mxu3 }
 0x1f9   : > { %v944_v44 = vpop.f32.mrf.mxu1 }
 0x1ff   : > { %v966_v9 = vpop.f32.mrf.mxu2 }
 0x200   : > { %v5063_v11 = vmul.f32 0.25, %v966_v9 }
 0x202   : > { %v1074_v59 = vsel %vm1034_vm3, %v5063_v11, -inf }
 0x203   : > { %1075 = vmax.xlane.f32.xlu0 %v1074_v59 }
 0x207   : > { %v968_v16 = vpop.f32.mrf.mxu2 }
 0x208   : > { %v1037_v19 = vpop.xlane.xlu1 %1036 }
 0x209   : > { %v1083_v20 = vsub.f32 %v4995_v42, %v1037_v19 }
 0x20a   : > { %v1014_v10 = vpop.f32.mrf.mxu1 }
 0x20b   : > { %1078 = vmax.xlane.f32.xlu0 %v1077_v23  ;;  %v1099_v24 = vmul.f32 1.442695, %v1083_v20  ;;  %v5080_v32 = vmul.f32 0.25, %v1014_v10 }
 0x20d   : > { %4388 = vpow2.f32 %v1099_v24  ;;  %v1080_v25 = vsel %vm1034_vm3, %v5080_v32, -inf }
 0x212   : > { %v1016_v35 = vpop.f32.mrf.mxu1 }
 0x213   : > { %1081 = vmax.xlane.f32.xlu0 %v1080_v25  ;;  %v5086_v43 = vpop.eup %4388 }
 0x214   : > { %v1131_v52 = vsel %vm1034_vm3, %v5086_v43, 0.0 }
 0x216   : > { %v1040_v42 = vpop.xlane.xlu2 %1039 }
 0x217   : > { %v1084_v47 = vsub.f32 %v5001_v55, %v1040_v42 }
 0x219   : > { %v1101_v48 = vmul.f32 1.442695, %v1084_v47 }
 0x21b   : > { %4390 = vpow2.f32 %v1101_v48  ;;  %1132 = vadd.xlane.f32.xlu0 %v1131_v52 }
 0x21e   : > { %v1043_v53 = vpop.xlane.xlu0 %1042 }
 0x21f   : > { %v1085_v58 = vsub.f32 %v5006_v1, %v1043_v53 }
 0x220   : > { %v1046_v60 = vpop.xlane.xlu2 %1045 }
 0x221   : > { %v5092_v63 = vpop.eup %4390  ;;  %v1103_v4 = vmul.f32 1.442695, %v1085_v58  ;;  %v1086_v6 = vsub.f32 %v5008_v3, %v1046_v60 }
 0x222   : > { %v1134_v44 = vsel %vm1034_vm3, %v5092_v63, 0.0 }
 0x223   : > { %4392 = vpow2.f32 %v1103_v4  ;;  %v1105_v55 = vmul.f32 1.442695, %v1086_v6  ;;  %1135 = vadd.xlane.f32.xlu1 %v1134_v44 }
 0x225   : > { %4394 = vpow2.f32 %v1105_v55 }
 0x226   : > { %v1049_v9 = vpop.xlane.xlu1 %1048 }
 0x227   : > { %v1087_v59 = vsub.f32 %v5016_v49, %v1049_v9 }
 0x229   : > { %v5098_v16 = vpop.eup %4392  ;;  %v1107_v19 = vmul.f32 1.442695, %v1087_v59 }
 0x22a   : > { %v1137_v1 = vsel %vm1034_vm3, %v5098_v16, 0.0 }
 0x22b   : > { %v5102_v20 = vpop.eup %4394  ;;  %4396 = vpow2.f32 %v1107_v19  ;;  %1138 = vadd.xlane.f32.xlu0 %v1137_v1 }
 0x22c   : > { %v1140_v3 = vsel %vm1034_vm3, %v5102_v20, 0.0 }
 0x22d   : > { %1141 = vadd.xlane.f32.xlu1 %v1140_v3 }
 0x22e   : > { %v1052_v53 = vpop.xlane.xlu2 %1051 }
 0x22f   : > { %v1088_v4 = vsub.f32 %v5021_v5, %v1052_v53 }
 0x231   : > { %v5106_v10 = vpop.eup %4396 }
 0x232   : > { %v1143_v23 = vsel %vm1034_vm3, %v5106_v10, 0.0 }
 0x233   : > { %1144 = vadd.xlane.f32.xlu2 %v1143_v23 }
 0x238   : > { %v1055_v49 = vpop.xlane.xlu0 %1054 }
 0x239   : > { %v1089_v24 = vsub.f32 %v5025_v18, %v1055_v49 }
 0x23b   : > { %v1111_v35 = vmul.f32 1.442695, %v1089_v24 }
 0x23d   : > { %4398 = vpow2.f32 %v1111_v35 }
 0x23e   : > { %v1061_v60 = vpop.xlane.xlu2 %1060 }
 0x243   : > { %v5111_v25 = vpop.eup %4398 }
 0x244   : > { %v1149_v42 = vsel %vm1034_vm3, %v5111_v25, 0.0 }
 0x245   : > { %1150 = vadd.xlane.f32.xlu0 %v1149_v42 }
 0x246   : > { %v1058_v47 = vpop.xlane.xlu1 %1057  ;;  %1645 = vrot.lane.b32.xlu1 %v4805_v46, %s4640_s19 }
 0x247   : > { %v1090_v48 = vsub.f32 %v5033_v27, %v1058_v47  ;;  %v1109_v27 = vmul.f32 1.442695, %v1088_v4 }
 0x249   : > { %v1113_v52 = vmul.f32 1.442695, %v1090_v48 }
 0x24b   : > { %4400 = vpow2.f32 %v1113_v52 }
 0x24e   : > { %v1070_v6 = vpop.xlane.xlu2 %1069 }
 0x24f   : > { %v1094_v9 = vsub.f32 %v5037_v38, %v1070_v6 }
 0x250   : > { %v1064_v19 = vpop.xlane.xlu0 %1063 }
 0x251   : > { %v5118_v58 = vpop.eup %4400  ;;  %v1121_v1 = vmul.f32 1.442695, %v1094_v9  ;;  %v1092_v3 = vsub.f32 %v5039_v40, %v1064_v19 }
 0x252   : > { %v1152_v18 = vsel %vm1034_vm3, %v5118_v58, 0.0 }
 0x253   : > { %1153 = vadd.xlane.f32.xlu2 %v1152_v18  ;;  %v1117_v24 = vmul.f32 1.442695, %v1092_v3 }
 0x25e   : > { %v1067_v44 = vpop.xlane.xlu1 %1066 }
 0x25f   : > { %v1093_v55 = vsub.f32 %v5045_v50, %v1067_v44 }
 0x261   : > { %v1119_v59 = vmul.f32 1.442695, %v1093_v55  ;;  %v1091_v55 = vsub.f32 %v5029_v21, %v1061_v60 }
 0x263   : > { %4402 = vpow2.f32 %v1119_v59  ;;  %v1115_v9 = vmul.f32 1.442695, %v1091_v55  ;;  %v1381_v55 = vsel %vm1232_vm2, %v5049_v26, 0  ;;  %v1423_v26 = vsel %vm1232_vm2, %v5059_v8, 0 }
 0x264   : > { %4404 = vpow2.f32 %v1109_v27 }
 0x265   : > { %4406 = vpow2.f32 %v1121_v1 }
 0x266   : > { %4408 = vpow2.f32 %v1117_v24 }
 0x268   : > { %v1073_v23 = vpop.xlane.xlu2 %1072 }
 0x269   : > { %v5126_v49 = vpop.eup %4402  ;;  %v1095_v5 = vsub.f32 %v5053_v29, %v1073_v23 }
 0x26a   : > { %v1161_v50 = vsel %vm1034_vm3, %v5126_v49, 0.0  ;;  %v5133_v38 = vpop.eup %4404 }
 0x26b   : > { %1574 = vrot.lane.b32.xlu2 %v4781_v31, %s4641_s20  ;;  %1162 = vadd.xlane.f32.xlu0 %v1161_v50  ;;  %v1123_v35 = vmul.f32 1.442695, %v1095_v5  ;;  %v5135_v40 = vpop.eup %4406  ;;  %v1146_v42 = vsel %vm1034_vm3, %v5133_v38, 0.0 }
 0x26c   : > { %v1164_v29 = vsel %vm1034_vm3, %v5135_v40, 0.0  ;;  %v5141_v47 = vpop.eup %4408 }
 0x26d   : > { %4410 = vpow2.f32 %v1123_v35  ;;  %v1158_v53 = vsel %vm1034_vm3, %v5141_v47, 0.0 }
 0x270   : > { %1147 = vadd.xlane.f32.xlu1 %v1146_v42 }
 0x273   : > { %1165 = vadd.xlane.f32.xlu0 %v1164_v29  ;;  %v5143_v52 = vpop.eup %4410 }
 0x274   : > { %v1167_v18 = vsel %vm1034_vm3, %v5143_v52, 0.0 }
 0x276   : > { %v1076_v48 = vpop.xlane.xlu0 %1075 }
 0x277   : > { %v1096_v3 = vsub.f32 %v5063_v11, %v1076_v48  ;;  %v1360_v48 = vsel %vm1232_vm2, %v5051_v62, 0 }
 0x278   : > { %1159 = vadd.xlane.f32.xlu1 %v1158_v53 }
 0x27b   : > { %1168 = vadd.xlane.f32.xlu0 %v1167_v18 }
 0x27e   : > { %v1079_v4 = vpop.xlane.xlu0 %1078 }
 0x27f   : > { %v1097_v6 = vsub.f32 %v5071_v0, %v1079_v4  ;;  %v1125_v0 = vmul.f32 1.442695, %v1096_v3 }
 0x281   : > { %v1127_v44 = vmul.f32 1.442695, %v1097_v6 }
 0x283   : > { %4412 = vpow2.f32 %v1127_v44 }
 0x284   : > { %4414 = vpow2.f32 %v1115_v9 }
 0x286   : > { %v1082_v59 = vpop.xlane.xlu0 %1081 }
 0x287   : > { %v1098_v27 = vsub.f32 %v5080_v32, %v1082_v59 }
 0x289   : > { %v5152_v19 = vpop.eup %4412  ;;  %v1129_v1 = vmul.f32 1.442695, %v1098_v27 }
 0x28a   : > { %v1173_v23 = vsel %vm1034_vm3, %v5152_v19, 0.0  ;;  %v5157_v21 = vpop.eup %4414 }
 0x28b   : > { %4416 = vpow2.f32 %v1129_v1  ;;  %1174 = vadd.xlane.f32.xlu1 %v1173_v23  ;;  %v1155_v11 = vsel %vm1034_vm3, %v5157_v21, 0.0  ;;  %v1444_v23 = vsel %vm1232_vm2, %v5012_v34, 0 }
 0x28e   : > { %v1133_v5 = vpop.xlane.xlu0 %1132 }
 0x28f   : > { %4418 = vrcp.f32 %v1133_v5 }
 0x290   : > { %4420 = vpow2.f32 %v1125_v0 }
 0x291   : > { %v5159_v60 = vpop.eup %4416 }
 0x292   : > { %v1176_v32 = vsel %vm1034_vm3, %v5159_v60, 0.0 }
 0x293   : > { %1177 = vadd.xlane.f32.xlu0 %v1176_v32  ;;  %v1528_v32 = vsel %vm1232_vm2, %v5061_v54, 0 }
 0x294   : > { %1156 = vadd.xlane.f32.xlu2 %v1155_v11 }
 0x295   : > { %v4419_v24 = vpop.eup %4418 }
 0x296   : > { %v1195_v50 = vmul.f32 %v4419_v24, %v5086_v43  ;;  %v1136_v35 = vpop.xlane.xlu1 %1135  ;;  %v5166_v42 = vpop.eup %4420 }
 0x297   : > { %4422 = vrcp.f32 %v1136_v35  ;;  %v1170_v53 = vsel %vm1034_vm3, %v5166_v42, 0.0 }
 0x298   : > { %v1211_v29 = vpack.c.bf16 %v1195_v50, %v1195_v50  ;;  %v1549_v50 = vsel %vm1232_vm2, %v5084_v33, 0 }
 0x29a   : > { %4238 = vmatmul.msk.bf16.vlgmr.msrb.gmra.mxu2 %vm1034_vm3, %v1211_v29 }
 0x29b   : > { %1369 = vmatpush.bf16.msrb.mxu2 %v1360_v48 }
 0x29c   : > { %1171 = vadd.xlane.f32.xlu2 %v1170_v53 }
 0x29d   : > { %v4423_v18 = vpop.eup %4422 }
 0x29e   : > { %v1196_v4 = vmul.f32 %v4423_v18, %v5092_v63  ;;  %v1139_v6 = vpop.xlane.xlu0 %1138 }
 0x29f   : > { %4424 = vrcp.f32 %v1139_v6  ;;  %v1628_v6 = vsel %vm638_vm1, %v5076_v15, 0  ;;  %v1507_v15 = vsel %vm1232_vm2, %v5069_v14, 0 }
 0x2a0   : > { %v1212_v43 = vpack.c.bf16 %v1196_v4, %v1196_v4  ;;  %v1142_v44 = vpop.xlane.xlu1 %1141 }
 0x2a1   : > { %4426 = vrcp.f32 %v1142_v44 }
 0x2a2   : > { %4239 = vmatmul.msk.bf16.vlgmr.msrb.gmra.mxu3 %vm1034_vm3, %v1212_v43 }
 0x2a3   : > { %1390 = vmatpush.bf16.msrb.mxu3 %v1381_v55 }
 0x2a4   : > { %1620 = vrot.lane.b32.xlu1 %v4797_v41, %s4641_s20 }
 0x2a5   : > { %v4425_v62 = vpop.eup %4424 }
 0x2a6   : > { %v1197_v9 = vmul.f32 %v4425_v62, %v5098_v16  ;;  %v1145_v59 = vpop.xlane.xlu2 %1144 }
 0x2a7   : > { %v4427_v27 = vpop.eup %4426  ;;  %4428 = vrcp.f32 %v1145_v59  ;;  %1597 = vrot.lane.b32.xlu0 %v4789_v36, %s4641_s20 }
 0x2a8   : > { %v1213_v63 = vpack.c.bf16 %v1197_v9, %v1197_v9  ;;  %v1198_v1 = vmul.f32 %v4427_v27, %v5102_v20  ;;  %v1465_v20 = vsel %vm1232_vm2, %v5057_v39, 0  ;;  %v1605_v27 = vsel %vm638_vm1, %v5078_v30, 0 }
 0x2aa   : > { %v1214_v3 = vpack.c.bf16 %v1198_v1, %v1198_v1  ;;  %4240 = vmatmul.msk.bf16.vlgmr.msra.gmra.mxu1 %vm1034_vm3, %v1213_v63 }
 0x2ab   : > { %1432 = vmatpush.bf16.msra.mxu1 %v1423_v26 }
 0x2ac   : > { %1691 = vrot.lane.b32.xlu1 %v4821_v56, %s4640_s19  ;;  %4241 = vmatmul.msk.bf16.vlgmr.msra.gmra.mxu2 %vm1034_vm3, %v1214_v3 }
 0x2ad   : > { %v4429_v16 = vpop.eup %4428  ;;  %1453 = vmatpush.bf16.msra.mxu2 %v1444_v23 }
 0x2ae   : > { %v1199_v0 = vmul.f32 %v4429_v16, %v5106_v10 }
 0x2af   : > { %1668 = vrot.lane.b32.xlu0 %v4813_v51, %s4640_s19 }
 0x2b0   : > { %v1215_v8 = vpack.c.bf16 %v1199_v0, %v1199_v0 }
 0x2b2   : > { %4242 = vmatmul.msk.bf16.vlgmr.msra.gmra.mxu3 %vm1034_vm3, %v1215_v8 }
 0x2b3   : > { %1474 = vmatpush.bf16.msra.mxu3 %v1465_v20 }
 0x2b4   : > { %1643 = vrot.lane.b32.xlu2 %v4805_v46, %s4641_s20  ;;  %1666 = vrot.lane.b32.xlu1 %v4813_v51, %s4641_s20 }
 0x2b7   : > { %1737 = vrot.lane.b32.xlu0 %v4837_v2, %s4640_s19 }
 0x2b8   : > { %v1151_v34 = vpop.xlane.xlu0 %1150 }
 0x2b9   : > { %4430 = vrcp.f32 %v1151_v34 }
 0x2bc   : > { %1714 = vrot.lane.b32.xlu2 %v4829_v61, %s4640_s19  ;;  %1735 = vrot.lane.b32.xlu1 %v4837_v2, %s4641_s20 }
 0x2bf   : > { %v4431_v39 = vpop.eup %4430  ;;  %1712 = vrot.lane.b32.xlu0 %v4829_v61, %s4641_s20 }
 0x2c0   : > { %v1201_v10 = vmul.f32 %v4431_v39, %v5111_v25 }
 0x2c2   : > { %v1217_v5 = vpack.c.bf16 %v1201_v10, %v1201_v10 }
 0x2c4   : > { %1689 = vrot.lane.b32.xlu2 %v4821_v56, %s4641_s20  ;;  %1806 = vrot.lane.b32.xlu1 %v4861_v17, %s4640_s19 }
 0x2c5   : > { %4244 = vmatmul.msk.bf16.vlgmr.msrb.gmra.mxu2 %vm1034_vm3, %v1217_v5 }
 0x2c6   : > { %1537 = vmatpush.bf16.msrb.mxu2 %v1528_v32  ;;  %v1154_v11 = vpop.xlane.xlu2 %1153 }
 0x2c7   : > { %4432 = vrcp.f32 %v1154_v11  ;;  %1783 = vrot.lane.b32.xlu0 %v4853_v12, %s4640_s19 }
 0x2cc   : > { %1760 = vrot.lane.b32.xlu2 %v4845_v7, %s4640_s19  ;;  %1781 = vrot.lane.b32.xlu1 %v4853_v12, %s4641_s20 }
 0x2cd   : > { %v4433_v25 = vpop.eup %4432 }
 0x2ce   : > { %v1202_v24 = vmul.f32 %v4433_v25, %v5118_v58  ;;  %v1646_v58 = vpop.permute.xlu1 %1645  ;;  %v5277_v63 = vpop.permute.xlu2 %1574 }
 0x2cf   : > { %1758 = vrot.lane.b32.xlu0 %v4845_v7, %s4641_s20  ;;  %v1651_v9 = vsel %vm638_vm1, %v1646_v58, 0 }
 0x2d0   : > { %v1218_v54 = vpack.c.bf16 %v1202_v24, %v1202_v24 }
 0x2d2   : > { %4245 = vmatmul.msk.bf16.vlgmr.msrb.gmra.mxu3 %vm1034_vm3, %v1218_v54 }
 0x2d3   : > { %1558 = vmatpush.bf16.msrb.mxu3 %v1549_v50 }
 0x2d4   : > { %1829 = vrot.lane.b32.xlu2 %v4869_v22, %s4640_s19  ;;  %1852 = vrot.lane.b32.xlu1 %v4877_v28, %s4640_s19 }
 0x2d7   : > { %1827 = vrot.lane.b32.xlu0 %v4869_v22, %s4641_s20 }
 0x2dc   : > { %1804 = vrot.lane.b32.xlu2 %v4861_v17, %s4641_s20  ;;  %1921 = vrot.lane.b32.xlu1 %v4904_v57, %s4640_s19 }
 0x2de   : > { %v1163_v33 = vpop.xlane.xlu0 %1162 }
 0x2df   : > { %4434 = vrcp.f32 %v1163_v33  ;;  %1898 = vrot.lane.b32.xlu0 %v4893_v45, %s4640_s19 }
 0x2e3   : > { %v1148_v35 = vpop.xlane.xlu1 %1147 }
 0x2e4   : > { %4436 = vrcp.f32 %v1148_v35  ;;  %1875 = vrot.lane.b32.xlu2 %v4885_v37, %s4640_s19  ;;  %1896 = vrot.lane.b32.xlu1 %v4893_v45, %s4641_s20 }
 0x2e5   : > { %v4435_v29 = vpop.eup %4434 }
 0x2e6   : > { %v1205_v48 = vmul.f32 %v4435_v29, %v5126_v49  ;;  %v1166_v53 = vpop.xlane.xlu0 %1165 }
 0x2e7   : > { %4438 = vrcp.f32 %v1166_v53  ;;  %1873 = vrot.lane.b32.xlu0 %v4885_v37, %s4641_s20 }
 0x2e8   : > { %v1221_v18 = vpack.c.bf16 %v1205_v48, %v1205_v48 }
 0x2ea   : > { %v4437_v4 = vpop.eup %4436  ;;  %4248 = vmatmul.msk.bf16.vlgmr.msra.gmra.mxu2 %vm1034_vm3, %v1221_v18 }
 0x2eb   : > { %v1200_v43 = vmul.f32 %v4437_v4, %v5133_v38  ;;  %1637 = vmatpush.bf16.xpose.msra.mxu2 %v1628_v6  ;;  %v1160_v55 = vpop.xlane.xlu1 %1159 }
 0x2ec   : > { %1850 = vrot.lane.b32.xlu2 %v4877_v28, %s4641_s20  ;;  %2171 = vrot.lane.b32.xlu1 %v4789_v36, %s4642_s21  ;;  %4440 = vrcp.f32 %v1160_v55 }
 0x2ed   : > { %v4439_v49 = vpop.eup %4438  ;;  %v1216_v44 = vpack.c.bf16 %v1200_v43, %v1200_v43 }
 0x2ee   : > { %v1206_v62 = vmul.f32 %v4439_v49, %v5135_v40  ;;  %v1169_v40 = vpop.xlane.xlu0 %1168 }
 0x2ef   : > { %2213 = vrot.lane.b32.xlu0 %v4805_v46, %s4642_s21  ;;  %4243 = vmatmul.msk.bf16.vlgmr.msrb.gmra.mxu1 %vm1034_vm3, %v1216_v44 }
 0x2f0   : > { %v1222_v38 = vpack.c.bf16 %v1206_v62, %v1206_v62  ;;  %1516 = vmatpush.bf16.msrb.mxu1 %v1507_v15 }
 0x2f2   : > { %4249 = vmatmul.msk.bf16.vlgmr.msra.gmra.mxu3 %vm1034_vm3, %v1222_v38  ;;  %v4441_v36 = vpop.eup %4440 }
 0x2f3   : > { %1660 = vmatpush.bf16.xpose.msra.mxu3 %v1651_v9  ;;  %v1204_v46 = vmul.f32 %v4441_v36, %v5141_v47 }
 0x2f4   : > { %1919 = vrot.lane.b32.xlu2 %v4904_v57, %s4641_s20  ;;  %2192 = vrot.lane.b32.xlu1 %v4797_v41, %s4642_s21 }
 0x2f5   : > { %v1220_v14 = vpack.c.bf16 %v1204_v46, %v1204_v46 }
 0x2f7   : > { %2276 = vrot.lane.b32.xlu0 %v4829_v61, %s4642_s21 }
 0x2fc   : > { %2150 = vrot.lane.b32.xlu2 %v4781_v31, %s4642_s21  ;;  %2234 = vrot.lane.b32.xlu1 %v4813_v51, %s4642_s21 }
 0x2fe   : > { %v1175_v59 = vpop.xlane.xlu1 %1174 }
 0x2ff   : > { %4442 = vrcp.f32 %v1175_v59  ;;  %2297 = vrot.lane.b32.xlu0 %v4837_v2, %s4642_s21  ;;  %4247 = vmatmul.msk.bf16.vlgmr.msra.gmra.mxu1 %vm1034_vm3, %v1220_v14 }
 0x300   : > { %1614 = vmatpush.bf16.xpose.msra.mxu1 %v1605_v27 }
 0x304   : > { %2255 = vrot.lane.b32.xlu2 %v4821_v56, %s4642_s21 }
 0x305   : > { %v4443_v31 = vpop.eup %4442 }
 0x306   : > { %v1209_v41 = vmul.f32 %v4443_v31, %v5152_v19  ;;  %v1178_v51 = vpop.xlane.xlu0 %1177  ;;  %v1582_v19 = vsel %vm638_vm1, %v5065_v13, 0 }
 0x307   : > { %4444 = vrcp.f32 %v1178_v51  ;;  %v1157_v61 = vpop.xlane.xlu2 %1156 }
 0x308   : > { %v1225_v47 = vpack.c.bf16 %v1209_v41, %v1209_v41  ;;  %4446 = vrcp.f32 %v1157_v61 }
 0x30a   : > { %4252 = vmatmul.msk.bf16.vlgmr.msrb.gmra.mxu2 %vm1034_vm3, %v1225_v47 }
 0x30d   : > { %v4445_v30 = vpop.eup %4444 }
 0x30e   : > { %v4447_v1 = vpop.eup %4446  ;;  %v1210_v2 = vmul.f32 %v4445_v30, %v5159_v60 }
 0x30f   : > { %v1172_v26 = vpop.xlane.xlu2 %1171  ;;  %v1203_v3 = vmul.f32 %v4447_v1, %v5157_v21 }
 0x310   : > { %v1226_v23 = vpack.c.bf16 %v1210_v2, %v1210_v2  ;;  %4448 = vrcp.f32 %v1172_v26 }
 0x311   : > { %v1219_v56 = vpack.c.bf16 %v1203_v3, %v1203_v3  ;;  %4450 = vrcp.f32 %v1169_v40 }
 0x312   : > { %4253 = vmatmul.msk.bf16.vlgmr.msrb.gmra.mxu3 %vm1034_vm3, %v1226_v23 }
 0x313   : > { %4246 = vmatmul.msk.bf16.vlgmr.msrb.gmra.mxu0 %vm1034_vm3, %v1219_v56 }
 0x314   : > { %1591 = vmatpush.bf16.xpose.msrb.mxu0 %v1582_v19 }
 0x316   : > { %v4449_v16 = vpop.eup %4448  ;;  %v1621_v0 = vpop.permute.xlu1 %1620 }
 0x317   : > { %v1208_v8 = vmul.f32 %v4449_v16, %v5166_v42  ;;  %v1644_v60 = vpop.permute.xlu2 %1643  ;;  %v4451_v21 = vpop.eup %4450 }
 0x318   : > { %v1207_v39 = vmul.f32 %v4451_v21, %v5143_v52 }
 0x319   : > { %v1224_v20 = vpack.c.bf16 %v1208_v8, %v1208_v8  ;;  %v1598_v34 = vpop.permute.xlu0 %1597 }
 0x31a   : > { %4256 = vmatmul.msk.bf16.vlgmr.msra.gmra.mxu2 %vm638_vm1, %v1621_v0  ;;  %v1223_v42 = vpack.c.bf16 %v1207_v39, %v1207_v39 }
 0x31b   : > { %4251 = vmatmul.msk.bf16.vlgmr.msrb.gmra.mxu1 %vm1034_vm3, %v1224_v20 }
 0x31d   : > { %v5296_v10 = vpop.f32.mrf.mxu2 }
 0x31e   : > { %v1692_v13 = vpop.permute.xlu1 %1691 }
 0x31f   : > { %v1697_v5 = vsel %vm638_vm1, %v1692_v13, 0  ;;  %v1715_v32 = vpop.permute.xlu2 %1714 }
 0x320   : > { %v1720_v11 = vsel %vm638_vm1, %v1715_v32, 0  ;;  %1706 = vmatpush.bf16.xpose.msrb.mxu1 %v1697_v5 }
 0x321   : > { %1729 = vmatpush.bf16.xpose.msrb.mxu2 %v1720_v11  ;;  %v1669_v25 = vpop.permute.xlu0 %1668 }
 0x322   : > { %v1674_v24 = vsel %vm638_vm1, %v1669_v25, 0  ;;  %4257 = vmatmul.msk.bf16.vlgmr.msra.gmra.mxu3 %vm638_vm1, %v1644_v60 }
 0x323   : > { %4250 = vmatmul.msk.bf16.vlgmr.msra.gmra.mxu0 %vm1034_vm3, %v1223_v42 }
 0x324   : > { %1683 = vmatpush.bf16.xpose.msra.mxu0 %v1674_v24 }
 0x325   : > { %v1247_v52 = vpop.f32.mrf.mxu2  ;;  %v5303_v54 = vpop.f32.mrf.mxu3 }
 0x326   : > { %v1564_v50 = vpack.c.bf16 %v5303_v54, %v5296_v10  ;;  %v1667_v58 = vpop.permute.xlu1 %1666 }
 0x327   : > { %v1690_v33 = vpop.permute.xlu2 %1689  ;;  %v5307_v35 = vpop.f32.mrf.mxu1 }
 0x329   : > { %v1738_v29 = vpop.permute.xlu0 %1737 }
 0x32a   : > { %v1743_v48 = vsel %vm638_vm1, %v1738_v29, 0 }
 0x32b   : > { %4255 = vmatmul.msk.bf16.vlgmr.msra.gmra.mxu1 %vm638_vm1, %v1598_v34  ;;  %1752 = vmatpush.bf16.xpose.msrb.mxu3 %v1743_v48 }
 0x32d   : > { %v1268_v53 = vpop.f32.mrf.mxu3 }
 0x32e   : > { %v1736_v18 = vpop.permute.xlu1 %1735 }
 0x32f   : > { %v1761_v4 = vpop.permute.xlu2 %1760  ;;  %v1289_v6 = vpop.f32.mrf.mxu1 }
 0x330   : > { %v5311_v43 = vpop.f32.mrf.mxu2  ;;  %v1766_v55 = vsel %vm638_vm1, %v1761_v4, 0 }
 0x331   : > { %v1565_v49 = vpack.c.bf16 %v5311_v43, %v5307_v35  ;;  %v1713_v44 = vpop.permute.xlu0 %1712 }
 0x332   : > { %4260 = vmatmul.msk.bf16.vlgmr.msrb.gmra.mxu2 %vm638_vm1, %v1713_v44  ;;  %4261 = vmatmul.msk.bf16.vlgmr.msrb.gmra.mxu3 %vm638_vm1, %v1736_v18 }
 0x333   : > { %4254 = vmatmul.msk.bf16.vlgmr.msrb.gmra.mxu0 %vm638_vm1, %v5277_v63 }
 0x334   : > { %1775 = vmatpush.bf16.xpose.msrb.mxu0 %v1766_v55 }
 0x335   : > { %v5320_v62 = vpop.f32.mrf.mxu3 }
 0x336   : > { %v1807_v15 = vpop.permute.xlu1 %1806 }
 0x337   : > { %v1812_v38 = vsel %vm638_vm1, %v1807_v15, 0  ;;  %v1830_v9 = vpop.permute.xlu2 %1829 }
 0x338   : > { %v1835_v36 = vsel %vm638_vm1, %v1830_v9, 0  ;;  %v1310_v46 = vpop.f32.mrf.mxu2  ;;  %1821 = vmatpush.bf16.xpose.msra.mxu2 %v1812_v38 }
 0x339   : > { %1844 = vmatpush.bf16.xpose.msra.mxu3 %v1835_v36  ;;  %v1784_v14 = vpop.permute.xlu0 %1783 }
 0x33a   : > { %v1789_v40 = vsel %vm638_vm1, %v1784_v14, 0 }
 0x33b   : > { %4259 = vmatmul.msk.bf16.vlgmr.msrb.gmra.mxu1 %vm638_vm1, %v1690_v33 }
 0x33c   : > { %1798 = vmatpush.bf16.xpose.msra.mxu1 %v1789_v40 }
 0x33d   : > { %v1331_v59 = vpop.f32.mrf.mxu3 }
 0x33e   : > { %v1782_v27 = vpop.permute.xlu1 %1781 }
 0x33f   : > { %v1805_v63 = vpop.permute.xlu2 %1804 }
 0x341   : > { %v1759_v31 = vpop.permute.xlu0 %1758 }
 0x342   : > { %4264 = vmatmul.msk.bf16.vlgmr.msra.gmra.mxu2 %vm638_vm1, %v1805_v63 }
 0x343   : > { %4258 = vmatmul.msk.bf16.vlgmr.msra.gmra.mxu0 %vm638_vm1, %v1667_v58 }
 0x346   : > { %v1853_v41 = vpop.permute.xlu1 %1852 }
 0x347   : > { %v1858_v51 = vsel %vm638_vm1, %v1853_v41, 0  ;;  %v1876_v61 = vpop.permute.xlu2 %1875 }
 0x348   : > { %v1881_v47 = vsel %vm638_vm1, %v1876_v61, 0  ;;  %v5330_v30 = vpop.f32.mrf.mxu2  ;;  %1867 = vmatpush.bf16.xpose.msra.mxu0 %v1858_v51 }
 0x349   : > { %1890 = vmatpush.bf16.xpose.msrb.mxu1 %v1881_v47  ;;  %v1828_v1 = vpop.permute.xlu0 %1827 }
 0x34a   : > { %4265 = vmatmul.msk.bf16.vlgmr.msra.gmra.mxu3 %vm638_vm1, %v1828_v1 }
 0x34b   : > { %4263 = vmatmul.msk.bf16.vlgmr.msra.gmra.mxu1 %vm638_vm1, %v1782_v27 }
 0x34e   : > { %v1922_v2 = vpop.permute.xlu1 %1921 }
 0x34f   : > { %v1927_v26 = vsel %vm638_vm1, %v1922_v2, 0  ;;  %v1851_v3 = vpop.permute.xlu2 %1850 }
 0x350   : > { %v1373_v23 = vpop.f32.mrf.mxu2  ;;  %1936 = vmatpush.bf16.xpose.msrb.mxu3 %v1927_v26 }
 0x351   : > { %v1899_v56 = vpop.permute.xlu0 %1898 }
 0x352   : > { %v1904_v19 = vsel %vm638_vm1, %v1899_v56, 0 }
 0x353   : > { %4262 = vmatmul.msk.bf16.vlgmr.msrb.gmra.mxu0 %vm638_vm1, %v1759_v31  ;;  %1913 = vmatpush.bf16.xpose.msrb.mxu2 %v1904_v19 }
 0x355   : > { %v5337_v16 = vpop.f32.mrf.mxu3 }
 0x356   : > { %v1567_v0 = vpack.c.bf16 %v5337_v16, %v5330_v30  ;;  %v1897_v8 = vpop.permute.xlu1 %1896 }
 0x357   : > { %v1920_v60 = vpop.permute.xlu2 %1919 }
 0x359   : > { %v1874_v20 = vpop.permute.xlu0 %1873 }
 0x35a   : > { %4268 = vmatmul.msk.bf16.vlgmr.msrb.gmra.mxu2 %vm638_vm1, %v1897_v8  ;;  %4269 = vmatmul.msk.bf16.vlgmr.msrb.gmra.mxu3 %vm638_vm1, %v1920_v60 }
 0x35b   : > { %4267 = vmatmul.msk.bf16.vlgmr.msrb.gmra.mxu1 %vm638_vm1, %v1874_v20 }
 0x35d   : > { %v1394_v34 = vpop.f32.mrf.mxu3 }
 0x35e   : > { %v2172_v21 = vpop.permute.xlu1 %2171 }
 0x35f   : > { %v2177_v39 = vsel %vm1232_vm2, %v2172_v21, 0  ;;  %v2151_v13 = vpop.permute.xlu2 %2150 }
 0x360   : > { %v2156_v5 = vsel %vm1232_vm2, %v2151_v13, 0  ;;  %2186 = vmatpush.bf16.msra.mxu1 %v2177_v39 }
 0x361   : > { %2165 = vmatpush.bf16.msrb.mxu0 %v2156_v5  ;;  %v2214_v32 = vpop.permute.xlu0 %2213 }
 0x362   : > { %v2219_v11 = vsel %vm1232_vm2, %v2214_v32, 0 }
 0x363   : > { %4266 = vmatmul.msk.bf16.vlgmr.msra.gmra.mxu0 %vm638_vm1, %v1851_v3  ;;  %2228 = vmatpush.bf16.msra.mxu3 %v2219_v11 }
 0x366   : > { %v2193_v42 = vpop.permute.xlu1 %2192 }
 0x367   : > { %v2198_v25 = vsel %vm1232_vm2, %v2193_v42, 0  ;;  %v2256_v24 = vpop.permute.xlu2 %2255 }
 0x368   : > { %v2261_v52 = vsel %vm1232_vm2, %v2256_v24, 0  ;;  %2207 = vmatpush.bf16.msra.mxu2 %v2198_v25 }
 0x369   : > { %2270 = vmatpush.bf16.msrb.mxu1 %v2261_v52  ;;  %v2277_v58 = vpop.permute.xlu0 %2276 }
 0x36a   : > { %v2282_v33 = vsel %vm1232_vm2, %v2277_v58, 0 }
 0x36c   : > { %2291 = vmatpush.bf16.msrb.mxu2 %v2282_v33  ;;  %v5351_v29 = vpop.f32.mrf.mxu1 }
 0x36d   : > { %v1566_v48 = vpack.c.bf16 %v5351_v29, %v5320_v62  ;;  %v5355_v53 = vpop.f32.mrf.mxu2 }
 0x36e   : > { %v2235_v18 = vpop.permute.xlu1 %2234 }
 0x36f   : > { %v2240_v4 = vsel %vm1232_vm2, %v2235_v18, 0 }
 0x370   : > { %2249 = vmatpush.bf16.msra.mxu0 %v2240_v4 }
 0x371   : > { %v2298_v6 = vpop.permute.xlu0 %2297 }
 0x372   : > { %v2303_v44 = vsel %vm1232_vm2, %v2298_v6, 0 }
 0x373   : > { %2312 = vmatpush.bf16.msrb.mxu3 %v2303_v44 }
 0x374   : > { %v1352_v55 = vpop.f32.mrf.mxu1 }
 0x375   : > { %v1457_v15 = vpop.f32.mrf.mxu2  ;;  %v5359_v38 = vpop.f32.mrf.mxu3 }
 0x376   : > { %v1569_v9 = vpack.c.bf16 %v5359_v38, %v5355_v53 }
 0x37c   : > { %v5363_v36 = vpop.f32.mrf.mxu1 }
 0x37d   : > { %v1478_v46 = vpop.f32.mrf.mxu3 }
 0x384   : > { %v1436_v14 = vpop.f32.mrf.mxu1 }
 0x38d   : > { %v5365_v40 = vpop.f32.mrf.mxu2 }
 0x390   : > { %v5367_v59 = vpop.f32.mrf.mxu0 }
 0x391   : > { %v1568_v27 = vpack.c.bf16 %v5363_v36, %v5367_v59 }
 0x395   : > { %v1541_v63 = vpop.f32.mrf.mxu2  ;;  %v5371_v31 = vpop.f32.mrf.mxu3 }
 0x396   : > { %v1571_v41 = vpack.c.bf16 %v5371_v31, %v5365_v40 }
 0x398   : > { %v1415_v51 = vpop.f32.mrf.mxu0  ;;  %v5375_v61 = vpop.f32.mrf.mxu1 }
 0x39d   : > { %v1562_v47 = vpop.f32.mrf.mxu3  ;;  %v1639_v1 = vpop.f32.mrf.mxu2 }
 0x39e   : > { %v5401_v14 = vmul.f32 0.25, %v1639_v1 }
 0x3a0   : > { %v5377_v2 = vpop.f32.mrf.mxu0  ;;  %v1520_v26 = vpop.f32.mrf.mxu1  ;;  %v1964_v47 = vsel %vm1034_vm3, %v5401_v14, -inf }
 0x3a1   : > { %v1570_v3 = vpack.c.bf16 %v5375_v61, %v5377_v2  ;;  %v5629_v2 = vld [vmem:[%s6885_s4] ss:$0 sm:$0xff] }
 0x3a5   : > { %v1641_v23 = vpop.f32.mrf.mxu2  ;;  %v1662_v56 = vpop.f32.mrf.mxu3 }
 0x3a6   : > { %v5389_v42 = vmul.f32 0.25, %v1662_v56 }
 0x3a8   : > { %v1499_v19 = vpop.f32.mrf.mxu0  ;;  %v1616_v8 = vpop.f32.mrf.mxu1  ;;  %v1967_v58 = vsel %vm1034_vm3, %v5389_v42, -inf }
 0x3a9   : > { %v5381_v60 = vmul.f32 0.25, %v1616_v8 }
 0x3ab   : > { %v1961_v20 = vsel %vm1034_vm3, %v5381_v60, -inf }
 0x3ac   : > { %1962 = vmax.xlane.f32.xlu1 %v1961_v20 }
 0x3ad   : > { %v1664_v34 = vpop.f32.mrf.mxu3 }
 0x3b0   : > { %v1593_v21 = vpop.f32.mrf.mxu0  ;;  %v1618_v39 = vpop.f32.mrf.mxu1 }
 0x3b1   : > { %v5385_v13 = vmul.f32 0.25, %v1593_v21 }
 0x3b3   : > { %v1958_v5 = vsel %vm1034_vm3, %v5385_v13, -inf }
 0x3b4   : > { %1959 = vmax.xlane.f32.xlu0 %v1958_v5 }
 0x3b5   : > { %v1731_v32 = vpop.f32.mrf.mxu2  ;;  %v1754_v11 = vpop.f32.mrf.mxu3 }
 0x3b6   : > { %v5405_v56 = vmul.f32 0.25, %v1754_v11  ;;  %v5415_v39 = vmul.f32 0.25, %v1731_v32 }
 0x3b8   : > { %v1595_v25 = vpop.f32.mrf.mxu0  ;;  %v1708_v24 = vpop.f32.mrf.mxu1  ;;  %v1979_v34 = vsel %vm1034_vm3, %v5405_v56, -inf }
 0x3b9   : > { %v5391_v52 = vmul.f32 0.25, %v1708_v24  ;;  %v1976_v25 = vsel %vm1034_vm3, %v5415_v39, -inf }
 0x3bb   : > { %v1973_v33 = vsel %vm1034_vm3, %v5391_v52, -inf }
 0x3bc   : > { %1968 = vmax.xlane.f32.xlu0 %v1967_v58  ;;  %1974 = vmax.xlane.f32.xlu1 %v1973_v33 }
 0x3bd   : > { %v1733_v18 = vpop.f32.mrf.mxu2  ;;  %v1756_v4 = vpop.f32.mrf.mxu3 }
 0x3c0   : > { %v1685_v6 = vpop.f32.mrf.mxu0  ;;  %v1710_v44 = vpop.f32.mrf.mxu1 }
 0x3c1   : > { %v5397_v55 = vmul.f32 0.25, %v1685_v6 }
 0x3c3   : > { %v1970_v15 = vsel %vm1034_vm3, %v5397_v55, -inf }
 0x3c4   : > { %1971 = vmax.xlane.f32.xlu2 %v1970_v15 }
 0x3c5   : > { %v1823_v46 = vpop.f32.mrf.mxu2 }
 0x3c8   : > { %v1687_v63 = vpop.f32.mrf.mxu0  ;;  %v1800_v51 = vpop.f32.mrf.mxu1 }
 0x3cc   : > { %1965 = vmax.xlane.f32.xlu2 %v1964_v47 }
 0x3cd   : > { %v1825_v26 = vpop.f32.mrf.mxu2  ;;  %v1846_v23 = vpop.f32.mrf.mxu3 }
 0x3ce   : > { %v5419_v33 = vmul.f32 0.25, %v1846_v23  ;;  %v5433_v23 = vmul.f32 0.25, %v1823_v46 }
 0x3d0   : > { %v1777_v19 = vpop.f32.mrf.mxu0  ;;  %v1802_v8 = vpop.f32.mrf.mxu1  ;;  %v1991_v6 = vsel %vm1034_vm3, %v5419_v33, -inf }
 0x3d1   : > { %v5407_v20 = vmul.f32 0.25, %v1777_v19  ;;  %v1988_v19 = vsel %vm1034_vm3, %v5433_v23, -inf }
 0x3d3   : > { %v1982_v1 = vsel %vm1034_vm3, %v5407_v20, -inf }
 0x3d4   : > { %1980 = vmax.xlane.f32.xlu2 %v1979_v34  ;;  %1983 = vmax.xlane.f32.xlu0 %v1982_v1 }
 0x3d5   : > { %2339 = vrot.lane.b32.xlu1 %v4853_v12, %s4642_s21  ;;  %v1848_v21 = vpop.f32.mrf.mxu3 }
 0x3d8   : > { %v1779_v5 = vpop.f32.mrf.mxu0  ;;  %v1892_v11 = vpop.f32.mrf.mxu1 }
 0x3d9   : > { %v5445_v21 = vmul.f32 0.25, %v1892_v11 }
 0x3db   : > { %v1997_v46 = vsel %vm1034_vm3, %v5445_v21, -inf }
 0x3dc   : > { %1977 = vmax.xlane.f32.xlu0 %v1976_v25 }
 0x3dd   : > { %v1915_v24 = vpop.f32.mrf.mxu2  ;;  %v1938_v58 = vpop.f32.mrf.mxu3 }
 0x3de   : > { %v5423_v32 = vmul.f32 0.25, %v1915_v24  ;;  %v5437_v8 = vmul.f32 0.25, %v1938_v58 }
 0x3e0   : > { %v1869_v18 = vpop.f32.mrf.mxu0  ;;  %v1894_v4 = vpop.f32.mrf.mxu1  ;;  %v2000_v63 = vsel %vm1034_vm3, %v5423_v32, -inf  ;;  %v2003_v34 = vsel %vm1034_vm3, %v5437_v8, -inf }
 0x3e1   : > { %v5429_v47 = vmul.f32 0.25, %v1869_v18 }
 0x3e3   : > { %v1994_v26 = vsel %vm1034_vm3, %v5429_v47, -inf }
 0x3e4   : > { %1992 = vmax.xlane.f32.xlu0 %v1991_v6 }
 0x3e5   : > { %v1917_v12 = vpop.f32.mrf.mxu2  ;;  %v1940_v44 = vpop.f32.mrf.mxu3 }
 0x3e8   : > { %v1871_v15 = vpop.f32.mrf.mxu0 }
 0x3ec   : > { %2318 = vrot.lane.b32.xlu2 %v4845_v7, %s4642_s21  ;;  %2001 = vmax.xlane.f32.xlu0 %v2000_v63  ;;  %v5441_v7 = vmul.f32 0.25, %v1800_v51 }
 0x3ee   : > { %v1985_v1 = vsel %vm1034_vm3, %v5441_v7, -inf }
 0x3ff   : > { %1995 = vmax.xlane.f32.xlu1 %v1994_v26 }
 0x407   : > { %1989 = vmax.xlane.f32.xlu1 %v1988_v19 }
 0x40f   : > { %2004 = vmax.xlane.f32.xlu1 %v2003_v34 }
 0x415   : > { %1986 = vmax.xlane.f32.xlu2 %v1985_v1 }
 0x41d   : > { %1998 = vmax.xlane.f32.xlu2 %v1997_v46 }
 0x41f   : > { %v1963_v5 = vpop.xlane.xlu1 %1962 }
 0x420   : > { %v2007_v25 = vsub.f32 %v5381_v60, %v1963_v5 }
 0x422   : > { %v2024_v24 = vmul.f32 1.442695, %v2007_v25 }
 0x424   : > { %4452 = vpow2.f32 %v2024_v24 }
 0x427   : > { %v1960_v58 = vpop.xlane.xlu0 %1959 }
 0x428   : > { %v2006_v18 = vsub.f32 %v5385_v13, %v1960_v58 }
 0x42a   : > { %v5451_v51 = vpop.eup %4452  ;;  %v2022_v4 = vmul.f32 1.442695, %v2006_v18 }
 0x42b   : > { %v2057_v6 = vsel %vm1034_vm3, %v5451_v51, 0.0 }
 0x42c   : > { %4454 = vpow2.f32 %v2022_v4  ;;  %2058 = vadd.xlane.f32.xlu0 %v2057_v6 }
 0x42f   : > { %v1975_v60 = vpop.xlane.xlu1 %1974  ;;  %v1969_v19 = vpop.xlane.xlu0 %1968 }
 0x430   : > { %v2011_v13 = vsub.f32 %v5391_v52, %v1975_v60  ;;  %v2009_v5 = vsub.f32 %v5389_v42, %v1969_v19 }
 0x432   : > { %v5455_v11 = vpop.eup %4454  ;;  %v2032_v26 = vmul.f32 1.442695, %v2011_v13 }
 0x433   : > { %v2054_v12 = vsel %vm1034_vm3, %v5455_v11, 0.0 }
 0x434   : > { %2055 = vadd.xlane.f32.xlu1 %v2054_v12 }
 0x437   : > { %v1972_v44 = vpop.xlane.xlu2 %1971 }
 0x438   : > { %v2010_v15 = vsub.f32 %v5397_v55, %v1972_v44  ;;  %v2028_v55 = vmul.f32 1.442695, %v2009_v5 }
 0x43a   : > { %v2030_v63 = vmul.f32 1.442695, %v2010_v15 }
 0x43c   : > { %4456 = vpow2.f32 %v2030_v63 }
 0x43d   : > { %4458 = vpow2.f32 %v2032_v26 }
 0x43f   : > { %v1966_v34 = vpop.xlane.xlu2 %1965 }
 0x440   : > { %v2008_v1 = vsub.f32 %v5401_v14, %v1966_v34 }
 0x442   : > { %v5462_v46 = vpop.eup %4456  ;;  %v2026_v25 = vmul.f32 1.442695, %v2008_v1 }
 0x443   : > { %v2066_v24 = vsel %vm1034_vm3, %v5462_v46, 0.0  ;;  %v5467_v52 = vpop.eup %4458 }
 0x444   : > { %4460 = vpow2.f32 %v2026_v25  ;;  %2067 = vadd.xlane.f32.xlu2 %v2066_v24  ;;  %v2069_v42 = vsel %vm1034_vm3, %v5467_v52, 0.0 }
 0x445   : > { %4462 = vpow2.f32 %v2028_v55 }
 0x447   : > { %v1984_v58 = vpop.xlane.xlu0 %1983  ;;  %v1981_v60 = vpop.xlane.xlu2 %1980 }
 0x448   : > { %v2014_v18 = vsub.f32 %v5407_v20, %v1984_v58  ;;  %v2013_v13 = vsub.f32 %v5405_v56, %v1981_v60  ;;  %v2340_v5 = vpop.permute.xlu1 %2339 }
 0x44a   : > { %v5470_v4 = vpop.eup %4460  ;;  %v2038_v14 = vmul.f32 1.442695, %v2014_v18 }
 0x44b   : > { %v2060_v6 = vsel %vm1034_vm3, %v5470_v4, 0.0  ;;  %v5478_v12 = vpop.eup %4462 }
 0x44c   : > { %2061 = vadd.xlane.f32.xlu0 %v2060_v6  ;;  %2070 = vadd.xlane.f32.xlu2 %v2069_v42  ;;  %4464 = vpow2.f32 %v2038_v14  ;;  %v2063_v26 = vsel %vm1034_vm3, %v5478_v12, 0.0 }
 0x44d   : > { %2360 = vrot.lane.b32.xlu1 %v4861_v17, %s4642_s21  ;;  %v2036_v17 = vmul.f32 1.442695, %v2013_v13 }
 0x44f   : > { %v1978_v20 = vpop.xlane.xlu0 %1977  ;;  %v2319_v18 = vpop.permute.xlu2 %2318 }
 0x450   : > { %v2012_v44 = vsub.f32 %v5415_v39, %v1978_v20 }
 0x452   : > { %v5481_v15 = vpop.eup %4464  ;;  %v2034_v63 = vmul.f32 1.442695, %v2012_v44 }
 0x453   : > { %v2078_v19 = vsel %vm1034_vm3, %v5481_v15, 0.0 }
 0x454   : > { %2064 = vadd.xlane.f32.xlu0 %v2063_v26  ;;  %4466 = vpow2.f32 %v2034_v63  ;;  %2079 = vadd.xlane.f32.xlu2 %v2078_v19 }
 0x455   : > { %4468 = vpow2.f32 %v2036_v17 }
 0x457   : > { %v1993_v13 = vpop.xlane.xlu0 %1992 }
 0x45a   : > { %v5488_v34 = vpop.eup %4466 }
 0x45b   : > { %v2072_v39 = vsel %vm1034_vm3, %v5488_v34, 0.0  ;;  %v5492_v1 = vpop.eup %4468 }
 0x45c   : > { %2073 = vadd.xlane.f32.xlu0 %v2072_v39  ;;  %v2075_v56 = vsel %vm1034_vm3, %v5492_v1, 0.0 }
 0x45f   : > { %v2002_v39 = vpop.xlane.xlu0 %2001 }
 0x464   : > { %2076 = vadd.xlane.f32.xlu0 %v2075_v56 }
 0x472   : > { %v1996_v25 = vpop.xlane.xlu1 %1995 }
 0x473   : > { %v2018_v20 = vsub.f32 %v5429_v47, %v1996_v25 }
 0x478   : > { %2381 = vrot.lane.b32.xlu0 %v4869_v22, %s4642_s21  ;;  %v2046_v22 = vmul.f32 1.442695, %v2018_v20 }
 0x47a   : > { %v1990_v24 = vpop.xlane.xlu1 %1989 }
 0x47b   : > { %v2016_v55 = vsub.f32 %v5433_v23, %v1990_v24  ;;  %v2017_v23 = vsub.f32 %v5419_v33, %v1993_v13 }
 0x47d   : > { %v2042_v58 = vmul.f32 1.442695, %v2016_v55  ;;  %v2044_v19 = vmul.f32 1.442695, %v2017_v23 }
 0x47f   : > { %4470 = vpow2.f32 %v2042_v58 }
 0x482   : > { %v2005_v33 = vpop.xlane.xlu1 %2004 }
 0x483   : > { %v2021_v58 = vsub.f32 %v5437_v8, %v2005_v33  ;;  %v2345_v8 = vsel %vm1232_vm2, %v2340_v5, 0  ;;  %v2020_v5 = vsub.f32 %v5423_v32, %v2002_v39 }
 0x485   : > { %v5499_v14 = vpop.eup %4470 }
 0x486   : > { %v2084_v6 = vsel %vm1034_vm3, %v5499_v14, 0.0 }
 0x487   : > { %2085 = vadd.xlane.f32.xlu2 %v2084_v6 }
 0x488   : > { %v1987_v42 = vpop.xlane.xlu2 %1986 }
 0x489   : > { %v2015_v60 = vsub.f32 %v5441_v7, %v1987_v42 }
 0x48b   : > { %v2040_v44 = vmul.f32 1.442695, %v2015_v60 }
 0x48d   : > { %4472 = vpow2.f32 %v2040_v44 }
 0x48e   : > { %4474 = vpow2.f32 %v2046_v22 }
 0x48f   : > { %4476 = vpow2.f32 %v2044_v19 }
 0x490   : > { %v1999_v17 = vpop.xlane.xlu2 %1998 }
 0x491   : > { %v2019_v47 = vsub.f32 %v5445_v21, %v1999_v17  ;;  %v2052_v21 = vmul.f32 1.442695, %v2021_v58  ;;  %v2324_v17 = vsel %vm1232_vm2, %v2319_v18, 0 }
 0x493   : > { %v5506_v63 = vpop.eup %4472  ;;  %v2048_v25 = vmul.f32 1.442695, %v2019_v47 }
 0x494   : > { %v2081_v26 = vsel %vm1034_vm3, %v5506_v63, 0.0  ;;  %v5510_v56 = vpop.eup %4474 }
 0x495   : > { %2082 = vadd.xlane.f32.xlu1 %v2081_v26  ;;  %v2090_v7 = vsel %vm1034_vm3, %v5510_v56, 0.0  ;;  %v5515_v24 = vpop.eup %4476 }
 0x496   : > { %v2087_v6 = vsel %vm1034_vm3, %v5515_v24, 0.0 }
 0x49d   : > { %2091 = vadd.xlane.f32.xlu1 %v2090_v7  ;;  %v2050_v7 = vmul.f32 1.442695, %v2020_v5 }
 0x49f   : > { %2402 = vrot.lane.b32.xlu2 %v4877_v28, %s4642_s21  ;;  %v2059_v55 = vpop.xlane.xlu0 %2058 }
 0x4a0   : > { %4478 = vrcp.f32 %v2059_v55 }
 0x4a1   : > { %4480 = vpow2.f32 %v2048_v25 }
 0x4a2   : > { %2088 = vadd.xlane.f32.xlu0 %v2087_v6 }
 0x4a6   : > { %v4479_v42 = vpop.eup %4478 }
 0x4a7   : > { %v5522_v60 = vpop.eup %4480  ;;  %v2119_v20 = vmul.f32 %v4479_v42, %v5451_v51  ;;  %v2056_v44 = vpop.xlane.xlu1 %2055 }
 0x4a8   : > { %4482 = vrcp.f32 %v2056_v44  ;;  %v2093_v28 = vsel %vm1034_vm3, %v5522_v60, 0.0 }
 0x4a9   : > { %4484 = vpow2.f32 %v2052_v21  ;;  %v2135_v13 = vpack.c.bf16 %v2119_v20, %v2119_v20 }
 0x4aa   : > { %2094 = vadd.xlane.f32.xlu0 %v2093_v28 }
 0x4ab   : > { %4271 = vmatmul.msk.bf16.vlgmr.msra.gmra.mxu1 %vm1034_vm3, %v2135_v13 }
 0x4ac   : > { %2354 = vmatpush.bf16.msra.mxu1 %v2345_v8 }
 0x4ae   : > { %v4483_v22 = vpop.eup %4482 }
 0x4af   : > { %v5529_v23 = vpop.eup %4484  ;;  %v2118_v26 = vmul.f32 %v4483_v22, %v5455_v11 }
 0x4b0   : > { %v2099_v51 = vsel %vm1034_vm3, %v5529_v23, 0.0 }
 0x4b1   : > { %v2134_v19 = vpack.c.bf16 %v2118_v26, %v2118_v26 }
 0x4b2   : > { %2100 = vadd.xlane.f32.xlu0 %v2099_v51 }
 0x4b3   : > { %4270 = vmatmul.msk.bf16.vlgmr.msrb.gmra.mxu0 %vm1034_vm3, %v2134_v19 }
 0x4b4   : > { %2333 = vmatpush.bf16.msrb.mxu0 %v2324_v17 }
 0x4b6   : > { %2423 = vrot.lane.b32.xlu1 %v4885_v37, %s4642_s21 }
 0x4b7   : > { %v2068_v47 = vpop.xlane.xlu2 %2067 }
 0x4b8   : > { %4486 = vrcp.f32 %v2068_v47 }
 0x4b9   : > { %4488 = vpow2.f32 %v2050_v7 }
 0x4be   : > { %v4487_v25 = vpop.eup %4486  ;;  %2465 = vrot.lane.b32.xlu1 %v4904_v57, %s4642_s21 }
 0x4bf   : > { %v2122_v11 = vmul.f32 %v4487_v25, %v5462_v46  ;;  %v2071_v18 = vpop.xlane.xlu2 %2070  ;;  %v2062_v33 = vpop.xlane.xlu0 %2061 }
 0x4c0   : > { %4490 = vrcp.f32 %v2071_v18  ;;  %v5543_v32 = vpop.eup %4488  ;;  %v2361_v20 = vpop.permute.xlu1 %2360 }
 0x4c1   : > { %v2138_v55 = vpack.c.bf16 %v2122_v11, %v2122_v11  ;;  %4492 = vrcp.f32 %v2062_v33  ;;  %v2096_v57 = vsel %vm1034_vm3, %v5543_v32, 0.0 }
 0x4c3   : > { %4274 = vmatmul.msk.bf16.vlgmr.msra.gmra.mxu0 %vm1034_vm3, %v2138_v55 }
 0x4c6   : > { %v4491_v37 = vpop.eup %4490  ;;  %2444 = vrot.lane.b32.xlu0 %v4893_v45, %s4642_s21 }
 0x4c7   : > { %v4493_v39 = vpop.eup %4492  ;;  %v2123_v58 = vmul.f32 %v4491_v37, %v5467_v52  ;;  %v2080_v6 = vpop.xlane.xlu2 %2079  ;;  %v2366_v52 = vsel %vm1232_vm2, %v2361_v20, 0 }
 0x4c8   : > { %v2120_v46 = vmul.f32 %v4493_v39, %v5470_v4  ;;  %v2065_v21 = vpop.xlane.xlu0 %2064  ;;  %2097 = vadd.xlane.f32.xlu2 %v2096_v57  ;;  %4494 = vrcp.f32 %v2080_v6 }
 0x4c9   : > { %v2139_v42 = vpack.c.bf16 %v2123_v58, %v2123_v58  ;;  %4496 = vrcp.f32 %v2065_v21 }
 0x4ca   : > { %v2136_v44 = vpack.c.bf16 %v2120_v46, %v2120_v46  ;;  %v4357_v46 = vld [vmem:[%s6884_s3 + $0x8] sm:$0xff] }
 0x4cb   : > { %4275 = vmatmul.msk.bf16.vlgmr.msrb.gmra.mxu1 %vm1034_vm3, %v2139_v42 }
 0x4cc   : > { %4272 = vmatmul.msk.bf16.vlgmr.msra.gmra.mxu2 %vm1034_vm3, %v2136_v44 }
 0x4cd   : > { %2375 = vmatpush.bf16.msra.mxu2 %v2366_v52 }
 0x4ce   : > { %v4495_v45 = vpop.eup %4494 }
 0x4cf   : > { %v4497_v13 = vpop.eup %4496  ;;  %v2126_v28 = vmul.f32 %v4495_v45, %v5481_v15 }
 0x4d0   : > { %v2074_v4 = vpop.xlane.xlu0 %2073  ;;  %v2121_v8 = vmul.f32 %v4497_v13, %v5478_v12 }
 0x4d1   : > { %4498 = vrcp.f32 %v2074_v4  ;;  %v2142_v22 = vpack.c.bf16 %v2126_v28, %v2126_v28 }
 0x4d2   : > { %v2137_v26 = vpack.c.bf16 %v2121_v8, %v2121_v8 }
 0x4d3   : > { %4278 = vmatmul.msk.bf16.vlgmr.msrb.gmra.mxu0 %vm1034_vm3, %v2142_v22 }
 0x4d4   : > { %4273 = vmatmul.msk.bf16.vlgmr.msra.gmra.mxu3 %vm1034_vm3, %v2137_v26 }
 0x4d7   : > { %v4499_v19 = vpop.eup %4498 }
 0x4d8   : > { %v2124_v51 = vmul.f32 %v4499_v19, %v5488_v34  ;;  %v2077_v17 = vpop.xlane.xlu0 %2076 }
 0x4d9   : > { %4500 = vrcp.f32 %v2077_v17 }
 0x4da   : > { %v2140_v5 = vpack.c.bf16 %v2124_v51, %v2124_v51 }
 0x4dc   : > { %4276 = vmatmul.msk.bf16.vlgmr.msrb.gmra.mxu2 %vm1034_vm3, %v2140_v5 }
 0x4df   : > { %v4501_v47 = vpop.eup %4500 }
 0x4e0   : > { %v2125_v15 = vmul.f32 %v4501_v47, %v5492_v1 }
 0x4e2   : > { %v2141_v7 = vpack.c.bf16 %v2125_v15, %v2125_v15 }
 0x4e4   : > { %4277 = vmatmul.msk.bf16.vlgmr.msrb.gmra.mxu3 %vm1034_vm3, %v2141_v7 }
 0x4ea   : > { %v2382_v12 = vpop.permute.xlu0 %2381 }
 0x4eb   : > { %v2387_v25 = vsel %vm1232_vm2, %v2382_v12, 0 }
 0x4ec   : > { %2396 = vmatpush.bf16.msra.mxu3 %v2387_v25 }
 0x4fa   : > { %v2086_v11 = vpop.xlane.xlu2 %2085 }
 0x4fb   : > { %4502 = vrcp.f32 %v2086_v11 }
 0x501   : > { %v4503_v18 = vpop.eup %4502 }
 0x502   : > { %v2128_v34 = vmul.f32 %v4503_v18, %v5499_v14  ;;  %v2403_v33 = vpop.permute.xlu2 %2402 }
 0x503   : > { %v2408_v55 = vsel %vm1232_vm2, %v2403_v33, 0 }
 0x504   : > { %v2144_v37 = vpack.c.bf16 %v2128_v34, %v2128_v34  ;;  %2417 = vmatpush.bf16.msra.mxu0 %v2408_v55 }
 0x506   : > { %4280 = vmatmul.msk.bf16.vlgmr.msra.gmra.mxu2 %vm1034_vm3, %v2144_v37 }
 0x508   : > { %v2083_v1 = vpop.xlane.xlu1 %2082  ;;  %2534 = vmatpush.bf16.msrb.mxu0 %v4357_v46 }
 0x509   : > { %4504 = vrcp.f32 %v2083_v1 }
 0x50f   : > { %v4505_v39 = vpop.eup %4504 }
 0x510   : > { %v2127_v58 = vmul.f32 %v4505_v39, %v5506_v63  ;;  %v2092_v57 = vpop.xlane.xlu1 %2091 }
 0x511   : > { %4506 = vrcp.f32 %v2092_v57 }
 0x512   : > { %v2143_v6 = vpack.c.bf16 %v2127_v58, %v2127_v58 }
 0x514   : > { %4279 = vmatmul.msk.bf16.vlgmr.msra.gmra.mxu1 %vm1034_vm3, %v2143_v6 }
 0x515   : > { %v2089_v14 = vpop.xlane.xlu0 %2088 }
 0x516   : > { %4508 = vrcp.f32 %v2089_v14 }
 0x517   : > { %v4507_v21 = vpop.eup %4506 }
 0x518   : > { %v2130_v42 = vmul.f32 %v4507_v21, %v5510_v56  ;;  %v4356_v56 = vld [vmem:[%s6884_s3] sm:$0xff] }
 0x51a   : > { %v2146_v20 = vpack.c.bf16 %v2130_v42, %v2130_v42 }
 0x51c   : > { %4282 = vmatmul.msk.bf16.vlgmr.msra.gmra.mxu0 %vm1034_vm3, %v2146_v20  ;;  %v4509_v44 = vpop.eup %4508 }
 0x51d   : > { %v2129_v63 = vmul.f32 %v4509_v44, %v5515_v24  ;;  %v2095_v52 = vpop.xlane.xlu0 %2094 }
 0x51e   : > { %4510 = vrcp.f32 %v2095_v52  ;;  %v4614_v52 = vld [vmem:[%s4746_s28] sm:$0xff] }
 0x51f   : > { %v2145_v45 = vpack.c.bf16 %v2129_v63, %v2129_v63 }
 0x521   : > { %4281 = vmatmul.msk.bf16.vlgmr.msra.gmra.mxu3 %vm1034_vm3, %v2145_v45 }
 0x524   : > { %v4511_v13 = vpop.eup %4510 }
 0x525   : > { %v2101_v28 = vpop.xlane.xlu0 %2100  ;;  %v2131_v4 = vmul.f32 %v4511_v13, %v5522_v60 }
 0x526   : > { %4512 = vrcp.f32 %v2101_v28 }
 0x527   : > { %v2147_v24 = vpack.c.bf16 %v2131_v4, %v2131_v4 }
 0x528   : > { %v2424_v8 = vpop.permute.xlu1 %2423  ;;  %v2188_v22 = vpop.f32.mrf.mxu1 }
 0x529   : > { %v2429_v26 = vsel %vm1232_vm2, %v2424_v8, 0 }
 0x52a   : > { %2438 = vmatpush.bf16.msrb.mxu1 %v2429_v26 }
 0x52c   : > { %v4513_v19 = vpop.eup %4512 }
 0x52d   : > { %4283 = vmatmul.msk.bf16.vlgmr.msrb.gmra.mxu1 %vm1034_vm3, %v2147_v24  ;;  %v2133_v51 = vmul.f32 %v4513_v19, %v5529_v23 }
 0x52e   : > { %2613 = vmatpush.bf16.msra.mxu1 %v4356_v56  ;;  %v4615_v56 = vld [vmem:[%s4746_s28 + $0x8] sm:$0xff] }
 0x52f   : > { %v2149_v7 = vpack.c.bf16 %v2133_v51, %v2133_v51 }
 0x530   : > { %v2167_v17 = vpop.f32.mrf.mxu0  ;;  %v2466_v5 = vpop.permute.xlu1 %2465 }
 0x531   : > { %v2486_v60 = vpack.c.bf16 %v2188_v22, %v2167_v17  ;;  %v2471_v47 = vsel %vm1232_vm2, %v2466_v5, 0  ;;  %v2190_v15 = vpop.f32.mrf.mxu1 }
 0x532   : > { %2480 = vmatpush.bf16.msrb.mxu3 %v2471_v47  ;;  %v4616_v15 = vld [vmem:[%s4746_s28 + $0x10] sm:$0xff] }
 0x533   : > { %4292 = vmatmul.msk.bf16.vlgmr.msrb.gmra.mxu0 %vm638_vm1, %v2486_v60 }
 0x535   : > { %4285 = vmatmul.msk.bf16.vlgmr.msrb.gmra.mxu3 %vm1034_vm3, %v2149_v7 }
 0x538   : > { %v2169_v12 = vpop.f32.mrf.mxu0  ;;  %v2445_v25 = vpop.permute.xlu0 %2444 }
 0x539   : > { %v2450_v11 = vsel %vm1232_vm2, %v2445_v25, 0 }
 0x53a   : > { %2459 = vmatpush.bf16.msrb.mxu2 %v2450_v11 }
 0x53b   : > { %v2098_v18 = vpop.xlane.xlu2 %2097 }
 0x53c   : > { %4514 = vrcp.f32 %v2098_v18 }
 0x53d   : > { %4304 = vmatmul.msk.bf16.vlgmr.msra.gmra.mxu1 %vm638_vm1, %v1564_v50 }
 0x540   : > { %v2251_v23 = vpop.f32.mrf.mxu0 }
 0x542   : > { %v4515_v34 = vpop.eup %4514 }
 0x543   : > { %v2132_v33 = vmul.f32 %v4515_v34, %v5543_v32  ;;  %v4617_v34 = vld [vmem:[%s4746_s28 + $0x18] sm:$0xff] }
 0x545   : > { %v2148_v55 = vpack.c.bf16 %v2132_v33, %v2132_v33 }
 0x547   : > { %4284 = vmatmul.msk.bf16.vlgmr.msrb.gmra.mxu2 %vm1034_vm3, %v2148_v55 }
 0x548   : > { %v2253_v37 = vpop.f32.mrf.mxu0  ;;  %v2272_v1 = vpop.f32.mrf.mxu1 }
 0x549   : > { %v2488_v43 = vpack.c.bf16 %v2272_v1, %v2251_v23 }
 0x54d   : > { %4305 = vmatmul.msk.bf16.gmra.mxu1 %vm638_vm1, %v1565_v49 }
 0x54f   : > { %v2209_v39 = vpop.f32.mrf.mxu2 }
 0x550   : > { %v2274_v58 = vpop.f32.mrf.mxu1  ;;  %v2335_v57 = vpop.f32.mrf.mxu0 }
 0x557   : > { %v2211_v10 = vpop.f32.mrf.mxu2  ;;  %v2230_v54 = vpop.f32.mrf.mxu3 }
 0x558   : > { %v2487_v50 = vpack.c.bf16 %v2230_v54, %v2209_v39  ;;  %v2337_v46 = vpop.f32.mrf.mxu0 }
 0x55a   : > { %4293 = vmatmul.msk.bf16.gmra.mxu0 %vm638_vm1, %v2487_v50 }
 0x55d   : > { %4306 = vmatmul.msk.bf16.gmra.mxu1 %vm638_vm1, %v1566_v48 }
 0x55f   : > { %v2293_v32 = vpop.f32.mrf.mxu2  ;;  %v2232_v6 = vpop.f32.mrf.mxu3 }
 0x560   : > { %v4619_v6 = vld [vmem:[%s4746_s28 + $0x28] sm:$0xff] }
 0x567   : > { %v2295_v14 = vpop.f32.mrf.mxu2  ;;  %v2314_v35 = vpop.f32.mrf.mxu3 }
 0x568   : > { %v2489_v21 = vpack.c.bf16 %v2314_v35, %v2293_v32 }
 0x56a   : > { %4294 = vmatmul.msk.bf16.gmra.mxu0 %vm638_vm1, %v2488_v43 }
 0x56d   : > { %4307 = vmatmul.msk.bf16.gmra.mxu1 %vm638_vm1, %v1567_v0 }
 0x56f   : > { %v2316_v49 = vpop.f32.mrf.mxu3 }
 0x57a   : > { %4295 = vmatmul.msk.bf16.gmra.mxu0 %vm638_vm1, %v2489_v21 }
 0x57d   : > { %4308 = vmatmul.msk.bf16.gmra.mxu1 %vm638_vm1, %v1568_v27 }
 0x589   : > { %v2377_v62 = vpop.f32.mrf.mxu2 }
 0x58d   : > { %4309 = vmatmul.msk.bf16.gmra.mxu1 %vm638_vm1, %v1569_v9 }
 0x591   : > { %v2356_v29 = vpop.f32.mrf.mxu1  ;;  %v2379_v48 = vpop.f32.mrf.mxu2 }
 0x592   : > { %v2490_v30 = vpack.c.bf16 %v2356_v29, %v2335_v57  ;;  %v4618_v57 = vld [vmem:[%s4746_s28 + $0x20] sm:$0xff] }
 0x594   : > { %4296 = vmatmul.msk.bf16.gmra.mxu0 %vm638_vm1, %v2490_v30 }
 0x599   : > { %v2358_v16 = vpop.f32.mrf.mxu1  ;;  %v2419_v0 = vpop.f32.mrf.mxu0 }
 0x59a   : > { %v4620_v16 = vld [vmem:[%s4746_s28 + $0x38] sm:$0xff] }
 0x59d   : > { %4310 = vmatmul.msk.bf16.gmra.mxu1 %vm638_vm1, %v1570_v3 }
 0x5a1   : > { %v2421_v36 = vpop.f32.mrf.mxu0 }
 0x5a4   : > { %v2398_v59 = vpop.f32.mrf.mxu3 }
 0x5a5   : > { %v2491_v27 = vpack.c.bf16 %v2398_v59, %v2377_v62 }
 0x5a7   : > { %4297 = vmatmul.msk.bf16.gmra.mxu0 %vm638_vm1, %v2491_v27 }
 0x5aa   : > { %v2440_v53 = vpop.f32.mrf.mxu1 }
 0x5ab   : > { %v2492_v42 = vpack.c.bf16 %v2440_v53, %v2419_v0 }
 0x5ac   : > { %v2400_v38 = vpop.f32.mrf.mxu3 }
 0x5ad   : > { %4311 = vmatmul.msk.bf16.gmra.mxu1 %vm638_vm1, %v1571_v41 }
 0x5b0   : > { %v2536_v20 = vpop.f32.mrf.mxu0 }
 0x5b2   : > { %v2442_v9 = vpop.f32.mrf.mxu1 }
 0x5b3   : > { %v4621_v9 = vld [vmem:[%s4746_s28 + $0x40] sm:$0xff] }
 0x5b7   : > { %4298 = vmatmul.msk.bf16.gmra.mxu0 %vm638_vm1, %v2492_v42 }
 0x5b8   : > { %v2482_v61 = vpop.f32.mrf.mxu3  ;;  %v2538_v45 = vpop.f32.mrf.mxu0 }
 0x5ba   : > { %v2615_v3 = vpop.f32.mrf.mxu1 }
 0x5bb   : > { %v2616_v44 = vadd.f32 %v2615_v3, %v2536_v20 }
 0x5bd   : > { %v2659_v63 = vadd.f32 %v5629_v2, %v2616_v44 }
 0x5bf   : > { %v5633_v40 = vadd.f32 %v4614_v52, %v2659_v63 }
 0x5c0   : > { %v2484_v31 = vpop.f32.mrf.mxu3 }
 0x5c1   : > { %v2693_v41 = vsel %vm543_vm0, %v5633_v40, 0.0 }
 0x5c2   : > { %v2617_v13 = vpop.f32.mrf.mxu1  ;;  %2694 = vadd.xlane.f32.xlu1 %v2693_v41 }
 0x5c3   : > { %v2618_v28 = vadd.f32 %v2617_v13, %v2538_v45 }
 0x5c5   : > { %v2660_v4 = vadd.f32 %v5629_v2, %v2618_v28 }
 0x5c7   : > { %v5639_v8 = vadd.f32 %v4615_v56, %v2660_v4 }
 0x5c9   : > { %v2696_v22 = vsel %vm543_vm0, %v5639_v8, 0.0 }
 0x5ca   : > { %2697 = vadd.xlane.f32.xlu0 %v2696_v22  ;;  %v2461_v26 = vpop.f32.mrf.mxu2  ;;  %v2620_v19 = vpop.f32.mrf.mxu1 }
 0x5cb   : > { %v2493_v24 = vpack.c.bf16 %v2482_v61, %v2461_v26  ;;  %v4643_v61 = vmov 32.0  }
 0x5cc   : > { %4516 = vrcp.f32 %v4643_v61  ;;  %v4625_v61 = vld [vmem:[%s4746_s28 + $0x58] sm:$0xff] }
 0x5cd   : > { %4299 = vmatmul.msk.bf16.gmra.mxu0 %vm638_vm1, %v2493_v24 }
 0x5d2   : > { %v2463_v51 = vpop.f32.mrf.mxu2  ;;  %v2622_v17 = vpop.f32.mrf.mxu1 }
 0x5d3   : > { %v4517_v3 = vpop.eup %4516  ;;  %v4622_v51 = vld [vmem:[%s4746_s28 + $0x30] sm:$0xff] }
 0x5d4   : > { %v2742_v44 = vmul.f32 32.0, %v4517_v3  ;;  %vm2746_vm4 = vweird.f32 %v4517_v3 }
 0x5d6   : > { %v2743_v63 = vsub.f32 1.0, %v2742_v44 }
 0x5d7   : > { %v2541_v5 = vpop.f32.mrf.mxu0 }
 0x5d8   : > { %v2621_v60 = vadd.f32 %v2620_v19, %v2541_v5  ;;  %v2744_v52 = vmul.f32 %v4517_v3, %v2743_v63 }
 0x5da   : > { %v2661_v47 = vadd.f32 %v5629_v2, %v2621_v60  ;;  %v2625_v18 = vpop.f32.mrf.mxu1  ;;  %v2745_v31 = vadd.f32 %v4517_v3, %v2744_v52 }
 0x5dc   : > { %v5646_v7 = vadd.f32 %v4616_v15, %v2661_v47  ;;  %v5680_v41 = vsel %vm2746_vm4, %v4517_v3, %v2745_v31 }
 0x5de   : > { %v2699_v12 = vsel %vm543_vm0, %v5646_v7, 0.0 }
 0x5df   : > { %v2543_v25 = vpop.f32.mrf.mxu0  ;;  %2700 = vadd.xlane.f32.xlu2 %v2699_v12 }
 0x5e0   : > { %v2623_v11 = vadd.f32 %v2622_v17, %v2543_v25 }
 0x5e2   : > { %v2662_v23 = vadd.f32 %v5629_v2, %v2623_v11  ;;  %v2627_v58 = vpop.f32.mrf.mxu1 }
 0x5e4   : > { %v5652_v33 = vadd.f32 %v4617_v34, %v2662_v23 }
 0x5e6   : > { %v2702_v55 = vsel %vm543_vm0, %v5652_v33, 0.0 }
 0x5e7   : > { %v2546_v37 = vpop.f32.mrf.mxu0  ;;  %2703 = vadd.xlane.f32.xlu2 %v2702_v55 }
 0x5e8   : > { %v2626_v1 = vadd.f32 %v2625_v18, %v2546_v37 }
 0x5ea   : > { %v2663_v39 = vadd.f32 %v5629_v2, %v2626_v1  ;;  %v2630_v35 = vpop.f32.mrf.mxu1 }
 0x5ec   : > { %v5658_v10 = vadd.f32 %v4618_v57, %v2663_v39 }
 0x5ee   : > { %v2705_v54 = vsel %vm543_vm0, %v5658_v10, 0.0 }
 0x5ef   : > { %v2548_v50 = vpop.f32.mrf.mxu0  ;;  %2706 = vadd.xlane.f32.xlu2 %v2705_v54 }
 0x5f0   : > { %v2628_v46 = vadd.f32 %v2627_v58, %v2548_v50 }
 0x5f2   : > { %v2664_v32 = vadd.f32 %v5629_v2, %v2628_v46  ;;  %v2632_v62 = vpop.f32.mrf.mxu1 }
 0x5f4   : > { %v5664_v14 = vadd.f32 %v4619_v6, %v2664_v32 }
 0x5f6   : > { %v2708_v43 = vsel %vm543_vm0, %v5664_v14, 0.0 }
 0x5f7   : > { %v2551_v49 = vpop.f32.mrf.mxu0  ;;  %2709 = vadd.xlane.f32.xlu2 %v2708_v43 }
 0x5f8   : > { %v2631_v21 = vadd.f32 %v2630_v35, %v2551_v49 }
 0x5fa   : > { %v2635_v59 = vpop.f32.mrf.mxu1  ;;  %v2665_v56 = vadd.f32 %v5629_v2, %v2631_v21 }
 0x5fc   : > { %v5695_v17 = vadd.f32 %v4622_v51, %v2665_v56 }
 0x5fe   : > { %v2711_v5 = vsel %vm543_vm0, %v5695_v17, 0.0 }
 0x5ff   : > { %v2553_v29 = vpop.f32.mrf.mxu0 }
 0x600   : > { %v2633_v48 = vadd.f32 %v2632_v62, %v2553_v29  ;;  %v4624_v29 = vld [vmem:[%s4746_s28 + $0x50] sm:$0xff] }
 0x602   : > { %v2666_v30 = vadd.f32 %v5629_v2, %v2633_v48  ;;  %v2637_v47 = vpop.f32.mrf.mxu1 }
 0x604   : > { %v5670_v0 = vadd.f32 %v4620_v16, %v2666_v30 }
 0x606   : > { %v2714_v36 = vsel %vm543_vm0, %v5670_v0, 0.0 }
 0x607   : > { %2715 = vadd.xlane.f32.xlu0 %v2714_v36 }
 0x60a   : > { %v2640_v34 = vpop.f32.mrf.mxu1 }
 0x611   : > { %v2556_v27 = vpop.f32.mrf.mxu0 }
 0x612   : > { %v2636_v53 = vadd.f32 %v2635_v59, %v2556_v27  ;;  %v2642_v43 = vpop.f32.mrf.mxu1 }
 0x614   : > { %v2667_v38 = vadd.f32 %v5629_v2, %v2636_v53 }
 0x616   : > { %v5676_v42 = vadd.f32 %v4621_v9, %v2667_v38 }
 0x618   : > { %v2717_v20 = vsel %vm543_vm0, %v5676_v42, 0.0 }
 0x619   : > { %2718 = vadd.xlane.f32.xlu0 %v2717_v20  ;;  %v2558_v15 = vpop.f32.mrf.mxu0 }
 0x61a   : > { %v2638_v25 = vadd.f32 %v2637_v47, %v2558_v15  ;;  %v2645_v38 = vpop.f32.mrf.mxu1 }
 0x61c   : > { %v2668_v55 = vadd.f32 %v5629_v2, %v2638_v25 }
 0x624   : > { %v2561_v18 = vpop.f32.mrf.mxu0 }
 0x625   : > { %v2641_v58 = vadd.f32 %v2640_v34, %v2561_v18 }
 0x627   : > { %v2669_v32 = vadd.f32 %v5629_v2, %v2641_v58 }
 0x629   : > { %v5728_v48 = vadd.f32 %v4624_v29, %v2669_v32 }
 0x62b   : > { %v2723_v59 = vsel %vm543_vm0, %v5728_v48, 0.0 }
 0x62c   : > { %v2563_v46 = vpop.f32.mrf.mxu0 }
 0x62d   : > { %v2643_v21 = vadd.f32 %v2642_v43, %v2563_v46 }
 0x62f   : > { %v2670_v16 = vadd.f32 %v5629_v2, %v2643_v21 }
 0x631   : > { %v5741_v3 = vadd.f32 %v4625_v61, %v2670_v16 }
 0x633   : > { %v2726_v31 = vsel %vm543_vm0, %v5741_v3, 0.0 }
 0x634   : > { %v2566_v27 = vpop.f32.mrf.mxu0 }
 0x635   : > { %v2695_v45 = vpop.xlane.xlu1 %2694  ;;  %v2646_v9 = vadd.f32 %v2645_v38, %v2566_v27 }
 0x636   : > { %v2748_v13 = vmul.f32 %v5680_v41, %v2695_v45  ;;  %v4626_v45 = vld [vmem:[%s4746_s28 + $0x60] sm:$0xff] }
 0x637   : > { %v2671_v63 = vadd.f32 %v5629_v2, %v2646_v9  ;;  %v4628_v9 = vld [vmem:[%s4746_s28 + $0x68] sm:$0xff] }
 0x638   : > { %v5684_v28 = vsub.f32 %v5633_v40, %v2748_v13 }
 0x639   : > { %v5750_v13 = vadd.f32 %v4626_v45, %v2671_v63 }
 0x63a   : > { %v2780_v4 = vmul.f32 %v5684_v28, %v5684_v28 }
 0x63b   : > { %v2729_v56 = vsel %vm543_vm0, %v5750_v13, 0.0 }
 0x63c   : > { %v2796_v22 = vsel %vm543_vm0, %v2780_v4, 0.0  ;;  %v2568_v4 = vpop.f32.mrf.mxu0 }
 0x63d   : > { %2797 = vadd.xlane.f32.xlu1 %v2796_v22  ;;  %v2698_v26 = vpop.xlane.xlu0 %2697 }
 0x63e   : > { %v2749_v24 = vmul.f32 %v5680_v41, %v2698_v26 }
 0x640   : > { %v5692_v19 = vsub.f32 %v5639_v8, %v2749_v24 }
 0x642   : > { %v2781_v40 = vmul.f32 %v5692_v19, %v5692_v19 }
 0x644   : > { %v2799_v60 = vsel %vm543_vm0, %v2781_v40, 0.0 }
 0x645   : > { %2712 = vadd.xlane.f32.xlu1 %v2711_v5  ;;  %2800 = vadd.xlane.f32.xlu2 %v2799_v60 }
 0x64a   : > { %v2571_v40 = vpop.f32.mrf.mxu0 }
 0x652   : > { %v2701_v12 = vpop.xlane.xlu2 %2700  ;;  %v2573_v47 = vpop.f32.mrf.mxu0 }
 0x653   : > { %v2750_v8 = vmul.f32 %v5680_v41, %v2701_v12 }
 0x655   : > { %v5704_v11 = vsub.f32 %v5646_v7, %v2750_v8  ;;  %v4623_v7 = vld [vmem:[%s4746_s28 + $0x48] sm:$0xff] }
 0x656   : > { %v5715_v54 = vadd.f32 %v4623_v7, %v2668_v55  ;;  %v4627_v55 = vld [vmem:[%s4746_s28 + $0x78] sm:$0xff] }
 0x657   : > { %v2782_v23 = vmul.f32 %v5704_v11, %v5704_v11 }
 0x658   : > { %v2720_v35 = vsel %vm543_vm0, %v5715_v54, 0.0 }
 0x659   : > { %v2802_v37 = vsel %vm543_vm0, %v2782_v23, 0.0 }
 0x65a   : > { %v2704_v1 = vpop.xlane.xlu2 %2703  ;;  %2803 = vadd.xlane.f32.xlu2 %v2802_v37 }
 0x65b   : > { %v2751_v39 = vmul.f32 %v5680_v41, %v2704_v1 }
 0x65d   : > { %v5712_v57 = vsub.f32 %v5652_v33, %v2751_v39 }
 0x65f   : > { %v2783_v50 = vmul.f32 %v5712_v57, %v5712_v57 }
 0x661   : > { %v2805_v6 = vsel %vm543_vm0, %v2783_v50, 0.0  ;;  %v4358_v50 = vld [vmem:[%s6888_s7] sm:$0xff] }
 0x662   : > { %v2707_v49 = vpop.xlane.xlu2 %2706  ;;  %2806 = vadd.xlane.f32.xlu1 %v2805_v6  ;;  %2721 = vadd.xlane.f32.xlu2 %v2720_v35 }
 0x663   : > { %v2752_v33 = vmul.f32 %v5680_v41, %v2707_v49 }
 0x665   : > { %v5725_v62 = vsub.f32 %v5658_v10, %v2752_v33 }
 0x667   : > { %v2784_v30 = vmul.f32 %v5725_v62, %v5725_v62 }
 0x669   : > { %v2808_v36 = vsel %vm543_vm0, %v2784_v30, 0.0 }
 0x66a   : > { %v2710_v53 = vpop.xlane.xlu2 %2709  ;;  %2809 = vadd.xlane.f32.xlu1 %v2808_v36  ;;  %2724 = vadd.xlane.f32.xlu2 %v2723_v59 }
 0x66b   : > { %v2753_v10 = vmul.f32 %v5680_v41, %v2710_v53 }
 0x66d   : > { %v5738_v20 = vsub.f32 %v5664_v14, %v2753_v10  ;;  %v2647_v14 = vpop.f32.mrf.mxu1 }
 0x66e   : > { %v2648_v49 = vadd.f32 %v2647_v14, %v2568_v4 }
 0x66f   : > { %v2785_v44 = vmul.f32 %v5738_v20, %v5738_v20 }
 0x670   : > { %v2672_v36 = vadd.f32 %v5629_v2, %v2648_v49 }
 0x671   : > { %v2811_v52 = vsel %vm543_vm0, %v2785_v44, 0.0 }
 0x672   : > { %2812 = vadd.xlane.f32.xlu0 %v2811_v52  ;;  %2727 = vadd.xlane.f32.xlu1 %v2726_v31  ;;  %v5791_v61 = vadd.f32 %v4628_v9, %v2672_v36 }
 0x674   : > { %v2732_v31 = vsel %vm543_vm0, %v5791_v61, 0.0 }
 0x675   : > { %v2650_v60 = vpop.f32.mrf.mxu1 }
 0x676   : > { %v2651_v38 = vadd.f32 %v2650_v60, %v2571_v40  ;;  %v5808_v60 = vld [vmem:[%s6887_s6] ss:$0 sm:$0xff] }
 0x678   : > { %v2673_v52 = vadd.f32 %v5629_v2, %v2651_v38 }
 0x67a   : > { %2730 = vadd.xlane.f32.xlu1 %v2729_v56  ;;  %v2716_v22 = vpop.xlane.xlu0 %2715  ;;  %v5799_v56 = vld [vmem:[%s6886_s5] ss:$0 sm:$0xff] }
 0x67b   : > { %v2755_v26 = vmul.f32 %v5680_v41, %v2716_v22 }
 0x67d   : > { %v5756_v24 = vsub.f32 %v5670_v0, %v2755_v26  ;;  %v2652_v8 = vpop.f32.mrf.mxu1  ;;  %v4629_v26 = vld [vmem:[%s4746_s28 + $0x70] sm:$0xff] }
 0x67e   : > { %v2653_v25 = vadd.f32 %v2652_v8, %v2573_v47 }
 0x67f   : > { %v2787_v51 = vmul.f32 %v5756_v24, %v5756_v24 }
 0x680   : > { %v2674_v23 = vadd.f32 %v5629_v2, %v2653_v25 }
 0x681   : > { %v2817_v5 = vsel %vm543_vm0, %v2787_v51, 0.0  ;;  %v5803_v51 = vadd.f32 %v4629_v26, %v2673_v52 }
 0x682   : > { %2818 = vadd.xlane.f32.xlu2 %v2817_v5  ;;  %v5770_v37 = vadd.f32 %v4627_v55, %v2674_v23 }
 0x684   : > { %v2738_v1 = vsel %vm543_vm0, %v5770_v37, 0.0 }
 0x68c   : > { %v2719_v15 = vpop.xlane.xlu0 %2718 }
 0x68d   : > { %v2756_v12 = vmul.f32 %v5680_v41, %v2719_v15 }
 0x68f   : > { %v5763_v18 = vsub.f32 %v5676_v42, %v2756_v12  ;;  %v4359_v42 = vld [vmem:[%s6888_s7 + $0x8] sm:$0xff] }
 0x690   : > { %3148 = vmatpush.bf16.msra.mxu2 %v4359_v42 }
 0x691   : > { %v2788_v0 = vmul.f32 %v5763_v18, %v5763_v18 }
 0x693   : > { %v2820_v34 = vsel %vm543_vm0, %v2788_v0, 0.0 }
 0x694   : > { %2821 = vadd.xlane.f32.xlu2 %v2820_v34  ;;  %3149 = vmatpush.bf16.msra.mxu2 %v4358_v50 }
 0x69c   : > { %2739 = vadd.xlane.f32.xlu2 %v2738_v1 }
 0x6b0   : > { %v2798_v39 = vpop.xlane.xlu1 %2797 }
 0x6b1   : > { %v2844_v58 = vmul.f32 %v2798_v39, %v5680_v41 }
 0x6b3   : > { %v2860_v7 = vadd.f32 1e-05, %v2844_v58 }
 0x6b5   : > { %4518 = vrsqrt.f32 %v2860_v7  ;;  %vm2882_vm6 = vweird.f32 %v2860_v7 }
 0x6b8   : > { %v2713_v46 = vpop.xlane.xlu1 %2712  ;;  %v2801_v32 = vpop.xlane.xlu2 %2800 }
 0x6b9   : > { %v2754_v6 = vmul.f32 %v5680_v41, %v2713_v46  ;;  %v2845_v35 = vmul.f32 %v2801_v32, %v5680_v41 }
 0x6bb   : > { %v4519_v43 = vpop.eup %4518  ;;  %v5784_v33 = vsub.f32 %v5695_v17, %v2754_v6  ;;  %v2861_v21 = vadd.f32 1e-05, %v2845_v35 }
 0x6bc   : > { %v2877_v29 = vmul.f32 %v4519_v43, %v2860_v7  ;;  %vm2883_vm5 = vweird.f32 %v4519_v43 }
 0x6bd   : > { %4520 = vrsqrt.f32 %v2861_v21  ;;  %v2786_v30 = vmul.f32 %v5784_v33, %v5784_v33  ;;  %vm2884_vm7 = vmor %vm2882_vm6, %vm2883_vm5  ;;  %vm2892_vm9 = vweird.f32 %v2861_v21 }
 0x6be   : > { %v2878_v16 = vmul.f32 %v4519_v43, %v2877_v29 }
 0x6bf   : > { %v2814_v59 = vsel %vm543_vm0, %v2786_v30, 0.0 }
 0x6c0   : > { %v2879_v27 = vmul.f32 0.5, %v2878_v16  ;;  %2815 = vadd.xlane.f32.xlu0 %v2814_v59 }
 0x6c2   : > { %v2880_v53 = vsub.f32 1.5, %v2879_v27 }
 0x6c3   : > { %v4521_v10 = vpop.eup %4520 }
 0x6c4   : > { %v2881_v17 = vmul.f32 %v4519_v43, %v2880_v53  ;;  %v2887_v44 = vmul.f32 %v4521_v10, %v2861_v21  ;;  %vm2893_vm8 = vweird.f32 %v4521_v10 }
 0x6c5   : > { %vm2894_vm10 = vmor %vm2892_vm9, %vm2893_vm8 }
 0x6c6   : > { %v2888_v63 = vmul.f32 %v4521_v10, %v2887_v44  ;;  %v2885_v45 = vsel %vm2884_vm7, %v4519_v43, %v2881_v17 }
 0x6c7   : > { %v3036_v22 = vmul.f32 %v2885_v45, %v5684_v28  ;;  %v2735_v28 = vsel %vm543_vm0, %v5803_v51, 0.0 }
 0x6c8   : > { %v2889_v14 = vmul.f32 0.5, %v2888_v63  ;;  %2733 = vadd.xlane.f32.xlu0 %v2732_v31 }
 0x6c9   : > { %v3055_v47 = vmul.f32 %v5799_v56, %v3036_v22 }
 0x6ca   : > { %v2890_v4 = vsub.f32 1.5, %v2889_v14 }
 0x6cb   : > { %v5817_v0 = vadd.f32 %v5808_v60, %v3055_v47 }
 0x6cc   : > { %v2891_v2 = vmul.f32 %v4521_v10, %v2890_v4 }
 0x6cd   : > { %v2804_v5 = vpop.xlane.xlu2 %2803 }
 0x6ce   : > { %v2895_v40 = vsel %vm2894_vm10, %v4521_v10, %v2891_v2  ;;  %v2846_v12 = vmul.f32 %v2804_v5, %v5680_v41 }
 0x6cf   : > { %v3037_v15 = vmul.f32 %v2895_v40, %v5692_v19 }
 0x6d0   : > { %2736 = vadd.xlane.f32.xlu0 %v2735_v28  ;;  %v2862_v25 = vadd.f32 1e-05, %v2846_v12 }
 0x6d1   : > { %v3056_v8 = vmul.f32 %v5799_v56, %v3037_v15 }
 0x6d2   : > { %4522 = vrsqrt.f32 %v2862_v25  ;;  %vm2902_vm12 = vweird.f32 %v2862_v25 }
 0x6d3   : > { %v5820_v23 = vadd.f32 %v5808_v60, %v3056_v8 }
 0x6d5   : > { %v3090_v34 = vpack.c.bf16 %v5820_v23, %v5817_v0  ;;  %v2807_v19 = vpop.xlane.xlu1 %2806  ;;  %v2722_v55 = vpop.xlane.xlu2 %2721 }
 0x6d6   : > { %v2847_v1 = vmul.f32 %v2807_v19, %v5680_v41  ;;  %v2757_v39 = vmul.f32 %v5680_v41, %v2722_v55 }
 0x6d7   : > { %4320 = vmatmul.msk.bf16.vlgmr.msra.gmra.mxu2 %vm543_vm0, %v3090_v34 }
 0x6d8   : > { %v4523_v42 = vpop.eup %4522  ;;  %v2863_v58 = vadd.f32 1e-05, %v2847_v1  ;;  %v5828_v7 = vsub.f32 %v5715_v54, %v2757_v39 }
 0x6d9   : > { %v2897_v50 = vmul.f32 %v4523_v42, %v2862_v25  ;;  %vm2903_vm11 = vweird.f32 %v4523_v42 }
 0x6da   : > { %4524 = vrsqrt.f32 %v2863_v58  ;;  %v2789_v46 = vmul.f32 %v5828_v7, %v5828_v7  ;;  %vm2904_vm13 = vmor %vm2902_vm12, %vm2903_vm11  ;;  %vm2912_vm15 = vweird.f32 %v2863_v58 }
 0x6db   : > { %v2898_v32 = vmul.f32 %v4523_v42, %v2897_v50 }
 0x6dc   : > { %v2823_v6 = vsel %vm543_vm0, %v2789_v46, 0.0 }
 0x6dd   : > { %v2899_v35 = vmul.f32 0.5, %v2898_v32  ;;  %v2810_v43 = vpop.xlane.xlu1 %2809  ;;  %2824 = vadd.xlane.f32.xlu1 %v2823_v6  ;;  %v2725_v49 = vpop.xlane.xlu2 %2724 }
 0x6de   : > { %v2848_v21 = vmul.f32 %v2810_v43, %v5680_v41  ;;  %v2758_v29 = vmul.f32 %v5680_v41, %v2725_v49 }
 0x6df   : > { %v2900_v30 = vsub.f32 1.5, %v2899_v35 }
 0x6e0   : > { %v4525_v16 = vpop.eup %4524  ;;  %v2864_v54 = vadd.f32 1e-05, %v2848_v21  ;;  %v5836_v36 = vsub.f32 %v5728_v48, %v2758_v29 }
 0x6e1   : > { %v2901_v59 = vmul.f32 %v4523_v42, %v2900_v30  ;;  %v2907_v27 = vmul.f32 %v4525_v16, %v2863_v58  ;;  %vm2913_vm14 = vweird.f32 %v4525_v16 }
 0x6e2   : > { %4526 = vrsqrt.f32 %v2864_v54  ;;  %v2790_v53 = vmul.f32 %v5836_v36, %v5836_v36  ;;  %vm2914_vm1 = vmor %vm2912_vm15, %vm2913_vm14  ;;  %vm2922_vm3 = vweird.f32 %v2864_v54 }
 0x6e3   : > { %v2908_v10 = vmul.f32 %v4525_v16, %v2907_v27  ;;  %v2905_v9 = vsel %vm2904_vm13, %v4523_v42, %v2901_v59 }
 0x6e4   : > { %v2826_v38 = vsel %vm543_vm0, %v2790_v53, 0.0  ;;  %v3038_v14 = vmul.f32 %v2905_v9, %v5704_v11 }
 0x6e5   : > { %v2909_v17 = vmul.f32 0.5, %v2908_v10  ;;  %v2728_v44 = vpop.xlane.xlu1 %2727  ;;  %2827 = vadd.xlane.f32.xlu1 %v2826_v38  ;;  %v2813_v63 = vpop.xlane.xlu0 %2812 }
 0x6e6   : > { %v2759_v48 = vmul.f32 %v5680_v41, %v2728_v44  ;;  %v2849_v52 = vmul.f32 %v2813_v63, %v5680_v41  ;;  %v3057_v11 = vmul.f32 %v5799_v56, %v3038_v14 }
 0x6e7   : > { %v2910_v31 = vsub.f32 1.5, %v2909_v17 }
 0x6e8   : > { %v4527_v45 = vpop.eup %4526  ;;  %v5845_v4 = vsub.f32 %v5741_v3, %v2759_v48  ;;  %v2865_v22 = vadd.f32 1e-05, %v2849_v52  ;;  %v5858_v1 = vadd.f32 %v5808_v60, %v3057_v11  ;;  %v4362_v11 = vld [vmem:[%s6890_s9 + $0x10] sm:$0xff] }
 0x6e9   : > { %v2911_v26 = vmul.f32 %v4525_v16, %v2910_v31  ;;  %v2917_v2 = vmul.f32 %v4527_v45, %v2864_v54  ;;  %vm2923_vm2 = vweird.f32 %v4527_v45 }
 0x6ea   : > { %4528 = vrsqrt.f32 %v2865_v22  ;;  %v2791_v40 = vmul.f32 %v5845_v4, %v5845_v4  ;;  %vm2924_vm4 = vmor %vm2922_vm3, %vm2923_vm2  ;;  %vm2932_vm6 = vweird.f32 %v2865_v22 }
 0x6eb   : > { %v2915_v5 = vsel %vm2914_vm1, %v4525_v16, %v2911_v26  ;;  %v2918_v47 = vmul.f32 %v4527_v45, %v2917_v2 }
 0x6ec   : > { %v3039_v15 = vmul.f32 %v2915_v5, %v5712_v57  ;;  %v2829_v12 = vsel %vm543_vm0, %v2791_v40, 0.0 }
 0x6ed   : > { %v2919_v28 = vmul.f32 0.5, %v2918_v47  ;;  %v2731_v3 = vpop.xlane.xlu1 %2730  ;;  %2830 = vadd.xlane.f32.xlu0 %v2829_v12 }
 0x6ee   : > { %v2760_v8 = vmul.f32 %v5680_v41, %v2731_v3  ;;  %v3058_v25 = vmul.f32 %v5799_v56, %v3039_v15 }
 0x6ef   : > { %v2920_v34 = vsub.f32 1.5, %v2919_v28 }
 0x6f0   : > { %v4529_v19 = vpop.eup %4528  ;;  %v5855_v55 = vsub.f32 %v5750_v13, %v2760_v8  ;;  %v5861_v57 = vadd.f32 %v5808_v60, %v3058_v25 }
 0x6f1   : > { %v2921_v39 = vmul.f32 %v4527_v45, %v2920_v34  ;;  %v2927_v42 = vmul.f32 %v4529_v19, %v2865_v22  ;;  %vm2933_vm5 = vweird.f32 %v4529_v19 }
 0x6f2   : > { %v3091_v58 = vpack.c.bf16 %v5861_v57, %v5858_v1  ;;  %v2792_v50 = vmul.f32 %v5855_v55, %v5855_v55  ;;  %vm2934_vm7 = vmor %vm2932_vm6, %vm2933_vm5  ;;  %vm3251_vm5 = vcmask 523264  }
 0x6f3   : > { %v2928_v46 = vmul.f32 %v4529_v19, %v2927_v42  ;;  %v2925_v32 = vsel %vm2924_vm4, %v4527_v45, %v2921_v39 }
 0x6f4   : > { %4321 = vmatmul.msk.bf16.gmra.mxu2 %vm543_vm0, %v3091_v58  ;;  %v2832_v13 = vsel %vm543_vm0, %v2792_v50, 0.0  ;;  %v3040_v43 = vmul.f32 %v2925_v32, %v5725_v62 }
 0x6f5   : > { %v2929_v6 = vmul.f32 0.5, %v2928_v46  ;;  %2833 = vadd.xlane.f32.xlu2 %v2832_v13  ;;  %v2819_v16 = vpop.xlane.xlu2 %2818 }
 0x6f6   : > { %v3059_v30 = vmul.f32 %v5799_v56, %v3040_v43  ;;  %v2851_v44 = vmul.f32 %v2819_v16, %v5680_v41 }
 0x6f7   : > { %v2930_v35 = vsub.f32 1.5, %v2929_v6  ;;  %v4360_v6 = vld [vmem:[%s6890_s9] sm:$0xff] }
 0x6f8   : > { %v5874_v59 = vadd.f32 %v5808_v60, %v3059_v30  ;;  %v2867_v63 = vadd.f32 1e-05, %v2851_v44 }
 0x6f9   : > { %v2931_v49 = vmul.f32 %v4529_v19, %v2930_v35 }
 0x6fa   : > { %4530 = vrsqrt.f32 %v2867_v63  ;;  %vm2952_vm9 = vweird.f32 %v2867_v63 }
 0x6fb   : > { %v2935_v21 = vsel %vm2934_vm7, %v4529_v19, %v2931_v49 }
 0x6fc   : > { %v3041_v29 = vmul.f32 %v2935_v21, %v5738_v20 }
 0x6fe   : > { %v3060_v54 = vmul.f32 %v5799_v56, %v3041_v29 }
 0x700   : > { %v5877_v27 = vadd.f32 %v5808_v60, %v3060_v54  ;;  %v4531_v48 = vpop.eup %4530 }
 0x701   : > { %v2947_v52 = vmul.f32 %v4531_v48, %v2867_v63  ;;  %vm2953_vm8 = vweird.f32 %v4531_v48 }
 0x702   : > { %v3092_v62 = vpack.c.bf16 %v5877_v27, %v5874_v59  ;;  %vm2954_vm10 = vmor %vm2952_vm9, %vm2953_vm8 }
 0x703   : > { %v2948_v31 = vmul.f32 %v4531_v48, %v2947_v52 }
 0x704   : > { %4322 = vmatmul.msk.bf16.gmra.mxu2 %vm543_vm0, %v3092_v62 }
 0x705   : > { %v2949_v26 = vmul.f32 0.5, %v2948_v31 }
 0x707   : > { %v2822_v53 = vpop.xlane.xlu2 %2821  ;;  %v2950_v2 = vsub.f32 1.5, %v2949_v26  ;;  %v5936_v26 = vld [vmem:[%s6889_s8] ss:$0 sm:$0xff] }
 0x708   : > { %v2852_v5 = vmul.f32 %v2822_v53, %v5680_v41 }
 0x709   : > { %v2951_v28 = vmul.f32 %v4531_v48, %v2950_v2 }
 0x70a   : > { %v2868_v8 = vadd.f32 1e-05, %v2852_v5 }
 0x70b   : > { %v2955_v39 = vsel %vm2954_vm10, %v4531_v48, %v2951_v28 }
 0x70c   : > { %v3043_v13 = vmul.f32 %v2955_v39, %v5756_v24  ;;  %vm2962_vm15 = vweird.f32 %v2868_v8 }
 0x70f   : > { %v2740_v10 = vpop.xlane.xlu2 %2739 }
 0x710   : > { %v2763_v20 = vmul.f32 %v5680_v41, %v2740_v10 }
 0x712   : > { %v5884_v38 = vsub.f32 %v5770_v37, %v2763_v20  ;;  %v4363_v37 = vld [vmem:[%s6890_s9 + $0x18] sm:$0xff] }
 0x713   : > { %3280 = vmatpush.bf16.msra.mxu3 %v4363_v37 }
 0x714   : > { %v2795_v9 = vmul.f32 %v5884_v38, %v5884_v38 }
 0x716   : > { %v2841_v17 = vsel %vm543_vm0, %v2795_v9, 0.0 }
 0x717   : > { %2842 = vadd.xlane.f32.xlu2 %v2841_v17  ;;  %3281 = vmatpush.bf16.msra.mxu3 %v4362_v11 }
 0x733   : > { %v2816_v45 = vpop.xlane.xlu0 %2815 }
 0x734   : > { %v2850_v14 = vmul.f32 %v2816_v45, %v5680_v41 }
 0x736   : > { %v2866_v22 = vadd.f32 1e-05, %v2850_v14 }
 0x738   : > { %4532 = vrsqrt.f32 %v2866_v22  ;;  %vm2942_vm12 = vweird.f32 %v2866_v22 }
 0x739   : > { %4534 = vrsqrt.f32 %v2868_v8 }
 0x73b   : > { %v2734_v40 = vpop.xlane.xlu0 %2733 }
 0x73c   : > { %v2761_v47 = vmul.f32 %v5680_v41, %v2734_v40 }
 0x73e   : > { %v4533_v15 = vpop.eup %4532  ;;  %v5897_v12 = vsub.f32 %v5791_v61, %v2761_v47  ;;  %v4361_v61 = vld [vmem:[%s6890_s9 + $0x8] sm:$0xff] }
 0x73f   : > { %v2937_v3 = vmul.f32 %v4533_v15, %v2866_v22  ;;  %3282 = vmatpush.bf16.msra.mxu3 %v4361_v61  ;;  %vm2943_vm11 = vweird.f32 %v4533_v15  ;;  %v4535_v21 = vpop.eup %4534 }
 0x740   : > { %v2793_v25 = vmul.f32 %v5897_v12, %v5897_v12  ;;  %vm2944_vm13 = vmor %vm2942_vm12, %vm2943_vm11  ;;  %v2957_v16 = vmul.f32 %v4535_v21, %v2868_v8  ;;  %vm2963_vm14 = vweird.f32 %v4535_v21 }
 0x741   : > { %v2938_v34 = vmul.f32 %v4533_v15, %v2937_v3  ;;  %vm2964_vm1 = vmor %vm2962_vm15, %vm2963_vm14 }
 0x742   : > { %v2835_v19 = vsel %vm543_vm0, %v2793_v25, 0.0  ;;  %v2958_v10 = vmul.f32 %v4535_v21, %v2957_v16 }
 0x743   : > { %v2939_v42 = vmul.f32 0.5, %v2938_v34  ;;  %2836 = vadd.xlane.f32.xlu1 %v2835_v19  ;;  %v2737_v58 = vpop.xlane.xlu0 %2736  ;;  %3283 = vmatpush.bf16.msra.mxu3 %v4360_v6 }
 0x744   : > { %v2762_v50 = vmul.f32 %v5680_v41, %v2737_v58  ;;  %v2959_v17 = vmul.f32 0.5, %v2958_v10 }
 0x745   : > { %v2940_v46 = vsub.f32 1.5, %v2939_v42 }
 0x746   : > { %v5911_v32 = vsub.f32 %v5803_v51, %v2762_v50  ;;  %v3062_v51 = vmul.f32 %v5799_v56, %v3043_v13  ;;  %v2960_v44 = vsub.f32 1.5, %v2959_v17 }
 0x747   : > { %v2941_v35 = vmul.f32 %v4533_v15, %v2940_v46 }
 0x748   : > { %v2794_v43 = vmul.f32 %v5911_v32, %v5911_v32  ;;  %v5926_v62 = vadd.f32 %v5808_v60, %v3062_v51  ;;  %v2961_v14 = vmul.f32 %v4535_v21, %v2960_v44 }
 0x749   : > { %v2945_v49 = vsel %vm2944_vm13, %v4533_v15, %v2941_v35 }
 0x74a   : > { %v3042_v29 = vmul.f32 %v2945_v49, %v5784_v33  ;;  %v2838_v24 = vsel %vm543_vm0, %v2794_v43, 0.0  ;;  %v2965_v2 = vsel %vm2964_vm1, %v4535_v21, %v2961_v14 }
 0x74b   : > { %2839 = vadd.xlane.f32.xlu0 %v2838_v24  ;;  %v3044_v34 = vmul.f32 %v2965_v2, %v5763_v18 }
 0x74c   : > { %v3061_v30 = vmul.f32 %v5799_v56, %v3042_v29 }
 0x74d   : > { %v3063_v6 = vmul.f32 %v5799_v56, %v3044_v34 }
 0x74e   : > { %v5923_v54 = vadd.f32 %v5808_v60, %v3061_v30 }
 0x74f   : > { %v5947_v21 = vadd.f32 %v5808_v60, %v3063_v6 }
 0x750   : > { %v3093_v53 = vpack.c.bf16 %v5926_v62, %v5923_v54  ;;  %v2825_v20 = vpop.xlane.xlu1 %2824 }
 0x751   : > { %v2853_v33 = vmul.f32 %v2825_v20, %v5680_v41 }
 0x752   : > { %4323 = vmatmul.msk.bf16.gmra.mxu2 %vm543_vm0, %v3093_v53 }
 0x753   : > { %v2869_v9 = vadd.f32 1e-05, %v2853_v33 }
 0x755   : > { %4536 = vrsqrt.f32 %v2869_v9  ;;  %vm2972_vm3 = vweird.f32 %v2869_v9 }
 0x758   : > { %v2828_v63 = vpop.xlane.xlu1 %2827 }
 0x759   : > { %v2854_v48 = vmul.f32 %v2828_v63, %v5680_v41 }
 0x75a   : > { %v3151_v52 = vpop.f32.mrf.mxu2 }
 0x75b   : > { %v4537_v31 = vpop.eup %4536  ;;  %v2870_v45 = vadd.f32 1e-05, %v2854_v48  ;;  %v3152_v5 = vadd.f32 %v5936_v26, %v3151_v52 }
 0x75c   : > { %v2967_v22 = vmul.f32 %v4537_v31, %v2869_v9  ;;  %vm2973_vm2 = vweird.f32 %v4537_v31 }
 0x75d   : > { %4538 = vrsqrt.f32 %v2870_v45  ;;  %v3191_v39 = vmax.f32 %v3152_v5, 0.0  ;;  %vm2974_vm4 = vmor %vm2972_vm3, %vm2973_vm2  ;;  %vm2982_vm7 = vweird.f32 %v2870_v45 }
 0x75e   : > { %v2968_v37 = vmul.f32 %v4537_v31, %v2967_v22 }
 0x760   : > { %v2969_v40 = vmul.f32 0.5, %v2968_v37  ;;  %v2831_v47 = vpop.xlane.xlu0 %2830 }
 0x761   : > { %v2855_v15 = vmul.f32 %v2831_v47, %v5680_v41 }
 0x762   : > { %v3153_v11 = vpop.f32.mrf.mxu2  ;;  %v2970_v28 = vsub.f32 1.5, %v2969_v40 }
 0x763   : > { %v3154_v3 = vadd.f32 %v5936_v26, %v3153_v11  ;;  %v4539_v25 = vpop.eup %4538  ;;  %v2871_v19 = vadd.f32 1e-05, %v2855_v15 }
 0x764   : > { %v2971_v8 = vmul.f32 %v4537_v31, %v2970_v28  ;;  %v2977_v61 = vmul.f32 %v4539_v25, %v2870_v45  ;;  %vm2983_vm6 = vweird.f32 %v4539_v25 }
 0x765   : > { %v3192_v42 = vmax.f32 %v3154_v3, 0.0  ;;  %4540 = vrsqrt.f32 %v2871_v19  ;;  %vm2984_vm8 = vmor %vm2982_vm7, %vm2983_vm6  ;;  %vm2992_vm10 = vweird.f32 %v2871_v19 }
 0x766   : > { %v2975_v58 = vsel %vm2974_vm4, %v4537_v31, %v2971_v8  ;;  %v2978_v50 = vmul.f32 %v4539_v25, %v2977_v61 }
 0x767   : > { %v3207_v46 = vpack.c.bf16 %v3192_v42, %v3191_v39  ;;  %v3045_v13 = vmul.f32 %v2975_v58, %v5828_v7 }
 0x768   : > { %v2979_v35 = vmul.f32 0.5, %v2978_v50 }
 0x769   : > { %4344 = vmatmul.msk.bf16.vlgmr.msra.gmra.mxu3 %vm3251_vm5, %v3207_v46  ;;  %v3064_v18 = vmul.f32 %v5799_v56, %v3045_v13 }
 0x76a   : > { %v2980_v43 = vsub.f32 1.5, %v2979_v35 }
 0x76b   : > { %v4541_v49 = vpop.eup %4540  ;;  %v5950_v29 = vadd.f32 %v5808_v60, %v3064_v18 }
 0x76c   : > { %v2981_v24 = vmul.f32 %v4539_v25, %v2980_v43  ;;  %v2987_v51 = vmul.f32 %v4541_v49, %v2871_v19  ;;  %vm2993_vm9 = vweird.f32 %v4541_v49 }
 0x76d   : > { %v3094_v7 = vpack.c.bf16 %v5950_v29, %v5947_v21  ;;  %vm2994_vm11 = vmor %vm2992_vm10, %vm2993_vm9 }
 0x76e   : > { %v2988_v30 = vmul.f32 %v4541_v49, %v2987_v51  ;;  %v2985_v16 = vsel %vm2984_vm8, %v4539_v25, %v2981_v24  ;;  %v2834_v25 = vpop.xlane.xlu2 %2833 }
 0x76f   : > { %4324 = vmatmul.msk.bf16.gmra.mxu2 %vm543_vm0, %v3094_v7  ;;  %v3046_v20 = vmul.f32 %v2985_v16, %v5836_v36  ;;  %v2856_v34 = vmul.f32 %v2834_v25, %v5680_v41 }
 0x770   : > { %v2989_v53 = vmul.f32 0.5, %v2988_v30 }
 0x771   : > { %v3065_v63 = vmul.f32 %v5799_v56, %v3046_v20  ;;  %v2872_v19 = vadd.f32 1e-05, %v2856_v34 }
 0x772   : > { %v2990_v10 = vsub.f32 1.5, %v2989_v53 }
 0x773   : > { %v5960_v52 = vadd.f32 %v5808_v60, %v3065_v63  ;;  %4542 = vrsqrt.f32 %v2872_v19  ;;  %vm3002_vm13 = vweird.f32 %v2872_v19 }
 0x774   : > { %v2991_v33 = vmul.f32 %v4541_v49, %v2990_v10 }
 0x776   : > { %v2995_v9 = vsel %vm2994_vm11, %v4541_v49, %v2991_v33 }
 0x777   : > { %v3047_v17 = vmul.f32 %v2995_v9, %v5845_v4  ;;  %v3156_v44 = vpop.f32.mrf.mxu2 }
 0x778   : > { %v3157_v45 = vadd.f32 %v5936_v26, %v3156_v44 }
 0x779   : > { %v3066_v48 = vmul.f32 %v5799_v56, %v3047_v17  ;;  %v4543_v61 = vpop.eup %4542 }
 0x77a   : > { %v3193_v22 = vmax.f32 %v3157_v45, 0.0  ;;  %v2997_v42 = vmul.f32 %v4543_v61, %v2872_v19  ;;  %vm3003_vm12 = vweird.f32 %v4543_v61 }
 0x77b   : > { %v5963_v31 = vadd.f32 %v5808_v60, %v3066_v48  ;;  %vm3004_vm14 = vmor %vm3002_vm13, %vm3003_vm12 }
 0x77c   : > { %v2998_v50 = vmul.f32 %v4543_v61, %v2997_v42 }
 0x77d   : > { %v3095_v36 = vpack.c.bf16 %v5963_v31, %v5960_v52 }
 0x77e   : > { %v2999_v35 = vmul.f32 0.5, %v2998_v50 }
 0x77f   : > { %v3158_v14 = vpop.f32.mrf.mxu2  ;;  %4325 = vmatmul.msk.bf16.gmra.mxu2 %vm543_vm0, %v3095_v36 }
 0x780   : > { %v3159_v4 = vadd.f32 %v5936_v26, %v3158_v14  ;;  %v3000_v18 = vsub.f32 1.5, %v2999_v35 }
 0x782   : > { %v3194_v37 = vmax.f32 %v3159_v4, 0.0  ;;  %v3001_v30 = vmul.f32 %v4543_v61, %v3000_v18 }
 0x784   : > { %v3208_v2 = vpack.c.bf16 %v3194_v37, %v3193_v22  ;;  %v3005_v20 = vsel %vm3004_vm14, %v4543_v61, %v3001_v30 }
 0x785   : > { %v3048_v63 = vmul.f32 %v3005_v20, %v5855_v55 }
 0x786   : > { %4345 = vmatmul.msk.bf16.gmra.mxu3 %vm3251_vm5, %v3208_v2 }
 0x787   : > { %v3161_v40 = vpop.f32.mrf.mxu2  ;;  %v3067_v37 = vmul.f32 %v5799_v56, %v3048_v63 }
 0x788   : > { %v3162_v5 = vadd.f32 %v5936_v26, %v3161_v40 }
 0x78a   : > { %v3195_v11 = vmax.f32 %v3162_v5, 0.0  ;;  %v2843_v8 = vpop.xlane.xlu2 %2842 }
 0x78b   : > { %v2859_v39 = vmul.f32 %v2843_v8, %v5680_v41 }
 0x78d   : > { %v2875_v58 = vadd.f32 1e-05, %v2859_v39 }
 0x78f   : > { %v3163_v47 = vpop.f32.mrf.mxu2  ;;  %4544 = vrsqrt.f32 %v2875_v58  ;;  %vm3032_vm8 = vweird.f32 %v2875_v58 }
 0x790   : > { %v3164_v15 = vadd.f32 %v5936_v26, %v3163_v47 }
 0x792   : > { %v3196_v28 = vmax.f32 %v3164_v15, 0.0  ;;  %v5983_v15 = vadd.f32 %v5808_v60, %v3067_v37 }
 0x794   : > { %v3209_v3 = vpack.c.bf16 %v3196_v28, %v3195_v11 }
 0x795   : > { %v4545_v49 = vpop.eup %4544 }
 0x796   : > { %4346 = vmatmul.msk.bf16.gmra.mxu3 %vm3251_vm5, %v3209_v3  ;;  %v3027_v16 = vmul.f32 %v4545_v49, %v2875_v58  ;;  %vm3033_vm4 = vweird.f32 %v4545_v49 }
 0x797   : > { %vm3034_vm9 = vmor %vm3032_vm8, %vm3033_vm4 }
 0x798   : > { %v3028_v33 = vmul.f32 %v4545_v49, %v3027_v16 }
 0x79a   : > { %v3029_v48 = vmul.f32 0.5, %v3028_v33 }
 0x79c   : > { %v3030_v2 = vsub.f32 1.5, %v3029_v48 }
 0x79e   : > { %v3031_v11 = vmul.f32 %v4545_v49, %v3030_v2 }
 0x7a0   : > { %v3035_v34 = vsel %vm3034_vm9, %v4545_v49, %v3031_v11 }
 0x7a1   : > { %v3051_v8 = vmul.f32 %v3035_v34, %v5884_v38 }
 0x7a3   : > { %v3070_v50 = vmul.f32 %v5799_v56, %v3051_v8 }
 0x7a5   : > { %v6001_v35 = vadd.f32 %v5808_v60, %v3070_v50 }
 0x7b6   : > { %v2837_v46 = vpop.xlane.xlu1 %2836 }
 0x7b7   : > { %v2857_v13 = vmul.f32 %v2837_v46, %v5680_v41 }
 0x7b9   : > { %v2873_v6 = vadd.f32 1e-05, %v2857_v13 }
 0x7bb   : > { %4546 = vrsqrt.f32 %v2873_v6  ;;  %vm3012_vm1 = vweird.f32 %v2873_v6 }
 0x7be   : > { %v2840_v43 = vpop.xlane.xlu0 %2839 }
 0x7bf   : > { %v2858_v24 = vmul.f32 %v2840_v43, %v5680_v41 }
 0x7c1   : > { %v4547_v51 = vpop.eup %4546  ;;  %v2874_v7 = vadd.f32 1e-05, %v2858_v24 }
 0x7c2   : > { %v3007_v53 = vmul.f32 %v4547_v51, %v2873_v6  ;;  %vm3013_vm15 = vweird.f32 %v4547_v51 }
 0x7c3   : > { %4548 = vrsqrt.f32 %v2874_v7  ;;  %vm3014_vm2 = vmor %vm3012_vm1, %vm3013_vm15  ;;  %vm3022_vm6 = vweird.f32 %v2874_v7 }
 0x7c4   : > { %v3008_v10 = vmul.f32 %v4547_v51, %v3007_v53 }
 0x7c6   : > { %v3009_v9 = vmul.f32 0.5, %v3008_v10 }
 0x7c8   : > { %v3010_v17 = vsub.f32 1.5, %v3009_v9 }
 0x7c9   : > { %v4549_v44 = vpop.eup %4548 }
 0x7ca   : > { %v3011_v36 = vmul.f32 %v4547_v51, %v3010_v17  ;;  %v3017_v45 = vmul.f32 %v4549_v44, %v2874_v7  ;;  %vm3023_vm3 = vweird.f32 %v4549_v44 }
 0x7cb   : > { %vm3024_vm7 = vmor %vm3022_vm6, %vm3023_vm3 }
 0x7cc   : > { %v3015_v14 = vsel %vm3014_vm2, %v4547_v51, %v3011_v36  ;;  %v3018_v4 = vmul.f32 %v4549_v44, %v3017_v45 }
 0x7cd   : > { %v3049_v22 = vmul.f32 %v3015_v14, %v5897_v12 }
 0x7ce   : > { %v3019_v40 = vmul.f32 0.5, %v3018_v4 }
 0x7cf   : > { %v3068_v5 = vmul.f32 %v5799_v56, %v3049_v22 }
 0x7d0   : > { %v3020_v47 = vsub.f32 1.5, %v3019_v40 }
 0x7d1   : > { %v5986_v55 = vadd.f32 %v5808_v60, %v3068_v5 }
 0x7d2   : > { %v3021_v28 = vmul.f32 %v4549_v44, %v3020_v47 }
 0x7d3   : > { %v3096_v12 = vpack.c.bf16 %v5986_v55, %v5983_v15 }
 0x7d4   : > { %v3025_v3 = vsel %vm3024_vm7, %v4549_v44, %v3021_v28 }
 0x7d5   : > { %v3166_v25 = vpop.f32.mrf.mxu2  ;;  %4326 = vmatmul.msk.bf16.gmra.mxu2 %vm543_vm0, %v3096_v12  ;;  %v3050_v19 = vmul.f32 %v3025_v3, %v5911_v32 }
 0x7d6   : > { %v3167_v39 = vadd.f32 %v5936_v26, %v3166_v25 }
 0x7d7   : > { %v3069_v61 = vmul.f32 %v5799_v56, %v3050_v19  ;;  %v6010_v56 = vld [vmem:[%s6891_s10] ss:$0 sm:$0xff] }
 0x7d8   : > { %v3197_v13 = vmax.f32 %v3167_v39, 0.0 }
 0x7d9   : > { %v5998_v58 = vadd.f32 %v5808_v60, %v3069_v61 }
 0x7db   : > { %v3097_v38 = vpack.c.bf16 %v6001_v35, %v5998_v58 }
 0x7dd   : > { %v3168_v42 = vpop.f32.mrf.mxu2 }
 0x7de   : > { %v3169_v46 = vadd.f32 %v5936_v26, %v3168_v42 }
 0x7e0   : > { %v3198_v6 = vmax.f32 %v3169_v46, 0.0 }
 0x7e2   : > { %v3210_v32 = vpack.c.bf16 %v3198_v6, %v3197_v13 }
 0x7e4   : > { %4347 = vmatmul.msk.bf16.gmra.mxu3 %vm3251_vm5, %v3210_v32 }
 0x7e5   : > { %4327 = vmatmul.msk.bf16.gmra.mxu2 %vm543_vm0, %v3097_v38 }
 0x7ec   : > { %v3285_v18 = vpop.f32.mrf.mxu3 }
 0x7ed   : > { %v3286_v43 = vadd.f32 %v6010_v56, %v3285_v18 }
 0x7ef   : > { %v6014_v49 = vadd.f32 %v3286_v43, %v5817_v0 }
 0x7f1   : > { %v3343_v60 = vsel %vm543_vm0, %v6014_v49, 0.0 }
 0x7f2   : > { %3344 = vadd.xlane.f32.xlu1 %v3343_v60  ;;  %v3171_v24 = vpop.f32.mrf.mxu2 }
 0x7f3   : > { %v3172_v53 = vadd.f32 %v5936_v26, %v3171_v24 }
 0x7f4   : > { %v3287_v51 = vpop.f32.mrf.mxu3 }
 0x7f5   : > { %v3288_v7 = vadd.f32 %v6010_v56, %v3287_v51  ;;  %v3199_v20 = vmax.f32 %v3172_v53, 0.0 }
 0x7f7   : > { %v6020_v30 = vadd.f32 %v3288_v7, %v5820_v23 }
 0x7f9   : > { %v3346_v16 = vsel %vm543_vm0, %v6020_v30, 0.0 }
 0x7fa   : > { %3347 = vadd.xlane.f32.xlu0 %v3346_v16  ;;  %v3173_v10 = vpop.f32.mrf.mxu2 }
 0x7fb   : > { %v3174_v0 = vadd.f32 %v5936_v26, %v3173_v10 }
 0x7fd   : > { %v3200_v33 = vmax.f32 %v3174_v0, 0.0 }
 0x7ff   : > { %v3211_v9 = vpack.c.bf16 %v3200_v33, %v3199_v20 }
 0x801   : > { %4348 = vmatmul.msk.bf16.gmra.mxu3 %vm3251_vm5, %v3211_v9 }
 0x802   : > { %v3176_v17 = vpop.f32.mrf.mxu2 }
 0x803   : > { %v3177_v44 = vadd.f32 %v5936_v26, %v3176_v17 }
 0x805   : > { %v3201_v14 = vmax.f32 %v3177_v44, 0.0 }
 0x809   : > { %v3290_v63 = vpop.f32.mrf.mxu3 }
 0x80a   : > { %v3291_v23 = vadd.f32 %v6010_v56, %v3290_v63  ;;  %v3178_v48 = vpop.f32.mrf.mxu2 }
 0x80b   : > { %v3179_v36 = vadd.f32 %v5936_v26, %v3178_v48 }
 0x80c   : > { %v6031_v45 = vadd.f32 %v3291_v23, %v5858_v1 }
 0x80d   : > { %v3202_v4 = vmax.f32 %v3179_v36, 0.0 }
 0x80e   : > { %v3349_v22 = vsel %vm543_vm0, %v6031_v45, 0.0 }
 0x80f   : > { %v3212_v37 = vpack.c.bf16 %v3202_v4, %v3201_v14  ;;  %3350 = vadd.xlane.f32.xlu2 %v3349_v22 }
 0x811   : > { %v3292_v2 = vpop.f32.mrf.mxu3  ;;  %4349 = vmatmul.msk.bf16.gmra.mxu3 %vm3251_vm5, %v3212_v37 }
 0x812   : > { %v3293_v40 = vadd.f32 %v6010_v56, %v3292_v2 }
 0x814   : > { %v6038_v5 = vadd.f32 %v3293_v40, %v5861_v57 }
 0x816   : > { %v3352_v47 = vsel %vm543_vm0, %v6038_v5, 0.0 }
 0x817   : > { %3353 = vadd.xlane.f32.xlu1 %v3352_v47 }
 0x819   : > { %v3295_v1 = vpop.f32.mrf.mxu3 }
 0x81a   : > { %v3296_v11 = vadd.f32 %v6010_v56, %v3295_v1 }
 0x81c   : > { %v6044_v28 = vadd.f32 %v3296_v11, %v5874_v59 }
 0x81e   : > { %v3355_v12 = vsel %vm543_vm0, %v6044_v28, 0.0 }
 0x81f   : > { %3356 = vadd.xlane.f32.xlu0 %v3355_v12 }
 0x821   : > { %v3297_v3 = vpop.f32.mrf.mxu3 }
 0x822   : > { %v3298_v25 = vadd.f32 %v6010_v56, %v3297_v3 }
 0x824   : > { %v6050_v57 = vadd.f32 %v3298_v25, %v5877_v27 }
 0x826   : > { %v3358_v34 = vsel %vm543_vm0, %v6050_v57, 0.0 }
 0x827   : > { %3359 = vadd.xlane.f32.xlu2 %v3358_v34 }
 0x858   : > { %v3181_v19 = vpop.f32.mrf.mxu2 }
 0x859   : > { %v3182_v8 = vadd.f32 %v5936_v26, %v3181_v19 }
 0x85b   : > { %v3203_v39 = vmax.f32 %v3182_v8, 0.0 }
 0x860   : > { %v3183_v61 = vpop.f32.mrf.mxu2 }
 0x861   : > { %v3184_v59 = vadd.f32 %v5936_v26, %v3183_v61 }
 0x863   : > { %v3204_v42 = vmax.f32 %v3184_v59, 0.0 }
 0x865   : > { %v3213_v50 = vpack.c.bf16 %v3204_v42, %v3203_v39  ;;  %v3345_v2 = vpop.xlane.xlu1 %3344 }
 0x866   : > { %v3391_v47 = vmul.f32 %v3345_v2, %v5680_v41 }
 0x867   : > { %v3300_v46 = vpop.f32.mrf.mxu3  ;;  %4350 = vmatmul.msk.bf16.gmra.mxu3 %vm3251_vm5, %v3213_v50 }
 0x868   : > { %v3301_v13 = vadd.f32 %v6010_v56, %v3300_v46  ;;  %v3186_v27 = vpop.f32.mrf.mxu2  ;;  %v6108_v11 = vsub.f32 %v6014_v49, %v3391_v47 }
 0x869   : > { %v3187_v38 = vadd.f32 %v5936_v26, %v3186_v27 }
 0x86a   : > { %v6059_v6 = vadd.f32 %v3301_v13, %v5923_v54  ;;  %v3423_v8 = vmul.f32 %v6108_v11, %v6108_v11 }
 0x86b   : > { %v3205_v7 = vmax.f32 %v3187_v38, 0.0 }
 0x86c   : > { %v3361_v32 = vsel %vm543_vm0, %v6059_v6, 0.0  ;;  %v3439_v59 = vsel %vm543_vm0, %v3423_v8, 0.0 }
 0x86d   : > { %3362 = vadd.xlane.f32.xlu1 %v3361_v32  ;;  %v3348_v3 = vpop.xlane.xlu0 %3347 }
 0x86f   : > { %v3302_v18 = vpop.f32.mrf.mxu3 }
 0x870   : > { %v3303_v43 = vadd.f32 %v6010_v56, %v3302_v18  ;;  %v3188_v60 = vpop.f32.mrf.mxu2 }
 0x871   : > { %v3189_v24 = vadd.f32 %v5936_v26, %v3188_v60 }
 0x872   : > { %v6067_v51 = vadd.f32 %v3303_v43, %v5926_v62 }
 0x873   : > { %v3206_v16 = vmax.f32 %v3189_v24, 0.0 }
 0x874   : > { %v3364_v54 = vsel %vm543_vm0, %v6067_v51, 0.0 }
 0x875   : > { %v3214_v53 = vpack.c.bf16 %v3206_v16, %v3205_v7  ;;  %3365 = vadd.xlane.f32.xlu0 %v3364_v54 }
 0x877   : > { %4351 = vmatmul.msk.bf16.gmra.mxu3 %vm3251_vm5, %v3214_v53 }
 0x882   : > { %v3351_v50 = vpop.xlane.xlu2 %3350 }
 0x884   : > { %v3305_v10 = vpop.f32.mrf.mxu3 }
 0x885   : > { %v3306_v0 = vadd.f32 %v6010_v56, %v3305_v10 }
 0x887   : > { %v6074_v20 = vadd.f32 %v3306_v0, %v5947_v21 }
 0x889   : > { %v3367_v26 = vsel %vm543_vm0, %v6074_v20, 0.0 }
 0x88a   : > { %3368 = vadd.xlane.f32.xlu2 %v3367_v26  ;;  %v3354_v12 = vpop.xlane.xlu1 %3353 }
 0x88b   : > { %v3394_v34 = vmul.f32 %v3354_v12, %v5680_v41 }
 0x88c   : > { %v3307_v62 = vpop.f32.mrf.mxu3 }
 0x88d   : > { %v3308_v33 = vadd.f32 %v6010_v56, %v3307_v62  ;;  %v6121_v49 = vsub.f32 %v6038_v5, %v3394_v34 }
 0x88f   : > { %v6080_v9 = vadd.f32 %v3308_v33, %v5950_v29  ;;  %v3426_v38 = vmul.f32 %v6121_v49, %v6121_v49 }
 0x891   : > { %v3370_v17 = vsel %vm543_vm0, %v6080_v9, 0.0  ;;  %v3448_v7 = vsel %vm543_vm0, %v3426_v38, 0.0 }
 0x892   : > { %3371 = vadd.xlane.f32.xlu1 %v3370_v17  ;;  %v3357_v13 = vpop.xlane.xlu0 %3356 }
 0x893   : > { %v3395_v18 = vmul.f32 %v3357_v13, %v5680_v41 }
 0x894   : > { %v3310_v44 = vpop.f32.mrf.mxu3 }
 0x895   : > { %v3311_v63 = vadd.f32 %v6010_v56, %v3310_v44  ;;  %v6150_v16 = vsub.f32 %v6044_v28, %v3395_v18 }
 0x897   : > { %v6086_v21 = vadd.f32 %v3311_v63, %v5960_v52  ;;  %v3427_v62 = vmul.f32 %v6150_v16, %v6150_v16 }
 0x899   : > { %v3373_v23 = vsel %vm543_vm0, %v6086_v21, 0.0 }
 0x89a   : > { %3374 = vadd.xlane.f32.xlu0 %v3373_v23  ;;  %v3360_v54 = vpop.xlane.xlu2 %3359 }
 0x89c   : > { %v3312_v48 = vpop.f32.mrf.mxu3 }
 0x89d   : > { %v3313_v36 = vadd.f32 %v6010_v56, %v3312_v48 }
 0x89f   : > { %v6092_v29 = vadd.f32 %v3313_v36, %v5963_v31  ;;  %v3451_v36 = vsel %vm543_vm0, %v3427_v62, 0.0 }
 0x8a1   : > { %v3376_v14 = vsel %vm543_vm0, %v6092_v29, 0.0 }
 0x8a2   : > { %3377 = vadd.xlane.f32.xlu2 %v3376_v14 }
 0x8e0   : > { %v3363_v46 = vpop.xlane.xlu1 %3362 }
 0x8e1   : > { %v3397_v32 = vmul.f32 %v3363_v46, %v5680_v41 }
 0x8e3   : > { %v6144_v24 = vsub.f32 %v6059_v6, %v3397_v32 }
 0x8e5   : > { %v3429_v0 = vmul.f32 %v6144_v24, %v6144_v24 }
 0x8e7   : > { %v3457_v44 = vsel %vm543_vm0, %v3429_v0, 0.0 }
 0x8e8   : > { %v3366_v10 = vpop.xlane.xlu0 %3365 }
 0x8e9   : > { %v3398_v28 = vmul.f32 %v3366_v10, %v5680_v41 }
 0x8ea   : > { %v3315_v4 = vpop.f32.mrf.mxu3 }
 0x8eb   : > { %v3316_v22 = vadd.f32 %v6010_v56, %v3315_v4  ;;  %v6171_v23 = vsub.f32 %v6067_v51, %v3398_v28 }
 0x8ed   : > { %v6098_v52 = vadd.f32 %v3316_v22, %v5983_v15  ;;  %v3430_v51 = vmul.f32 %v6171_v23, %v6171_v23 }
 0x8ef   : > { %v3379_v37 = vsel %vm543_vm0, %v6098_v52, 0.0 }
 0x8f0   : > { %3380 = vadd.xlane.f32.xlu1 %v3379_v37 }
 0x8f2   : > { %v3317_v40 = vpop.f32.mrf.mxu3 }
 0x8f3   : > { %v3318_v31 = vadd.f32 %v6010_v56, %v3317_v40 }
 0x8f5   : > { %v6105_v1 = vadd.f32 %v3318_v31, %v5986_v55  ;;  %v3392_v55 = vmul.f32 %v3348_v3, %v5680_v41 }
 0x8f7   : > { %v3382_v15 = vsel %vm543_vm0, %v6105_v1, 0.0  ;;  %v6127_v42 = vsub.f32 %v6020_v30, %v3392_v55 }
 0x8f8   : > { %3383 = vadd.xlane.f32.xlu0 %v3382_v15  ;;  %v3460_v15 = vsel %vm543_vm0, %v3430_v51, 0.0 }
 0x8f9   : > { %v3424_v30 = vmul.f32 %v6127_v42, %v6127_v42 }
 0x8fa   : > { %v3320_v25 = vpop.f32.mrf.mxu3 }
 0x8fb   : > { %v3321_v19 = vadd.f32 %v6010_v56, %v3320_v25 }
 0x8fd   : > { %v6118_v61 = vadd.f32 %v3321_v19, %v5998_v58  ;;  %v3393_v58 = vmul.f32 %v3351_v50, %v5680_v41  ;;  %v3369_v48 = vpop.xlane.xlu2 %3368 }
 0x8ff   : > { %v3385_v39 = vsel %vm543_vm0, %v6118_v61, 0.0  ;;  %v6141_v60 = vsub.f32 %v6031_v45, %v3393_v58  ;;  %v3396_v45 = vmul.f32 %v3360_v54, %v5680_v41 }
 0x900   : > { %3440 = vadd.xlane.f32.xlu0 %v3439_v59  ;;  %3386 = vadd.xlane.f32.xlu2 %v3385_v39 }
 0x901   : > { %v3425_v26 = vmul.f32 %v6141_v60, %v6141_v60  ;;  %v6163_v33 = vsub.f32 %v6050_v57, %v3396_v45  ;;  %v3399_v57 = vmul.f32 %v3369_v48, %v5680_v41 }
 0x902   : > { %v3322_v27 = vpop.f32.mrf.mxu3 }
 0x903   : > { %v3323_v5 = vadd.f32 %v6010_v56, %v3322_v27  ;;  %v3445_v63 = vsel %vm543_vm0, %v3425_v26, 0.0  ;;  %v3428_v4 = vmul.f32 %v6163_v33, %v6163_v33  ;;  %v6183_v37 = vsub.f32 %v6074_v20, %v3399_v57 }
 0x905   : > { %v6138_v43 = vadd.f32 %v3323_v5, %v6001_v35  ;;  %v3372_v53 = vpop.xlane.xlu1 %3371  ;;  %v3442_v35 = vsel %vm543_vm0, %v3424_v30, 0.0  ;;  %v3454_v40 = vsel %vm543_vm0, %v3428_v4, 0.0  ;;  %v3431_v3 = vmul.f32 %v6183_v37, %v6183_v37 }
 0x906   : > { %v3400_v6 = vmul.f32 %v3372_v53, %v5680_v41 }
 0x907   : > { %v3388_v56 = vsel %vm543_vm0, %v6138_v43, 0.0 }
 0x908   : > { %3449 = vadd.xlane.f32.xlu0 %v3448_v7  ;;  %3389 = vadd.xlane.f32.xlu1 %v3388_v56  ;;  %v6166_v17 = vsub.f32 %v6080_v9, %v3400_v6 }
 0x909   : > { %3443 = vadd.xlane.f32.xlu2 %v3442_v35 }
 0x90a   : > { %v3432_v9 = vmul.f32 %v6166_v17, %v6166_v17 }
 0x90c   : > { %v3466_v2 = vsel %vm543_vm0, %v3432_v9, 0.0 }
 0x90d   : > { %v3375_v14 = vpop.xlane.xlu0 %3374 }
 0x90e   : > { %v3401_v22 = vmul.f32 %v3375_v14, %v5680_v41 }
 0x910   : > { %3458 = vadd.xlane.f32.xlu0 %v3457_v44  ;;  %3446 = vadd.xlane.f32.xlu1 %v3445_v63  ;;  %v6188_v47 = vsub.f32 %v6086_v21, %v3401_v22  ;;  %v3463_v21 = vsel %vm543_vm0, %v3431_v3, 0.0 }
 0x911   : > { %3452 = vadd.xlane.f32.xlu2 %v3451_v36 }
 0x912   : > { %v3433_v20 = vmul.f32 %v6188_v47, %v6188_v47 }
 0x914   : > { %v3469_v34 = vsel %vm543_vm0, %v3433_v20, 0.0 }
 0x915   : > { %v3378_v31 = vpop.xlane.xlu2 %3377 }
 0x916   : > { %v3402_v12 = vmul.f32 %v3378_v31, %v5680_v41 }
 0x918   : > { %3467 = vadd.xlane.f32.xlu0 %v3466_v2  ;;  %3455 = vadd.xlane.f32.xlu1 %v3454_v40  ;;  %v6197_v25 = vsub.f32 %v6092_v29, %v3402_v12 }
 0x919   : > { %3461 = vadd.xlane.f32.xlu2 %v3460_v15 }
 0x91a   : > { %v3434_v19 = vmul.f32 %v6197_v25, %v6197_v25 }
 0x91c   : > { %v3472_v8 = vsel %vm543_vm0, %v3434_v19, 0.0 }
 0x920   : > { %3464 = vadd.xlane.f32.xlu1 %v3463_v21 }
 0x921   : > { %3470 = vadd.xlane.f32.xlu2 %v3469_v34 }
 0x928   : > { %3473 = vadd.xlane.f32.xlu1 %v3472_v8 }
 0x963   : > { %v3381_v55 = vpop.xlane.xlu1 %3380 }
 0x964   : > { %v3403_v59 = vmul.f32 %v3381_v55, %v5680_v41 }
 0x966   : > { %v6206_v39 = vsub.f32 %v6098_v52, %v3403_v59 }
 0x968   : > { %v3435_v29 = vmul.f32 %v6206_v39, %v6206_v39 }
 0x96a   : > { %v3475_v50 = vsel %vm543_vm0, %v3435_v29, 0.0 }
 0x96b   : > { %3476 = vadd.xlane.f32.xlu0 %v3475_v50  ;;  %v3384_v46 = vpop.xlane.xlu0 %3383 }
 0x96c   : > { %v3404_v13 = vmul.f32 %v3384_v46, %v5680_v41  ;;  %v6267_v46 = vld [vmem:[%s6892_s11] ss:$0 sm:$0xff] }
 0x96e   : > { %v6213_v27 = vsub.f32 %v6105_v1, %v3404_v13 }
 0x970   : > { %v3436_v58 = vmul.f32 %v6213_v27, %v6213_v27 }
 0x972   : > { %v3478_v32 = vsel %vm543_vm0, %v3436_v58, 0.0 }
 0x973   : > { %v3387_v5 = vpop.xlane.xlu2 %3386  ;;  %3479 = vadd.xlane.f32.xlu2 %v3478_v32  ;;  %v3441_v52 = vpop.xlane.xlu0 %3440 }
 0x974   : > { %v3405_v38 = vmul.f32 %v3387_v5, %v5680_v41  ;;  %v3487_v18 = vmul.f32 %v3441_v52, %v5680_v41 }
 0x976   : > { %v6221_v30 = vsub.f32 %v6118_v61, %v3405_v38  ;;  %v3503_v7 = vadd.f32 1e-05, %v3487_v18 }
 0x978   : > { %4550 = vrsqrt.f32 %v3503_v7  ;;  %v3437_v1 = vmul.f32 %v6221_v30, %v6221_v30  ;;  %vm3525_vm10 = vweird.f32 %v3503_v7 }
 0x97a   : > { %v3481_v56 = vsel %vm543_vm0, %v3437_v1, 0.0 }
 0x97b   : > { %v3390_v54 = vpop.xlane.xlu1 %3389  ;;  %3482 = vadd.xlane.f32.xlu1 %v3481_v56  ;;  %v3450_v53 = vpop.xlane.xlu0 %3449 }
 0x97c   : > { %v3406_v35 = vmul.f32 %v3390_v54, %v5680_v41  ;;  %v3444_v10 = vpop.xlane.xlu2 %3443  ;;  %v3490_v45 = vmul.f32 %v3450_v53, %v5680_v41 }
 0x97d   : > { %v3488_v6 = vmul.f32 %v3444_v10, %v5680_v41  ;;  %v6290_v10 = vld [vmem:[%s6893_s12] ss:$0 sm:$0xff] }
 0x97e   : > { %v4551_v0 = vpop.eup %4550  ;;  %v6230_v61 = vsub.f32 %v6138_v43, %v3406_v35  ;;  %v6232_v26 = vadd.f32 1e-05, %v3490_v45 }
 0x97f   : > { %v3520_v28 = vmul.f32 %v4551_v0, %v3503_v7  ;;  %v6234_v62 = vadd.f32 1e-05, %v3488_v6  ;;  %vm3526_vm5 = vweird.f32 %v4551_v0 }
 0x980   : > { %4552 = vrsqrt.f32 %v6232_v26  ;;  %v3438_v44 = vmul.f32 %v6230_v61, %v6230_v61  ;;  %vm3527_vm11 = vmor %vm3525_vm10, %vm3526_vm5  ;;  %vm3555_vm15 = vweird.f32 %v6232_v26 }
 0x981   : > { %v3521_v63 = vmul.f32 %v4551_v0, %v3520_v28  ;;  %4554 = vrsqrt.f32 %v6234_v62  ;;  %vm3535_vm14 = vweird.f32 %v6234_v62 }
 0x982   : > { %v3484_v48 = vsel %vm543_vm0, %v3438_v44, 0.0 }
 0x983   : > { %v3522_v36 = vmul.f32 0.5, %v3521_v63  ;;  %3485 = vadd.xlane.f32.xlu0 %v3484_v48  ;;  %v3447_v14 = vpop.xlane.xlu1 %3446  ;;  %v3459_v43 = vpop.xlane.xlu0 %3458 }
 0x984   : > { %v3489_v57 = vmul.f32 %v3447_v14, %v5680_v41  ;;  %v3453_v9 = vpop.xlane.xlu2 %3452  ;;  %v3493_v4 = vmul.f32 %v3459_v43, %v5680_v41 }
 0x985   : > { %v3523_v22 = vsub.f32 1.5, %v3522_v36  ;;  %v3491_v51 = vmul.f32 %v3453_v9, %v5680_v41 }
 0x986   : > { %v6244_v2 = vpop.eup %4552  ;;  %v6246_v40 = vadd.f32 1e-05, %v3489_v57  ;;  %v6248_v31 = vadd.f32 1e-05, %v3493_v4 }
 0x987   : > { %v6250_v15 = vpop.eup %4554  ;;  %v3524_v12 = vmul.f32 %v4551_v0, %v3523_v22  ;;  %v3550_v3 = vmul.f32 %v6244_v2, %v6232_v26  ;;  %v6254_v20 = vadd.f32 1e-05, %v3491_v51  ;;  %vm3556_vm13 = vweird.f32 %v6244_v2 }
 0x988   : > { %v3530_v21 = vmul.f32 %v6250_v15, %v6234_v62  ;;  %4556 = vrsqrt.f32 %v6246_v40  ;;  %vm3536_vm12 = vweird.f32 %v6250_v15  ;;  %vm6306_vm1 = vmor %vm3555_vm15, %vm3556_vm13  ;;  %vm3545_vm2 = vweird.f32 %v6246_v40 }
 0x989   : > { %v3551_v34 = vmul.f32 %v6244_v2, %v3550_v3  ;;  %4558 = vrsqrt.f32 %v6254_v20  ;;  %v3528_v8 = vsel %vm3527_vm11, %v4551_v0, %v3524_v12  ;;  %vm3565_vm3 = vweird.f32 %v6254_v20  ;;  %vm6316_vm4 = vmor %vm3535_vm14, %vm3536_vm12 }
 0x98a   : > { %v3531_v19 = vmul.f32 %v6250_v15, %v3530_v21  ;;  %4560 = vrsqrt.f32 %v6248_v31  ;;  %v3679_v50 = vmul.f32 %v3528_v8, %v6108_v11  ;;  %vm3585_vm8 = vweird.f32 %v6248_v31 }
 0x98b   : > { %v3552_v55 = vmul.f32 0.5, %v3551_v34  ;;  %v3456_v59 = vpop.xlane.xlu1 %3455  ;;  %v3468_v29 = vpop.xlane.xlu0 %3467 }
 0x98c   : > { %v3532_v13 = vmul.f32 0.5, %v3531_v19  ;;  %v3492_v58 = vmul.f32 %v3456_v59, %v5680_v41  ;;  %v3462_v32 = vpop.xlane.xlu2 %3461  ;;  %v3496_v5 = vmul.f32 %v3468_v29, %v5680_v41  ;;  %v3698_v35 = vmul.f32 %v6267_v46, %v3679_v50 }
 0x98d   : > { %v3553_v52 = vsub.f32 1.5, %v3552_v55  ;;  %v3494_v38 = vmul.f32 %v3462_v32, %v5680_v41 }
 0x98e   : > { %v6272_v18 = vpop.eup %4556  ;;  %v3533_v7 = vsub.f32 1.5, %v3532_v13  ;;  %v6276_v11 = vadd.f32 1e-05, %v3492_v58  ;;  %v6284_v53 = vadd.f32 1e-05, %v3496_v5  ;;  %v6323_v43 = vadd.f32 %v6290_v10, %v3698_v35 }
 0x98f   : > { %v6278_v1 = vpop.eup %4558  ;;  %v3540_v56 = vmul.f32 %v6272_v18, %v6246_v40  ;;  %v6282_v54 = vadd.f32 1e-05, %v3494_v38  ;;  %v3554_v0 = vmul.f32 %v6244_v2, %v3553_v52  ;;  %vm3546_vm6 = vweird.f32 %v6272_v18 }
 0x990   : > { %v6292_v45 = vpop.eup %4560  ;;  %v3534_v6 = vmul.f32 %v6250_v15, %v3533_v7  ;;  %v3560_v28 = vmul.f32 %v6278_v1, %v6254_v20  ;;  %4562 = vrsqrt.f32 %v6276_v11  ;;  %v3735_v34 = vsel %vm543_vm0, %v6323_v43, 0.0  ;;  %vm6364_vm10 = vmor %vm3545_vm2, %vm3546_vm6 }
 0x991   : > { %v3541_v44 = vmul.f32 %v6272_v18, %v3540_v56  ;;  %v3580_v63 = vmul.f32 %v6292_v45, %v6248_v31  ;;  %4564 = vrsqrt.f32 %v6282_v54  ;;  %v3558_v12 = vsel %vm6306_vm1, %v6244_v2, %v3554_v0  ;;  %3736 = vadd.xlane.f32.xlu2 %v3735_v34 }
 0x992   : > { %v3561_v36 = vmul.f32 %v6278_v1, %v3560_v28  ;;  %4566 = vrsqrt.f32 %v6284_v53  ;;  %v3538_v51 = vsel %vm6316_vm4, %v6250_v15, %v3534_v6  ;;  %vm3566_vm7 = vweird.f32 %v6278_v1 }
 0x993   : > { %v3542_v62 = vmul.f32 0.5, %v3541_v44  ;;  %v3581_v14 = vmul.f32 %v6292_v45, %v3580_v63  ;;  %v3465_v57 = vpop.xlane.xlu1 %3464  ;;  %v3680_v29 = vmul.f32 %v3538_v51, %v6127_v42  ;;  %v3682_v50 = vmul.f32 %v3558_v12, %v6121_v49  ;;  %vm6378_vm13 = vmor %vm3565_vm3, %vm3566_vm7 }
 0x994   : > { %v3562_v9 = vmul.f32 0.5, %v3561_v36  ;;  %v3495_v4 = vmul.f32 %v3465_v57, %v5680_v41  ;;  %v3471_v22 = vpop.xlane.xlu2 %3470  ;;  %vm3586_vm9 = vweird.f32 %v6292_v45  ;;  %vm3575_vm5 = vweird.f32 %v6276_v11 }
 0x995   : > { %v3543_v3 = vsub.f32 1.5, %v3542_v62  ;;  %v3582_v21 = vmul.f32 0.5, %v3581_v14  ;;  %v3497_v19 = vmul.f32 %v3471_v22, %v5680_v41  ;;  %vm3595_vm12 = vweird.f32 %v6282_v54  ;;  %vm6422_vm2 = vmor %vm3585_vm8, %vm3586_vm9 }
 0x996   : > { %v6335_v8 = vpop.eup %4562  ;;  %v3563_v55 = vsub.f32 1.5, %v3562_v9  ;;  %v6339_v15 = vadd.f32 1e-05, %v3495_v4  ;;  %vm3615_vm14 = vweird.f32 %v6284_v53  ;;  %v3699_v0 = vmul.f32 %v6267_v46, %v3680_v29 }
 0x997   : > { %v3583_v59 = vsub.f32 1.5, %v3582_v21  ;;  %v3570_v2 = vmul.f32 %v6335_v8, %v6276_v11  ;;  %v6345_v13 = vpop.eup %4564  ;;  %v3544_v58 = vmul.f32 %v6272_v18, %v3543_v3  ;;  %v6351_v5 = vadd.f32 1e-05, %v3497_v19 }
 0x998   : > { %v3564_v32 = vmul.f32 %v6278_v1, %v3563_v55  ;;  %4568 = vrsqrt.f32 %v6339_v15  ;;  %v6353_v52 = vpop.eup %4566  ;;  %v3590_v49 = vmul.f32 %v6345_v13, %v6282_v54  ;;  %vm3576_vm11 = vweird.f32 %v6335_v8 }
 0x999   : > { %v3571_v42 = vmul.f32 %v6335_v8, %v3570_v2  ;;  %v3584_v7 = vmul.f32 %v6292_v45, %v3583_v59  ;;  %v3610_v56 = vmul.f32 %v6353_v52, %v6284_v53  ;;  %4570 = vrsqrt.f32 %v6351_v5  ;;  %vm3577_vm4 = vmor %vm3575_vm5, %vm3576_vm11 }
 0x99a   : > { %v3591_v6 = vmul.f32 %v6345_v13, %v3590_v49  ;;  %v3701_v28 = vmul.f32 %v6267_v46, %v3682_v50  ;;  %v3548_v20 = vsel %vm6364_vm10, %v6272_v18, %v3544_v58  ;;  %v3568_v36 = vsel %vm6378_vm13, %v6278_v1, %v3564_v32 }
 0x99b   : > { %v3572_v35 = vmul.f32 0.5, %v3571_v42  ;;  %v3474_v44 = vpop.xlane.xlu1 %3473  ;;  %v3611_v63 = vmul.f32 %v6353_v52, %v3610_v56  ;;  %v6395_v14 = vadd.f32 %v6290_v10, %v3699_v0  ;;  %v3681_v51 = vmul.f32 %v3548_v20, %v6141_v60 }
 0x99c   : > { %v3498_v48 = vmul.f32 %v3474_v44, %v5680_v41  ;;  %v3592_v62 = vmul.f32 0.5, %v3591_v6  ;;  %v6398_v57 = vadd.f32 %v6290_v10, %v3701_v28  ;;  %v3683_v18 = vmul.f32 %v3568_v36, %v6150_v16 }
 0x99d   : > { %v3573_v26 = vsub.f32 1.5, %v3572_v35  ;;  %v3612_v4 = vmul.f32 0.5, %v3611_v63  ;;  %vm3596_vm15 = vweird.f32 %v6345_v13  ;;  %vm3605_vm1 = vweird.f32 %v6339_v15 }
 0x99e   : > { %v6400_v9 = vpop.eup %4568  ;;  %v6402_v22 = vadd.f32 1e-05, %v3498_v48  ;;  %v3593_v1 = vsub.f32 1.5, %v3592_v62  ;;  %v3738_v19 = vsel %vm543_vm0, %v6395_v14, 0.0  ;;  %v3744_v60 = vsel %vm543_vm0, %v6398_v57, 0.0  ;;  %vm6443_vm7 = vmor %vm3595_vm12, %vm3596_vm15 }
 0x99f   : > { %v3574_v12 = vmul.f32 %v6335_v8, %v3573_v26  ;;  %v3600_v3 = vmul.f32 %v6400_v9, %v6339_v15  ;;  %v6411_v21 = vpop.eup %4570  ;;  %v3613_v34 = vsub.f32 1.5, %v3612_v4  ;;  %vm3616_vm3 = vweird.f32 %v6353_v52  ;;  %3739 = vadd.xlane.f32.xlu1 %v3738_v19  ;;  %3745 = vadd.xlane.f32.xlu2 %v3744_v60 }
 0x9a0   : > { %4572 = vrsqrt.f32 %v6402_v22  ;;  %v3594_v55 = vmul.f32 %v6345_v13, %v3593_v1  ;;  %v3620_v2 = vmul.f32 %v6411_v21, %v6351_v5  ;;  %vm3606_vm6 = vweird.f32 %v6400_v9  ;;  %vm6456_vm8 = vmor %vm3615_vm14, %vm3616_vm3 }
 0x9a1   : > { %v3601_v59 = vmul.f32 %v6400_v9, %v3600_v3  ;;  %v3614_v31 = vmul.f32 %v6353_v52, %v3613_v34  ;;  %v3700_v29 = vmul.f32 %v6267_v46, %v3681_v51  ;;  %v3702_v50 = vmul.f32 %v6267_v46, %v3683_v18  ;;  %vm6487_vm5 = vmor %vm3605_vm1, %vm3606_vm6 }
 0x9a2   : > { %v3621_v11 = vmul.f32 %v6411_v21, %v3620_v2  ;;  %v3588_v42 = vsel %vm6422_vm2, %v6292_v45, %v3584_v7  ;;  %v3578_v49 = vsel %vm3577_vm4, %v6335_v8, %v3574_v12  ;;  %v3598_v53 = vsel %vm6443_vm7, %v6345_v13, %v3594_v55 }
 0x9a3   : > { %v3602_v32 = vmul.f32 0.5, %v3601_v59  ;;  %v6461_v54 = vadd.f32 %v6290_v10, %v3700_v29  ;;  %v6464_v56 = vadd.f32 %v6290_v10, %v3702_v50  ;;  %v3685_v40 = vmul.f32 %v3588_v42, %v6144_v24 }
 0x9a4   : > { %v3684_v45 = vmul.f32 %v3578_v49, %v6163_v33  ;;  %v3622_v8 = vmul.f32 0.5, %v3621_v11  ;;  %v3618_v35 = vsel %vm6456_vm8, %v6353_v52, %v3614_v31  ;;  %vm3626_vm9 = vweird.f32 %v6411_v21 }
 0x9a5   : > { %v3603_v7 = vsub.f32 1.5, %v3602_v32  ;;  %v3741_v0 = vsel %vm543_vm0, %v6461_v54, 0.0  ;;  %v3747_v28 = vsel %vm543_vm0, %v6464_v56, 0.0  ;;  %v3704_v24 = vmul.f32 %v6267_v46, %v3685_v40 }
 0x9a6   : > { %v4573_v6 = vpop.eup %4572  ;;  %v3703_v33 = vmul.f32 %v6267_v46, %v3684_v45  ;;  %v3623_v63 = vsub.f32 1.5, %v3622_v8  ;;  %3742 = vadd.xlane.f32.xlu0 %v3741_v0  ;;  %v3686_v36 = vmul.f32 %v3598_v53, %v6171_v23  ;;  %v3688_v26 = vmul.f32 %v3618_v35, %v6166_v17 }
 0x9a7   : > { %v3604_v44 = vmul.f32 %v6400_v9, %v3603_v7  ;;  %v3630_v13 = vmul.f32 %v4573_v6, %v6402_v22  ;;  %v6492_v48 = vadd.f32 %v6290_v10, %v3704_v24  ;;  %vm3625_vm10 = vweird.f32 %v6351_v5  ;;  %3748 = vadd.xlane.f32.xlu1 %v3747_v28 }
 0x9a8   : > { %v6495_v20 = vadd.f32 %v6290_v10, %v3703_v33  ;;  %v3624_v62 = vmul.f32 %v6411_v21, %v3623_v63  ;;  %vm3627_vm11 = vmor %vm3625_vm10, %vm3626_vm9  ;;  %v3705_v18 = vmul.f32 %v6267_v46, %v3686_v36  ;;  %v3707_v23 = vmul.f32 %v6267_v46, %v3688_v26 }
 0x9a9   : > { %v3631_v4 = vmul.f32 %v4573_v6, %v3630_v13  ;;  %v3608_v15 = vsel %vm6487_vm5, %v6400_v9, %v3604_v44  ;;  %v3753_v51 = vsel %vm543_vm0, %v6492_v48, 0.0  ;;  %vm3636_vm12 = vweird.f32 %v4573_v6 }
 0x9aa   : > { %3754 = vadd.xlane.f32.xlu2 %v3753_v51  ;;  %v3687_v17 = vmul.f32 %v3608_v15, %v6183_v37  ;;  %v3628_v5 = vsel %vm3627_vm11, %v6411_v21, %v3624_v62  ;;  %v3750_v1 = vsel %vm543_vm0, %v6495_v20, 0.0  ;;  %v6513_v3 = vadd.f32 %v6290_v10, %v3705_v18 }
 0x9ab   : > { %v3632_v12 = vmul.f32 0.5, %v3631_v4  ;;  %v6516_v9 = vadd.f32 %v6290_v10, %v3707_v23  ;;  %v3689_v34 = vmul.f32 %v3628_v5, %v6188_v47  ;;  %vm3635_vm13 = vweird.f32 %v6402_v22 }
 0x9ac   : > { %v3706_v60 = vmul.f32 %v6267_v46, %v3687_v17  ;;  %v3756_v37 = vsel %vm543_vm0, %v6513_v3, 0.0  ;;  %vm3637_vm14 = vmor %vm3635_vm13, %vm3636_vm12 }
 0x9ad   : > { %v3633_v19 = vsub.f32 1.5, %v3632_v12  ;;  %v3708_v21 = vmul.f32 %v6267_v46, %v3689_v34  ;;  %v3762_v55 = vsel %vm543_vm0, %v6516_v9, 0.0 }
 0x9ae   : > { %3751 = vadd.xlane.f32.xlu0 %v3750_v1  ;;  %v6527_v59 = vadd.f32 %v6290_v10, %v3706_v60 }
 0x9af   : > { %v3634_v16 = vmul.f32 %v4573_v6, %v3633_v19  ;;  %3757 = vadd.xlane.f32.xlu1 %v3756_v37  ;;  %v6530_v2 = vadd.f32 %v6290_v10, %v3708_v21 }
 0x9b0   : > { %v3759_v29 = vsel %vm543_vm0, %v6527_v59, 0.0 }
 0x9b1   : > { %v3638_v47 = vsel %vm3637_vm14, %v4573_v6, %v3634_v16  ;;  %v3765_v50 = vsel %vm543_vm0, %v6530_v2, 0.0 }
 0x9b2   : > { %v3690_v31 = vmul.f32 %v3638_v47, %v6197_v25  ;;  %3763 = vadd.xlane.f32.xlu2 %v3762_v55 }
 0x9b4   : > { %v3709_v22 = vmul.f32 %v6267_v46, %v3690_v31 }
 0x9b6   : > { %3760 = vadd.xlane.f32.xlu0 %v3759_v29  ;;  %v6539_v58 = vadd.f32 %v6290_v10, %v3709_v22 }
 0x9b7   : > { %3766 = vadd.xlane.f32.xlu1 %v3765_v50 }
 0x9b8   : > { %v3768_v32 = vsel %vm543_vm0, %v6539_v58, 0.0 }
 0x9be   : > { %3769 = vadd.xlane.f32.xlu0 %v3768_v32 }
 0x9de   : > { %v3477_v11 = vpop.xlane.xlu0 %3476 }
 0x9df   : > { %v3499_v25 = vmul.f32 %v3477_v11, %v5680_v41 }
 0x9e1   : > { %v3515_v42 = vadd.f32 1e-05, %v3499_v25 }
 0x9e3   : > { %4574 = vrsqrt.f32 %v3515_v42  ;;  %vm3645_vm1 = vweird.f32 %v3515_v42 }
 0x9e6   : > { %v3480_v49 = vpop.xlane.xlu2 %3479 }
 0x9e7   : > { %v3500_v38 = vmul.f32 %v3480_v49, %v5680_v41 }
 0x9e9   : > { %v4575_v40 = vpop.eup %4574  ;;  %v3516_v45 = vadd.f32 1e-05, %v3500_v38 }
 0x9ea   : > { %v3640_v7 = vmul.f32 %v4575_v40, %v3515_v42  ;;  %vm3646_vm15 = vweird.f32 %v4575_v40 }
 0x9eb   : > { %4576 = vrsqrt.f32 %v3516_v45  ;;  %vm3647_vm2 = vmor %vm3645_vm1, %vm3646_vm15  ;;  %vm3655_vm4 = vweird.f32 %v3516_v45 }
 0x9ec   : > { %v3641_v8 = vmul.f32 %v4575_v40, %v3640_v7 }
 0x9ee   : > { %v3642_v53 = vmul.f32 0.5, %v3641_v8  ;;  %v3483_v35 = vpop.xlane.xlu1 %3482 }
 0x9ef   : > { %v3501_v6 = vmul.f32 %v3483_v35, %v5680_v41 }
 0x9f0   : > { %v3643_v0 = vsub.f32 1.5, %v3642_v53 }
 0x9f1   : > { %v4577_v28 = vpop.eup %4576  ;;  %v3517_v24 = vadd.f32 1e-05, %v3501_v6 }
 0x9f2   : > { %v3644_v33 = vmul.f32 %v4575_v40, %v3643_v0  ;;  %v3650_v44 = vmul.f32 %v4577_v28, %v3516_v45  ;;  %vm3656_vm3 = vweird.f32 %v4577_v28 }
 0x9f3   : > { %4578 = vrsqrt.f32 %v3517_v24  ;;  %vm3657_vm6 = vmor %vm3655_vm4, %vm3656_vm3  ;;  %vm3665_vm8 = vweird.f32 %v3517_v24 }
 0x9f4   : > { %v3651_v63 = vmul.f32 %v4577_v28, %v3650_v44  ;;  %v3648_v13 = vsel %vm3647_vm2, %v4575_v40, %v3644_v33 }
 0x9f5   : > { %v3691_v52 = vmul.f32 %v3648_v13, %v6206_v39 }
 0x9f6   : > { %v3652_v36 = vmul.f32 0.5, %v3651_v63  ;;  %v3486_v26 = vpop.xlane.xlu0 %3485 }
 0x9f7   : > { %v3502_v62 = vmul.f32 %v3486_v26, %v5680_v41  ;;  %v3710_v4 = vmul.f32 %v6267_v46, %v3691_v52 }
 0x9f8   : > { %v3653_v15 = vsub.f32 1.5, %v3652_v36 }
 0x9f9   : > { %v4579_v51 = vpop.eup %4578  ;;  %v3518_v18 = vadd.f32 1e-05, %v3502_v62  ;;  %v6550_v23 = vadd.f32 %v6290_v10, %v3710_v4 }
 0x9fa   : > { %v3654_v12 = vmul.f32 %v4577_v28, %v3653_v15  ;;  %v3660_v17 = vmul.f32 %v4579_v51, %v3517_v24  ;;  %vm3666_vm7 = vweird.f32 %v4579_v51 }
 0x9fb   : > { %4580 = vrsqrt.f32 %v3518_v18  ;;  %v3771_v39 = vsel %vm543_vm0, %v6550_v23, 0.0  ;;  %vm3667_vm9 = vmor %vm3665_vm8, %vm3666_vm7  ;;  %vm3675_vm10 = vweird.f32 %v3518_v18 }
 0x9fc   : > { %v3661_v5 = vmul.f32 %v4579_v51, %v3660_v17  ;;  %3772 = vadd.xlane.f32.xlu2 %v3771_v39  ;;  %v3658_v1 = vsel %vm3657_vm6, %v4577_v28, %v3654_v12 }
 0x9fd   : > { %v3692_v34 = vmul.f32 %v3658_v1, %v6213_v27 }
 0x9fe   : > { %v3662_v19 = vmul.f32 0.5, %v3661_v5 }
 0x9ff   : > { %v3711_v60 = vmul.f32 %v6267_v46, %v3692_v34 }
 0xa00   : > { %v3663_v37 = vsub.f32 1.5, %v3662_v19 }
 0xa01   : > { %v4581_v21 = vpop.eup %4580  ;;  %v6557_v16 = vadd.f32 %v6290_v10, %v3711_v60 }
 0xa02   : > { %v3664_v55 = vmul.f32 %v4579_v51, %v3663_v37  ;;  %v3670_v47 = vmul.f32 %v4581_v21, %v3518_v18  ;;  %vm3676_vm5 = vweird.f32 %v4581_v21 }
 0xa03   : > { %v3774_v31 = vsel %vm543_vm0, %v6557_v16, 0.0  ;;  %vm3677_vm11 = vmor %vm3675_vm10, %vm3676_vm5 }
 0xa04   : > { %v3671_v29 = vmul.f32 %v4581_v21, %v3670_v47  ;;  %3775 = vadd.xlane.f32.xlu1 %v3774_v31  ;;  %v3668_v22 = vsel %vm3667_vm9, %v4579_v51, %v3664_v55  ;;  %v3737_v25 = vpop.xlane.xlu2 %3736 }
 0xa05   : > { %v3693_v27 = vmul.f32 %v3668_v22, %v6221_v30  ;;  %v3783_v38 = vmul.f32 %v3737_v25, %v5680_v41 }
 0xa06   : > { %v3672_v50 = vmul.f32 0.5, %v3671_v29 }
 0xa07   : > { %v3712_v32 = vmul.f32 %v6267_v46, %v3693_v27  ;;  %v6570_v45 = vsub.f32 %v6323_v43, %v3783_v38 }
 0xa08   : > { %v3673_v11 = vsub.f32 1.5, %v3672_v50 }
 0xa09   : > { %v6564_v42 = vadd.f32 %v6290_v10, %v3712_v32  ;;  %v3815_v8 = vmul.f32 %v6570_v45, %v6570_v45 }
 0xa0a   : > { %v3674_v49 = vmul.f32 %v4581_v21, %v3673_v11 }
 0xa0b   : > { %v3777_v40 = vsel %vm543_vm0, %v6564_v42, 0.0  ;;  %v3831_v35 = vsel %vm543_vm0, %v3815_v8, 0.0 }
 0xa0c   : > { %3778 = vadd.xlane.f32.xlu0 %v3777_v40  ;;  %v3678_v30 = vsel %vm3677_vm11, %v4581_v21, %v3674_v49  ;;  %3832 = vadd.xlane.f32.xlu1 %v3831_v35 }
 0xa0d   : > { %v3694_v7 = vmul.f32 %v3678_v30, %v6230_v61 }
 0xa0f   : > { %v3713_v53 = vmul.f32 %v6267_v46, %v3694_v7 }
 0xa11   : > { %v6578_v6 = vadd.f32 %v6290_v10, %v3713_v53 }
 0xa12   : > { %v3740_v43 = vpop.xlane.xlu1 %3739  ;;  %v3746_v28 = vpop.xlane.xlu2 %3745 }
 0xa13   : > { %v3780_v0 = vsel %vm543_vm0, %v6578_v6, 0.0  ;;  %v3784_v24 = vmul.f32 %v3740_v43, %v5680_v41  ;;  %v3786_v61 = vmul.f32 %v3746_v28, %v5680_v41 }
 0xa14   : > { %3781 = vadd.xlane.f32.xlu2 %v3780_v0 }
 0xa15   : > { %v6585_v33 = vsub.f32 %v6395_v14, %v3784_v24  ;;  %v6588_v46 = vsub.f32 %v6398_v57, %v3786_v61 }
 0xa17   : > { %v3816_v10 = vmul.f32 %v6585_v33, %v6585_v33  ;;  %v3818_v44 = vmul.f32 %v6588_v46, %v6588_v46 }
 0xa19   : > { %v3743_v63 = vpop.xlane.xlu0 %3742  ;;  %v3834_v13 = vsel %vm543_vm0, %v3816_v10, 0.0  ;;  %v3840_v52 = vsel %vm543_vm0, %v3818_v44, 0.0 }
 0xa1a   : > { %v3785_v36 = vmul.f32 %v3743_v63, %v5680_v41  ;;  %3835 = vadd.xlane.f32.xlu0 %v3834_v13  ;;  %v3749_v26 = vpop.xlane.xlu1 %3748  ;;  %3841 = vadd.xlane.f32.xlu1 %v3840_v52 }
 0xa1b   : > { %v3787_v14 = vmul.f32 %v3749_v26, %v5680_v41 }
 0xa1c   : > { %v6599_v57 = vsub.f32 %v6461_v54, %v3785_v36 }
 0xa1d   : > { %v3755_v62 = vpop.xlane.xlu2 %3754  ;;  %v6602_v4 = vsub.f32 %v6464_v56, %v3787_v14 }
 0xa1e   : > { %v3789_v15 = vmul.f32 %v3755_v62, %v5680_v41  ;;  %v3817_v51 = vmul.f32 %v6599_v57, %v6599_v57 }
 0xa1f   : > { %v3819_v12 = vmul.f32 %v6602_v4, %v6602_v4 }
 0xa20   : > { %v6608_v18 = vsub.f32 %v6492_v48, %v3789_v15  ;;  %v3837_v17 = vsel %vm543_vm0, %v3817_v51, 0.0 }
 0xa21   : > { %3838 = vadd.xlane.f32.xlu2 %v3837_v17  ;;  %v3752_v54 = vpop.xlane.xlu0 %3751  ;;  %v3843_v39 = vsel %vm543_vm0, %v3819_v12, 0.0 }
 0xa22   : > { %v3821_v56 = vmul.f32 %v6608_v18, %v6608_v18  ;;  %v3788_v5 = vmul.f32 %v3752_v54, %v5680_v41  ;;  %3844 = vadd.xlane.f32.xlu0 %v3843_v39  ;;  %v3758_v1 = vpop.xlane.xlu1 %3757 }
 0xa23   : > { %v3790_v34 = vmul.f32 %v3758_v1, %v5680_v41 }
 0xa24   : > { %v3849_v48 = vsel %vm543_vm0, %v3821_v56, 0.0  ;;  %v6620_v19 = vsub.f32 %v6495_v20, %v3788_v5 }
 0xa25   : > { %3850 = vadd.xlane.f32.xlu1 %v3849_v48  ;;  %v3764_v60 = vpop.xlane.xlu2 %3763  ;;  %v6623_v37 = vsub.f32 %v6513_v3, %v3790_v34 }
 0xa26   : > { %v3792_v21 = vmul.f32 %v3764_v60, %v5680_v41  ;;  %v3820_v55 = vmul.f32 %v6620_v19, %v6620_v19 }
 0xa27   : > { %v3822_v31 = vmul.f32 %v6623_v37, %v6623_v37 }
 0xa28   : > { %v6629_v47 = vsub.f32 %v6516_v9, %v3792_v21  ;;  %v3846_v29 = vsel %vm543_vm0, %v3820_v55, 0.0 }
 0xa29   : > { %3847 = vadd.xlane.f32.xlu2 %v3846_v29  ;;  %v3761_v20 = vpop.xlane.xlu0 %3760  ;;  %v3852_v22 = vsel %vm543_vm0, %v3822_v31, 0.0 }
 0xa2a   : > { %v3824_v3 = vmul.f32 %v6629_v47, %v6629_v47  ;;  %v3791_v27 = vmul.f32 %v3761_v20, %v5680_v41  ;;  %3853 = vadd.xlane.f32.xlu0 %v3852_v22  ;;  %v3767_v50 = vpop.xlane.xlu1 %3766 }
 0xa2b   : > { %v3793_v32 = vmul.f32 %v3767_v50, %v5680_v41  ;;  %v6700_v50 = vld [vmem:[%s6894_s13] ss:$0 sm:$0xff] }
 0xa2c   : > { %v3858_v9 = vsel %vm543_vm0, %v3824_v3, 0.0  ;;  %v6641_v11 = vsub.f32 %v6527_v59, %v3791_v27 }
 0xa2d   : > { %3859 = vadd.xlane.f32.xlu1 %v3858_v9  ;;  %v6644_v25 = vsub.f32 %v6530_v2, %v3793_v32 }
 0xa2e   : > { %v3823_v49 = vmul.f32 %v6641_v11, %v6641_v11 }
 0xa2f   : > { %v3825_v38 = vmul.f32 %v6644_v25, %v6644_v25 }
 0xa30   : > { %v3855_v40 = vsel %vm543_vm0, %v3823_v49, 0.0 }
 0xa31   : > { %3856 = vadd.xlane.f32.xlu2 %v3855_v40  ;;  %v3770_v30 = vpop.xlane.xlu0 %3769  ;;  %v3861_v7 = vsel %vm543_vm0, %v3825_v38, 0.0 }
 0xa32   : > { %v3794_v8 = vmul.f32 %v3770_v30, %v5680_v41  ;;  %3862 = vadd.xlane.f32.xlu0 %v3861_v7  ;;  %v6707_v30 = vld [vmem:[%s6895_s14] ss:$0 sm:$0xff] }
 0xa34   : > { %v6654_v59 = vsub.f32 %v6539_v58, %v3794_v8 }
 0xa36   : > { %v3826_v2 = vmul.f32 %v6654_v59, %v6654_v59 }
 0xa38   : > { %v3864_v53 = vsel %vm543_vm0, %v3826_v2, 0.0 }
 0xa39   : > { %3865 = vadd.xlane.f32.xlu2 %v3864_v53 }
 0xa6f   : > { %v3773_v35 = vpop.xlane.xlu2 %3772 }
 0xa70   : > { %v3795_v0 = vmul.f32 %v3773_v35, %v5680_v41 }
 0xa72   : > { %v6661_v43 = vsub.f32 %v6550_v23, %v3795_v0 }
 0xa74   : > { %v3827_v28 = vmul.f32 %v6661_v43, %v6661_v43 }
 0xa76   : > { %v3867_v24 = vsel %vm543_vm0, %v3827_v28, 0.0 }
 0xa77   : > { %v3776_v61 = vpop.xlane.xlu1 %3775  ;;  %3868 = vadd.xlane.f32.xlu1 %v3867_v24 }
 0xa78   : > { %v3796_v58 = vmul.f32 %v3776_v61, %v5680_v41 }
 0xa7a   : > { %v6668_v10 = vsub.f32 %v6557_v16, %v3796_v58 }
 0xa7c   : > { %v3828_v44 = vmul.f32 %v6668_v10, %v6668_v10 }
 0xa7e   : > { %v3870_v63 = vsel %vm543_vm0, %v3828_v44, 0.0 }
 0xa7f   : > { %3871 = vadd.xlane.f32.xlu0 %v3870_v63  ;;  %v3779_v23 = vpop.xlane.xlu0 %3778  ;;  %v3833_v36 = vpop.xlane.xlu1 %3832 }
 0xa80   : > { %v3797_v13 = vmul.f32 %v3779_v23, %v5680_v41  ;;  %v3879_v14 = vmul.f32 %v3833_v36, %v5680_v41 }
 0xa82   : > { %v6675_v52 = vsub.f32 %v6564_v42, %v3797_v13  ;;  %v3895_v62 = vadd.f32 1e-05, %v3879_v14 }
 0xa84   : > { %v3829_v26 = vmul.f32 %v6675_v52, %v6675_v52  ;;  %4582 = vrsqrt.f32 %v3895_v62  ;;  %vm3917_vm13 = vweird.f32 %v3895_v62 }
 0xa86   : > { %v3873_v16 = vsel %vm543_vm0, %v3829_v26, 0.0 }
 0xa87   : > { %v3782_v15 = vpop.xlane.xlu2 %3781  ;;  %3874 = vadd.xlane.f32.xlu2 %v3873_v16 }
 0xa88   : > { %v3798_v51 = vmul.f32 %v3782_v15, %v5680_v41 }
 0xa8a   : > { %v6683_v12 = vsub.f32 %v6578_v6, %v3798_v51  ;;  %v4583_v54 = vpop.eup %4582 }
 0xa8b   : > { %v3912_v5 = vmul.f32 %v4583_v54, %v3895_v62  ;;  %vm3918_vm12 = vweird.f32 %v4583_v54 }
 0xa8c   : > { %v3830_v42 = vmul.f32 %v6683_v12, %v6683_v12  ;;  %vm3919_vm14 = vmor %vm3917_vm13, %vm3918_vm12 }
 0xa8d   : > { %v3842_v39 = vpop.xlane.xlu1 %3841  ;;  %v3836_v56 = vpop.xlane.xlu0 %3835  ;;  %v3913_v48 = vmul.f32 %v4583_v54, %v3912_v5 }
 0xa8e   : > { %v3876_v17 = vsel %vm543_vm0, %v3830_v42, 0.0  ;;  %v3882_v1 = vmul.f32 %v3842_v39, %v5680_v41  ;;  %v3880_v34 = vmul.f32 %v3836_v56, %v5680_v41 }
 0xa8f   : > { %3877 = vadd.xlane.f32.xlu1 %v3876_v17  ;;  %v3914_v6 = vmul.f32 0.5, %v3913_v48 }
 0xa90   : > { %v3898_v60 = vadd.f32 1e-05, %v3882_v1  ;;  %v6690_v21 = vadd.f32 1e-05, %v3880_v34 }
 0xa91   : > { %v3915_v31 = vsub.f32 1.5, %v3914_v6 }
 0xa92   : > { %4584 = vrsqrt.f32 %v3898_v60  ;;  %vm3947_vm15 = vweird.f32 %v3898_v60  ;;  %vm3927_vm3 = vweird.f32 %v6690_v21 }
 0xa93   : > { %4586 = vrsqrt.f32 %v6690_v21  ;;  %v3916_v22 = vmul.f32 %v4583_v54, %v3915_v31 }
 0xa94   : > { %v3839_v55 = vpop.xlane.xlu2 %3838 }
 0xa95   : > { %v3881_v29 = vmul.f32 %v3839_v55, %v5680_v41  ;;  %v3845_v20 = vpop.xlane.xlu0 %3844  ;;  %v3920_v49 = vsel %vm3919_vm14, %v4583_v54, %v3916_v22 }
 0xa96   : > { %v3883_v27 = vmul.f32 %v3845_v20, %v5680_v41  ;;  %v4071_v7 = vmul.f32 %v3920_v49, %v6570_v45 }
 0xa97   : > { %v6694_v3 = vadd.f32 1e-05, %v3881_v29 }
 0xa98   : > { %v3851_v32 = vpop.xlane.xlu1 %3850  ;;  %v4585_v9 = vpop.eup %4584  ;;  %v6710_v2 = vadd.f32 1e-05, %v3883_v27  ;;  %v4090_v0 = vmul.f32 %v6700_v50, %v4071_v7 }
 0xa99   : > { %v3885_v38 = vmul.f32 %v3851_v32, %v5680_v41  ;;  %4588 = vrsqrt.f32 %v6694_v3  ;;  %v4587_v40 = vpop.eup %4586  ;;  %v3942_v8 = vmul.f32 %v4585_v9, %v3898_v60  ;;  %vm3948_vm1 = vweird.f32 %v4585_v9 }
 0xa9a   : > { %v3922_v53 = vmul.f32 %v4587_v40, %v6690_v21  ;;  %4590 = vrsqrt.f32 %v6710_v2  ;;  %v4109_v58 = vadd.f32 %v6707_v30, %v4090_v0  ;;  %vm3928_vm2 = vweird.f32 %v4587_v40  ;;  %vm3949_vm6 = vmor %vm3947_vm15, %vm3948_vm1 }
 0xa9b   : > { %v6713_v35 = vadd.f32 1e-05, %v3885_v38  ;;  %v3943_v28 = vmul.f32 %v4585_v9, %v3942_v8  ;;  %vm3937_vm4 = vweird.f32 %v6694_v3  ;;  %vm3929_vm7 = vmor %vm3927_vm3, %vm3928_vm2  ;;  %vm3957_vm8 = vweird.f32 %v6710_v2 }
 0xa9c   : > { %v3848_v24 = vpop.xlane.xlu2 %3847  ;;  %v3923_v45 = vmul.f32 %v4587_v40, %v3922_v53  ;;  %4125 = vst.msk [vmem:[%s6722_s24] sm:$0xff] %vm543_vm0, %v4109_v58 }
 0xa9d   : > { %4592 = vrsqrt.f32 %v6713_v35  ;;  %v3884_v61 = vmul.f32 %v3848_v24, %v5680_v41  ;;  %v3944_v44 = vmul.f32 0.5, %v3943_v28  ;;  %v3854_v63 = vpop.xlane.xlu0 %3853  ;;  %vm3977_vm12 = vweird.f32 %v6713_v35 }
 0xa9e   : > { %v3924_v13 = vmul.f32 0.5, %v3923_v45  ;;  %v3886_v26 = vmul.f32 %v3854_v63, %v5680_v41 }
 0xa9f   : > { %v4589_v23 = vpop.eup %4588  ;;  %v6727_v36 = vadd.f32 1e-05, %v3884_v61  ;;  %v3945_v14 = vsub.f32 1.5, %v3944_v44 }
 0xaa0   : > { %v3932_v16 = vmul.f32 %v4589_v23, %v6694_v3  ;;  %v3860_v62 = vpop.xlane.xlu1 %3859  ;;  %v3925_v15 = vsub.f32 1.5, %v3924_v13  ;;  %v6735_v42 = vpop.eup %4590  ;;  %v6745_v34 = vadd.f32 1e-05, %v3886_v26  ;;  %vm3938_vm9 = vweird.f32 %v4589_v23 }
 0xaa1   : > { %v3888_v51 = vmul.f32 %v3860_v62, %v5680_v41  ;;  %4594 = vrsqrt.f32 %v6727_v36  ;;  %v3946_v17 = vmul.f32 %v4585_v9, %v3945_v14  ;;  %v3952_v5 = vmul.f32 %v6735_v42, %v6710_v2  ;;  %vm3939_vm11 = vmor %vm3937_vm4, %vm3938_vm9 }
 0xaa2   : > { %v3933_v54 = vmul.f32 %v4589_v23, %v3932_v16  ;;  %v3926_v56 = vmul.f32 %v4587_v40, %v3925_v15  ;;  %vm3958_vm5 = vweird.f32 %v6735_v42  ;;  %vm3967_vm1 = vweird.f32 %v6727_v36 }
 0xaa3   : > { %v6739_v39 = vpop.eup %4592  ;;  %v6743_v1 = vadd.f32 1e-05, %v3888_v51  ;;  %v3950_v48 = vsel %vm3949_vm6, %v4585_v9, %v3946_v17  ;;  %v3953_v29 = vmul.f32 %v6735_v42, %v3952_v5  ;;  %vm3959_vm13 = vmor %vm3957_vm8, %vm3958_vm5  ;;  %vm3987_vm8 = vweird.f32 %v6745_v34 }
 0xaa4   : > { %v3972_v60 = vmul.f32 %v6739_v39, %v6713_v35  ;;  %v3934_v21 = vmul.f32 0.5, %v3933_v54  ;;  %v3857_v6 = vpop.xlane.xlu2 %3856  ;;  %v4074_v55 = vmul.f32 %v3950_v48, %v6588_v46  ;;  %v3930_v31 = vsel %vm3929_vm7, %v4587_v40, %v3926_v56 }
 0xaa5   : > { %4596 = vrsqrt.f32 %v6743_v1  ;;  %v4072_v20 = vmul.f32 %v3930_v31, %v6585_v33  ;;  %v3954_v49 = vmul.f32 0.5, %v3953_v29  ;;  %vm3978_vm10 = vweird.f32 %v6739_v39  ;;  %v3863_v0 = vpop.xlane.xlu0 %3862 }
 0xaa6   : > { %v3973_v22 = vmul.f32 %v6739_v39, %v3972_v60  ;;  %v3935_v27 = vsub.f32 1.5, %v3934_v21  ;;  %v4093_v9 = vmul.f32 %v6700_v50, %v4074_v55  ;;  %4598 = vrsqrt.f32 %v6745_v34  ;;  %vm3979_vm14 = vmor %vm3977_vm12, %vm3978_vm10 }
 0xaa7   : > { %v6756_v32 = vpop.eup %4594  ;;  %v4091_v46 = vmul.f32 %v6700_v50, %v4072_v20  ;;  %v3955_v8 = vsub.f32 1.5, %v3954_v49  ;;  %v3887_v53 = vmul.f32 %v3857_v6, %v5680_v41  ;;  %v3889_v35 = vmul.f32 %v3863_v0, %v5680_v41 }
 0xaa8   : > { %v3974_v38 = vmul.f32 0.5, %v3973_v22  ;;  %v3936_v40 = vmul.f32 %v4589_v23, %v3935_v27  ;;  %v3962_v33 = vmul.f32 %v6756_v32, %v6727_v36  ;;  %v4112_v7 = vadd.f32 %v6707_v30, %v4093_v9 }
 0xaa9   : > { %v4110_v28 = vadd.f32 %v6707_v30, %v4091_v46  ;;  %v3956_v3 = vmul.f32 %v6735_v42, %v3955_v8  ;;  %v6776_v63 = vadd.f32 1e-05, %v3887_v53  ;;  %vm3968_vm15 = vweird.f32 %v6756_v32 }
 0xaaa   : > { %v3975_v24 = vsub.f32 1.5, %v3974_v38  ;;  %v3940_v45 = vsel %vm3939_vm11, %v4589_v23, %v3936_v40  ;;  %v3963_v61 = vmul.f32 %v6756_v32, %v3962_v33  ;;  %4128 = vst.msk [vmem:[%s6722_s24 + $0x18] sm:$0xff] %vm543_vm0, %v4112_v7  ;;  %vm3969_vm3 = vmor %vm3967_vm1, %vm3968_vm15  ;;  %vm4007_vm4 = vweird.f32 %v6743_v1 }
 0xaab   : > { %v4597_v58 = vpop.eup %4596  ;;  %v4073_v44 = vmul.f32 %v3940_v45, %v6599_v57  ;;  %4126 = vst.msk [vmem:[%s6722_s24 + $0x8] sm:$0xff] %vm543_vm0, %v4110_v28  ;;  %v3960_v16 = vsel %vm3959_vm13, %v6735_v42, %v3956_v3  ;;  %4600 = vrsqrt.f32 %v6776_v63  ;;  %vm3997_vm10 = vweird.f32 %v6776_v63 }
 0xaac   : > { %v3976_v13 = vmul.f32 %v6739_v39, %v3975_v24  ;;  %v4002_v23 = vmul.f32 %v4597_v58, %v6743_v1  ;;  %v3964_v26 = vmul.f32 0.5, %v3963_v61  ;;  %v4599_v14 = vpop.eup %4598  ;;  %v4075_v62 = vmul.f32 %v3960_v16, %v6602_v4  ;;  %v3866_v17 = vpop.xlane.xlu2 %3865 }
 0xaad   : > { %v4092_v57 = vmul.f32 %v6700_v50, %v4073_v44  ;;  %v3982_v42 = vmul.f32 %v4599_v14, %v6745_v34  ;;  %vm4008_vm2 = vweird.f32 %v4597_v58  ;;  %v3890_v36 = vmul.f32 %v3866_v17, %v5680_v41 }
 0xaae   : > { %v3980_v2 = vsel %vm3979_vm14, %v6739_v39, %v3976_v13  ;;  %v4003_v15 = vmul.f32 %v4597_v58, %v4002_v23  ;;  %v3965_v51 = vsub.f32 1.5, %v3964_v26  ;;  %v4094_v5 = vmul.f32 %v6700_v50, %v4075_v62  ;;  %vm4009_vm6 = vmor %vm4007_vm4, %vm4008_vm2 }
 0xaaf   : > { %v4077_v54 = vmul.f32 %v3980_v2, %v6608_v18  ;;  %v4111_v56 = vadd.f32 %v6707_v30, %v4092_v57  ;;  %v6801_v39 = vadd.f32 1e-05, %v3889_v35  ;;  %v3983_v18 = vmul.f32 %v4599_v14, %v3982_v42 }
 0xab0   : > { %v4004_v48 = vmul.f32 0.5, %v4003_v15  ;;  %v3966_v60 = vmul.f32 %v6756_v32, %v3965_v51  ;;  %v4113_v21 = vadd.f32 %v6707_v30, %v4094_v5  ;;  %v3906_v49 = vadd.f32 1e-05, %v3890_v36 }
 0xab1   : > { %v4096_v4 = vmul.f32 %v6700_v50, %v4077_v54  ;;  %4127 = vst.msk [vmem:[%s6722_s24 + $0x10] sm:$0xff] %vm543_vm0, %v4111_v56  ;;  %4602 = vrsqrt.f32 %v6801_v39  ;;  %v4601_v31 = vpop.eup %4600  ;;  %v3984_v22 = vmul.f32 0.5, %v3983_v18  ;;  %vm3988_vm7 = vweird.f32 %v4599_v14 }
 0xab2   : > { %v4005_v6 = vsub.f32 1.5, %v4004_v48  ;;  %v3970_v55 = vsel %vm3969_vm3, %v6756_v32, %v3966_v60  ;;  %4129 = vst.msk [vmem:[%s6722_s24 + $0x20] sm:$0xff] %vm543_vm0, %v4113_v21  ;;  %v3992_v9 = vmul.f32 %v4601_v31, %v6776_v63  ;;  %4604 = vrsqrt.f32 %v3906_v49  ;;  %vm3989_vm9 = vmor %vm3987_vm8, %vm3988_vm7 }
 0xab3   : > { %v4115_v29 = vadd.f32 %v6707_v30, %v4096_v4  ;;  %v4076_v20 = vmul.f32 %v3970_v55, %v6620_v19  ;;  %v3985_v46 = vsub.f32 1.5, %v3984_v22  ;;  %vm3998_vm5 = vweird.f32 %v4601_v31 }
 0xab4   : > { %v4006_v27 = vmul.f32 %v4597_v58, %v4005_v6  ;;  %v3993_v19 = vmul.f32 %v4601_v31, %v3992_v9  ;;  %vm3999_vm11 = vmor %vm3997_vm10, %vm3998_vm5  ;;  %vm4017_vm13 = vweird.f32 %v6801_v39  ;;  %vm4027_vm1 = vweird.f32 %v3906_v49 }
 0xab5   : > { %4131 = vst.msk [vmem:[%s6722_s24 + $0x30] sm:$0xff] %vm543_vm0, %v4115_v29  ;;  %v4095_v32 = vmul.f32 %v6700_v50, %v4076_v20  ;;  %v3986_v1 = vmul.f32 %v4599_v14, %v3985_v46 }
 0xab6   : > { %v4010_v38 = vsel %vm4009_vm6, %v4597_v58, %v4006_v27  ;;  %v3994_v8 = vmul.f32 0.5, %v3993_v19 }
 0xab7   : > { %v4080_v40 = vmul.f32 %v4010_v38, %v6629_v47  ;;  %v4114_v33 = vadd.f32 %v6707_v30, %v4095_v32  ;;  %v4603_v7 = vpop.eup %4602  ;;  %v3990_v0 = vsel %vm3989_vm9, %v4599_v14, %v3986_v1 }
 0xab8   : > { %v4012_v28 = vmul.f32 %v4603_v7, %v6801_v39  ;;  %v4078_v24 = vmul.f32 %v3990_v0, %v6623_v37  ;;  %v3995_v45 = vsub.f32 1.5, %v3994_v8  ;;  %v4605_v34 = vpop.eup %4604  ;;  %vm4018_vm12 = vweird.f32 %v4603_v7 }
 0xab9   : > { %v4099_v53 = vmul.f32 %v6700_v50, %v4080_v40  ;;  %4130 = vst.msk [vmem:[%s6722_s24 + $0x28] sm:$0xff] %vm543_vm0, %v4114_v33  ;;  %v4022_v13 = vmul.f32 %v4605_v34, %v3906_v49  ;;  %vm4019_vm14 = vmor %vm4017_vm13, %vm4018_vm12  ;;  %vm4028_vm15 = vweird.f32 %v4605_v34 }
 0xaba   : > { %v4013_v61 = vmul.f32 %v4603_v7, %v4012_v28  ;;  %v4097_v58 = vmul.f32 %v6700_v50, %v4078_v24  ;;  %v3996_v44 = vmul.f32 %v4601_v31, %v3995_v45  ;;  %vm4029_vm2 = vmor %vm4027_vm1, %vm4028_vm15 }
 0xabb   : > { %v4118_v47 = vadd.f32 %v6707_v30, %v4099_v53  ;;  %v4023_v14 = vmul.f32 %v4605_v34, %v4022_v13 }
 0xabc   : > { %v4014_v3 = vmul.f32 0.5, %v4013_v61  ;;  %v4116_v23 = vadd.f32 %v6707_v30, %v4097_v58  ;;  %v4000_v37 = vsel %vm3999_vm11, %v4601_v31, %v3996_v44 }
 0xabd   : > { %4134 = vst.msk [vmem:[%s6722_s24 + $0x48] sm:$0xff] %vm543_vm0, %v4118_v47  ;;  %v4079_v26 = vmul.f32 %v4000_v37, %v6641_v11  ;;  %v4024_v63 = vmul.f32 0.5, %v4023_v14 }
 0xabe   : > { %v4015_v35 = vsub.f32 1.5, %v4014_v3  ;;  %4132 = vst.msk [vmem:[%s6722_s24 + $0x38] sm:$0xff] %vm543_vm0, %v4116_v23 }
 0xabf   : > { %v4098_v57 = vmul.f32 %v6700_v50, %v4079_v26  ;;  %v4025_v15 = vsub.f32 1.5, %v4024_v63 }
 0xac0   : > { %v4016_v16 = vmul.f32 %v4603_v7, %v4015_v35 }
 0xac1   : > { %v4117_v2 = vadd.f32 %v6707_v30, %v4098_v57  ;;  %v4026_v51 = vmul.f32 %v4605_v34, %v4025_v15 }
 0xac2   : > { %v4020_v62 = vsel %vm4019_vm14, %v4603_v7, %v4016_v16 }
 0xac3   : > { %v4081_v11 = vmul.f32 %v4020_v62, %v6644_v25  ;;  %4133 = vst.msk [vmem:[%s6722_s24 + $0x40] sm:$0xff] %vm543_vm0, %v4117_v2  ;;  %v4030_v54 = vsel %vm4029_vm2, %v4605_v34, %v4026_v51 }
 0xac4   : > { %v4082_v42 = vmul.f32 %v4030_v54, %v6654_v59 }
 0xac5   : > { %v4100_v17 = vmul.f32 %v6700_v50, %v4081_v11 }
 0xac6   : > { %v4101_v5 = vmul.f32 %v6700_v50, %v4082_v42 }
 0xac7   : > { %v4119_v56 = vadd.f32 %v6707_v30, %v4100_v17 }
 0xac8   : > { %v4120_v48 = vadd.f32 %v6707_v30, %v4101_v5 }
 0xac9   : > { %4135 = vst.msk [vmem:[%s6722_s24 + $0x50] sm:$0xff] %vm543_vm0, %v4119_v56 }
 0xaca   : > { %4136 = vst.msk [vmem:[%s6722_s24 + $0x58] sm:$0xff] %vm543_vm0, %v4120_v48 }
 0xaea   : > { %v3869_v25 = vpop.xlane.xlu1 %3868 }
 0xaeb   : > { %v3891_v60 = vmul.f32 %v3869_v25, %v5680_v41 }
 0xaed   : > { %v3907_v39 = vadd.f32 1e-05, %v3891_v60 }
 0xaef   : > { %4606 = vrsqrt.f32 %v3907_v39  ;;  %vm4037_vm4 = vweird.f32 %v3907_v39 }
 0xaf2   : > { %v3872_v4 = vpop.xlane.xlu0 %3871 }
 0xaf3   : > { %v3892_v18 = vmul.f32 %v3872_v4, %v5680_v41 }
 0xaf5   : > { %v4607_v36 = vpop.eup %4606  ;;  %v3908_v21 = vadd.f32 1e-05, %v3892_v18 }
 0xaf6   : > { %v4032_v6 = vmul.f32 %v4607_v36, %v3907_v39  ;;  %vm4038_vm3 = vweird.f32 %v4607_v36 }
 0xaf7   : > { %4608 = vrsqrt.f32 %v3908_v21  ;;  %vm4039_vm6 = vmor %vm4037_vm4, %vm4038_vm3  ;;  %vm4047_vm8 = vweird.f32 %v3908_v21 }
 0xaf8   : > { %v4033_v59 = vmul.f32 %v4607_v36, %v4032_v6 }
 0xafa   : > { %v4034_v55 = vmul.f32 0.5, %v4033_v59  ;;  %v3875_v31 = vpop.xlane.xlu2 %3874 }
 0xafb   : > { %v3893_v29 = vmul.f32 %v3875_v31, %v5680_v41 }
 0xafc   : > { %v4035_v20 = vsub.f32 1.5, %v4034_v55 }
 0xafd   : > { %v4609_v22 = vpop.eup %4608  ;;  %v3909_v27 = vadd.f32 1e-05, %v3893_v29 }
 0xafe   : > { %v4036_v9 = vmul.f32 %v4607_v36, %v4035_v20  ;;  %v4042_v49 = vmul.f32 %v4609_v22, %v3908_v21  ;;  %vm4048_vm7 = vweird.f32 %v4609_v22 }
 0xaff   : > { %4610 = vrsqrt.f32 %v3909_v27  ;;  %vm4049_vm9 = vmor %vm4047_vm8, %vm4048_vm7  ;;  %vm4057_vm10 = vweird.f32 %v3909_v27 }
 0xb00   : > { %v4040_v32 = vsel %vm4039_vm6, %v4607_v36, %v4036_v9  ;;  %v4043_v46 = vmul.f32 %v4609_v22, %v4042_v49 }
 0xb01   : > { %v4083_v38 = vmul.f32 %v4040_v32, %v6661_v43 }
 0xb02   : > { %v4044_v19 = vmul.f32 0.5, %v4043_v46  ;;  %v3878_v40 = vpop.xlane.xlu1 %3877 }
 0xb03   : > { %v4102_v33 = vmul.f32 %v6700_v50, %v4083_v38  ;;  %v3894_v1 = vmul.f32 %v3878_v40, %v5680_v41 }
 0xb04   : > { %v4045_v7 = vsub.f32 1.5, %v4044_v19 }
 0xb05   : > { %v4611_v8 = vpop.eup %4610  ;;  %v4121_v53 = vadd.f32 %v6707_v30, %v4102_v33  ;;  %v3910_v0 = vadd.f32 1e-05, %v3894_v1 }
 0xb06   : > { %v4046_v28 = vmul.f32 %v4609_v22, %v4045_v7  ;;  %v4052_v24 = vmul.f32 %v4611_v8, %v3909_v27  ;;  %vm4058_vm5 = vweird.f32 %v4611_v8 }
 0xb07   : > { %4137 = vst.msk [vmem:[%s6722_s24 + $0x60] sm:$0xff] %vm543_vm0, %v4121_v53  ;;  %4612 = vrsqrt.f32 %v3910_v0  ;;  %vm4059_vm11 = vmor %vm4057_vm10, %vm4058_vm5  ;;  %vm4067_vm13 = vweird.f32 %v3910_v0 }
 0xb08   : > { %v4050_v43 = vsel %vm4049_vm9, %v4609_v22, %v4046_v28  ;;  %v4053_v45 = vmul.f32 %v4611_v8, %v4052_v24 }
 0xb09   : > { %v4084_v47 = vmul.f32 %v4050_v43, %v6668_v10 }
 0xb0a   : > { %v4054_v61 = vmul.f32 0.5, %v4053_v45 }
 0xb0b   : > { %v4103_v41 = vmul.f32 %v6700_v50, %v4084_v47 }
 0xb0c   : > { %v4055_v34 = vsub.f32 1.5, %v4054_v61 }
 0xb0d   : > { %v4613_v58 = vpop.eup %4612  ;;  %v4122_v44 = vadd.f32 %v6707_v30, %v4103_v41 }
 0xb0e   : > { %v4056_v3 = vmul.f32 %v4611_v8, %v4055_v34  ;;  %v4062_v13 = vmul.f32 %v4613_v58, %v3910_v0  ;;  %vm4068_vm12 = vweird.f32 %v4613_v58 }
 0xb0f   : > { %4138 = vst.msk [vmem:[%s6722_s24 + $0x68] sm:$0xff] %vm543_vm0, %v4122_v44  ;;  %vm4069_vm14 = vmor %vm4067_vm13, %vm4068_vm12 }
 0xb10   : > { %v4060_v23 = vsel %vm4059_vm11, %v4611_v8, %v4056_v3  ;;  %v4063_v37 = vmul.f32 %v4613_v58, %v4062_v13 }
 0xb11   : > { %v4085_v10 = vmul.f32 %v4060_v23, %v6675_v52 }
 0xb12   : > { %v4064_v26 = vmul.f32 0.5, %v4063_v37 }
 0xb13   : > { %v4104_v35 = vmul.f32 %v6700_v50, %v4085_v10 }
 0xb14   : > { %v4065_v14 = vsub.f32 1.5, %v4064_v26 }
 0xb15   : > { %v4123_v57 = vadd.f32 %v6707_v30, %v4104_v35 }
 0xb16   : > { %v4066_v16 = vmul.f32 %v4613_v58, %v4065_v14 }
 0xb17   : > { %4139 = vst.msk [vmem:[%s6722_s24 + $0x70] sm:$0xff] %vm543_vm0, %v4123_v57 }
 0xb18   : > { %v4070_v63 = vsel %vm4069_vm14, %v4613_v58, %v4066_v16 }
 0xb19   : > { %v4086_v2 = vmul.f32 %v4070_v63, %v6683_v12 }
 0xb1b   : > { %v4105_v62 = vmul.f32 %v6700_v50, %v4086_v2 }
 0xb1d   : > { %v4124_v15 = vadd.f32 %v6707_v30, %v4105_v62 }
 0xb1f   : > { %4140 = vst.msk [vmem:[%s6722_s24 + $0x78] sm:$0xff] %vm543_vm0, %v4124_v15 }
 0xb20 PF: > { %s25_s18 = sadd.s32 1, %s4636_s18  }
 0xb21   : > { %p22_p4 = scmp.ge.s32.totalorder %s25_s18, 4  }
 0xb23   :  { %24 = sbr.rel (!%p22_p4) target bundleno = 1 (0x1), region = 111 }

</bundles_post_ra>
